<compile_context>
chip_gen: v7x
topology: tpu7x:2x2x1
jax: 0.10.0
libtpu: 0.0.40
codegen_flags: <defaults>
</compile_context>

<pallas_src>
import functools

import jax
import jax.numpy as jnp
import numpy as np
from jax.experimental import pallas as pl
from jax.experimental.pallas import tpu as pltpu

POOL_SIZES = (5, 9, 13)                 # as in the PyTorch module
_MAXPAD = max(POOL_SIZES) // 2


def _slide_max(a, k, axis, start, length):
    """out[i] = max(a[start+i : start+i+k]) along `axis`, for i in [0, length)."""
    out = None
    for t in range(k):
        idx = [slice(None)] * a.ndim
        idx[axis] = slice(start + t, start + t + length)
        v = a[tuple(idx)]
        out = v if out is None else jnp.maximum(out, v)
    return out


def _spp_kernel(x_ref, o_ref, pad_ref, *, pool_sizes):
    # x_ref  : (1, H, W, Cb)
    # o_ref  : (1, n_pools + 1, H, W, Cb)   slots = [p13, p9, p5, identity]
    # pad_ref: (H + 2P, W + 2P, Cb) VMEM scratch
    _, H, W, _ = x_ref.shape
    P = max(pool_sizes) // 2

    # Build the -inf halo in VMEM (single HBM read of x; matches PyTorch's
    # implicit -inf padding of max_pool2d).
    pad_ref[...] = jnp.full(pad_ref.shape, -jnp.inf, dtype=pad_ref.dtype)
    pad_ref[pl.ds(P, H), pl.ds(P, W), :] = x_ref[0]
    xp = pad_ref[...]                                   # (H+2P, W+2P, Cb)

    # Reversed pool order first (maxpools[::-1] in the PyTorch forward).
    for slot, k in enumerate(reversed(pool_sizes)):
        r = k // 2
        rows = _slide_max(xp, k, axis=0, start=P - r, length=H)      # (H, W+2P, Cb)
        pooled = _slide_max(rows, k, axis=1, start=P - r, length=W)  # (H, W, Cb)
        o_ref[0, slot] = pooled.astype(o_ref.dtype)

    # Identity branch rides along in the same output block.
    o_ref[0, len(pool_sizes)] = x_ref[0]


def spatial_pyramid_pooling(x_nchw, pool_sizes=POOL_SIZES):
    """SpatialPyramidPooling forward: (N, C, H, W) -> (N, (len+1)*C, H, W)."""
    N, C, H, W = x_nchw.shape
    n_out = len(pool_sizes) + 1
    P = max(pool_sizes) // 2

    # Lane-dense channel tiling: 128-wide blocks when the channel count allows.
    cb = 128 if C % 128 == 0 else C
    n_cblk = C // cb

    x_nhwc = jnp.transpose(x_nchw, (0, 2, 3, 1))        # NCHW -> NHWC (glue)

    out = pl.pallas_call(
        functools.partial(_spp_kernel, pool_sizes=tuple(pool_sizes)),
        out_shape=jax.ShapeDtypeStruct((N, n_out, H, W, C), x_nhwc.dtype),
        grid=(N, n_cblk),
        in_specs=[pl.BlockSpec((1, H, W, cb), lambda b, c: (b, 0, 0, c))],
        out_specs=pl.BlockSpec((1, n_out, H, W, cb),
                               lambda b, c: (b, 0, 0, 0, c)),
        scratch_shapes=[pltpu.VMEM((H + 2 * P, W + 2 * P, cb), x_nhwc.dtype)],
        compiler_params=pltpu.CompilerParams(
            dimension_semantics=("parallel", "parallel")),
    )(x_nhwc)

    # (N, n_out, H, W, C) -> (N, n_out, C, H, W) -> (N, n_out*C, H, W)
    return jnp.transpose(out, (0, 1, 4, 2, 3)).reshape(N, n_out * C, H, W)


# --------------------------------------------------------------------------
# Pure-JAX reference (PyTorch-equivalent semantics) for correctness check
# --------------------------------------------------------------------------
def _maxpool_ref(x_nchw, k):
    pad = k // 2
    return jax.lax.reduce_window(
        x_nchw, -jnp.inf, jax.lax.max,
        window_dimensions=(1, 1, k, k),
        window_strides=(1, 1, 1, 1),
        padding=((0, 0), (0, 0), (pad, pad), (pad, pad)))


def spp_ref(x_nchw, pool_sizes=POOL_SIZES):
    feats = [_maxpool_ref(x_nchw, k) for k in reversed(pool_sizes)]
    return jnp.concatenate(feats + [x_nchw], axis=1)


if __name__ == "__main__":
    key = jax.random.PRNGKey(0)
    x = jax.random.normal(key, (2, 4, 16, 16), jnp.float32)   # NCHW

    fwd = jax.jit(spatial_pyramid_pooling)
    out = jax.block_until_ready(fwd(x))

    ref = jax.block_until_ready(spp_ref(x))
    assert out.shape == (2, 16, 16, 16), out.shape
    np.testing.assert_allclose(np.asarray(out), np.asarray(ref), rtol=0, atol=0)
    print("KERNEL_OK")
</pallas_src>

<mosaic_0001>
module attributes {stable_mosaic.version = 11 : i64} {
  func.func @_spp_kernel(%arg0: i32, %arg1: i32, %arg2: memref<1x16x16x4xf32, #tpu.memory_space<vmem>>, %arg3: memref<1x4x16x16x4xf32, #tpu.memory_space<vmem>>, %arg4: memref<28x28x4xf32, #tpu.memory_space<vmem>>) attributes {dimension_semantics = [#tpu.dimension_semantics<parallel>, #tpu.dimension_semantics<parallel>], iteration_bounds = array<i64: 2, 1>, scalar_prefetch = 0 : i64, scratch_operands = 1 : i64, tpu.core_type = #tpu.core_type<tc>, window_params = [{transform_indices = @transform_0, window_bounds = array<i64: 1, 16, 16, 4>}, {transform_indices = @transform_1, window_bounds = array<i64: 1, 4, 16, 16, 4>}]} {
    %cst = arith.constant 0xFF800000 : f32
    %0 = vector.broadcast %cst : f32 to vector<28x28x4xf32>
    %c0 = arith.constant 0 : index
    %c0_0 = arith.constant 0 : index
    %c0_1 = arith.constant 0 : index
    %1 = vector.load %arg4[%c0, %c0_0, %c0_1] : memref<28x28x4xf32, #tpu.memory_space<vmem>>, vector<28x28x4xf32>
    tpu.vector_store %arg4[%c0, %c0_0, %c0_1], %0 {strides = array<i32>} : memref<28x28x4xf32, #tpu.memory_space<vmem>>, vector<28x28x4xf32>,
    %c0_2 = arith.constant 0 : index
    %c0_3 = arith.constant 0 : index
    %c0_4 = arith.constant 0 : index
    %c0_5 = arith.constant 0 : index
    %2 = vector.load %arg2[%c0_2, %c0_3, %c0_4, %c0_5] : memref<1x16x16x4xf32, #tpu.memory_space<vmem>>, vector<1x16x16x4xf32>
    %3 = vector.shape_cast %2 : vector<1x16x16x4xf32> to vector<16x16x4xf32>
    %c6 = arith.constant 6 : index
    %c6_6 = arith.constant 6 : index
    %c0_7 = arith.constant 0 : index
    %4 = vector.load %arg4[%c6, %c6_6, %c0_7] : memref<28x28x4xf32, #tpu.memory_space<vmem>>, vector<16x16x4xf32>
    tpu.vector_store %arg4[%c6, %c6_6, %c0_7], %3 {strides = array<i32>} : memref<28x28x4xf32, #tpu.memory_space<vmem>>, vector<16x16x4xf32>,
    %c0_8 = arith.constant 0 : index
    %c0_9 = arith.constant 0 : index
    %c0_10 = arith.constant 0 : index
    %5 = vector.load %arg4[%c0_8, %c0_9, %c0_10] : memref<28x28x4xf32, #tpu.memory_space<vmem>>, vector<28x28x4xf32>
    %6 = vector.extract_strided_slice %5 {offsets = [0, 0, 0], sizes = [16, 28, 4], strides = [1, 1, 1]} : vector<28x28x4xf32> to vector<16x28x4xf32>
    %7 = vector.extract_strided_slice %5 {offsets = [1, 0, 0], sizes = [16, 28, 4], strides = [1, 1, 1]} : vector<28x28x4xf32> to vector<16x28x4xf32>
    %8 = arith.maximumf %6, %7 : vector<16x28x4xf32>
    %9 = vector.extract_strided_slice %5 {offsets = [2, 0, 0], sizes = [16, 28, 4], strides = [1, 1, 1]} : vector<28x28x4xf32> to vector<16x28x4xf32>
    %10 = arith.maximumf %8, %9 : vector<16x28x4xf32>
    %11 = vector.extract_strided_slice %5 {offsets = [3, 0, 0], sizes = [16, 28, 4], strides = [1, 1, 1]} : vector<28x28x4xf32> to vector<16x28x4xf32>
    %12 = arith.maximumf %10, %11 : vector<16x28x4xf32>
    %13 = vector.extract_strided_slice %5 {offsets = [4, 0, 0], sizes = [16, 28, 4], strides = [1, 1, 1]} : vector<28x28x4xf32> to vector<16x28x4xf32>
    %14 = arith.maximumf %12, %13 : vector<16x28x4xf32>
    %15 = vector.extract_strided_slice %5 {offsets = [5, 0, 0], sizes = [16, 28, 4], strides = [1, 1, 1]} : vector<28x28x4xf32> to vector<16x28x4xf32>
    %16 = arith.maximumf %14, %15 : vector<16x28x4xf32>
    %17 = vector.extract_strided_slice %5 {offsets = [6, 0, 0], sizes = [16, 28, 4], strides = [1, 1, 1]} : vector<28x28x4xf32> to vector<16x28x4xf32>
    %18 = arith.maximumf %16, %17 : vector<16x28x4xf32>
    %19 = vector.extract_strided_slice %5 {offsets = [7, 0, 0], sizes = [16, 28, 4], strides = [1, 1, 1]} : vector<28x28x4xf32> to vector<16x28x4xf32>
    %20 = arith.maximumf %18, %19 : vector<16x28x4xf32>
    %21 = vector.extract_strided_slice %5 {offsets = [8, 0, 0], sizes = [16, 28, 4], strides = [1, 1, 1]} : vector<28x28x4xf32> to vector<16x28x4xf32>
    %22 = arith.maximumf %20, %21 : vector<16x28x4xf32>
    %23 = vector.extract_strided_slice %5 {offsets = [9, 0, 0], sizes = [16, 28, 4], strides = [1, 1, 1]} : vector<28x28x4xf32> to vector<16x28x4xf32>
    %24 = arith.maximumf %22, %23 : vector<16x28x4xf32>
    %25 = vector.extract_strided_slice %5 {offsets = [10, 0, 0], sizes = [16, 28, 4], strides = [1, 1, 1]} : vector<28x28x4xf32> to vector<16x28x4xf32>
    %26 = arith.maximumf %24, %25 : vector<16x28x4xf32>
    %27 = vector.extract_strided_slice %5 {offsets = [11, 0, 0], sizes = [16, 28, 4], strides = [1, 1, 1]} : vector<28x28x4xf32> to vector<16x28x4xf32>
    %28 = arith.maximumf %26, %27 : vector<16x28x4xf32>
    %29 = vector.extract_strided_slice %5 {offsets = [12, 0, 0], sizes = [16, 28, 4], strides = [1, 1, 1]} : vector<28x28x4xf32> to vector<16x28x4xf32>
    %30 = arith.maximumf %28, %29 : vector<16x28x4xf32>
    %31 = vector.extract_strided_slice %30 {offsets = [0, 0, 0], sizes = [16, 16, 4], strides = [1, 1, 1]} : vector<16x28x4xf32> to vector<16x16x4xf32>
    %32 = vector.extract_strided_slice %30 {offsets = [0, 1, 0], sizes = [16, 16, 4], strides = [1, 1, 1]} : vector<16x28x4xf32> to vector<16x16x4xf32>
    %33 = arith.maximumf %31, %32 : vector<16x16x4xf32>
    %34 = vector.extract_strided_slice %30 {offsets = [0, 2, 0], sizes = [16, 16, 4], strides = [1, 1, 1]} : vector<16x28x4xf32> to vector<16x16x4xf32>
    %35 = arith.maximumf %33, %34 : vector<16x16x4xf32>
    %36 = vector.extract_strided_slice %30 {offsets = [0, 3, 0], sizes = [16, 16, 4], strides = [1, 1, 1]} : vector<16x28x4xf32> to vector<16x16x4xf32>
    %37 = arith.maximumf %35, %36 : vector<16x16x4xf32>
    %38 = vector.extract_strided_slice %30 {offsets = [0, 4, 0], sizes = [16, 16, 4], strides = [1, 1, 1]} : vector<16x28x4xf32> to vector<16x16x4xf32>
    %39 = arith.maximumf %37, %38 : vector<16x16x4xf32>
    %40 = vector.extract_strided_slice %30 {offsets = [0, 5, 0], sizes = [16, 16, 4], strides = [1, 1, 1]} : vector<16x28x4xf32> to vector<16x16x4xf32>
    %41 = arith.maximumf %39, %40 : vector<16x16x4xf32>
    %42 = vector.extract_strided_slice %30 {offsets = [0, 6, 0], sizes = [16, 16, 4], strides = [1, 1, 1]} : vector<16x28x4xf32> to vector<16x16x4xf32>
    %43 = arith.maximumf %41, %42 : vector<16x16x4xf32>
    %44 = vector.extract_strided_slice %30 {offsets = [0, 7, 0], sizes = [16, 16, 4], strides = [1, 1, 1]} : vector<16x28x4xf32> to vector<16x16x4xf32>
    %45 = arith.maximumf %43, %44 : vector<16x16x4xf32>
    %46 = vector.extract_strided_slice %30 {offsets = [0, 8, 0], sizes = [16, 16, 4], strides = [1, 1, 1]} : vector<16x28x4xf32> to vector<16x16x4xf32>
    %47 = arith.maximumf %45, %46 : vector<16x16x4xf32>
    %48 = vector.extract_strided_slice %30 {offsets = [0, 9, 0], sizes = [16, 16, 4], strides = [1, 1, 1]} : vector<16x28x4xf32> to vector<16x16x4xf32>
    %49 = arith.maximumf %47, %48 : vector<16x16x4xf32>
    %50 = vector.extract_strided_slice %30 {offsets = [0, 10, 0], sizes = [16, 16, 4], strides = [1, 1, 1]} : vector<16x28x4xf32> to vector<16x16x4xf32>
    %51 = arith.maximumf %49, %50 : vector<16x16x4xf32>
    %52 = vector.extract_strided_slice %30 {offsets = [0, 11, 0], sizes = [16, 16, 4], strides = [1, 1, 1]} : vector<16x28x4xf32> to vector<16x16x4xf32>
    %53 = arith.maximumf %51, %52 : vector<16x16x4xf32>
    %54 = vector.extract_strided_slice %30 {offsets = [0, 12, 0], sizes = [16, 16, 4], strides = [1, 1, 1]} : vector<16x28x4xf32> to vector<16x16x4xf32>
    %55 = arith.maximumf %53, %54 : vector<16x16x4xf32>
    %c0_11 = arith.constant 0 : index
    %c0_12 = arith.constant 0 : index
    %c0_13 = arith.constant 0 : index
    %c0_14 = arith.constant 0 : index
    %c0_15 = arith.constant 0 : index
    %56 = vector.load %arg3[%c0_11, %c0_12, %c0_13, %c0_14, %c0_15] : memref<1x4x16x16x4xf32, #tpu.memory_space<vmem>>, vector<1x1x16x16x4xf32>
    %57 = vector.shape_cast %56 : vector<1x1x16x16x4xf32> to vector<16x16x4xf32>
    %58 = vector.shape_cast %55 : vector<16x16x4xf32> to vector<1x1x16x16x4xf32>
    tpu.vector_store %arg3[%c0_11, %c0_12, %c0_13, %c0_14, %c0_15], %58 {strides = array<i32>} : memref<1x4x16x16x4xf32, #tpu.memory_space<vmem>>, vector<1x1x16x16x4xf32>,
    %59 = vector.extract_strided_slice %5 {offsets = [2, 0, 0], sizes = [16, 28, 4], strides = [1, 1, 1]} : vector<28x28x4xf32> to vector<16x28x4xf32>
    %60 = vector.extract_strided_slice %5 {offsets = [3, 0, 0], sizes = [16, 28, 4], strides = [1, 1, 1]} : vector<28x28x4xf32> to vector<16x28x4xf32>
    %61 = arith.maximumf %59, %60 : vector<16x28x4xf32>
    %62 = vector.extract_strided_slice %5 {offsets = [4, 0, 0], sizes = [16, 28, 4], strides = [1, 1, 1]} : vector<28x28x4xf32> to vector<16x28x4xf32>
    %63 = arith.maximumf %61, %62 : vector<16x28x4xf32>
    %64 = vector.extract_strided_slice %5 {offsets = [5, 0, 0], sizes = [16, 28, 4], strides = [1, 1, 1]} : vector<28x28x4xf32> to vector<16x28x4xf32>
    %65 = arith.maximumf %63, %64 : vector<16x28x4xf32>
    %66 = vector.extract_strided_slice %5 {offsets = [6, 0, 0], sizes = [16, 28, 4], strides = [1, 1, 1]} : vector<28x28x4xf32> to vector<16x28x4xf32>
    %67 = arith.maximumf %65, %66 : vector<16x28x4xf32>
    %68 = vector.extract_strided_slice %5 {offsets = [7, 0, 0], sizes = [16, 28, 4], strides = [1, 1, 1]} : vector<28x28x4xf32> to vector<16x28x4xf32>
    %69 = arith.maximumf %67, %68 : vector<16x28x4xf32>
    %70 = vector.extract_strided_slice %5 {offsets = [8, 0, 0], sizes = [16, 28, 4], strides = [1, 1, 1]} : vector<28x28x4xf32> to vector<16x28x4xf32>
    %71 = arith.maximumf %69, %70 : vector<16x28x4xf32>
    %72 = vector.extract_strided_slice %5 {offsets = [9, 0, 0], sizes = [16, 28, 4], strides = [1, 1, 1]} : vector<28x28x4xf32> to vector<16x28x4xf32>
    %73 = arith.maximumf %71, %72 : vector<16x28x4xf32>
    %74 = vector.extract_strided_slice %5 {offsets = [10, 0, 0], sizes = [16, 28, 4], strides = [1, 1, 1]} : vector<28x28x4xf32> to vector<16x28x4xf32>
    %75 = arith.maximumf %73, %74 : vector<16x28x4xf32>
    %76 = vector.extract_strided_slice %75 {offsets = [0, 2, 0], sizes = [16, 16, 4], strides = [1, 1, 1]} : vector<16x28x4xf32> to vector<16x16x4xf32>
    %77 = vector.extract_strided_slice %75 {offsets = [0, 3, 0], sizes = [16, 16, 4], strides = [1, 1, 1]} : vector<16x28x4xf32> to vector<16x16x4xf32>
    %78 = arith.maximumf %76, %77 : vector<16x16x4xf32>
    %79 = vector.extract_strided_slice %75 {offsets = [0, 4, 0], sizes = [16, 16, 4], strides = [1, 1, 1]} : vector<16x28x4xf32> to vector<16x16x4xf32>
    %80 = arith.maximumf %78, %79 : vector<16x16x4xf32>
    %81 = vector.extract_strided_slice %75 {offsets = [0, 5, 0], sizes = [16, 16, 4], strides = [1, 1, 1]} : vector<16x28x4xf32> to vector<16x16x4xf32>
    %82 = arith.maximumf %80, %81 : vector<16x16x4xf32>
    %83 = vector.extract_strided_slice %75 {offsets = [0, 6, 0], sizes = [16, 16, 4], strides = [1, 1, 1]} : vector<16x28x4xf32> to vector<16x16x4xf32>
    %84 = arith.maximumf %82, %83 : vector<16x16x4xf32>
    %85 = vector.extract_strided_slice %75 {offsets = [0, 7, 0], sizes = [16, 16, 4], strides = [1, 1, 1]} : vector<16x28x4xf32> to vector<16x16x4xf32>
    %86 = arith.maximumf %84, %85 : vector<16x16x4xf32>
    %87 = vector.extract_strided_slice %75 {offsets = [0, 8, 0], sizes = [16, 16, 4], strides = [1, 1, 1]} : vector<16x28x4xf32> to vector<16x16x4xf32>
    %88 = arith.maximumf %86, %87 : vector<16x16x4xf32>
    %89 = vector.extract_strided_slice %75 {offsets = [0, 9, 0], sizes = [16, 16, 4], strides = [1, 1, 1]} : vector<16x28x4xf32> to vector<16x16x4xf32>
    %90 = arith.maximumf %88, %89 : vector<16x16x4xf32>
    %91 = vector.extract_strided_slice %75 {offsets = [0, 10, 0], sizes = [16, 16, 4], strides = [1, 1, 1]} : vector<16x28x4xf32> to vector<16x16x4xf32>
    %92 = arith.maximumf %90, %91 : vector<16x16x4xf32>
    %c0_16 = arith.constant 0 : index
    %c1 = arith.constant 1 : index
    %c0_17 = arith.constant 0 : index
    %c0_18 = arith.constant 0 : index
    %c0_19 = arith.constant 0 : index
    %93 = vector.load %arg3[%c0_16, %c1, %c0_17, %c0_18, %c0_19] : memref<1x4x16x16x4xf32, #tpu.memory_space<vmem>>, vector<1x1x16x16x4xf32>
    %94 = vector.shape_cast %93 : vector<1x1x16x16x4xf32> to vector<16x16x4xf32>
    %95 = vector.shape_cast %92 : vector<16x16x4xf32> to vector<1x1x16x16x4xf32>
    tpu.vector_store %arg3[%c0_16, %c1, %c0_17, %c0_18, %c0_19], %95 {strides = array<i32>} : memref<1x4x16x16x4xf32, #tpu.memory_space<vmem>>, vector<1x1x16x16x4xf32>,
    %96 = vector.extract_strided_slice %5 {offsets = [4, 0, 0], sizes = [16, 28, 4], strides = [1, 1, 1]} : vector<28x28x4xf32> to vector<16x28x4xf32>
    %97 = vector.extract_strided_slice %5 {offsets = [5, 0, 0], sizes = [16, 28, 4], strides = [1, 1, 1]} : vector<28x28x4xf32> to vector<16x28x4xf32>
    %98 = arith.maximumf %96, %97 : vector<16x28x4xf32>
    %99 = vector.extract_strided_slice %5 {offsets = [6, 0, 0], sizes = [16, 28, 4], strides = [1, 1, 1]} : vector<28x28x4xf32> to vector<16x28x4xf32>
    %100 = arith.maximumf %98, %99 : vector<16x28x4xf32>
    %101 = vector.extract_strided_slice %5 {offsets = [7, 0, 0], sizes = [16, 28, 4], strides = [1, 1, 1]} : vector<28x28x4xf32> to vector<16x28x4xf32>
    %102 = arith.maximumf %100, %101 : vector<16x28x4xf32>
    %103 = vector.extract_strided_slice %5 {offsets = [8, 0, 0], sizes = [16, 28, 4], strides = [1, 1, 1]} : vector<28x28x4xf32> to vector<16x28x4xf32>
    %104 = arith.maximumf %102, %103 : vector<16x28x4xf32>
    %105 = vector.extract_strided_slice %104 {offsets = [0, 4, 0], sizes = [16, 16, 4], strides = [1, 1, 1]} : vector<16x28x4xf32> to vector<16x16x4xf32>
    %106 = vector.extract_strided_slice %104 {offsets = [0, 5, 0], sizes = [16, 16, 4], strides = [1, 1, 1]} : vector<16x28x4xf32> to vector<16x16x4xf32>
    %107 = arith.maximumf %105, %106 : vector<16x16x4xf32>
    %108 = vector.extract_strided_slice %104 {offsets = [0, 6, 0], sizes = [16, 16, 4], strides = [1, 1, 1]} : vector<16x28x4xf32> to vector<16x16x4xf32>
    %109 = arith.maximumf %107, %108 : vector<16x16x4xf32>
    %110 = vector.extract_strided_slice %104 {offsets = [0, 7, 0], sizes = [16, 16, 4], strides = [1, 1, 1]} : vector<16x28x4xf32> to vector<16x16x4xf32>
    %111 = arith.maximumf %109, %110 : vector<16x16x4xf32>
    %112 = vector.extract_strided_slice %104 {offsets = [0, 8, 0], sizes = [16, 16, 4], strides = [1, 1, 1]} : vector<16x28x4xf32> to vector<16x16x4xf32>
    %113 = arith.maximumf %111, %112 : vector<16x16x4xf32>
    %c0_20 = arith.constant 0 : index
    %c2 = arith.constant 2 : index
    %c0_21 = arith.constant 0 : index
    %c0_22 = arith.constant 0 : index
    %c0_23 = arith.constant 0 : index
    %114 = vector.load %arg3[%c0_20, %c2, %c0_21, %c0_22, %c0_23] : memref<1x4x16x16x4xf32, #tpu.memory_space<vmem>>, vector<1x1x16x16x4xf32>
    %115 = vector.shape_cast %114 : vector<1x1x16x16x4xf32> to vector<16x16x4xf32>
    %116 = vector.shape_cast %113 : vector<16x16x4xf32> to vector<1x1x16x16x4xf32>
    tpu.vector_store %arg3[%c0_20, %c2, %c0_21, %c0_22, %c0_23], %116 {strides = array<i32>} : memref<1x4x16x16x4xf32, #tpu.memory_space<vmem>>, vector<1x1x16x16x4xf32>,
    %c0_24 = arith.constant 0 : index
    %c0_25 = arith.constant 0 : index
    %c0_26 = arith.constant 0 : index
    %c0_27 = arith.constant 0 : index
    %117 = vector.load %arg2[%c0_24, %c0_25, %c0_26, %c0_27] : memref<1x16x16x4xf32, #tpu.memory_space<vmem>>, vector<1x16x16x4xf32>
    %118 = vector.shape_cast %117 : vector<1x16x16x4xf32> to vector<16x16x4xf32>
    %c0_28 = arith.constant 0 : index
    %c3 = arith.constant 3 : index
    %c0_29 = arith.constant 0 : index
    %c0_30 = arith.constant 0 : index
    %c0_31 = arith.constant 0 : index
    %119 = vector.load %arg3[%c0_28, %c3, %c0_29, %c0_30, %c0_31] : memref<1x4x16x16x4xf32, #tpu.memory_space<vmem>>, vector<1x1x16x16x4xf32>
    %120 = vector.shape_cast %119 : vector<1x1x16x16x4xf32> to vector<16x16x4xf32>
    %121 = vector.shape_cast %118 : vector<16x16x4xf32> to vector<1x1x16x16x4xf32>
    tpu.vector_store %arg3[%c0_28, %c3, %c0_29, %c0_30, %c0_31], %121 {strides = array<i32>} : memref<1x4x16x16x4xf32, #tpu.memory_space<vmem>>, vector<1x1x16x16x4xf32>,
    return
  }
  func.func @transform_0(%arg0: i32, %arg1: i32) -> (i32, i32, i32, i32) {
    %c0_i32 = arith.constant 0 : i32
    %c0_i32_0 = arith.constant 0 : i32
    %c0_i32_1 = arith.constant 0 : i32
    return %arg0, %c0_i32, %c0_i32_0, %arg1 : i32, i32, i32, i32
  }
  func.func @transform_1(%arg0: i32, %arg1: i32) -> (i32, i32, i32, i32, i32) {
    %c0_i32 = arith.constant 0 : i32
    %c0_i32_0 = arith.constant 0 : i32
    %c0_i32_1 = arith.constant 0 : i32
    %c0_i32_2 = arith.constant 0 : i32
    return %arg0, %c0_i32, %c0_i32_0, %c0_i32_1, %arg1 : i32, i32, i32, i32, i32
  }
}

</mosaic_0001>

<bundles_post_ra>
// kernel: spatial_pyramid_pooling.1
= control target key start
LH: loop header
LB: loop body
LE: loop exit
PB: predicated region body
PF: predicated region fallthrough
CT: control target
= control target key end

     0   :  { %s5338_s6 = smov 0   ;;  %s5340_s7 = smov 0   ;;  %s10333_s0 = inlined_call_operand.vmem [shape: f32[2,16,16,4], index: 0, kind: input, shape index: {}]   ;;  %s10334_s1 = inlined_call_operand.vmem [shape: f32[2,4,16,16,4], index: 1, kind: output, shape index: {}]  }
   0x1   :  { %s5342_s8 = smov 0  }
   0x2 LB: > { %s23_s9 = sadd.s32 1, %s5321_s7  ;;  %p5043_p0 = scmp.ge.s32.totalorder %s5325_s8, 1  ;;  %s5325_s8 = sphi %s5342_s8, %s11_s8   ;;  %s5321_s7 = sphi %s5340_s7, %s10969_s7   ;;  %s5317_s6 = sphi %s5338_s6, %s10968_s6  }
   0x3   : > { %p25_p1 = scmp.ge.s32.totalorder %s23_s9, 2  ;;  %p106_p2 = scmp.lt.s32.totalorder %s5325_s8, 3 }
   0x5   : > { %s10971_s9 = smov (%p25_p1, %s23_s9), 0  ;;  %p107_p3 = pnand %p5043_p0, %p106_p2 }
   0x7   : > { %110 = sbr.rel (%p107_p3) target bundleno = 953 (0x3b9), region = 24 }
   0xe   : > { %vm148_vm0 = vcmask 31744   ;;  %vm152_vm1 = vcmask 27648   ;;  %p132_p4 = scmp.lt.s32.totalorder %s5317_s6, 1  ;;  %v5327_v0 = vmov -inf   ;;  %vm1255_vm2 = vcmask 1046528  }
   0xf   : > { %149 = vst.msk [vmem:[#allocation2] sm:$0xff] %vm148_vm0, %v5327_v0  ;;  %150 = vst.msk [vmem:[#allocation2 + $0x8] sm:$0xff] %vm148_vm0, %v5327_v0  ;;  %vm1400_vm3 = vcmask 1045504   ;;  %vm1545_vm4 = vcmask 1044480   ;;  %vm4842_vm5 = vcmask 31748   ;;  %vm1690_vm6 = vcmask 1043456  }
  0x10   : > { %151 = vst.msk [vmem:[#allocation2 + $0x10] sm:$0xff] %vm148_vm0, %v5327_v0  ;;  %154 = vst.msk [vmem:[#allocation2 + $0x20] sm:$0xff] %vm148_vm0, %v5327_v0  ;;  %s10973_s6 = smov (!%p132_p4, %s5317_s6), 1  ;;  %vm2125_vm7 = vcmask 1040384   ;;  %vm4050_vm8 = vcmask 25600   ;;  %vm1835_vm9 = vcmask 1042432  }
  0x11   : > { %155 = vst.msk [vmem:[#allocation2 + $0x28] sm:$0xff] %vm148_vm0, %v5327_v0  ;;  %156 = vst.msk [vmem:[#allocation2 + $0x30] sm:$0xff] %vm148_vm0, %v5327_v0  ;;  %s5178_s10 = sshll.u32 %s10973_s6, 8  ;;  %s5179_s14 = sshll.u32 %s10973_s6, 10  ;;  %vm1980_vm10 = vcmask 1041408   ;;  %vm4047_vm11 = vcmask 31746  }
  0x12   : > { %158 = vst.msk [vmem:[#allocation2 + $0x40] sm:$0xff] %vm148_vm0, %v5327_v0  ;;  %159 = vst.msk [vmem:[#allocation2 + $0x48] sm:$0xff] %vm148_vm0, %v5327_v0  ;;  %s5592_s13 = scalar_lea.vmem %s10333_s0, %s5178_s10  ;;  %s5873_s17 = scalar_lea.vmem %s10334_s1, %s5179_s14 }
  0x13   : > { %160 = vst.msk [vmem:[#allocation2 + $0x50] sm:$0xff] %vm148_vm0, %v5327_v0  ;;  %162 = vst.msk [vmem:[#allocation2 + $0x60] sm:$0xff] %vm148_vm0, %v5327_v0  ;;  %v262_v1 = vld [vmem:[%s5592_s13] sm:$0xff]  ;;  %v263_v2 = vld [vmem:[%s5592_s13 + $0x8] sm:$0xff] }
  0x14   : > { %163 = vst.msk [vmem:[#allocation2 + $0x68] sm:$0xff] %vm148_vm0, %v5327_v0  ;;  %164 = vst.msk [vmem:[#allocation2 + $0x70] sm:$0xff] %vm148_vm0, %v5327_v0  ;;  %v264_v3 = vld [vmem:[%s5592_s13 + $0x10] sm:$0xff]  ;;  %v265_v4 = vld [vmem:[%s5592_s13 + $0x18] sm:$0xff] }
  0x15   : > { %166 = vst.msk [vmem:[#allocation2 + $0x80] sm:$0xff] %vm148_vm0, %v5327_v0  ;;  %167 = vst.msk [vmem:[#allocation2 + $0x88] sm:$0xff] %vm148_vm0, %v5327_v0  ;;  %v266_v5 = vld [vmem:[%s5592_s13 + $0x20] sm:$0xff]  ;;  %v267_v6 = vld [vmem:[%s5592_s13 + $0x28] sm:$0xff] }
  0x16   : > { %168 = vst.msk [vmem:[#allocation2 + $0x90] sm:$0xff] %vm148_vm0, %v5327_v0  ;;  %170 = vst.msk [vmem:[#allocation2 + $0xa0] sm:$0xff] %vm148_vm0, %v5327_v0  ;;  %v327_v7 = vld [vmem:[#allocation2] sm:$0xff]  ;;  %v328_v8 = vld [vmem:[#allocation2 + $0x8] sm:$0xff] }
  0x17   : > { %171 = vst.msk [vmem:[#allocation2 + $0xa8] sm:$0xff] %vm148_vm0, %v5327_v0  ;;  %172 = vst.msk [vmem:[#allocation2 + $0xb0] sm:$0xff] %vm148_vm0, %v5327_v0  ;;  %v329_v9 = vld [vmem:[#allocation2 + $0x10] sm:$0xff]  ;;  %v331_v10 = vld [vmem:[#allocation2 + $0x20] sm:$0xff] }
  0x18   : > { %174 = vst.msk [vmem:[#allocation2 + $0xc0] sm:$0xff] %vm148_vm0, %v5327_v0  ;;  %175 = vst.msk [vmem:[#allocation2 + $0xc8] sm:$0xff] %vm148_vm0, %v5327_v0  ;;  %v332_v11 = vld [vmem:[#allocation2 + $0x28] sm:$0xff]  ;;  %v333_v12 = vld [vmem:[#allocation2 + $0x30] sm:$0xff]  ;;  %v439_v16 = vmax.f32 %v327_v7, %v331_v10 }
  0x19   : > { %176 = vst.msk [vmem:[#allocation2 + $0xd0] sm:$0xff] %vm148_vm0, %v5327_v0  ;;  %178 = vst.msk [vmem:[#allocation2 + $0xe0] sm:$0xff] %vm148_vm0, %v5327_v0  ;;  %v335_v13 = vld [vmem:[#allocation2 + $0x40] sm:$0xff]  ;;  %v336_v14 = vld [vmem:[#allocation2 + $0x48] sm:$0xff]  ;;  %v440_v17 = vmax.f32 %v328_v8, %v332_v11  ;;  %v441_v18 = vmax.f32 %v329_v9, %v333_v12 }
  0x1a   : > { %179 = vst.msk [vmem:[#allocation2 + $0xe8] sm:$0xff] %vm148_vm0, %v5327_v0  ;;  %180 = vst.msk [vmem:[#allocation2 + $0xf0] sm:$0xff] %vm148_vm0, %v5327_v0  ;;  %v337_v15 = vld [vmem:[#allocation2 + $0x50] sm:$0xff]  ;;  %v339_v19 = vld [vmem:[#allocation2 + $0x60] sm:$0xff]  ;;  %v443_v22 = vmax.f32 %v331_v10, %v335_v13  ;;  %v444_v23 = vmax.f32 %v332_v11, %v336_v14  ;;  %v503_v31 = vmax.f32 %v439_v16, %v335_v13 }
  0x1b   : > { %182 = vst.msk [vmem:[#allocation2 + $0x100] sm:$0xff] %vm148_vm0, %v5327_v0  ;;  %183 = vst.msk [vmem:[#allocation2 + $0x108] sm:$0xff] %vm148_vm0, %v5327_v0  ;;  %v340_v20 = vld [vmem:[#allocation2 + $0x68] sm:$0xff]  ;;  %v341_v21 = vld [vmem:[#allocation2 + $0x70] sm:$0xff]  ;;  %v445_v24 = vmax.f32 %v333_v12, %v337_v15  ;;  %v447_v28 = vmax.f32 %v335_v13, %v339_v19  ;;  %v504_v38 = vmax.f32 %v440_v17, %v336_v14 }
  0x1c   : > { %184 = vst.msk [vmem:[#allocation2 + $0x110] sm:$0xff] %vm148_vm0, %v5327_v0  ;;  %186 = vst.msk [vmem:[#allocation2 + $0x120] sm:$0xff] %vm148_vm0, %v5327_v0  ;;  %v5606_v25 = vld [vmem:[#allocation2 + $0x80] sm:$0xff]  ;;  %v5608_v26 = vld [vmem:[#allocation2 + $0x88] sm:$0xff]  ;;  %v448_v29 = vmax.f32 %v336_v14, %v340_v20  ;;  %v449_v30 = vmax.f32 %v337_v15, %v341_v21  ;;  %v505_v39 = vmax.f32 %v441_v18, %v337_v15 }
  0x1d   : > { %187 = vst.msk [vmem:[#allocation2 + $0x128] sm:$0xff] %vm148_vm0, %v5327_v0  ;;  %188 = vst.msk [vmem:[#allocation2 + $0x130] sm:$0xff] %vm148_vm0, %v5327_v0  ;;  %v5610_v27 = vld [vmem:[#allocation2 + $0x90] sm:$0xff]  ;;  %v5612_v32 = vld [vmem:[#allocation2 + $0xa0] sm:$0xff]  ;;  %v451_v35 = vmax.f32 %v339_v19, %v5606_v25  ;;  %v452_v36 = vmax.f32 %v340_v20, %v5608_v26  ;;  %v507_v40 = vmax.f32 %v443_v22, %v339_v19 }
  0x1e   : > { %190 = vst.msk [vmem:[#allocation2 + $0x140] sm:$0xff] %vm148_vm0, %v5327_v0  ;;  %191 = vst.msk [vmem:[#allocation2 + $0x148] sm:$0xff] %vm148_vm0, %v5327_v0  ;;  %v5614_v33 = vld [vmem:[#allocation2 + $0xa8] sm:$0xff]  ;;  %v5616_v34 = vld [vmem:[#allocation2 + $0xb0] sm:$0xff]  ;;  %v453_v37 = vmax.f32 %v341_v21, %v5610_v27  ;;  %v508_v41 = vmax.f32 %v444_v23, %v340_v20  ;;  %v509_v42 = vmax.f32 %v445_v24, %v341_v21 }
  0x1f   : > { %192 = vst.msk [vmem:[#allocation2 + $0x150] sm:$0xff] %vm148_vm0, %v5327_v0  ;;  %194 = vst.msk [vmem:[#allocation2 + $0x160] sm:$0xff] %vm148_vm0, %v5327_v0  ;;  %v5622_v43 = vmax.f32 %v447_v28, %v5606_v25  ;;  %v512_v44 = vmax.f32 %v448_v29, %v5608_v26  ;;  %v513_v45 = vmax.f32 %v449_v30, %v5610_v27  ;;  %v268_v16 = vld [vmem:[%s5592_s13 + $0x30] sm:$0xff]  ;;  %v269_v17 = vld [vmem:[%s5592_s13 + $0x38] sm:$0xff] }
  0x20   : > { %195 = vst.msk [vmem:[#allocation2 + $0x168] sm:$0xff] %vm148_vm0, %v5327_v0  ;;  %196 = vst.msk [vmem:[#allocation2 + $0x170] sm:$0xff] %vm148_vm0, %v5327_v0  ;;  %v5627_v46 = vmax.f32 %v451_v35, %v5612_v32  ;;  %v5630_v47 = vmax.f32 %v452_v36, %v5614_v33  ;;  %v517_v48 = vmax.f32 %v453_v37, %v5616_v34  ;;  %v270_v18 = vld [vmem:[%s5592_s13 + $0x40] sm:$0xff]  ;;  %v271_v24 = vld [vmem:[%s5592_s13 + $0x48] sm:$0xff] }
  0x21   : > { %198 = vst.msk [vmem:[#allocation2 + $0x180] sm:$0xff] %vm148_vm0, %v5327_v0  ;;  %199 = vst.msk [vmem:[#allocation2 + $0x188] sm:$0xff] %vm148_vm0, %v5327_v0  ;;  %v567_v49 = vmax.f32 %v503_v31, %v339_v19  ;;  %v568_v50 = vmax.f32 %v504_v38, %v340_v20  ;;  %v569_v51 = vmax.f32 %v505_v39, %v341_v21  ;;  %v275_v36 = vld [vmem:[%s5592_s13 + $0x68] sm:$0xff]  ;;  %v276_v37 = vld [vmem:[%s5592_s13 + $0x70] sm:$0xff] }
  0x22   : > { %200 = vst.msk [vmem:[#allocation2 + $0x190] sm:$0xff] %vm148_vm0, %v5327_v0  ;;  %202 = vst.msk [vmem:[#allocation2 + $0x1a0] sm:$0xff] %vm148_vm0, %v5327_v0  ;;  %v571_v52 = vmax.f32 %v507_v40, %v5606_v25  ;;  %v572_v53 = vmax.f32 %v508_v41, %v5608_v26  ;;  %v573_v54 = vmax.f32 %v509_v42, %v5610_v27  ;;  %v277_v42 = vld [vmem:[%s5592_s13 + $0x78] sm:$0xff] }
  0x23   : > { %203 = vst.msk [vmem:[#allocation2 + $0x1a8] sm:$0xff] %vm148_vm0, %v5327_v0  ;;  %204 = vst.msk [vmem:[#allocation2 + $0x1b0] sm:$0xff] %vm148_vm0, %v5327_v0  ;;  %v575_v55 = vmax.f32 %v5622_v43, %v5612_v32  ;;  %v576_v56 = vmax.f32 %v512_v44, %v5614_v33  ;;  %v577_v57 = vmax.f32 %v513_v45, %v5616_v34  ;;  %v278_v43 = vld [vmem:[%s5592_s13 + $0x80] sm:$0xff]  ;;  %v279_v44 = vld [vmem:[%s5592_s13 + $0x88] sm:$0xff] }
  0x24   : > { %206 = vst.msk [vmem:[#allocation2 + $0x1c0] sm:$0xff] %vm148_vm0, %v5327_v0  ;;  %207 = vst.msk [vmem:[#allocation2 + $0x1c8] sm:$0xff] %vm148_vm0, %v5327_v0  ;;  %v631_v58 = vmax.f32 %v567_v49, %v5606_v25  ;;  %v632_v59 = vmax.f32 %v568_v50, %v5608_v26  ;;  %v633_v60 = vmax.f32 %v569_v51, %v5610_v27  ;;  %v281_v49 = vld [vmem:[%s5592_s13 + $0x98] sm:$0xff]  ;;  %v282_v50 = vld [vmem:[%s5592_s13 + $0xa0] sm:$0xff] }
  0x25   : > { %208 = vst.msk [vmem:[#allocation2 + $0x1d0] sm:$0xff] %vm148_vm0, %v5327_v0  ;;  %210 = vst.msk [vmem:[#allocation2 + $0x1e0] sm:$0xff] %vm148_vm0, %v5327_v0  ;;  %v635_v61 = vmax.f32 %v571_v52, %v5612_v32  ;;  %v5645_v62 = vmax.f32 %v572_v53, %v5614_v33  ;;  %v637_v63 = vmax.f32 %v573_v54, %v5616_v34 }
  0x26   : > { %211 = vst.msk [vmem:[#allocation2 + $0x1e8] sm:$0xff] %vm148_vm0, %v5327_v0  ;;  %212 = vst.msk [vmem:[#allocation2 + $0x1f0] sm:$0xff] %vm148_vm0, %v5327_v0  ;;  %v457_v12 = vmax.f32 %v5610_v27, %v5616_v34  ;;  %v455_v19 = vmax.f32 %v5606_v25, %v5612_v32  ;;  %v272_v25 = vld [vmem:[%s5592_s13 + $0x50] sm:$0xff]  ;;  %v273_v27 = vld [vmem:[%s5592_s13 + $0x58] sm:$0xff]  ;;  %v456_v28 = vmax.f32 %v5608_v26, %v5614_v33 }
  0x27   : > { %214 = vst.msk [vmem:[#allocation2 + $0x200] sm:$0xff] %vm148_vm0, %v5327_v0  ;;  %215 = vst.msk [vmem:[#allocation2 + $0x208] sm:$0xff] %vm148_vm0, %v5327_v0  ;;  %v274_v26 = vld [vmem:[%s5592_s13 + $0x60] sm:$0xff] }
  0x28   : > { %216 = vst.msk [vmem:[#allocation2 + $0x210] sm:$0xff] %vm148_vm0, %v5327_v0  ;;  %218 = vst.msk [vmem:[#allocation2 + $0x220] sm:$0xff] %vm148_vm0, %v5327_v0 }
  0x29   : > { %219 = vst.msk [vmem:[#allocation2 + $0x228] sm:$0xff] %vm148_vm0, %v5327_v0  ;;  %220 = vst.msk [vmem:[#allocation2 + $0x230] sm:$0xff] %vm148_vm0, %v5327_v0 }
  0x2a   : > { %222 = vst.msk [vmem:[#allocation2 + $0x240] sm:$0xff] %vm148_vm0, %v5327_v0  ;;  %223 = vst.msk [vmem:[#allocation2 + $0x248] sm:$0xff] %vm148_vm0, %v5327_v0 }
  0x2b   : > { %224 = vst.msk [vmem:[#allocation2 + $0x250] sm:$0xff] %vm148_vm0, %v5327_v0  ;;  %226 = vst.msk [vmem:[#allocation2 + $0x260] sm:$0xff] %vm148_vm0, %v5327_v0 }
  0x2c   : > { %227 = vst.msk [vmem:[#allocation2 + $0x268] sm:$0xff] %vm148_vm0, %v5327_v0  ;;  %228 = vst.msk [vmem:[#allocation2 + $0x270] sm:$0xff] %vm148_vm0, %v5327_v0 }
  0x2d   : > { %230 = vst.msk [vmem:[#allocation2 + $0x280] sm:$0xff] %vm148_vm0, %v5327_v0  ;;  %231 = vst.msk [vmem:[#allocation2 + $0x288] sm:$0xff] %vm148_vm0, %v5327_v0 }
  0x2e   : > { %232 = vst.msk [vmem:[#allocation2 + $0x290] sm:$0xff] %vm148_vm0, %v5327_v0  ;;  %234 = vst.msk [vmem:[#allocation2 + $0x2a0] sm:$0xff] %vm148_vm0, %v5327_v0 }
  0x2f   : > { %235 = vst.msk [vmem:[#allocation2 + $0x2a8] sm:$0xff] %vm148_vm0, %v5327_v0  ;;  %236 = vst.msk [vmem:[#allocation2 + $0x2b0] sm:$0xff] %vm148_vm0, %v5327_v0 }
  0x30   : > { %238 = vst.msk [vmem:[#allocation2 + $0x2c0] sm:$0xff] %vm148_vm0, %v5327_v0  ;;  %239 = vst.msk [vmem:[#allocation2 + $0x2c8] sm:$0xff] %vm148_vm0, %v5327_v0 }
  0x31   : > { %240 = vst.msk [vmem:[#allocation2 + $0x2d0] sm:$0xff] %vm148_vm0, %v5327_v0  ;;  %242 = vst.msk [vmem:[#allocation2 + $0x2e0] sm:$0xff] %vm148_vm0, %v5327_v0 }
  0x32   : > { %243 = vst.msk [vmem:[#allocation2 + $0x2e8] sm:$0xff] %vm148_vm0, %v5327_v0  ;;  %244 = vst.msk [vmem:[#allocation2 + $0x2f0] sm:$0xff] %vm148_vm0, %v5327_v0 }
  0x33   : > { %246 = vst.msk [vmem:[#allocation2 + $0x300] sm:$0xff] %vm148_vm0, %v5327_v0  ;;  %247 = vst.msk [vmem:[#allocation2 + $0x308] sm:$0xff] %vm148_vm0, %v5327_v0 }
  0x34   : > { %248 = vst.msk [vmem:[#allocation2 + $0x310] sm:$0xff] %vm148_vm0, %v5327_v0  ;;  %250 = vst.msk [vmem:[#allocation2 + $0x320] sm:$0xff] %vm148_vm0, %v5327_v0 }
  0x35   : > { %251 = vst.msk [vmem:[#allocation2 + $0x328] sm:$0xff] %vm148_vm0, %v5327_v0  ;;  %252 = vst.msk [vmem:[#allocation2 + $0x330] sm:$0xff] %vm148_vm0, %v5327_v0 }
  0x36   : > { %254 = vst.msk [vmem:[#allocation2 + $0x340] sm:$0xff] %vm148_vm0, %v5327_v0  ;;  %255 = vst.msk [vmem:[#allocation2 + $0x348] sm:$0xff] %vm148_vm0, %v5327_v0 }
  0x37   : > { %256 = vst.msk [vmem:[#allocation2 + $0x350] sm:$0xff] %vm148_vm0, %v5327_v0  ;;  %258 = vst.msk [vmem:[#allocation2 + $0x360] sm:$0xff] %vm148_vm0, %v5327_v0 }
  0x38   : > { %259 = vst.msk [vmem:[#allocation2 + $0x368] sm:$0xff] %vm148_vm0, %v5327_v0  ;;  %260 = vst.msk [vmem:[#allocation2 + $0x370] sm:$0xff] %vm148_vm0, %v5327_v0 }
  0x39   : > { %153 = vst.msk [vmem:[#allocation2 + $0x18] sm:$0xf] %vm152_vm1, %v5327_v0  ;;  %157 = vst.msk [vmem:[#allocation2 + $0x38] sm:$0xf] %vm152_vm1, %v5327_v0 }
  0x3a   : > { %161 = vst.msk [vmem:[#allocation2 + $0x58] sm:$0xf] %vm152_vm1, %v5327_v0  ;;  %165 = vst.msk [vmem:[#allocation2 + $0x78] sm:$0xf] %vm152_vm1, %v5327_v0 }
  0x3b   : > { %169 = vst.msk [vmem:[#allocation2 + $0x98] sm:$0xf] %vm152_vm1, %v5327_v0  ;;  %173 = vst.msk [vmem:[#allocation2 + $0xb8] sm:$0xf] %vm152_vm1, %v5327_v0 }
  0x3c   : > { %177 = vst.msk [vmem:[#allocation2 + $0xd8] sm:$0xf] %vm152_vm1, %v5327_v0  ;;  %181 = vst.msk [vmem:[#allocation2 + $0xf8] sm:$0xf] %vm152_vm1, %v5327_v0 }
  0x3d   : > { %185 = vst.msk [vmem:[#allocation2 + $0x118] sm:$0xf] %vm152_vm1, %v5327_v0  ;;  %189 = vst.msk [vmem:[#allocation2 + $0x138] sm:$0xf] %vm152_vm1, %v5327_v0 }
  0x3e   : > { %193 = vst.msk [vmem:[#allocation2 + $0x158] sm:$0xf] %vm152_vm1, %v5327_v0  ;;  %197 = vst.msk [vmem:[#allocation2 + $0x178] sm:$0xf] %vm152_vm1, %v5327_v0 }
  0x3f   : > { %201 = vst.msk [vmem:[#allocation2 + $0x198] sm:$0xf] %vm152_vm1, %v5327_v0  ;;  %205 = vst.msk [vmem:[#allocation2 + $0x1b8] sm:$0xf] %vm152_vm1, %v5327_v0 }
  0x40   : > { %209 = vst.msk [vmem:[#allocation2 + $0x1d8] sm:$0xf] %vm152_vm1, %v5327_v0  ;;  %213 = vst.msk [vmem:[#allocation2 + $0x1f8] sm:$0xf] %vm152_vm1, %v5327_v0 }
  0x41   : > { %217 = vst.msk [vmem:[#allocation2 + $0x218] sm:$0xf] %vm152_vm1, %v5327_v0  ;;  %221 = vst.msk [vmem:[#allocation2 + $0x238] sm:$0xf] %vm152_vm1, %v5327_v0 }
  0x42   : > { %225 = vst.msk [vmem:[#allocation2 + $0x258] sm:$0xf] %vm152_vm1, %v5327_v0  ;;  %229 = vst.msk [vmem:[#allocation2 + $0x278] sm:$0xf] %vm152_vm1, %v5327_v0 }
  0x43   : > { %233 = vst.msk [vmem:[#allocation2 + $0x298] sm:$0xf] %vm152_vm1, %v5327_v0  ;;  %237 = vst.msk [vmem:[#allocation2 + $0x2b8] sm:$0xf] %vm152_vm1, %v5327_v0 }
  0x44   : > { %241 = vst.msk [vmem:[#allocation2 + $0x2d8] sm:$0xf] %vm152_vm1, %v5327_v0  ;;  %245 = vst.msk [vmem:[#allocation2 + $0x2f8] sm:$0xf] %vm152_vm1, %v5327_v0 }
  0x45   : > { %249 = vst.msk [vmem:[#allocation2 + $0x318] sm:$0xf] %vm152_vm1, %v5327_v0  ;;  %253 = vst.msk [vmem:[#allocation2 + $0x338] sm:$0xf] %vm152_vm1, %v5327_v0 }
  0x46   : > { %257 = vst.msk [vmem:[#allocation2 + $0x358] sm:$0xf] %vm152_vm1, %v5327_v0  ;;  %261 = vst.msk [vmem:[#allocation2 + $0x378] sm:$0xf] %vm152_vm1, %v5327_v0  ;;  %v695_v0 = vmax.f32 %v631_v58, %v5612_v32 }
  0x47   : > { %295 = vst.msk [vmem:[#allocation2 + $0xc6] sm:$0xff] %vm148_vm0, %v262_v1  ;;  %296 = vst.msk [vmem:[#allocation2 + $0xce] sm:$0xff] %vm148_vm0, %v263_v2  ;;  %v696_v1 = vmax.f32 %v632_v59, %v5614_v33  ;;  %v697_v2 = vmax.f32 %v633_v60, %v5616_v34 }
  0x48   : > { %297 = vst.msk [vmem:[#allocation2 + $0xe6] sm:$0xff] %vm148_vm0, %v264_v3  ;;  %298 = vst.msk [vmem:[#allocation2 + $0xee] sm:$0xff] %vm148_vm0, %v265_v4 }
  0x49   : > { %299 = vst.msk [vmem:[#allocation2 + $0x106] sm:$0xff] %vm148_vm0, %v266_v5  ;;  %300 = vst.msk [vmem:[#allocation2 + $0x10e] sm:$0xff] %vm148_vm0, %v267_v6 }
  0x4a   : > { %301 = vst.msk [vmem:[#allocation2 + $0x126] sm:$0xff] %vm148_vm0, %v268_v16  ;;  %302 = vst.msk [vmem:[#allocation2 + $0x12e] sm:$0xff] %vm148_vm0, %v269_v17 }
  0x4b   : > { %303 = vst.msk [vmem:[#allocation2 + $0x146] sm:$0xff] %vm148_vm0, %v270_v18  ;;  %304 = vst.msk [vmem:[#allocation2 + $0x14e] sm:$0xff] %vm148_vm0, %v271_v24 }
  0x4c   : > { %305 = vst.msk [vmem:[#allocation2 + $0x166] sm:$0xff] %vm148_vm0, %v272_v25  ;;  %306 = vst.msk [vmem:[#allocation2 + $0x16e] sm:$0xff] %vm148_vm0, %v273_v27 }
  0x4d   : > { %307 = vst.msk [vmem:[#allocation2 + $0x186] sm:$0xff] %vm148_vm0, %v274_v26  ;;  %308 = vst.msk [vmem:[#allocation2 + $0x18e] sm:$0xff] %vm148_vm0, %v275_v36 }
  0x4e   : > { %v5651_v3 = vld [vmem:[#allocation2 + $0xc0] sm:$0xff]  ;;  %v5653_v4 = vld [vmem:[#allocation2 + $0xc8] sm:$0xff]  ;;  %v5655_v5 = vld [vmem:[#allocation2 + $0xd0] sm:$0xff]  ;;  %309 = vst.msk [vmem:[#allocation2 + $0x1a6] sm:$0xff] %vm148_vm0, %v276_v37 }
  0x4f   : > { %v699_v6 = vmax.f32 %v635_v61, %v5651_v3  ;;  %v5659_v7 = vmax.f32 %v695_v0, %v5651_v3  ;;  %v581_v8 = vmax.f32 %v517_v48, %v5655_v5  ;;  %v5663_v9 = vmax.f32 %v577_v57, %v5655_v5  ;;  %v5665_v10 = vld [vmem:[#allocation2 + $0xe0] sm:$0xff]  ;;  %v5667_v11 = vld [vmem:[#allocation2 + $0xf0] sm:$0xff]  ;;  %v5690_v23 = vld [vmem:[#allocation2 + $0xe8] sm:$0xff]  ;;  %310 = vst.msk [vmem:[#allocation2 + $0x1ae] sm:$0xff] %vm148_vm0, %v277_v42 }
  0x50   : > { %10562 = vst [vmem:[#allocation3_spill] sm:$0xff] %v5667_v11  ;;  %v580_v13 = vmax.f32 %v5630_v47, %v5653_v4  ;;  %v701_v14 = vmax.f32 %v637_v63, %v5655_v5  ;;  %v5675_v15 = vmax.f32 %v697_v2, %v5655_v5  ;;  %v5683_v20 = vmax.f32 %v576_v56, %v5653_v4  ;;  %v5723_v41 = vld [vmem:[#allocation2 + $0x100] sm:$0xff]  ;;  %v5737_v47 = vld [vmem:[#allocation2 + $0x110] sm:$0xff]  ;;  %v5750_v54 = vld [vmem:[#allocation2 + $0x108] sm:$0xff] }
  0x51   : > { %v700_v21 = vmax.f32 %v5645_v62, %v5653_v4  ;;  %v5688_v22 = vmax.f32 %v696_v1, %v5653_v4  ;;  %v579_v29 = vmax.f32 %v5627_v46, %v5651_v3  ;;  %v5703_v30 = vmax.f32 %v699_v6, %v5665_v10  ;;  %311 = vst.msk [vmem:[#allocation2 + $0x1c6] sm:$0xff] %vm148_vm0, %v278_v43  ;;  %v280_v48 = vld [vmem:[%s5592_s13 + $0x90] sm:$0xff]  ;;  %v285_v57 = vld [vmem:[%s5592_s13 + $0xb8] sm:$0xff]  ;;  %v286_v61 = vld [vmem:[%s5592_s13 + $0xc0] sm:$0xff] }
  0x52   : > { %10563 = vst [vmem:[#allocation4_spill] sm:$0xff] %v5675_v15  ;;  %v5706_v31 = vmax.f32 %v581_v8, %v5667_v11  ;;  %v705_v35 = vmax.f32 %v5663_v9, %v5667_v11  ;;  %v823_v38 = vmax.f32 %v5659_v7, %v5665_v10  ;;  %v5719_v39 = vmax.f32 %v701_v14, %v5667_v11  ;;  %v284_v56 = vld [vmem:[%s5592_s13 + $0xb0] sm:$0xff]  ;;  %v287_v62 = vld [vmem:[%s5592_s13 + $0xc8] sm:$0xff]  ;;  %v289_v7 = vld [vmem:[%s5592_s13 + $0xd8] sm:$0xff] }
  0x53   : > { %v5732_v45 = vmax.f32 %v575_v55, %v5651_v3  ;;  %v5735_v46 = vmax.f32 %v580_v13, %v5690_v23  ;;  %312 = vst.msk [vmem:[#allocation2 + $0x1ce] sm:$0xff] %vm148_vm0, %v279_v44  ;;  %v704_v51 = vmax.f32 %v5683_v20, %v5690_v23  ;;  %v764_v52 = vmax.f32 %v700_v21, %v5690_v23  ;;  %v283_v55 = vld [vmem:[%s5592_s13 + $0xa8] sm:$0xff]  ;;  %v288_v63 = vld [vmem:[%s5592_s13 + $0xd0] sm:$0xff]  ;;  %v290_v8 = vld [vmem:[%s5592_s13 + $0xe0] sm:$0xff] }
  0x54   : > { %10564 = vst [vmem:[#allocation5_spill] sm:$0xff] %v5719_v39  ;;  %v824_v53 = vmax.f32 %v5688_v22, %v5690_v23  ;;  %313 = vst.msk [vmem:[#allocation2 + $0x1e6] sm:$0xff] %vm148_vm0, %v280_v48  ;;  %v521_v58 = vmax.f32 %v457_v12, %v5655_v5  ;;  %v5760_v59 = vmax.f32 %v579_v29, %v5665_v10  ;;  %v291_v12 = vld [vmem:[%s5592_s13 + $0xe8] sm:$0xff]  ;;  %v5808_v24 = vld [vmem:[#allocation2 + $0x130] sm:$0xff] }
  0x55   : > { %314 = vst.msk [vmem:[#allocation2 + $0x1ee] sm:$0xff] %vm148_vm0, %v281_v49  ;;  %315 = vst.msk [vmem:[#allocation2 + $0x206] sm:$0xff] %vm148_vm0, %v282_v50  ;;  %v827_v60 = vmax.f32 %v5703_v30, %v5723_v41  ;;  %v519_v0 = vmax.f32 %v455_v19, %v5651_v3  ;;  %v520_v1 = vmax.f32 %v456_v28, %v5653_v4  ;;  %v5819_v28 = vld [vmem:[#allocation2 + $0x120] sm:$0xff]  ;;  %v5821_v29 = vld [vmem:[#allocation2 + $0x128] sm:$0xff] }
  0x56   : > { %10565 = vst [vmem:[#allocation6_spill] sm:$0xff] %v5760_v59  ;;  %316 = vst.msk [vmem:[#allocation2 + $0x20e] sm:$0xff] %vm148_vm0, %v283_v55  ;;  %v5773_v2 = vmax.f32 %v823_v38, %v5723_v41  ;;  %v709_v6 = vmax.f32 %v5706_v31, %v5737_v47  ;;  %v585_v13 = vmax.f32 %v521_v58, %v5667_v11  ;;  %v5846_v49 = vld [vmem:[#allocation2 + $0x150] sm:$0xff] }
  0x57   : > { %317 = vst.msk [vmem:[#allocation2 + $0x226] sm:$0xff] %vm148_vm0, %v284_v56  ;;  %318 = vst.msk [vmem:[#allocation2 + $0x22e] sm:$0xff] %vm148_vm0, %v285_v57  ;;  %v461_v14 = vmax.f32 %v5616_v34, %v5655_v5  ;;  %v708_v16 = vmax.f32 %v5735_v46, %v5750_v54  ;;  %v583_v17 = vmax.f32 %v519_v0, %v5665_v10 }
  0x58   : > { %10566 = vst [vmem:[#allocation7_spill] sm:$0xff] %v5773_v2  ;;  %319 = vst.msk [vmem:[#allocation2 + $0x246] sm:$0xff] %vm148_vm0, %v286_v61  ;;  %v584_v18 = vmax.f32 %v520_v1, %v5690_v23  ;;  %v465_v19 = vmax.f32 %v5655_v5, %v5667_v11  ;;  %v5796_v20 = vmax.f32 %v704_v51, %v5750_v54 }
  0x59   : > { %320 = vst.msk [vmem:[#allocation2 + $0x24e] sm:$0xff] %vm148_vm0, %v287_v62  ;;  %321 = vst.msk [vmem:[#allocation2 + $0x266] sm:$0xff] %vm148_vm0, %v288_v63  ;;  %v5802_v34 = vmax.f32 %v705_v35, %v5737_v47  ;;  %v828_v21 = vmax.f32 %v764_v52, %v5750_v54  ;;  %v5806_v22 = vmax.f32 %v824_v53, %v5750_v54 }
  0x5a   : > { %322 = vst.msk [vmem:[#allocation2 + $0x26e] sm:$0xff] %vm148_vm0, %v289_v7  ;;  %323 = vst.msk [vmem:[#allocation2 + $0x286] sm:$0xff] %vm148_vm0, %v290_v8  ;;  %v5811_v25 = vmax.f32 %v585_v13, %v5737_v47  ;;  %v647_v5 = vmax.f32 %v583_v17, %v5723_v41  ;;  %v5815_v27 = vmax.f32 %v584_v18, %v5750_v54  ;;  %v5862_v8 = vld [vmem:[#allocation2 + $0x140] sm:$0xff] }
  0x5b   : > { %324 = vst.msk [vmem:[#allocation2 + $0x28e] sm:$0xff] %vm148_vm0, %v291_v12  ;;  %10567 = vst [vmem:[#allocation8_spill] sm:$0xff] %v5806_v22  ;;  %v469_v9 = vmax.f32 %v5667_v11, %v5737_v47  ;;  %v5824_v30 = vmax.f32 %v709_v6, %v5808_v24  ;;  %v525_v31 = vmax.f32 %v461_v14, %v5667_v11 }
  0x5c   : > { %v5832_v36 = vmax.f32 %v827_v60, %v5819_v28  ;;  %v5835_v37 = vmax.f32 %v708_v16, %v5821_v29  ;;  %v4172_v38 = vrot.slane %v5811_v25, 1  ;;  %v529_v42 = vmax.f32 %v465_v19, %v5737_v47  ;;  %10571 = vst [vmem:[#allocation12_spill] sm:$0xff] %v5846_v49 }
  0x5d   : > { %v5842_v44 = vmax.f32 %v828_v21, %v5821_v29  ;;  %v713_v46 = vmax.f32 %v5811_v25, %v5808_v24  ;;  %v4169_v48 = vrot.slane %v647_v5, 1  ;;  %v4348_v51 = vrot.slane %v5811_v25, 2  ;;  %v6055_v35 = vld [vmem:[#allocation2 + $0x210] sm:$0xff] }
  0x5e   : > { %10568 = vst [vmem:[#allocation9_spill] sm:$0xff] %v5832_v36  ;;  %10569 = vst [vmem:[#allocation10_spill] sm:$0xff] %v5835_v37  ;;  %v4299_v50 = vmax.f32 %v5811_v25, %v4172_v38  ;;  %v4170_v52 = vrot.slane %v5815_v27, 1  ;;  %v4345_v53 = vrot.slane %v647_v5, 2  ;;  %v4524_v56 = vrot.slane %v5811_v25, 3 }
  0x5f   : > { %10570 = vst [vmem:[#allocation11_spill] sm:$0xff] %v5842_v44  ;;  %v711_v57 = vmax.f32 %v647_v5, %v5819_v28  ;;  %v4346_v58 = vrot.slane %v5815_v27, 2  ;;  %v4521_v62 = vrot.slane %v647_v5, 3  ;;  %v4522_v63 = vrot.slane %v5815_v27, 3 }
  0x60   : > { %v4475_v60 = vmax.f32 %v4299_v50, %v4348_v51  ;;  %v4171_v61 = vsel %vm1255_vm2, %v4169_v48, %v4170_v52  ;;  %v4698_v0 = vrot.slane %v5811_v25, 4  ;;  %v589_v6 = vmax.f32 %v525_v31, %v5737_v47  ;;  %v292_v25 = vld [vmem:[%s5592_s13 + $0xf0] sm:$0xff]  ;;  %v5885_v50 = vld [vmem:[#allocation2 + $0x148] sm:$0xff] }
  0x61   : > { %v4297_v1 = vmax.f32 %v647_v5, %v4171_v61  ;;  %v593_v7 = vmax.f32 %v529_v42, %v5808_v24  ;;  %v5865_v12 = vmax.f32 %v713_v46, %v5846_v49  ;;  %v712_v14 = vmax.f32 %v5815_v27, %v5821_v29  ;;  %v293_v5 = vld [vmem:[%s5592_s13 + $0xf8] sm:$0xff]  ;;  %325 = vst.msk [vmem:[#allocation2 + $0x2a6] sm:$0xff] %vm148_vm0, %v292_v25 }
  0x62   : > { %v4651_v13 = vmax.f32 %v4475_v60, %v4524_v56  ;;  %v4347_v16 = vsel %vm1400_vm3, %v4345_v53, %v4346_v58  ;;  %v5876_v17 = vmax.f32 %v711_v57, %v5862_v8  ;;  %v4173_v19 = vsel %vm1255_vm2, %v4170_v52, %v4172_v38  ;;  %v5887_v53 = vld [vmem:[#allocation2 + $0x170] sm:$0xff]  ;;  %326 = vst.msk [vmem:[#allocation2 + $0x2ae] sm:$0xff] %vm148_vm0, %v293_v5 }
  0x63   : > { %v4473_v18 = vmax.f32 %v4297_v1, %v4347_v16  ;;  %v533_v21 = vmax.f32 %v469_v9, %v5808_v24  ;;  %v4523_v42 = vsel %vm1545_vm4, %v4521_v62, %v4522_v63  ;;  %v4697_v46 = vrot.slane %v5815_v27, 4  ;;  %v377_v5 = vld [vmem:[#allocation2 + $0x190] sm:$0xff] }
  0x64   : > { %10572 = vst [vmem:[#allocation13_spill] sm:$0xff] %v5876_v17  ;;  %v4795_v31 = vmax.f32 %v4651_v13, %v4698_v0  ;;  %v4298_v48 = vmax.f32 %v5815_v27, %v4173_v19  ;;  %v4349_v9 = vsel %vm1400_vm3, %v4346_v58, %v4348_v51  ;;  %v5893_v52 = vmax.f32 %v589_v6, %v5808_v24 }
  0x65   : > { %v4649_v38 = vmax.f32 %v4473_v18, %v4523_v42  ;;  %v5896_v57 = vmax.f32 %v593_v7, %v5846_v49  ;;  %v841_v27 = vmax.f32 %v5865_v12, %v5887_v53  ;;  %v776_v60 = vmax.f32 %v712_v14, %v5885_v50 }
  0x66   : > { %5098 = vst.msk [vmem:[%s5873_s17 + $0x20c] sm:$0xf] %vm152_vm1, %v4795_v31  ;;  %v4474_v61 = vmax.f32 %v4298_v48, %v4349_v9  ;;  %v4525_v62 = vsel %vm1545_vm4, %v4522_v63, %v4524_v56  ;;  %v10348_v51 = vrot.slane %v5893_v52, 1  ;;  %v597_v58 = vmax.f32 %v533_v21, %v5846_v49 }
  0x67   : > { %v4793_v1 = vmax.f32 %v4649_v38, %v4697_v46  ;;  %v473_v6 = vmax.f32 %v5737_v47, %v5808_v24  ;;  %v717_v13 = vmax.f32 %v5893_v52, %v5846_v49  ;;  %v477_v12 = vmax.f32 %v5808_v24, %v5846_v49 }
  0x68   : > { %v4650_v7 = vmax.f32 %v4474_v61, %v4525_v62  ;;  %v481_v14 = vmax.f32 %v5846_v49, %v5887_v53  ;;  %v4699_v56 = vsel %vm1690_vm6, %v4697_v46, %v4698_v0  ;;  %v4302_v63 = vmax.f32 %v5893_v52, %v10348_v51  ;;  %v5940_v62 = vld [vmem:[#allocation2 + $0x160] sm:$0xff] }
  0x69   : > { %5096 = vst.msk [vmem:[%s5873_s17 + $0x1fc] sm:$0xf0] %vm4842_vm5, %v4793_v1  ;;  %v10347_v47 = vrot.slane %v5893_v52, 2  ;;  %v10337_v16 = vrot.slane %v5896_v57, 1  ;;  %v10345_v19 = vrot.slane %v5893_v52, 3  ;;  %v10344_v21 = vrot.slane %v5893_v52, 4 }
  0x6a   : > { %v4794_v18 = vmax.f32 %v4650_v7, %v4699_v56  ;;  %v721_v25 = vmax.f32 %v5896_v57, %v5887_v53  ;;  %v10335_v42 = vrot.slane %v5896_v57, 2  ;;  %v5933_v46 = vmax.f32 %v597_v58, %v5887_v53  ;;  %v5942_v1 = vld [vmem:[#allocation2 + $0x168] sm:$0xff] }
  0x6b   : > { %v4478_v0 = vmax.f32 %v4302_v63, %v10347_v47  ;;  %v4305_v31 = vmax.f32 %v5896_v57, %v10337_v16  ;;  %v781_v48 = vmax.f32 %v717_v13, %v5887_v53  ;;  %v537_v38 = vmax.f32 %v473_v6, %v5846_v49  ;;  %v5975_v16 = vld [vmem:[#allocation2 + $0x188] sm:$0xff] }
  0x6c   : > { %5097 = vst.msk [vmem:[%s5873_s17 + $0x204] sm:$0xff] %vm148_vm0, %v4794_v18  ;;  %v541_v9 = vmax.f32 %v477_v12, %v5887_v53  ;;  %v545_v61 = vmax.f32 %v481_v14, %v377_v5  ;;  %v10336_v56 = vrot.slane %v5896_v57, 3  ;;  %v725_v13 = vmax.f32 %v5933_v46, %v377_v5  ;;  %v5956_v18 = vld [vmem:[#allocation2 + $0x1b0] sm:$0xff] }
  0x6d   : > { %v4654_v7 = vmax.f32 %v4478_v0, %v10345_v19  ;;  %v4481_v58 = vmax.f32 %v4305_v31, %v10335_v42  ;;  %v840_v12 = vmax.f32 %v776_v60, %v5942_v1  ;;  %v5953_v14 = vmax.f32 %v721_v25, %v377_v5 }
  0x6e   : > { %v10338_v63 = vrot.slane %v5933_v46, 1  ;;  %v10343_v40 = vrot.slane %v5896_v57, 4  ;;  %v10340_v55 = vrot.slane %v5933_v46, 2  ;;  %v601_v25 = vmax.f32 %v537_v38, %v5887_v53 }
  0x6f   : > { %v4798_v0 = vmax.f32 %v4654_v7, %v10344_v21  ;;  %v4657_v31 = vmax.f32 %v4481_v58, %v10336_v56  ;;  %v605_v6 = vmax.f32 %v541_v9, %v377_v5  ;;  %v609_v43 = vmax.f32 %v545_v61, %v5956_v18  ;;  %v5985_v61 = vld [vmem:[#allocation2 + $0x1d0] sm:$0xff] }
  0x70   : > { %v4308_v60 = vmax.f32 %v5933_v46, %v10338_v63  ;;  %v845_v42 = vmax.f32 %v781_v48, %v377_v5  ;;  %v789_v58 = vmax.f32 %v725_v13, %v5956_v18  ;;  %v485_v56 = vmax.f32 %v5887_v53, %v377_v5 }
  0x71   : > { %5101 = vst.msk [vmem:[%s5873_s17 + $0x21c] sm:$0xf] %vm152_vm1, %v4798_v0  ;;  %v4801_v7 = vmax.f32 %v4657_v31, %v10343_v40  ;;  %v10339_v38 = vrot.slane %v5933_v46, 3  ;;  %v5980_v9 = vmax.f32 %v601_v25, %v377_v5  ;;  %v5983_v48 = vmax.f32 %v605_v6, %v5956_v18 }
  0x72   : > { %v4484_v63 = vmax.f32 %v4308_v60, %v10340_v55  ;;  %v5987_v0 = vmax.f32 %v841_v27, %v377_v5  ;;  %v5990_v13 = vmax.f32 %v840_v12, %v5975_v16  ;;  %v849_v53 = vmax.f32 %v5953_v14, %v5956_v18 }
  0x73   : > { %5104 = vst.msk [vmem:[%s5873_s17 + $0x22c] sm:$0xf] %vm152_vm1, %v4801_v7  ;;  %v489_v31 = vmax.f32 %v377_v5, %v5956_v18  ;;  %v10341_v6 = vrot.slane %v5933_v46, 4  ;;  %v10342_v25 = vrot.slane %v5980_v9, 1  ;;  %v6002_v27 = vmax.f32 %v609_v43, %v5985_v61 }
  0x74   : > { %10573 = vst [vmem:[#allocation14_spill] sm:$0xff] %v5987_v0  ;;  %10574 = vst [vmem:[#allocation15_spill] sm:$0xff] %v5990_v13  ;;  %v4660_v60 = vmax.f32 %v4484_v63, %v10339_v38  ;;  %v6005_v12 = vmax.f32 %v845_v42, %v5956_v18  ;;  %v853_v14 = vmax.f32 %v789_v58, %v5985_v61  ;;  %v10346_v7 = vrot.slane %v5983_v48, 1 }
  0x75   : > { %v549_v5 = vmax.f32 %v485_v56, %v5956_v18  ;;  %v729_v38 = vmax.f32 %v5980_v9, %v5956_v18  ;;  %v4311_v43 = vmax.f32 %v5980_v9, %v10342_v25  ;;  %v10349_v55 = vrot.slane %v5980_v9, 2 }
  0x76   : > { %10575 = vst [vmem:[#allocation16_spill] sm:$0xff] %v6005_v12  ;;  %v4804_v63 = vmax.f32 %v4660_v60, %v10341_v6  ;;  %v733_v42 = vmax.f32 %v5983_v48, %v5985_v61  ;;  %v4314_v58 = vmax.f32 %v5983_v48, %v10346_v7  ;;  %v10350_v56 = vrot.slane %v5983_v48, 2  ;;  %v6025_v6 = vld [vmem:[#allocation2 + $0x1f0] sm:$0xff] }
  0x77   : > { %v553_v60 = vmax.f32 %v489_v31, %v5985_v61  ;;  %v4487_v25 = vmax.f32 %v4311_v43, %v10349_v55  ;;  %v10352_v40 = vrot.slane %v5980_v9, 3  ;;  %v10351_v21 = vrot.slane %v6002_v27, 1 }
  0x78   : > { %5107 = vst.msk [vmem:[%s5873_s17 + $0x23c] sm:$0xf] %vm152_vm1, %v4804_v63  ;;  %v493_v19 = vmax.f32 %v5956_v18, %v5985_v61  ;;  %v10360_v7 = vrot.slane %v5980_v9, 4  ;;  %v4490_v47 = vmax.f32 %v4314_v58, %v10350_v56  ;;  %v10354_v31 = vrot.slane %v5983_v48, 3 }
  0x79   : > { %v737_v63 = vmax.f32 %v6002_v27, %v6025_v6  ;;  %v793_v51 = vmax.f32 %v729_v38, %v5985_v61  ;;  %v4663_v43 = vmax.f32 %v4487_v25, %v10352_v40  ;;  %v4317_v18 = vmax.f32 %v6002_v27, %v10351_v21 }
  0x7a   : > { %v10356_v55 = vrot.slane %v6002_v27, 2  ;;  %v6049_v26 = vmax.f32 %v733_v42, %v6025_v6  ;;  %v4666_v58 = vmax.f32 %v4490_v47, %v10354_v31  ;;  %v10357_v56 = vrot.slane %v5983_v48, 4 }
  0x7b   : > { %v613_v38 = vmax.f32 %v549_v5, %v5985_v61  ;;  %v4807_v25 = vmax.f32 %v4663_v43, %v10360_v7  ;;  %v10355_v40 = vrot.slane %v6002_v27, 3  ;;  %v617_v42 = vmax.f32 %v553_v60, %v6025_v6  ;;  %v401_v7 = vld [vmem:[#allocation2 + $0x250] sm:$0xff] }
  0x7c   : > { %v4493_v21 = vmax.f32 %v4317_v18, %v10356_v55  ;;  %v6064_v44 = vmax.f32 %v849_v53, %v5985_v61  ;;  %v4810_v47 = vmax.f32 %v4666_v58, %v10357_v56  ;;  %v801_v5 = vmax.f32 %v737_v63, %v6055_v35 }
  0x7d   : > { %v6070_v31 = vmax.f32 %v613_v38, %v6025_v6  ;;  %5110 = vst.msk [vmem:[%s5873_s17 + $0x24c] sm:$0xf] %vm152_vm1, %v4807_v25  ;;  %v10359_v18 = vrot.slane %v6002_v27, 4  ;;  %v6078_v60 = vmax.f32 %v617_v42, %v6055_v35  ;;  %v557_v53 = vmax.f32 %v493_v19, %v6025_v6  ;;  %v6091_v25 = vld [vmem:[#allocation2 + $0x230] sm:$0xff] }
  0x7e   : > { %10576 = vst [vmem:[#allocation17_spill] sm:$0xff] %v6064_v44  ;;  %v4669_v43 = vmax.f32 %v4493_v21, %v10355_v40  ;;  %v6082_v58 = vmax.f32 %v853_v14, %v6025_v6  ;;  %5113 = vst.msk [vmem:[%s5873_s17 + $0x25c] sm:$0xf] %vm152_vm1, %v4810_v47  ;;  %v497_v38 = vmax.f32 %v5985_v61, %v6025_v6  ;;  %v10595_v13 = vrot.slane %v5893_v52, 1 }
  0x7f   : > { %v10358_v63 = vrot.slane %v6070_v31, 1  ;;  %v501_v21 = vmax.f32 %v6025_v6, %v6055_v35  ;;  %v857_v42 = vmax.f32 %v793_v51, %v6025_v6  ;;  %v861_v19 = vmax.f32 %v6049_v26, %v6055_v35 }
  0x80   : > { %10577 = vst [vmem:[#allocation18_spill] sm:$0xff] %v6082_v58  ;;  %v4813_v14 = vmax.f32 %v4669_v43, %v10359_v18  ;;  %v10361_v47 = vrot.slane %v6078_v60, 1  ;;  %v865_v40 = vmax.f32 %v801_v5, %v6091_v25  ;;  %v741_v61 = vmax.f32 %v6070_v31, %v6055_v35 }
  0x81   : > { %v4320_v55 = vmax.f32 %v6070_v31, %v10358_v63  ;;  %v10362_v56 = vrot.slane %v6070_v31, 2  ;;  %v10363_v6 = vrot.slane %v6078_v60, 2  ;;  %v621_v5 = vmax.f32 %v557_v53, %v6055_v35 }
  0x82   : > { %5116 = vst.msk [vmem:[%s5873_s17 + $0x26c] sm:$0xf] %vm152_vm1, %v4813_v14  ;;  %v4323_v51 = vmax.f32 %v6078_v60, %v10361_v47  ;;  %v745_v63 = vmax.f32 %v6078_v60, %v6091_v25  ;;  %v561_v18 = vmax.f32 %v497_v38, %v6055_v35  ;;  %v565_v14 = vmax.f32 %v501_v21, %v6091_v25 }
  0x83   : > { %v4496_v43 = vmax.f32 %v4320_v55, %v10362_v56  ;;  %v10364_v36 = vrot.slane %v6078_v60, 3  ;;  %v6125_v53 = vmax.f32 %v621_v5, %v6091_v25  ;;  %v805_v55 = vmax.f32 %v741_v61, %v6091_v25 }
  0x84   : > { %v4499_v47 = vmax.f32 %v4323_v51, %v10363_v6  ;;  %v10578_v56 = vrot.slane %v6070_v31, 3  ;;  %v625_v38 = vmax.f32 %v561_v18, %v6091_v25  ;;  %v629_v22 = vmax.f32 %v565_v14, %v401_v7  ;;  %v405_v14 = vld [vmem:[#allocation2 + $0x270] sm:$0xff] }
  0x85   : > { %v10367_v26 = vrot.slane %v6078_v60, 4  ;;  %v749_v51 = vmax.f32 %v6125_v53, %v401_v7  ;;  %v10366_v6 = vrot.slane %v6125_v53, 1  ;;  %v6137_v5 = vmax.f32 %v857_v42, %v6055_v35 }
  0x86   : > { %v4672_v39 = vmax.f32 %v4496_v43, %v10578_v56  ;;  %v4675_v21 = vmax.f32 %v4499_v47, %v10364_v36  ;;  %v10580_v61 = vrot.slane %v6070_v31, 4  ;;  %v809_v43 = vmax.f32 %v745_v63, %v401_v7 }
  0x87   : > { %10579 = vst [vmem:[#allocation19_spill] sm:$0xff] %v6137_v5  ;;  %v2672_v18 = vmax.f32 %v6055_v35, %v6091_v25  ;;  %v4326_v36 = vmax.f32 %v6125_v53, %v10366_v6  ;;  %v10368_v2 = vrot.slane %v6125_v53, 2  ;;  %v6149_v11 = vmax.f32 %v625_v38, %v401_v7 }
  0x88   : > { %v4816_v56 = vmax.f32 %v4672_v39, %v10580_v61  ;;  %v4819_v47 = vmax.f32 %v4675_v21, %v10367_v26  ;;  %v6152_v42 = vmax.f32 %v861_v19, %v6091_v25  ;;  %v869_v39 = vmax.f32 %v805_v55, %v401_v7 }
  0x89   : > { %v813_v63 = vmax.f32 %v749_v51, %v405_v14  ;;  %v6156_v35 = vmax.f32 %v629_v22, %v405_v14  ;;  %v6158_v61 = vmax.f32 %v865_v40, %v401_v7  ;;  %v4502_v21 = vmax.f32 %v4326_v36, %v10368_v2  ;;  %v409_v51 = vld [vmem:[#allocation2 + $0x290] sm:$0xff] }
  0x8a   : > { %10581 = vst [vmem:[#allocation20_spill] sm:$0xff] %v6152_v42  ;;  %5119 = vst.msk [vmem:[%s5873_s17 + $0x27c] sm:$0xf] %vm152_vm1, %v4816_v56  ;;  %v10370_v6 = vrot.slane %v6125_v53, 3  ;;  %v10371_v38 = vrot.slane %v6149_v11, 1  ;;  %v873_v26 = vmax.f32 %v809_v43, %v405_v14  ;;  %v2680_v55 = vmax.f32 %v2672_v18, %v401_v7 }
  0x8b   : > { %10582 = vst [vmem:[#allocation21_spill] sm:$0xff] %v6158_v61  ;;  %5122 = vst.msk [vmem:[%s5873_s17 + $0x28c] sm:$0xf] %vm152_vm1, %v4819_v47  ;;  %v2676_v56 = vmax.f32 %v6091_v25, %v401_v7  ;;  %v10374_v36 = vrot.slane %v6149_v11, 2  ;;  %v4099_v47 = vmax.f32 %v401_v7, %v405_v14  ;;  %v6174_v2 = vmax.f32 %v869_v39, %v405_v14  ;;  %v6184_v61 = vld [vmem:[#allocation2 + $0x2b0] sm:$0xff] }
  0x8c   : > { %v4678_v40 = vmax.f32 %v4502_v21, %v10370_v6  ;;  %v4329_v22 = vmax.f32 %v6149_v11, %v10371_v38  ;;  %v877_v43 = vmax.f32 %v813_v63, %v409_v51  ;;  %v753_v19 = vmax.f32 %v6149_v11, %v405_v14 }
  0x8d   : > { %10583 = vst [vmem:[#allocation22_spill] sm:$0xff] %v6174_v2  ;;  %v10376_v18 = vrot.slane %v6156_v35, 1  ;;  %v10584_v25 = vrot.slane %v6125_v53, 4  ;;  %v10378_v6 = vrot.slane %v6149_v11, 3  ;;  %v10382_v39 = vrot.slane %v6156_v35, 2 }
  0x8e   : > { %v4505_v21 = vmax.f32 %v4329_v22, %v10374_v36  ;;  %v2688_v63 = vmax.f32 %v2680_v55, %v405_v14  ;;  %v2684_v2 = vmax.f32 %v2676_v56, %v405_v14  ;;  %v757_v22 = vmax.f32 %v6156_v35, %v409_v51 }
  0x8f   : > { %v4822_v15 = vmax.f32 %v4678_v40, %v10584_v25  ;;  %v4332_v7 = vmax.f32 %v6156_v35, %v10376_v18  ;;  %v4105_v25 = vmax.f32 %v4099_v47, %v409_v51  ;;  %v4102_v36 = vmax.f32 %v405_v14, %v409_v51  ;;  %v6206_v47 = vld [vmem:[#allocation2 + $0x2d0] sm:$0xff] }
  0x90   : > { %v4681_v40 = vmax.f32 %v4505_v21, %v10378_v6  ;;  %v10381_v42 = vrot.slane %v6156_v35, 3  ;;  %v6198_v18 = vmax.f32 %v2688_v63, %v409_v51  ;;  %v2692_v5 = vmax.f32 %v2684_v2, %v409_v51 }
  0x91   : > { %5125 = vst.msk [vmem:[%s5873_s17 + $0x29c] sm:$0xf] %vm152_vm1, %v4822_v15  ;;  %v4508_v38 = vmax.f32 %v4332_v7, %v10382_v39  ;;  %v6200_v55 = vmax.f32 %v753_v19, %v409_v51  ;;  %v10585_v15 = vrot.slane %v6149_v11, 4  ;;  %v4111_v21 = vmax.f32 %v4105_v25, %v6184_v61 }
  0x92   : > { %v4108_v6 = vmax.f32 %v4102_v36, %v6184_v61  ;;  %v6208_v14 = vmax.f32 %v873_v26, %v409_v51  ;;  %v10380_v63 = vrot.slane %v6156_v35, 4  ;;  %v10379_v2 = vrot.slane %v6198_v18, 1 }
  0x93   : > { %v4825_v56 = vmax.f32 %v4681_v40, %v10585_v15  ;;  %v4684_v7 = vmax.f32 %v4508_v38, %v10381_v42  ;;  %v6215_v19 = vmax.f32 %v877_v43, %v6184_v61  ;;  %v6220_v40 = vmax.f32 %v757_v22, %v6184_v61 }
  0x94   : > { %10586 = vst [vmem:[#allocation23_spill] sm:$0xff] %v6208_v14  ;;  %v6223_v36 = vmax.f32 %v2692_v5, %v6184_v61  ;;  %v6226_v26 = vmax.f32 %v4111_v21, %v6206_v47  ;;  %v2704_v51 = vmax.f32 %v6198_v18, %v6184_v61  ;;  %v4335_v43 = vmax.f32 %v6198_v18, %v10379_v2  ;;  %v6241_v21 = vld [vmem:[#allocation2 + $0x2f0] sm:$0xff] }
  0x95   : > { %10587 = vst [vmem:[#allocation24_spill] sm:$0xff] %v6215_v19  ;;  %5128 = vst.msk [vmem:[%s5873_s17 + $0x2ac] sm:$0xf] %vm152_vm1, %v4825_v56  ;;  %v4828_v38 = vmax.f32 %v4684_v7, %v10380_v63  ;;  %v10383_v25 = vrot.slane %v6198_v18, 2  ;;  %v4114_v56 = vmax.f32 %v4108_v6, %v6206_v47  ;;  %v10386_v2 = vrot.slane %v6198_v18, 3 }
  0x96   : > { %v10384_v5 = vrot.slane %v6223_v36, 1  ;;  %v10387_v63 = vrot.slane %v6226_v26, 1  ;;  %v10588_v42 = vmax.f32 %v5612_v32, %v5651_v3  ;;  %v10589_v22 = vrot.slane %v6223_v36, 2 }
  0x97   : > { %5131 = vst.msk [vmem:[%s5873_s17 + $0x2bc] sm:$0xf] %vm152_vm1, %v4828_v38  ;;  %v4511_v7 = vmax.f32 %v4335_v43, %v10383_v25  ;;  %v6261_v25 = vmax.f32 %v2704_v51, %v6206_v47  ;;  %v6273_v43 = vmax.f32 %v4114_v56, %v6241_v21  ;;  %v10590_v51 = vmax.f32 %v5614_v33, %v5653_v4 }
  0x98   : > { %v523_v39 = vmax.f32 %v10588_v42, %v5665_v10  ;;  %v4338_v38 = vmax.f32 %v6223_v36, %v10384_v5  ;;  %v4341_v32 = vmax.f32 %v6226_v26, %v10387_v63  ;;  %v10390_v5 = vrot.slane %v6223_v36, 3 }
  0x99   : > { %v4687_v15 = vmax.f32 %v4511_v7, %v10386_v2  ;;  %v524_v19 = vmax.f32 %v10590_v51, %v5690_v23  ;;  %v10591_v7 = vrot.slane %v6198_v18, 4  ;;  %v2708_v63 = vmax.f32 %v6223_v36, %v6206_v47 }
  0x9a   : > { %v4514_v6 = vmax.f32 %v4338_v38, %v10589_v22  ;;  %v10592_v42 = vrot.slane %v6226_v26, 2  ;;  %v587_v22 = vmax.f32 %v523_v39, %v5723_v41  ;;  %v10392_v38 = vrot.slane %v6223_v36, 4 }
  0x9b   : > { %v4831_v2 = vmax.f32 %v4687_v15, %v10591_v7  ;;  %v10391_v33 = vrot.slane %v6273_v43, 1  ;;  %v10395_v51 = vrot.slane %v6273_v43, 2  ;;  %v10593_v15 = vrot.slane %v6226_v26, 3 }
  0x9c   : > { %v4517_v14 = vmax.f32 %v4341_v32, %v10592_v42  ;;  %v4690_v56 = vmax.f32 %v4514_v6, %v10390_v5  ;;  %v10393_v58 = vrot.slane %v6226_v26, 4  ;;  %v588_v39 = vmax.f32 %v524_v19, %v5750_v54 }
  0x9d   : > { %5134 = vst.msk [vmem:[%s5873_s17 + $0x2cc] sm:$0xf] %vm152_vm1, %v4831_v2  ;;  %v463_v6 = vmax.f32 %v5651_v3, %v5665_v10  ;;  %v4344_v42 = vmax.f32 %v6273_v43, %v10391_v33  ;;  %v651_v5 = vmax.f32 %v587_v22, %v5819_v28  ;;  %v464_v22 = vmax.f32 %v5653_v4, %v5690_v23 }
  0x9e   : > { %v4693_v7 = vmax.f32 %v4517_v14, %v10593_v15  ;;  %v4834_v32 = vmax.f32 %v4690_v56, %v10392_v38  ;;  %v6307_v14 = vmax.f32 %v2708_v63, %v6241_v21  ;;  %v652_v3 = vmax.f32 %v588_v39, %v5821_v29  ;;  %v425_v15 = vld [vmem:[#allocation2 + $0x310] sm:$0xff] }
  0x9f   : > { %v4520_v56 = vmax.f32 %v4344_v42, %v10395_v51  ;;  %v4174_v33 = vrot.slane %v651_v5, 1  ;;  %v4350_v38 = vrot.slane %v651_v5, 2  ;;  %v10594_v39 = vrot.slane %v6273_v43, 3 }
  0xa0   : > { %v4837_v19 = vmax.f32 %v4693_v7, %v10393_v58  ;;  %5137 = vst.msk [vmem:[%s5873_s17 + $0x2dc] sm:$0xf] %vm152_vm1, %v4834_v32  ;;  %v716_v63 = vmax.f32 %v652_v3, %v5885_v50  ;;  %v4175_v2 = vrot.slane %v652_v3, 1  ;;  %v4351_v7 = vrot.slane %v652_v3, 2 }
  0xa1   : > { %v4526_v58 = vrot.slane %v651_v5, 3  ;;  %v4696_v44 = vmax.f32 %v4520_v56, %v10594_v39  ;;  %v4527_v32 = vrot.slane %v652_v3, 3  ;;  %v527_v42 = vmax.f32 %v463_v6, %v5723_v41 }
  0xa2   : > { %5140 = vst.msk [vmem:[%s5873_s17 + $0x2ec] sm:$0xf] %vm152_vm1, %v4837_v19  ;;  %v467_v51 = vmax.f32 %v5665_v10, %v5723_v41  ;;  %v715_v4 = vmax.f32 %v651_v5, %v5862_v8  ;;  %v4176_v19 = vsel %vm1255_vm2, %v4174_v33, %v4175_v2  ;;  %v4352_v12 = vsel %vm1400_vm3, %v4350_v38, %v4351_v7 }
  0xa3   : > { %v4178_v17 = vsel %vm1255_vm2, %v4175_v2, %v10595_v13  ;;  %v2720_v56 = vmax.f32 %v6261_v25, %v6241_v21  ;;  %v10596_v39 = vrot.slane %v6273_v43, 4  ;;  %v4300_v6 = vmax.f32 %v651_v5, %v4176_v19 }
  0xa4   : > { %v4528_v37 = vsel %vm1545_vm4, %v4526_v58, %v4527_v32  ;;  %v2724_v10 = vmax.f32 %v6307_v14, %v425_v15  ;;  %v780_v59 = vmax.f32 %v716_v63, %v5942_v1  ;;  %v4700_v33 = vrot.slane %v652_v3, 4 }
  0xa5   : > { %v4840_v0 = vmax.f32 %v4696_v44, %v10596_v39  ;;  %v4301_v49 = vmax.f32 %v652_v3, %v4178_v17  ;;  %v4476_v38 = vmax.f32 %v4300_v6, %v4352_v12  ;;  %v10597_v13 = vrot.slane %v5893_v52, 2 }
  0xa6   : > { %v528_v25 = vmax.f32 %v464_v22, %v5750_v54  ;;  %v591_v44 = vmax.f32 %v527_v42, %v5819_v28  ;;  %v6348_v5 = vmax.f32 %v715_v4, %v5940_v62  ;;  %v468_v14 = vmax.f32 %v5690_v23, %v5750_v54  ;;  %v429_v23 = vld [vmem:[#allocation2 + $0x330] sm:$0xff] }
  0xa7   : > { %5143 = vst.msk [vmem:[%s5873_s17 + $0x2fc] sm:$0xf] %vm152_vm1, %v4840_v0  ;;  %v4354_v2 = vsel %vm1400_vm3, %v4351_v7, %v10597_v13  ;;  %v531_v17 = vmax.f32 %v467_v51, %v5819_v28  ;;  %v4652_v3 = vmax.f32 %v4476_v38, %v4528_v37  ;;  %v10598_v0 = vrot.slane %v5893_v52, 3 }
  0xa8   : > { %v4477_v58 = vmax.f32 %v4301_v49, %v4354_v2  ;;  %v592_v63 = vmax.f32 %v528_v25, %v5821_v29  ;;  %v655_v22 = vmax.f32 %v591_v44, %v5862_v8  ;;  %v844_v7 = vmax.f32 %v780_v59, %v5975_v16  ;;  %v6380_v25 = vld [vmem:[#allocation2 + $0x1a8] sm:$0xff] }
  0xa9   : > { %v4530_v12 = vsel %vm1545_vm4, %v4527_v32, %v10598_v0  ;;  %v532_v49 = vmax.f32 %v468_v14, %v5821_v29  ;;  %v595_v4 = vmax.f32 %v531_v17, %v5862_v8  ;;  %v4796_v19 = vmax.f32 %v4652_v3, %v4700_v33 }
  0xaa   : > { %v4653_v42 = vmax.f32 %v4477_v58, %v4530_v12  ;;  %v10599_v37 = vrot.slane %v5893_v52, 4  ;;  %v656_v32 = vmax.f32 %v592_v63, %v5885_v50  ;;  %v4179_v39 = vrot.slane %v655_v22, 1 }
  0xab   : > { %v10600_v59 = vmax.f32 %v6200_v55, %v6184_v61  ;;  %v10602_v38 = vmax.f32 %v6220_v40, %v6206_v47  ;;  %v596_v52 = vmax.f32 %v532_v49, %v5885_v50  ;;  %v6382_v44 = vmax.f32 %v2720_v56, %v425_v15  ;;  %5099 = vst.msk [vmem:[%s5873_s17 + $0x20c] sm:$0xf0] %vm4842_vm5, %v4796_v19 }
  0xac   : > { %v4702_v51 = vsel %vm1690_vm6, %v4700_v33, %v10599_v37  ;;  %v6378_v33 = vld [vmem:[#allocation2 + $0x180] sm:$0xff]  ;;  %v4180_v61 = vrot.slane %v656_v32, 1  ;;  %v4355_v55 = vrot.slane %v655_v22, 2  ;;  %v4356_v58 = vrot.slane %v656_v32, 2 }
  0xad   : > { %v6369_v6 = vmax.f32 %v10600_v59, %v6206_v47  ;;  %v6375_v13 = vmax.f32 %v10602_v38, %v6241_v21  ;;  %v4797_v2 = vmax.f32 %v4653_v42, %v4702_v51  ;;  %v6386_v14 = vmax.f32 %v2724_v10, %v429_v23 }
  0xae   : > { %v6391_v40 = vmax.f32 %v844_v7, %v6380_v25  ;;  %v659_v21 = vmax.f32 %v595_v4, %v5940_v62  ;;  %v4181_v15 = vsel %vm1255_vm2, %v4179_v39, %v4180_v61  ;;  %v4531_v56 = vrot.slane %v655_v22, 3 }
  0xaf   : > { %10601 = vst [vmem:[#allocation25_spill] sm:$0xff] %v6369_v6  ;;  %10603 = vst [vmem:[#allocation26_spill] sm:$0xff] %v6375_v13  ;;  %v4532_v17 = vrot.slane %v656_v32, 3  ;;  %v6398_v3 = vmax.f32 %v596_v52, %v5942_v1  ;;  %v720_v10 = vmax.f32 %v656_v32, %v5942_v1  ;;  %v4303_v0 = vmax.f32 %v655_v22, %v4181_v15 }
  0xb0   : > { %5100 = vst.msk [vmem:[%s5873_s17 + $0x214] sm:$0xff] %vm148_vm0, %v4797_v2  ;;  %v10604_v12 = vrot.slane %v5896_v57, 1  ;;  %v471_v7 = vmax.f32 %v5723_v41, %v5819_v28  ;;  %v719_v42 = vmax.f32 %v655_v22, %v5940_v62  ;;  %v4357_v49 = vsel %vm1400_vm3, %v4355_v55, %v4356_v58 }
  0xb1   : > { %v472_v23 = vmax.f32 %v5750_v54, %v5821_v29  ;;  %v4479_v19 = vmax.f32 %v4303_v0, %v4357_v49  ;;  %v4703_v37 = vrot.slane %v656_v32, 4  ;;  %v10605_v51 = vrot.slane %v5896_v57, 2 }
  0xb2   : > { %v4183_v63 = vsel %vm1255_vm2, %v4180_v61, %v10604_v12  ;;  %v4184_v59 = vrot.slane %v659_v21, 1  ;;  %v4533_v38 = vsel %vm1545_vm4, %v4531_v56, %v4532_v17  ;;  %v4185_v41 = vrot.slane %v6398_v3, 1 }
  0xb3   : > { %v4304_v4 = vmax.f32 %v656_v32, %v4183_v63  ;;  %v4359_v39 = vsel %vm1400_vm3, %v4356_v58, %v10605_v51  ;;  %v4360_v52 = vrot.slane %v659_v21, 2  ;;  %v784_v22 = vmax.f32 %v720_v10, %v5975_v16 }
  0xb4   : > { %v4655_v61 = vmax.f32 %v4479_v19, %v4533_v38  ;;  %v10606_v55 = vrot.slane %v5896_v57, 3  ;;  %v4361_v32 = vrot.slane %v6398_v3, 2  ;;  %v4186_v58 = vsel %vm1255_vm2, %v4184_v59, %v4185_v41 }
  0xb5   : > { %v4480_v2 = vmax.f32 %v4304_v4, %v4359_v39  ;;  %v4536_v0 = vrot.slane %v659_v21, 3  ;;  %v4537_v56 = vrot.slane %v6398_v3, 3  ;;  %v6423_v12 = vmax.f32 %v719_v42, %v6378_v33 }
  0xb6   : > { %v4535_v54 = vsel %vm1545_vm4, %v4532_v17, %v10606_v55  ;;  %v4799_v63 = vmax.f32 %v4655_v61, %v4703_v37  ;;  %v10607_v10 = vrot.slane %v5896_v57, 4  ;;  %v4306_v4 = vmax.f32 %v659_v21, %v4186_v58  ;;  %v6447_v55 = vld [vmem:[#allocation2 + $0x1a0] sm:$0xff] }
  0xb7   : > { %v4656_v15 = vmax.f32 %v4480_v2, %v4535_v54  ;;  %v723_v17 = vmax.f32 %v659_v21, %v6378_v33  ;;  %v724_v51 = vmax.f32 %v6398_v3, %v5975_v16  ;;  %v4362_v39 = vsel %vm1400_vm3, %v4360_v52, %v4361_v32 }
  0xb8   : > { %v4705_v49 = vsel %vm1690_vm6, %v4703_v37, %v10607_v10  ;;  %v848_v59 = vmax.f32 %v784_v22, %v6380_v25  ;;  %5102 = vst.msk [vmem:[%s5873_s17 + $0x21c] sm:$0xf0] %vm4842_vm5, %v4799_v63  ;;  %v4482_v42 = vmax.f32 %v4306_v4, %v4362_v39  ;;  %v4538_v38 = vsel %vm1545_vm4, %v4536_v0, %v4537_v56  ;;  %v6464_v4 = vld [vmem:[#allocation2 + $0x1c8] sm:$0xff]  ;;  %v6470_v39 = vld [vmem:[#allocation2 + $0x1c0] sm:$0xff] }
  0xb9   : > { %v4800_v19 = vmax.f32 %v4656_v15, %v4705_v49  ;;  %v10608_v57 = vrot.slane %v5933_v46, 1  ;;  %v4706_v21 = vrot.slane %v6398_v3, 4  ;;  %v10609_v61 = vrot.slane %v5933_v46, 2 }
  0xba   : > { %v535_v22 = vmax.f32 %v471_v7, %v5862_v8  ;;  %v4658_v54 = vmax.f32 %v4482_v42, %v4538_v38  ;;  %v536_v15 = vmax.f32 %v472_v23, %v5885_v50  ;;  %v476_v58 = vmax.f32 %v5821_v29, %v5885_v50 }
  0xbb   : > { %v4188_v37 = vsel %vm1255_vm2, %v4185_v41, %v10608_v57  ;;  %5103 = vst.msk [vmem:[%s5873_s17 + $0x224] sm:$0xff] %vm148_vm0, %v4800_v19  ;;  %v4364_v52 = vsel %vm1400_vm3, %v4361_v32, %v10609_v61  ;;  %v475_v41 = vmax.f32 %v5819_v28, %v5862_v8  ;;  %v788_v0 = vmax.f32 %v724_v51, %v6380_v25 }
  0xbc   : > { %v4307_v2 = vmax.f32 %v6398_v3, %v4188_v37  ;;  %v6455_v3 = vmax.f32 %v723_v17, %v6447_v55  ;;  %v599_v7 = vmax.f32 %v535_v22, %v5940_v62  ;;  %v4802_v63 = vmax.f32 %v4658_v54, %v4706_v21 }
  0xbd   : > { %v10610_v10 = vrot.slane %v5933_v46, 3  ;;  %v600_v49 = vmax.f32 %v536_v15, %v5942_v1  ;;  %v539_v28 = vmax.f32 %v475_v41, %v5940_v62  ;;  %v540_v51 = vmax.f32 %v476_v58, %v5942_v1 }
  0xbe   : > { %v4483_v32 = vmax.f32 %v4307_v2, %v4364_v52  ;;  %v663_v17 = vmax.f32 %v599_v7, %v6378_v33  ;;  %v6473_v42 = vmax.f32 %v848_v59, %v6464_v4  ;;  %5105 = vst.msk [vmem:[%s5873_s17 + $0x22c] sm:$0xf0] %vm4842_vm5, %v4802_v63  ;;  %v852_v61 = vmax.f32 %v788_v0, %v6464_v4  ;;  %v6493_v7 = vld [vmem:[#allocation2 + $0x1e8] sm:$0xff] }
  0xbf   : > { %v4540_v23 = vsel %vm1545_vm4, %v4537_v56, %v10610_v10  ;;  %v10611_v56 = vrot.slane %v5933_v46, 4  ;;  %v664_v57 = vmax.f32 %v600_v49, %v5975_v16  ;;  %v603_v37 = vmax.f32 %v539_v28, %v6378_v33 }
  0xc0   : > { %v4659_v19 = vmax.f32 %v4483_v32, %v4540_v23  ;;  %v4189_v22 = vrot.slane %v663_v17, 1  ;;  %v4365_v59 = vrot.slane %v663_v17, 2  ;;  %v479_v41 = vmax.f32 %v5862_v8, %v5940_v62 }
  0xc1   : > { %v4708_v38 = vsel %vm1690_vm6, %v4706_v21, %v10611_v56  ;;  %v4190_v54 = vrot.slane %v664_v57, 1  ;;  %v4366_v15 = vrot.slane %v664_v57, 2  ;;  %v728_v46 = vmax.f32 %v664_v57, %v6380_v25 }
  0xc2   : > { %v4803_v52 = vmax.f32 %v4659_v19, %v4708_v38  ;;  %v4541_v21 = vrot.slane %v663_v17, 3  ;;  %v604_v58 = vmax.f32 %v540_v51, %v5975_v16  ;;  %v480_v32 = vmax.f32 %v5885_v50, %v5942_v1 }
  0xc3   : > { %v4191_v0 = vsel %vm1255_vm2, %v4189_v22, %v4190_v54  ;;  %v4542_v63 = vrot.slane %v664_v57, 3  ;;  %v10612_v10 = vrot.slane %v5980_v9, 1  ;;  %v667_v8 = vmax.f32 %v603_v37, %v6447_v55 }
  0xc4   : > { %5106 = vst.msk [vmem:[%s5873_s17 + $0x234] sm:$0xff] %vm148_vm0, %v4803_v52  ;;  %v6501_v49 = vmax.f32 %v852_v61, %v6493_v7  ;;  %v727_v28 = vmax.f32 %v663_v17, %v6447_v55  ;;  %v4309_v19 = vmax.f32 %v663_v17, %v4191_v0  ;;  %v4367_v50 = vsel %vm1400_vm3, %v4365_v59, %v4366_v15 }
  0xc5   : > { %v4193_v23 = vsel %vm1255_vm2, %v4190_v54, %v10612_v10  ;;  %v4709_v56 = vrot.slane %v664_v57, 4  ;;  %v10613_v38 = vrot.slane %v5980_v9, 2  ;;  %v543_v22 = vmax.f32 %v479_v41, %v6378_v33 }
  0xc6   : > { %v4310_v51 = vmax.f32 %v664_v57, %v4193_v23  ;;  %v4485_v2 = vmax.f32 %v4309_v19, %v4367_v50  ;;  %v668_v37 = vmax.f32 %v604_v58, %v6380_v25  ;;  %v544_v61 = vmax.f32 %v480_v32, %v5975_v16 }
  0xc7   : > { %v4369_v52 = vsel %vm1400_vm3, %v4366_v15, %v10613_v38  ;;  %v792_v10 = vmax.f32 %v728_v46, %v6464_v4  ;;  %v4543_v17 = vsel %vm1545_vm4, %v4541_v21, %v4542_v63  ;;  %v10614_v0 = vrot.slane %v5980_v9, 3 }
  0xc8   : > { %v4486_v54 = vmax.f32 %v4310_v51, %v4369_v52  ;;  %v4194_v59 = vrot.slane %v667_v8, 1  ;;  %v6517_v23 = vmax.f32 %v727_v28, %v6470_v39  ;;  %v4661_v15 = vmax.f32 %v4485_v2, %v4543_v17 }
  0xc9   : > { %v4545_v57 = vsel %vm1545_vm4, %v4542_v63, %v10614_v0  ;;  %v483_v58 = vmax.f32 %v5940_v62, %v6378_v33  ;;  %v10615_v32 = vrot.slane %v5980_v9, 4  ;;  %v4195_v21 = vrot.slane %v668_v37, 1 }
  0xca   : > { %v4662_v41 = vmax.f32 %v4486_v54, %v4545_v57  ;;  %v4370_v19 = vrot.slane %v667_v8, 2  ;;  %v4371_v51 = vrot.slane %v668_v37, 2  ;;  %v4805_v50 = vmax.f32 %v4661_v15, %v4709_v56 }
  0xcb   : > { %v4711_v46 = vsel %vm1690_vm6, %v4709_v56, %v10615_v32  ;;  %v4546_v38 = vrot.slane %v667_v8, 3  ;;  %v4547_v52 = vrot.slane %v668_v37, 3  ;;  %v856_v28 = vmax.f32 %v792_v10, %v6493_v7 }
  0xcc   : > { %v4806_v63 = vmax.f32 %v4662_v41, %v4711_v46  ;;  %v731_v2 = vmax.f32 %v667_v8, %v6470_v39  ;;  %v4196_v54 = vsel %vm1255_vm2, %v4194_v59, %v4195_v21  ;;  %v10616_v17 = vrot.slane %v5983_v48, 1  ;;  %5108 = vst.msk [vmem:[%s5873_s17 + $0x23c] sm:$0xf0] %vm4842_vm5, %v4805_v50  ;;  %v6535_v41 = vld [vmem:[#allocation2 + $0x1e0] sm:$0xff] }
  0xcd   : > { %v732_v9 = vmax.f32 %v668_v37, %v6464_v4  ;;  %v4312_v56 = vmax.f32 %v667_v8, %v4196_v54  ;;  %v4712_v57 = vrot.slane %v668_v37, 4  ;;  %10617 = vst [vmem:[#allocation27_spill] sm:$0xff] %v6535_v41  ;;  %v4372_v10 = vsel %vm1400_vm3, %v4370_v19, %v4371_v51 }
  0xce   : > { %v4198_v0 = vsel %vm1255_vm2, %v4195_v21, %v10616_v17  ;;  %5109 = vst.msk [vmem:[%s5873_s17 + $0x244] sm:$0xff] %vm148_vm0, %v4806_v63  ;;  %v10618_v32 = vrot.slane %v5983_v48, 2  ;;  %v607_v46 = vmax.f32 %v543_v22, %v6447_v55  ;;  %v608_v21 = vmax.f32 %v544_v61, %v6380_v25 }
  0xcf   : > { %v4313_v15 = vmax.f32 %v668_v37, %v4198_v0  ;;  %v4488_v63 = vmax.f32 %v4312_v56, %v4372_v10  ;;  %v4548_v8 = vsel %vm1545_vm4, %v4546_v38, %v4547_v52  ;;  %v6546_v37 = vld [vmem:[#allocation2 + $0x208] sm:$0xff]  ;;  %v10619_v17 = vrot.slane %v5983_v48, 3 }
  0xd0   : > { %v4374_v59 = vsel %vm1400_vm3, %v4371_v51, %v10618_v32  ;;  %v6552_v0 = vmax.f32 %v607_v46, %v6470_v39  ;;  %v672_v22 = vmax.f32 %v608_v21, %v6464_v4  ;;  %v484_v61 = vmax.f32 %v5942_v1, %v5975_v16 }
  0xd1   : > { %v4489_v54 = vmax.f32 %v4313_v15, %v4374_v59  ;;  %v4550_v19 = vsel %vm1545_vm4, %v4547_v52, %v10619_v17  ;;  %v6558_v51 = vmax.f32 %v856_v28, %v6546_v37  ;;  %v796_v38 = vmax.f32 %v732_v9, %v6493_v7 }
  0xd2   : > { %v4664_v56 = vmax.f32 %v4488_v63, %v4548_v8  ;;  %v6562_v10 = vmax.f32 %v731_v2, %v6535_v41  ;;  %v10622_v52 = vrot.slane %v5983_v48, 4  ;;  %v4199_v59 = vrot.slane %v6552_v0, 1 }
  0xd3   : > { %10620 = vst [vmem:[#allocation28_spill] sm:$0xff] %v6558_v51  ;;  %v4665_v15 = vmax.f32 %v4489_v54, %v4550_v19  ;;  %v4200_v46 = vrot.slane %v672_v22, 1  ;;  %v4375_v28 = vrot.slane %v6552_v0, 2  ;;  %v4376_v17 = vrot.slane %v672_v22, 2  ;;  %v6573_v54 = vld [vmem:[#allocation2 + $0x200] sm:$0xff] }
  0xd4   : > { %10621 = vst [vmem:[#allocation29_spill] sm:$0xff] %v6562_v10  ;;  %v4714_v32 = vsel %vm1690_vm6, %v4712_v57, %v10622_v52  ;;  %v4808_v1 = vmax.f32 %v4664_v56, %v4712_v57  ;;  %v4551_v63 = vrot.slane %v6552_v0, 3  ;;  %v547_v8 = vmax.f32 %v483_v58, %v6447_v55  ;;  %10623 = vst [vmem:[#allocation30_spill] sm:$0xff] %v6573_v54  ;;  %v6691_v10 = vld [vmem:[#allocation2 + $0x268] sm:$0xff] }
  0xd5   : > { %v4809_v21 = vmax.f32 %v4665_v15, %v4714_v32  ;;  %v4201_v9 = vsel %vm1255_vm2, %v4199_v59, %v4200_v46  ;;  %v548_v2 = vmax.f32 %v484_v61, %v6380_v25  ;;  %v860_v48 = vmax.f32 %v796_v38, %v6546_v37 }
  0xd6   : > { %5111 = vst.msk [vmem:[%s5873_s17 + $0x24c] sm:$0xf0] %vm4842_vm5, %v4808_v1  ;;  %v4315_v57 = vmax.f32 %v6552_v0, %v4201_v9  ;;  %v4552_v19 = vrot.slane %v672_v22, 3  ;;  %v487_v56 = vmax.f32 %v6378_v33, %v6447_v55  ;;  %v4377_v58 = vsel %vm1400_vm3, %v4375_v28, %v4376_v17  ;;  %v6592_v9 = vld [vmem:[#allocation2 + $0x228] sm:$0xff] }
  0xd7   : > { %5112 = vst.msk [vmem:[%s5873_s17 + $0x254] sm:$0xff] %vm148_vm0, %v4809_v21  ;;  %v10624_v61 = vrot.slane %v6002_v27, 1  ;;  %v488_v38 = vmax.f32 %v5975_v16, %v6380_v25  ;;  %v736_v32 = vmax.f32 %v672_v22, %v6493_v7  ;;  %v4715_v1 = vrot.slane %v672_v22, 4 }
  0xd8   : > { %v4491_v59 = vmax.f32 %v4315_v57, %v4377_v58  ;;  %v4553_v50 = vsel %vm1545_vm4, %v4551_v63, %v4552_v19  ;;  %v10625_v15 = vrot.slane %v6002_v27, 2  ;;  %v611_v29 = vmax.f32 %v547_v8, %v6470_v39 }
  0xd9   : > { %v4203_v52 = vsel %vm1255_vm2, %v4200_v46, %v10624_v61  ;;  %v612_v46 = vmax.f32 %v548_v2, %v6464_v4  ;;  %v6601_v61 = vmax.f32 %v860_v48, %v6592_v9  ;;  %v10627_v58 = vrot.slane %v6002_v27, 3 }
  0xda   : > { %v4316_v21 = vmax.f32 %v672_v22, %v4203_v52  ;;  %v4379_v28 = vsel %vm1400_vm3, %v4376_v17, %v10625_v15  ;;  %v4667_v16 = vmax.f32 %v4491_v59, %v4553_v50  ;;  %v551_v22 = vmax.f32 %v487_v56, %v6470_v39 }
  0xdb   : > { %10626 = vst [vmem:[#allocation31_spill] sm:$0xff] %v6601_v61  ;;  %v4555_v63 = vsel %vm1545_vm4, %v4552_v19, %v10627_v58  ;;  %v675_v52 = vmax.f32 %v611_v29, %v6535_v41  ;;  %v676_v17 = vmax.f32 %v612_v46, %v6493_v7  ;;  %v552_v8 = vmax.f32 %v488_v38, %v6464_v4 }
  0xdc   : > { %v4492_v57 = vmax.f32 %v4316_v21, %v4379_v28  ;;  %v735_v2 = vmax.f32 %v6552_v0, %v6535_v41  ;;  %v800_v48 = vmax.f32 %v736_v32, %v6546_v37  ;;  %v4811_v15 = vmax.f32 %v4667_v16, %v4715_v1 }
  0xdd   : > { %v10628_v59 = vrot.slane %v6002_v27, 4  ;;  %v4204_v21 = vrot.slane %v675_v52, 1  ;;  %v4205_v19 = vrot.slane %v676_v17, 1  ;;  %v615_v29 = vmax.f32 %v551_v22, %v6535_v41 }
  0xde   : > { %v4668_v50 = vmax.f32 %v4492_v57, %v4555_v63  ;;  %5114 = vst.msk [vmem:[%s5873_s17 + $0x25c] sm:$0xf0] %vm4842_vm5, %v4811_v15  ;;  %v739_v38 = vmax.f32 %v675_v52, %v6573_v54  ;;  %v4380_v46 = vrot.slane %v675_v52, 2  ;;  %v4381_v0 = vrot.slane %v676_v17, 2 }
  0xdf   : > { %v4717_v56 = vsel %vm1690_vm6, %v4715_v1, %v10628_v59  ;;  %v4206_v32 = vsel %vm1255_vm2, %v4204_v21, %v4205_v19  ;;  %v4556_v16 = vrot.slane %v675_v52, 3  ;;  %v4557_v57 = vrot.slane %v676_v17, 3 }
  0xe0   : > { %v4812_v28 = vmax.f32 %v4668_v50, %v4717_v56  ;;  %v616_v27 = vmax.f32 %v552_v8, %v6493_v7  ;;  %v6623_v58 = vmax.f32 %v735_v2, %v6573_v54  ;;  %v864_v1 = vmax.f32 %v800_v48, %v6592_v9  ;;  %v6631_v50 = vld [vmem:[#allocation2 + $0x220] sm:$0xff] }
  0xe1   : > { %v4318_v22 = vmax.f32 %v675_v52, %v4206_v32  ;;  %v10630_v63 = vrot.slane %v6070_v31, 1  ;;  %10631 = vst [vmem:[#allocation33_spill] sm:$0xff] %v6631_v50  ;;  %v740_v59 = vmax.f32 %v676_v17, %v6546_v37  ;;  %v4382_v56 = vsel %vm1400_vm3, %v4380_v46, %v4381_v0 }
  0xe2   : > { %10629 = vst [vmem:[#allocation32_spill] sm:$0xff] %v6623_v58  ;;  %5115 = vst.msk [vmem:[%s5873_s17 + $0x264] sm:$0xff] %vm148_vm0, %v4812_v28  ;;  %v4718_v21 = vrot.slane %v676_v17, 4  ;;  %v6636_v2 = vmax.f32 %v739_v38, %v6631_v50  ;;  %v10633_v48 = vrot.slane %v6070_v31, 2  ;;  %v491_v28 = vmax.f32 %v6447_v55, %v6470_v39 }
  0xe3   : > { %v4208_v15 = vsel %vm1255_vm2, %v4205_v19, %v10630_v63  ;;  %v4494_v47 = vmax.f32 %v4318_v22, %v4382_v56  ;;  %v4558_v19 = vsel %vm1545_vm4, %v4556_v16, %v4557_v57  ;;  %v679_v63 = vmax.f32 %v615_v29, %v6573_v54 }
  0xe4   : > { %v4319_v8 = vmax.f32 %v676_v17, %v4208_v15  ;;  %10632 = vst [vmem:[#allocation34_spill] sm:$0xff] %v6636_v2  ;;  %v4384_v52 = vsel %vm1400_vm3, %v4381_v0, %v10633_v48  ;;  %v680_v46 = vmax.f32 %v616_v27, %v6546_v37  ;;  %v10634_v22 = vrot.slane %v6070_v31, 3  ;;  %v6657_v48 = vld [vmem:[#allocation2 + $0x240] sm:$0xff] }
  0xe5   : > { %v4670_v38 = vmax.f32 %v4494_v47, %v4558_v19  ;;  %v492_v0 = vmax.f32 %v6380_v25, %v6464_v4  ;;  %v804_v56 = vmax.f32 %v740_v59, %v6592_v9  ;;  %v4209_v27 = vrot.slane %v679_v63, 1  ;;  %10636 = vst [vmem:[#allocation35_spill] sm:$0xff] %v6657_v48  ;;  %v6659_v47 = vld [vmem:[#allocation2 + $0x248] sm:$0xff] }
  0xe6   : > { %v4495_v32 = vmax.f32 %v4319_v8, %v4384_v52  ;;  %v4560_v15 = vsel %vm1545_vm4, %v4557_v57, %v10634_v22  ;;  %v10635_v8 = vrot.slane %v6070_v31, 4  ;;  %v4210_v19 = vrot.slane %v680_v46, 1 }
  0xe7   : > { %v4814_v52 = vmax.f32 %v4670_v38, %v4718_v21  ;;  %v4385_v57 = vrot.slane %v679_v63, 2  ;;  %v4386_v22 = vrot.slane %v680_v46, 2  ;;  %v6662_v17 = vmax.f32 %v864_v1, %v6659_v47 }
  0xe8   : > { %v4671_v16 = vmax.f32 %v4495_v32, %v4560_v15  ;;  %v4720_v29 = vsel %vm1690_vm6, %v4718_v21, %v10635_v8  ;;  %v555_v31 = vmax.f32 %v491_v28, %v6535_v41  ;;  %v4211_v32 = vsel %vm1255_vm2, %v4209_v27, %v4210_v19 }
  0xe9   : > { %10637 = vst [vmem:[#allocation36_spill] sm:$0xff] %v6662_v17  ;;  %5117 = vst.msk [vmem:[%s5873_s17 + $0x26c] sm:$0xf0] %vm4842_vm5, %v4814_v52  ;;  %v4561_v15 = vrot.slane %v679_v63, 3  ;;  %v4562_v8 = vrot.slane %v680_v46, 3  ;;  %v556_v21 = vmax.f32 %v492_v0, %v6493_v7  ;;  %v868_v38 = vmax.f32 %v804_v56, %v6659_v47 }
  0xea   : > { %v4815_v59 = vmax.f32 %v4671_v16, %v4720_v29  ;;  %v4321_v1 = vmax.f32 %v679_v63, %v4211_v32  ;;  %v10638_v17 = vrot.slane %v6078_v60, 1  ;;  %v495_v28 = vmax.f32 %v6470_v39, %v6535_v41 }
  0xeb   : > { %v743_v16 = vmax.f32 %v679_v63, %v6631_v50  ;;  %v744_v29 = vmax.f32 %v680_v46, %v6592_v9  ;;  %v4387_v27 = vsel %vm1400_vm3, %v4385_v57, %v4386_v22  ;;  %v4721_v2 = vrot.slane %v680_v46, 4 }
  0xec   : > { %5118 = vst.msk [vmem:[%s5873_s17 + $0x274] sm:$0xff] %vm148_vm0, %v4815_v59  ;;  %v4213_v25 = vsel %vm1255_vm2, %v4210_v19, %v10638_v17  ;;  %v4497_v0 = vmax.f32 %v4321_v1, %v4387_v27  ;;  %v10639_v56 = vrot.slane %v6078_v60, 2  ;;  %v619_v32 = vmax.f32 %v555_v31, %v6573_v54 }
  0xed   : > { %v4322_v52 = vmax.f32 %v680_v46, %v4213_v25  ;;  %v4563_v17 = vsel %vm1545_vm4, %v4561_v15, %v4562_v8  ;;  %v10640_v58 = vrot.slane %v6078_v60, 3  ;;  %v620_v61 = vmax.f32 %v556_v21, %v6546_v37 }
  0xee   : > { %v4389_v59 = vsel %vm1400_vm3, %v4386_v22, %v10639_v56  ;;  %v4673_v57 = vmax.f32 %v4497_v0, %v4563_v17  ;;  %v683_v46 = vmax.f32 %v619_v32, %v6631_v50  ;;  %v496_v22 = vmax.f32 %v6464_v4, %v6493_v7 }
  0xef   : > { %v4498_v19 = vmax.f32 %v4322_v52, %v4389_v59  ;;  %v4565_v63 = vsel %vm1545_vm4, %v4562_v8, %v10640_v58  ;;  %v559_v25 = vmax.f32 %v495_v28, %v6573_v54  ;;  %v6698_v31 = vmax.f32 %v868_v38, %v6691_v10 }
  0xf0   : > { %v6701_v15 = vmax.f32 %v743_v16, %v6657_v48  ;;  %v684_v8 = vmax.f32 %v620_v61, %v6592_v9  ;;  %v808_v21 = vmax.f32 %v744_v29, %v6659_v47  ;;  %v4817_v1 = vmax.f32 %v4673_v57, %v4721_v2 }
  0xf1   : > { %10641 = vst [vmem:[#allocation37_spill] sm:$0xff] %v6698_v31  ;;  %v4674_v58 = vmax.f32 %v4498_v19, %v4565_v63  ;;  %v10643_v27 = vrot.slane %v6078_v60, 4  ;;  %v4214_v4 = vrot.slane %v683_v46, 1  ;;  %v4390_v56 = vrot.slane %v683_v46, 2 }
  0xf2   : > { %10642 = vst [vmem:[#allocation38_spill] sm:$0xff] %v6701_v15  ;;  %v4215_v28 = vrot.slane %v684_v8, 1  ;;  %v4391_v38 = vrot.slane %v684_v8, 2  ;;  %5120 = vst.msk [vmem:[%s5873_s17 + $0x27c] sm:$0xf0] %vm4842_vm5, %v4817_v1  ;;  %v747_v16 = vmax.f32 %v683_v46, %v6657_v48  ;;  %v560_v59 = vmax.f32 %v496_v22, %v6546_v37 }
  0xf3   : > { %v4723_v52 = vsel %vm1690_vm6, %v4721_v2, %v10643_v27  ;;  %v623_v61 = vmax.f32 %v559_v25, %v6631_v50  ;;  %v499_v29 = vmax.f32 %v6535_v41, %v6573_v54  ;;  %v4566_v2 = vrot.slane %v683_v46, 3 }
  0xf4   : > { %v4818_v0 = vmax.f32 %v4674_v58, %v4723_v52  ;;  %v4216_v60 = vsel %vm1255_vm2, %v4214_v4, %v4215_v28  ;;  %v4567_v32 = vrot.slane %v684_v8, 3  ;;  %v10644_v17 = vrot.slane %v6125_v53, 1 }
  0xf5   : > { %v872_v63 = vmax.f32 %v808_v21, %v6691_v10  ;;  %v4324_v57 = vmax.f32 %v683_v46, %v4216_v60  ;;  %v500_v22 = vmax.f32 %v6493_v7, %v6546_v37  ;;  %v748_v25 = vmax.f32 %v684_v8, %v6659_v47 }
  0xf6   : > { %5121 = vst.msk [vmem:[%s5873_s17 + $0x284] sm:$0xff] %vm148_vm0, %v4818_v0  ;;  %v4218_v19 = vsel %vm1255_vm2, %v4215_v28, %v10644_v17  ;;  %v4392_v1 = vsel %vm1400_vm3, %v4390_v56, %v4391_v38  ;;  %v4724_v27 = vrot.slane %v684_v8, 4  ;;  %v10645_v52 = vrot.slane %v6125_v53, 2  ;;  %v6729_v0 = vld [vmem:[#allocation2 + $0x260] sm:$0xff] }
  0xf7   : > { %v4325_v58 = vmax.f32 %v684_v8, %v4218_v19  ;;  %10646 = vst [vmem:[#allocation39_spill] sm:$0xff] %v6729_v0  ;;  %v4500_v31 = vmax.f32 %v4324_v57, %v4392_v1  ;;  %v624_v21 = vmax.f32 %v560_v59, %v6592_v9  ;;  %v687_v46 = vmax.f32 %v623_v61, %v6657_v48  ;;  %v6743_v61 = vld [vmem:[#allocation2 + $0x288] sm:$0xff] }
  0xf8   : > { %v4394_v4 = vsel %vm1400_vm3, %v4391_v38, %v10645_v52  ;;  %v6734_v60 = vmax.f32 %v747_v16, %v6729_v0  ;;  %v4568_v7 = vsel %vm1545_vm4, %v4566_v2, %v4567_v32  ;;  %v10648_v56 = vrot.slane %v6125_v53, 3 }
  0xf9   : > { %v4501_v28 = vmax.f32 %v4325_v58, %v4394_v4  ;;  %v563_v17 = vmax.f32 %v499_v29, %v6631_v50  ;;  %v4676_v38 = vmax.f32 %v4500_v31, %v4568_v7  ;;  %v688_v57 = vmax.f32 %v624_v21, %v6659_v47  ;;  %v6758_v7 = vld [vmem:[#allocation2 + $0x280] sm:$0xff] }
  0xfa   : > { %10647 = vst [vmem:[#allocation40_spill] sm:$0xff] %v6734_v60  ;;  %v4570_v8 = vsel %vm1545_vm4, %v4567_v32, %v10648_v56  ;;  %v564_v59 = vmax.f32 %v500_v22, %v6592_v9  ;;  %v6746_v16 = vmax.f32 %v748_v25, %v6691_v10  ;;  %v10649_v2 = vrot.slane %v6125_v53, 4  ;;  %10651 = vst [vmem:[#allocation42_spill] sm:$0xff] %v6758_v7 }
  0xfb   : > { %v4677_v19 = vmax.f32 %v4501_v28, %v4570_v8  ;;  %v4219_v32 = vrot.slane %v687_v46, 1  ;;  %v627_v29 = vmax.f32 %v563_v17, %v6657_v48  ;;  %v6755_v1 = vmax.f32 %v872_v63, %v6743_v61 }
  0xfc   : > { %v4726_v58 = vsel %vm1690_vm6, %v4724_v27, %v10649_v2  ;;  %v4820_v22 = vmax.f32 %v4676_v38, %v4724_v27  ;;  %v752_v4 = vmax.f32 %v688_v57, %v6691_v10  ;;  %v4220_v28 = vrot.slane %v688_v57, 1 }
  0xfd   : > { %10650 = vst [vmem:[#allocation41_spill] sm:$0xff] %v6755_v1  ;;  %v4821_v52 = vmax.f32 %v4677_v19, %v4726_v58  ;;  %v4395_v25 = vrot.slane %v687_v46, 2  ;;  %v4396_v21 = vrot.slane %v688_v57, 2  ;;  %v4571_v53 = vrot.slane %v687_v46, 3 }
  0xfe   : > { %5123 = vst.msk [vmem:[%s5873_s17 + $0x28c] sm:$0xf0] %vm4842_vm5, %v4820_v22  ;;  %v4572_v56 = vrot.slane %v688_v57, 3  ;;  %v628_v8 = vmax.f32 %v564_v59, %v6659_v47  ;;  %v6766_v63 = vmax.f32 %v627_v29, %v6729_v0  ;;  %v876_v17 = vmax.f32 %v6746_v16, %v6743_v61 }
  0xff   : > { %5124 = vst.msk [vmem:[%s5873_s17 + $0x294] sm:$0xff] %vm148_vm0, %v4821_v52  ;;  %v4221_v38 = vsel %vm1255_vm2, %v4219_v32, %v4220_v28  ;;  %v10652_v19 = vrot.slane %v6149_v11, 1  ;;  %v751_v58 = vmax.f32 %v687_v46, %v6729_v0  ;;  %v4727_v52 = vrot.slane %v688_v57, 4 }
 0x100   : > { %v4327_v22 = vmax.f32 %v687_v46, %v4221_v38  ;;  %v6778_v29 = vmax.f32 %v752_v4, %v6743_v61  ;;  %v4397_v31 = vsel %vm1400_vm3, %v4395_v25, %v4396_v21  ;;  %v10653_v27 = vrot.slane %v6149_v11, 2 }
 0x101   : > { %v4223_v2 = vsel %vm1255_vm2, %v4220_v28, %v10652_v19  ;;  %v692_v32 = vmax.f32 %v628_v8, %v6691_v10  ;;  %v4573_v1 = vsel %vm1545_vm4, %v4571_v53, %v4572_v56  ;;  %v4224_v19 = vrot.slane %v6766_v63, 1 }
 0x102   : > { %v4328_v59 = vmax.f32 %v688_v57, %v4223_v2  ;;  %v4399_v16 = vsel %vm1400_vm3, %v4396_v21, %v10653_v27  ;;  %v4503_v60 = vmax.f32 %v4327_v22, %v4397_v31  ;;  %v10654_v46 = vrot.slane %v6149_v11, 3 }
 0x103   : > { %v756_v4 = vmax.f32 %v692_v32, %v6743_v61  ;;  %v4225_v38 = vrot.slane %v692_v32, 1  ;;  %v4400_v25 = vrot.slane %v6766_v63, 2  ;;  %v4401_v21 = vrot.slane %v692_v32, 2 }
 0x104   : > { %v4504_v28 = vmax.f32 %v4328_v59, %v4399_v16  ;;  %v4575_v57 = vsel %vm1545_vm4, %v4572_v56, %v10654_v46  ;;  %v4679_v2 = vmax.f32 %v4503_v60, %v4573_v1  ;;  %v4576_v31 = vrot.slane %v6766_v63, 3  ;;  %v6799_v59 = vld [vmem:[#allocation2 + $0x2a8] sm:$0xff] }
 0x105   : > { %v10655_v53 = vrot.slane %v6149_v11, 4  ;;  %v4226_v27 = vsel %vm1255_vm2, %v4224_v19, %v4225_v38  ;;  %v4577_v22 = vrot.slane %v692_v32, 3  ;;  %v2670_v56 = vmax.f32 %v6573_v54, %v6631_v50 }
 0x106   : > { %v4680_v15 = vmax.f32 %v4504_v28, %v4575_v57  ;;  %v6802_v60 = vmax.f32 %v751_v58, %v6758_v7  ;;  %v4823_v1 = vmax.f32 %v4679_v2, %v4727_v52  ;;  %v4330_v28 = vmax.f32 %v6766_v63, %v4226_v27 }
 0x107   : > { %v4729_v8 = vsel %vm1690_vm6, %v4727_v52, %v10655_v53  ;;  %v880_v11 = vmax.f32 %v6778_v29, %v6799_v59  ;;  %v755_v46 = vmax.f32 %v6766_v63, %v6758_v7  ;;  %v4402_v19 = vsel %vm1400_vm3, %v4400_v25, %v4401_v21 }
 0x108   : > { %10656 = vst [vmem:[#allocation43_spill] sm:$0xff] %v6802_v60  ;;  %v4824_v16 = vmax.f32 %v4680_v15, %v4729_v8  ;;  %v10657_v57 = vrot.slane %v6156_v35, 1  ;;  %5126 = vst.msk [vmem:[%s5873_s17 + $0x29c] sm:$0xf0] %vm4842_vm5, %v4823_v1  ;;  %v6818_v15 = vmax.f32 %v756_v4, %v6799_v59  ;;  %v4506_v58 = vmax.f32 %v4330_v28, %v4402_v19 }
 0x109   : > { %v4578_v52 = vsel %vm1545_vm4, %v4576_v31, %v4577_v22  ;;  %v4730_v2 = vrot.slane %v692_v32, 4  ;;  %v10658_v63 = vrot.slane %v6156_v35, 2  ;;  %v2671_v8 = vmax.f32 %v6546_v37, %v6592_v9 }
 0x10a   : > { %v4228_v53 = vsel %vm1255_vm2, %v4225_v38, %v10657_v57  ;;  %5127 = vst.msk [vmem:[%s5873_s17 + $0x2a4] sm:$0xff] %vm148_vm0, %v4824_v16  ;;  %v2678_v38 = vmax.f32 %v2670_v56, %v6657_v48  ;;  %v4682_v27 = vmax.f32 %v4506_v58, %v4578_v52  ;;  %v2674_v4 = vmax.f32 %v6631_v50, %v6657_v48 }
 0x10b   : > { %v4331_v29 = vmax.f32 %v692_v32, %v4228_v53  ;;  %v4404_v25 = vsel %vm1400_vm3, %v4401_v21, %v10658_v63  ;;  %v2675_v31 = vmax.f32 %v6592_v9, %v6659_v47  ;;  %v10659_v32 = vrot.slane %v6156_v35, 3  ;;  %v6850_v63 = vld [vmem:[#allocation2 + $0x2a0] sm:$0xff] }
 0x10c   : > { %v2679_v21 = vmax.f32 %v2671_v8, %v6659_v47  ;;  %v2686_v28 = vmax.f32 %v2678_v38, %v6729_v0  ;;  %v4097_v37 = vmax.f32 %v6657_v48, %v6729_v0  ;;  %v4826_v56 = vmax.f32 %v4682_v27, %v4730_v2  ;;  %v6858_v38 = vld [vmem:[#allocation2 + $0x2c8] sm:$0xff] }
 0x10d   : > { %v4507_v1 = vmax.f32 %v4331_v29, %v4404_v25  ;;  %v4580_v16 = vsel %vm1545_vm4, %v4577_v22, %v10659_v32  ;;  %v2682_v57 = vmax.f32 %v2674_v4, %v6729_v0  ;;  %v2683_v53 = vmax.f32 %v2675_v31, %v6691_v10 }
 0x10e   : > { %v6841_v58 = vmax.f32 %v876_v17, %v6799_v59  ;;  %v10661_v9 = vrot.slane %v6156_v35, 4  ;;  %v2687_v52 = vmax.f32 %v2679_v21, %v6691_v10  ;;  %v6848_v29 = vmax.f32 %v2686_v28, %v6758_v7  ;;  %5129 = vst.msk [vmem:[%s5873_s17 + $0x2ac] sm:$0xf0] %vm4842_vm5, %v4826_v56 }
 0x10f   : > { %v4683_v19 = vmax.f32 %v4507_v1, %v4580_v16  ;;  %v2690_v8 = vmax.f32 %v2682_v57, %v6758_v7  ;;  %v2691_v17 = vmax.f32 %v2683_v53, %v6743_v61  ;;  %v4098_v35 = vmax.f32 %v6659_v47, %v6691_v10 }
 0x110   : > { %10660 = vst [vmem:[#allocation44_spill] sm:$0xff] %v6841_v58  ;;  %v4732_v22 = vsel %vm1690_vm6, %v4730_v2, %v10661_v9  ;;  %v2695_v27 = vmax.f32 %v2687_v52, %v6743_v61  ;;  %v4229_v1 = vrot.slane %v6848_v29, 1  ;;  %v4103_v4 = vmax.f32 %v4097_v37, %v6758_v7 }
 0x111   : > { %v4827_v25 = vmax.f32 %v4683_v19, %v4732_v22  ;;  %v6866_v31 = vmax.f32 %v880_v11, %v6858_v38  ;;  %v6869_v32 = vmax.f32 %v755_v46, %v6850_v63  ;;  %v4405_v16 = vrot.slane %v6848_v29, 2 }
 0x112   : > { %v4230_v21 = vrot.slane %v2695_v27, 1  ;;  %v4406_v28 = vrot.slane %v2695_v27, 2  ;;  %v4581_v56 = vrot.slane %v6848_v29, 3  ;;  %v6878_v19 = vmax.f32 %v2691_v17, %v6799_v59 }
 0x113   : > { %10662 = vst [vmem:[#allocation45_spill] sm:$0xff] %v6866_v31  ;;  %10663 = vst [vmem:[#allocation46_spill] sm:$0xff] %v6869_v32  ;;  %v4582_v37 = vrot.slane %v2695_v27, 3  ;;  %v6881_v11 = vmax.f32 %v2690_v8, %v6850_v63  ;;  %v4104_v46 = vmax.f32 %v4098_v35, %v6743_v61  ;;  %v4100_v57 = vmax.f32 %v6729_v0, %v6758_v7  ;;  %v6924_v0 = vld [vmem:[#allocation2 + $0x2c0] sm:$0xff] }
 0x114   : > { %5130 = vst.msk [vmem:[%s5873_s17 + $0x2b4] sm:$0xff] %vm148_vm0, %v4827_v25  ;;  %v4231_v9 = vsel %vm1255_vm2, %v4229_v1, %v4230_v21  ;;  %v10664_v22 = vrot.slane %v6198_v18, 1  ;;  %v4109_v25 = vmax.f32 %v4103_v4, %v6850_v63  ;;  %v2703_v17 = vmax.f32 %v2695_v27, %v6799_v59  ;;  %10670 = vst [vmem:[#allocation48_spill] sm:$0xff] %v6924_v0 }
 0x115   : > { %v4333_v8 = vmax.f32 %v6848_v29, %v4231_v9  ;;  %v4733_v2 = vrot.slane %v2695_v27, 4  ;;  %v4407_v47 = vsel %vm1400_vm3, %v4405_v16, %v4406_v28  ;;  %v4583_v31 = vsel %vm1545_vm4, %v4581_v56, %v4582_v37 }
 0x116   : > { %v4233_v52 = vsel %vm1255_vm2, %v4230_v21, %v10664_v22  ;;  %v10665_v53 = vrot.slane %v6198_v18, 2  ;;  %v10666_v4 = vrot.slane %v6198_v18, 3  ;;  %v4234_v9 = vrot.slane %v6881_v11, 1 }
 0x117   : > { %v4334_v35 = vmax.f32 %v2695_v27, %v4233_v52  ;;  %v4509_v21 = vmax.f32 %v4333_v8, %v4407_v47  ;;  %v4235_v27 = vrot.slane %v6878_v19, 1  ;;  %v4410_v16 = vrot.slane %v6881_v11, 2 }
 0x118   : > { %v4409_v1 = vsel %vm1400_vm3, %v4406_v28, %v10665_v53  ;;  %v4585_v58 = vsel %vm1545_vm4, %v4582_v37, %v10666_v4  ;;  %v4411_v56 = vrot.slane %v6878_v19, 2  ;;  %v4586_v52 = vrot.slane %v6881_v11, 3 }
 0x119   : > { %v4510_v22 = vmax.f32 %v4334_v35, %v4409_v1  ;;  %v4685_v28 = vmax.f32 %v4509_v21, %v4583_v31  ;;  %v10667_v60 = vrot.slane %v6198_v18, 4  ;;  %v4587_v8 = vrot.slane %v6878_v19, 3  ;;  %v330_v21 = vld [vmem:[#allocation2 + $0x18] sm:$0xf] }
 0x11a   : > { %v4236_v37 = vsel %vm1255_vm2, %v4234_v9, %v4235_v27  ;;  %v4412_v35 = vsel %vm1400_vm3, %v4410_v16, %v4411_v56  ;;  %v4736_v1 = vrot.slane %v6878_v19, 4  ;;  %v10668_v4 = vrot.slane %v6223_v36, 1 }
 0x11b   : > { %v4686_v53 = vmax.f32 %v4510_v22, %v4585_v58  ;;  %v4735_v47 = vsel %vm1690_vm6, %v4733_v2, %v10667_v60  ;;  %v6921_v58 = vmax.f32 %v2703_v17, %v6858_v38  ;;  %v4829_v18 = vmax.f32 %v4685_v28, %v4733_v2  ;;  %v334_v22 = vld [vmem:[#allocation2 + $0x38] sm:$0xf] }
 0x11c   : > { %v4238_v7 = vsel %vm1255_vm2, %v4235_v27, %v10668_v4  ;;  %v4336_v60 = vmax.f32 %v6881_v11, %v4236_v37  ;;  %v4588_v9 = vsel %vm1545_vm4, %v4586_v52, %v4587_v8  ;;  %v10671_v48 = vrot.slane %v6223_v36, 2  ;;  %v6946_v37 = vld [vmem:[#allocation2 + $0x2e0] sm:$0xff] }
 0x11d   : > { %10669 = vst [vmem:[#allocation47_spill] sm:$0xff] %v6921_v58  ;;  %v4830_v31 = vmax.f32 %v4686_v53, %v4735_v47  ;;  %v4337_v16 = vmax.f32 %v6878_v19, %v4238_v7  ;;  %v10672_v27 = vrot.slane %v6223_v36, 3  ;;  %5132 = vst.msk [vmem:[%s5873_s17 + $0x2bc] sm:$0xf0] %vm4842_vm5, %v4829_v18  ;;  %v4110_v28 = vmax.f32 %v4104_v46, %v6799_v59 }
 0x11e   : > { %v4414_v50 = vsel %vm1400_vm3, %v4411_v56, %v10671_v48  ;;  %v4512_v2 = vmax.f32 %v4336_v60, %v4412_v35  ;;  %v4115_v53 = vmax.f32 %v4109_v25, %v6924_v0  ;;  %v4101_v7 = vmax.f32 %v6691_v10, %v6743_v61 }
 0x11f   : > { %v4590_v17 = vsel %vm1545_vm4, %v4587_v8, %v10672_v27  ;;  %5133 = vst.msk [vmem:[%s5873_s17 + $0x2c4] sm:$0xff] %vm148_vm0, %v4830_v31  ;;  %v4513_v52 = vmax.f32 %v4337_v16, %v4414_v50  ;;  %v10673_v47 = vrot.slane %v6223_v36, 4  ;;  %v4106_v56 = vmax.f32 %v4100_v57, %v6850_v63  ;;  %v338_v36 = vld [vmem:[#allocation2 + $0x58] sm:$0xf]  ;;  %v6951_v16 = vld [vmem:[#allocation2 + $0x2e8] sm:$0xff] }
 0x120   : > { %v442_v8 = vmax.f32 %v330_v21, %v334_v22  ;;  %v4688_v4 = vmax.f32 %v4512_v2, %v4588_v9  ;;  %v4116_v35 = vmax.f32 %v4110_v28, %v6858_v38  ;;  %v4239_v18 = vrot.slane %v4115_v53, 1  ;;  %10674 = vst [vmem:[#allocation49_spill] sm:$0xff] %v6951_v16 }
 0x121   : > { %v4738_v48 = vsel %vm1690_vm6, %v4736_v1, %v10673_v47  ;;  %v4415_v46 = vrot.slane %v4115_v53, 2  ;;  %v4689_v25 = vmax.f32 %v4513_v52, %v4590_v17  ;;  %v4591_v31 = vrot.slane %v4115_v53, 3 }
 0x122   : > { %v4107_v10 = vmax.f32 %v4101_v7, %v6799_v59  ;;  %v4112_v50 = vmax.f32 %v4106_v56, %v6924_v0  ;;  %v4832_v61 = vmax.f32 %v4688_v4, %v4736_v1  ;;  %v4240_v60 = vrot.slane %v4116_v35, 1 }
 0x123   : > { %v4416_v57 = vrot.slane %v4116_v35, 2  ;;  %v4592_v21 = vrot.slane %v4116_v35, 3  ;;  %v4833_v9 = vmax.f32 %v4689_v25, %v4738_v48  ;;  %v4739_v27 = vrot.slane %v4116_v35, 4 }
 0x124   : > { %v4113_v2 = vmax.f32 %v4107_v10, %v6858_v38  ;;  %v4118_v28 = vmax.f32 %v4112_v50, %v6946_v37  ;;  %5135 = vst.msk [vmem:[%s5873_s17 + $0x2cc] sm:$0xf0] %vm4842_vm5, %v4832_v61  ;;  %v4241_v59 = vsel %vm1255_vm2, %v4239_v18, %v4240_v60  ;;  %v10675_v7 = vrot.slane %v6226_v26, 1  ;;  %v6968_v10 = vld [vmem:[#allocation2 + $0x78] sm:$0xf] }
 0x125   : > { %v4417_v17 = vsel %vm1400_vm3, %v4415_v46, %v4416_v57  ;;  %v446_v52 = vmax.f32 %v334_v22, %v338_v36  ;;  %5136 = vst.msk [vmem:[%s5873_s17 + $0x2d4] sm:$0xff] %vm148_vm0, %v4833_v9  ;;  %v4339_v47 = vmax.f32 %v4115_v53, %v4241_v59  ;;  %v4593_v48 = vsel %vm1545_vm4, %v4591_v31, %v4592_v21 }
 0x126   : > { %v4243_v1 = vsel %vm1255_vm2, %v4240_v60, %v10675_v7  ;;  %v10676_v4 = vrot.slane %v6226_v26, 2  ;;  %v10677_v18 = vrot.slane %v6226_v26, 3  ;;  %v4119_v50 = vmax.f32 %v4113_v2, %v6951_v16 }
 0x127   : > { %v4340_v56 = vmax.f32 %v4116_v35, %v4243_v1  ;;  %v4244_v61 = vrot.slane %v4118_v28, 1  ;;  %v4420_v22 = vrot.slane %v4118_v28, 2  ;;  %v4515_v60 = vmax.f32 %v4339_v47, %v4417_v17 }
 0x128   : > { %v4419_v25 = vsel %vm1400_vm3, %v4416_v57, %v10676_v4  ;;  %v4595_v46 = vsel %vm1545_vm4, %v4592_v21, %v10677_v18  ;;  %v10678_v53 = vrot.slane %v6226_v26, 4  ;;  %v4596_v31 = vrot.slane %v4118_v28, 3 }
 0x129   : > { %v4516_v9 = vmax.f32 %v4340_v56, %v4419_v25  ;;  %v4245_v59 = vrot.slane %v4119_v50, 1  ;;  %v4421_v7 = vrot.slane %v4119_v50, 2  ;;  %v4597_v57 = vrot.slane %v4119_v50, 3 }
 0x12a   : > { %v4741_v35 = vsel %vm1690_vm6, %v4739_v27, %v10678_v53  ;;  %v450_v1 = vmax.f32 %v338_v36, %v6968_v10  ;;  %v4691_v4 = vmax.f32 %v4515_v60, %v4593_v48  ;;  %v506_v21 = vmax.f32 %v442_v8, %v338_v36  ;;  %v6984_v48 = vld [vmem:[#allocation2 + $0x98] sm:$0xf] }
 0x12b   : > { %v4692_v54 = vmax.f32 %v4516_v9, %v4595_v46  ;;  %v510_v2 = vmax.f32 %v446_v52, %v6968_v10  ;;  %v4246_v17 = vsel %vm1255_vm2, %v4244_v61, %v4245_v59  ;;  %v4422_v47 = vsel %vm1400_vm3, %v4420_v22, %v4421_v7 }
 0x12c   : > { %v4742_v26 = vrot.slane %v4119_v50, 4  ;;  %v10679_v56 = vrot.slane %v6273_v43, 1  ;;  %v4835_v18 = vmax.f32 %v4691_v4, %v4739_v27  ;;  %v4342_v51 = vmax.f32 %v4118_v28, %v4246_v17  ;;  %v6998_v28 = vld [vmem:[#allocation2 + $0xb8] sm:$0xf] }
 0x12d   : > { %v4836_v53 = vmax.f32 %v4692_v54, %v4741_v35  ;;  %v4598_v8 = vsel %vm1545_vm4, %v4596_v31, %v4597_v57  ;;  %v10680_v36 = vrot.slane %v6273_v43, 2  ;;  %v10681_v46 = vrot.slane %v6273_v43, 3 }
 0x12e   : > { %v4248_v25 = vsel %vm1255_vm2, %v4245_v59, %v10679_v56  ;;  %v514_v22 = vmax.f32 %v450_v1, %v6984_v48  ;;  %5138 = vst.msk [vmem:[%s5873_s17 + $0x2dc] sm:$0xf0] %vm4842_vm5, %v4835_v18  ;;  %v4518_v54 = vmax.f32 %v4342_v51, %v4422_v47  ;;  %v574_v60 = vmax.f32 %v510_v2, %v6984_v48  ;;  %v7024_v2 = vld [vmem:[#allocation2 + $0x308] sm:$0xff] }
 0x12f   : > { %v4343_v41 = vmax.f32 %v4119_v50, %v4248_v25  ;;  %v4424_v52 = vsel %vm1400_vm3, %v4421_v7, %v10680_v36  ;;  %v4600_v61 = vsel %vm1545_vm4, %v4597_v57, %v10681_v46  ;;  %5139 = vst.msk [vmem:[%s5873_s17 + $0x2e4] sm:$0xff] %vm148_vm0, %v4836_v53  ;;  %v570_v50 = vmax.f32 %v506_v21, %v6968_v10  ;;  %v5205_v7 = vld [vmem:[#allocation2 + $0x150] sm:$0xff]  ;;  %v7019_v21 = vld [vmem:[#allocation2 + $0xd8] sm:$0xf] }
 0x130   : > { %v2706_v9 = vmax.f32 %v6881_v11, %v6924_v0  ;;  %v10682_v35 = vrot.slane %v6273_v43, 4  ;;  %v578_v59 = vmax.f32 %v514_v22, %v6998_v28  ;;  %v10683_v51 = vmax.f32 %v5802_v34, %v5808_v24  ;;  %10687 = vst [vmem:[#allocation52_spill] sm:$0xff] %v7024_v2  ;;  %v7044_v36 = vld [vmem:[#allocation2 + $0xf8] sm:$0xf]  ;;  %v5207_v22 = vld [vmem:[#allocation2 + $0x128] sm:$0xff] }
 0x131   : > { %v4519_v27 = vmax.f32 %v4343_v41, %v4424_v52  ;;  %v10684_v57 = vmax.f32 %v6878_v19, %v6858_v38  ;;  %v4694_v4 = vmax.f32 %v4518_v54, %v4598_v8  ;;  %v7022_v43 = vmax.f32 %v570_v50, %v6984_v48 }
 0x132   : > { %v4744_v31 = vsel %vm1690_vm6, %v4742_v26, %v10682_v35  ;;  %v7011_v41 = vmax.f32 %v10683_v51, %v5205_v7  ;;  %v10688_v24 = vmax.f32 %v6818_v15, %v6858_v38  ;;  %v642_v17 = vmax.f32 %v578_v59, %v7019_v21  ;;  %v7072_v7 = vld [vmem:[#allocation2 + $0x100] sm:$0xff]  ;;  %v7075_v51 = vld [vmem:[#allocation2 + $0x148] sm:$0xff] }
 0x133   : > { %v7017_v1 = vmax.f32 %v10684_v57, %v6951_v16  ;;  %v4695_v11 = vmax.f32 %v4519_v27, %v4600_v61  ;;  %10686 = vst [vmem:[#allocation51_spill] sm:$0xff] %v7022_v43  ;;  %v10690_v56 = vmax.f32 %v6848_v29, %v6850_v63  ;;  %v4838_v53 = vmax.f32 %v4694_v4, %v4742_v26  ;;  %v7052_v61 = vld [vmem:[#allocation2 + $0x118] sm:$0xf]  ;;  %v5206_v26 = vld [vmem:[#allocation2 + $0xe0] sm:$0xff] }
 0x134   : > { %v7032_v19 = vmax.f32 %v10688_v24, %v6951_v16  ;;  %v2785_v47 = vrot.slane %v7011_v41, 1  ;;  %v7047_v15 = vmax.f32 %v2706_v9, %v6946_v37  ;;  %v706_v38 = vmax.f32 %v642_v17, %v7044_v36  ;;  %v7085_v17 = vld [vmem:[#allocation2 + $0x158] sm:$0xf]  ;;  %v7102_v29 = vld [vmem:[#allocation2 + $0x140] sm:$0xff] }
 0x135   : > { %10685 = vst [vmem:[#allocation50_spill] sm:$0xff] %v7017_v1  ;;  %v7040_v25 = vmax.f32 %v10690_v56, %v6924_v0  ;;  %v4839_v8 = vmax.f32 %v4695_v11, %v4744_v31  ;;  %v10421_v46 = vrot.slane %v7011_v41, 2  ;;  %5141 = vst.msk [vmem:[%s5873_s17 + $0x2ec] sm:$0xf0] %vm4842_vm5, %v4838_v53  ;;  %v703_v37 = vmax.f32 %v5732_v45, %v5206_v26  ;;  %v7069_v31 = vld [vmem:[#allocation2 + $0x138] sm:$0xf] }
 0x136   : > { %10689 = vst [vmem:[#allocation53_spill] sm:$0xff] %v7032_v19  ;;  %10692 = vst [vmem:[#allocation55_spill] sm:$0xff] %v7047_v15  ;;  %v2912_v52 = vmax.f32 %v7011_v41, %v2785_v47  ;;  %v832_v54 = vmax.f32 %v5796_v20, %v5207_v22  ;;  %v7063_v27 = vmax.f32 %v574_v60, %v6998_v28  ;;  %v3137_v35 = vrot.slane %v7011_v41, 3  ;;  %v7088_v53 = vld [vmem:[#allocation2 + $0x120] sm:$0xff]  ;;  %v5211_v26 = vld [vmem:[#allocation2 + $0x170] sm:$0xff] }
 0x137   : > { %10691 = vst [vmem:[#allocation54_spill] sm:$0xff] %v7040_v25  ;;  %5142 = vst.msk [vmem:[%s5873_s17 + $0x2f4] sm:$0xff] %vm148_vm0, %v4839_v8  ;;  %v770_v50 = vmax.f32 %v706_v38, %v7052_v61  ;;  %v10420_v59 = vrot.slane %v7011_v41, 4  ;;  %v767_v45 = vmax.f32 %v703_v37, %v7072_v7  ;;  %v454_v60 = vmax.f32 %v6968_v10, %v6984_v48  ;;  %v10694_v37 = vld [vmem:[#allocation12_spill] sm:$0xff]  ;;  %v7128_v1 = vld [vmem:[#allocation2 + $0x198] sm:$0xf] }
 0x138   : > { %10693 = vst [vmem:[#allocation56_spill] sm:$0xff] %v7063_v27  ;;  %v3088_v9 = vmax.f32 %v2912_v52, %v10421_v46  ;;  %v7078_v20 = vmax.f32 %v832_v54, %v7075_v51  ;;  %v3489_v11 = vrot.slane %v7011_v41, 5  ;;  %v3663_v24 = vrot.slane %v7011_v41, 6 }
 0x139   : > { %v834_v57 = vmax.f32 %v770_v50, %v7069_v31  ;;  %v10426_v56 = vrot.slane %v7011_v41, 7  ;;  %v831_v8 = vmax.f32 %v767_v45, %v7088_v53  ;;  %v10695_v22 = vmax.f32 %v5824_v30, %v10694_v37  ;;  %v10696_v50 = vld [vmem:[#allocation6_spill] sm:$0xff] }
 0x13a   : > { %v3264_v4 = vmax.f32 %v3088_v9, %v3137_v35  ;;  %v2783_v38 = vrot.slane %v7078_v20, 1  ;;  %v707_v9 = vmax.f32 %v10696_v50, %v7072_v7  ;;  %v518_v18 = vmax.f32 %v454_v60, %v6998_v28 }
 0x13b   : > { %v898_v10 = vmax.f32 %v834_v57, %v7085_v17  ;;  %v7098_v54 = vmax.f32 %v10695_v22, %v5211_v26  ;;  %v7105_v45 = vmax.f32 %v831_v8, %v7102_v29  ;;  %v2959_v37 = vrot.slane %v7078_v20, 2 }
 0x13c   : > { %v3440_v52 = vmax.f32 %v3264_v4, %v10420_v59  ;;  %v2786_v57 = vsel %vm1255_vm2, %v2783_v38, %v2785_v47  ;;  %v10698_v4 = vld [vmem:[#allocation10_spill] sm:$0xff]  ;;  %v3135_v7 = vrot.slane %v7078_v20, 3  ;;  %v3487_v2 = vrot.slane %v7078_v20, 5 }
 0x13d   : > { %10697 = vst [vmem:[#allocation12_spill] sm:$0xff] %v7105_v45  ;;  %v836_v34 = vmax.f32 %v10698_v4, %v7075_v51  ;;  %v7111_v59 = vld [vmem:[#allocation2 + $0x178] sm:$0xf]  ;;  %v3825_v26 = vrot.slane %v898_v10, 7  ;;  %v2782_v8 = vrot.slane %v7105_v45, 1  ;;  %v2958_v50 = vrot.slane %v7105_v45, 2 }
 0x13e   : > { %v3616_v30 = vmax.f32 %v3440_v52, %v3489_v11  ;;  %v962_v22 = vmax.f32 %v898_v10, %v7111_v59  ;;  %v3134_v47 = vrot.slane %v7105_v45, 3  ;;  %v3310_v46 = vrot.slane %v7105_v45, 4 }
 0x13f   : > { %v3311_v51 = vrot.slane %v7078_v20, 4  ;;  %v2911_v52 = vmax.f32 %v7078_v20, %v2786_v57  ;;  %v3826_v4 = vsel %vm2125_vm7, %v10426_v56, %v3825_v26  ;;  %v2784_v27 = vsel %vm1255_vm2, %v2782_v8, %v2783_v38 }
 0x140   : > { %v3760_v60 = vmax.f32 %v3616_v30, %v3663_v24  ;;  %v3486_v43 = vrot.slane %v7105_v45, 5  ;;  %v2910_v30 = vmax.f32 %v7105_v45, %v2784_v27  ;;  %v3662_v16 = vrot.slane %v7078_v20, 6 }
 0x141   : > { %v3822_v57 = vrot.slane %v7078_v20, 7  ;;  %v7134_v58 = vmax.f32 %v962_v22, %v7128_v1  ;;  %v2960_v26 = vsel %vm1400_vm3, %v2958_v50, %v2959_v37  ;;  %v3136_v38 = vsel %vm1545_vm4, %v3134_v47, %v3135_v7 }
 0x142   : > { %v3952_v15 = vmax.f32 %v3760_v60, %v3826_v4  ;;  %v10699_v8 = vrot.slane %v7011_v41, 2  ;;  %v3086_v60 = vmax.f32 %v2910_v30, %v2960_v26  ;;  %v3312_v4 = vsel %vm1690_vm6, %v3310_v46, %v3311_v51 }
 0x143   : > { %v3488_v45 = vsel %vm1835_vm9, %v3486_v43, %v3487_v2  ;;  %v3138_v19 = vsel %vm1545_vm4, %v3135_v7, %v3137_v35  ;;  %v582_v22 = vmax.f32 %v518_v18, %v7019_v21  ;;  %v2790_v0 = vrot.slane %v7098_v54, 1  ;;  %v5213_v7 = vld [vmem:[#allocation2 + $0x168] sm:$0xff] }
 0x144   : > { %v2962_v56 = vsel %vm1400_vm3, %v2959_v37, %v10699_v8  ;;  %v4000_v25 = vmax.f32 %v3952_v15, %v898_v10  ;;  %v3262_v50 = vmax.f32 %v3086_v60, %v3136_v38  ;;  %v10700_v32 = vrot.slane %v7011_v41, 4 }
 0x145   : > { %v3087_v27 = vmax.f32 %v2911_v52, %v2962_v56  ;;  %v3490_v10 = vsel %vm1835_vm9, %v3487_v2, %v3489_v11  ;;  %v3664_v46 = vsel %vm1980_vm10, %v3662_v16, %v3663_v24  ;;  %v646_v43 = vmax.f32 %v582_v22, %v7044_v36  ;;  %v5214_v22 = vld [vmem:[#allocation2 + $0x160] sm:$0xff] }
 0x146   : > { %5050 = vst.msk [vmem:[%s5873_s17 + $0x10e] sm:$0x3] %vm4050_vm8, %v4000_v25  ;;  %v3314_v15 = vsel %vm1690_vm6, %v3311_v51, %v10700_v32  ;;  %v2915_v18 = vmax.f32 %v7098_v54, %v2790_v0  ;;  %v2966_v35 = vrot.slane %v7098_v54, 2  ;;  %v3438_v25 = vmax.f32 %v3262_v50, %v3312_v4 }
 0x147   : > { %v3263_v47 = vmax.f32 %v3087_v27, %v3138_v19  ;;  %v10701_v19 = vrot.slane %v7011_v41, 7  ;;  %v771_v32 = vmax.f32 %v707_v9, %v7088_v53  ;;  %v710_v2 = vmax.f32 %v646_v43, %v7052_v61 }
 0x148   : > { %v3091_v11 = vmax.f32 %v2915_v18, %v2966_v35  ;;  %v3142_v24 = vrot.slane %v7098_v54, 3  ;;  %v7166_v51 = vmax.f32 %v836_v34, %v5213_v7  ;;  %v3614_v52 = vmax.f32 %v3438_v25, %v3488_v45 }
 0x149   : > { %v3439_v56 = vmax.f32 %v3263_v47, %v3314_v15  ;;  %v3824_v37 = vsel %vm2125_vm7, %v3822_v57, %v10701_v19  ;;  %v3318_v26 = vrot.slane %v7098_v54, 4  ;;  %v835_v38 = vmax.f32 %v771_v32, %v7102_v29 }
 0x14a   : > { %v774_v8 = vmax.f32 %v710_v2, %v7069_v31  ;;  %v3267_v60 = vmax.f32 %v3091_v11, %v3142_v24  ;;  %v3494_v53 = vrot.slane %v7098_v54, 5  ;;  %v3666_v9 = vrot.slane %v7098_v54, 6 }
 0x14b   : > { %v3615_v30 = vmax.f32 %v3439_v56, %v3490_v10  ;;  %v3758_v4 = vmax.f32 %v3614_v52, %v3662_v16  ;;  %v7173_v50 = vmax.f32 %v835_v38, %v5214_v22  ;;  %v2788_v34 = vrot.slane %v7166_v51, 1 }
 0x14c   : > { %v838_v45 = vmax.f32 %v774_v8, %v7085_v17  ;;  %v3443_v47 = vmax.f32 %v3267_v60, %v3318_v26  ;;  %v3828_v15 = vrot.slane %v7098_v54, 7  ;;  %v2964_v29 = vrot.slane %v7166_v51, 2 }
 0x14d   : > { %v3759_v27 = vmax.f32 %v3615_v30, %v3664_v46  ;;  %v3950_v10 = vmax.f32 %v3758_v4, %v3822_v57  ;;  %v2787_v18 = vrot.slane %v7173_v50, 1  ;;  %v2963_v16 = vrot.slane %v7173_v50, 2 }
 0x14e   : > { %v7182_v46 = vmax.f32 %v838_v45, %v7111_v59  ;;  %v3619_v25 = vmax.f32 %v3443_v47, %v3494_v53  ;;  %v3140_v56 = vrot.slane %v7166_v51, 3  ;;  %v3316_v19 = vrot.slane %v7166_v51, 4  ;;  %v10702_v47 = vld [vmem:[#allocation14_spill] sm:$0xff] }
 0x14f   : > { %v3951_v43 = vmax.f32 %v3759_v27, %v3824_v37  ;;  %v3998_v32 = vmax.f32 %v3950_v10, %v7078_v20  ;;  %v2789_v57 = vsel %vm1255_vm2, %v2787_v18, %v2788_v34  ;;  %v3139_v37 = vrot.slane %v7173_v50, 3 }
 0x150   : > { %v3763_v11 = vmax.f32 %v3619_v25, %v3666_v9  ;;  %v3830_v7 = vrot.slane %v7182_v46, 7  ;;  %v2913_v52 = vmax.f32 %v7173_v50, %v2789_v57  ;;  %v3315_v30 = vrot.slane %v7173_v50, 4 }
 0x151   : > { %v3999_v2 = vmax.f32 %v3951_v43, %v7011_v41  ;;  %5048 = vst.msk [vmem:[%s5873_s17 + $0xfe] sm:$0xfc] %vm4047_vm11, %v3998_v32  ;;  %v2965_v38 = vsel %vm1400_vm3, %v2963_v16, %v2964_v29  ;;  %v3491_v8 = vrot.slane %v7173_v50, 5  ;;  %v3492_v60 = vrot.slane %v7166_v51, 5 }
 0x152   : > { %v458_v4 = vmax.f32 %v6984_v48, %v6998_v28  ;;  %v966_v27 = vmax.f32 %v7182_v46, %v7128_v1  ;;  %v3831_v22 = vsel %vm2125_vm7, %v3828_v15, %v3830_v7  ;;  %v3089_v45 = vmax.f32 %v2913_v52, %v2965_v38 }
 0x153   : > { %5049 = vst.msk [vmem:[%s5873_s17 + $0x106] sm:$0xff] %vm148_vm0, %v3999_v2  ;;  %v2795_v10 = vrot.slane %v10702_v47, 1  ;;  %v3955_v43 = vmax.f32 %v3763_v11, %v3831_v22  ;;  %v3141_v18 = vsel %vm1545_vm4, %v3139_v37, %v3140_v56  ;;  %v3665_v16 = vrot.slane %v7166_v51, 6 }
 0x154   : > { %v2791_v25 = vsel %vm1255_vm2, %v2788_v34, %v2790_v0  ;;  %v3265_v32 = vmax.f32 %v3089_v45, %v3141_v18  ;;  %v3317_v48 = vsel %vm1690_vm6, %v3315_v30, %v3316_v19  ;;  %v3827_v2 = vrot.slane %v7166_v51, 7 }
 0x155   : > { %v2914_v57 = vmax.f32 %v7166_v51, %v2791_v25  ;;  %v4003_v7 = vmax.f32 %v3955_v43, %v7182_v46  ;;  %v3493_v11 = vsel %vm1835_vm9, %v3491_v8, %v3492_v60  ;;  %v2967_v37 = vsel %vm1400_vm3, %v2964_v29, %v2966_v35 }
 0x156   : > { %v3143_v52 = vsel %vm1545_vm4, %v3140_v56, %v3142_v24  ;;  %v3441_v38 = vmax.f32 %v3265_v32, %v3317_v48  ;;  %v3319_v0 = vsel %vm1690_vm6, %v3316_v19, %v3318_v26  ;;  %v522_v34 = vmax.f32 %v458_v4, %v7019_v21 }
 0x157   : > { %v3090_v22 = vmax.f32 %v2914_v57, %v2967_v37  ;;  %5053 = vst.msk [vmem:[%s5873_s17 + $0x11e] sm:$0x3] %vm4050_vm8, %v4003_v7  ;;  %v3495_v30 = vsel %vm1835_vm9, %v3492_v60, %v3494_v53  ;;  %v3667_v45 = vsel %vm1980_vm10, %v3665_v16, %v3666_v9  ;;  %v2918_v8 = vmax.f32 %v10702_v47, %v2795_v10  ;;  %v5215_v53 = vld [vmem:[#allocation2 + $0x180] sm:$0xff]  ;;  %v10703_v60 = vld [vmem:[#allocation13_spill] sm:$0xff] }
 0x158   : > { %v2971_v35 = vrot.slane %v10702_v47, 2  ;;  %v3617_v29 = vmax.f32 %v3441_v38, %v3493_v11  ;;  %v3829_v56 = vsel %vm2125_vm7, %v3827_v2, %v3828_v15  ;;  %v586_v26 = vmax.f32 %v522_v34, %v7044_v36  ;;  %v10706_v57 = vld [vmem:[#allocation15_spill] sm:$0xff] }
 0x159   : > { %v3266_v24 = vmax.f32 %v3090_v22, %v3143_v52  ;;  %v3147_v4 = vrot.slane %v10702_v47, 3  ;;  %v3323_v43 = vrot.slane %v10702_v47, 4  ;;  %v10704_v9 = vmax.f32 %v10703_v60, %v5940_v62 }
 0x15a   : > { %v3094_v19 = vmax.f32 %v2918_v8, %v2971_v35  ;;  %v3761_v25 = vmax.f32 %v3617_v29, %v3665_v16  ;;  %v650_v48 = vmax.f32 %v586_v26, %v7052_v61  ;;  %v2793_v7 = vrot.slane %v10706_v57, 1 }
 0x15b   : > { %v7237_v18 = vmax.f32 %v10704_v9, %v5215_v53  ;;  %v3442_v32 = vmax.f32 %v3266_v24, %v3319_v0  ;;  %v2969_v52 = vrot.slane %v10706_v57, 2  ;;  %v3499_v62 = vrot.slane %v10702_v47, 5 }
 0x15c   : > { %v3270_v15 = vmax.f32 %v3094_v19, %v3147_v4  ;;  %v3953_v38 = vmax.f32 %v3761_v25, %v3827_v2  ;;  %v714_v34 = vmax.f32 %v650_v48, %v7069_v31  ;;  %v3145_v29 = vrot.slane %v10706_v57, 3 }
 0x15d   : > { %10705 = vst [vmem:[#allocation6_spill] sm:$0xff] %v7237_v18  ;;  %v2792_v11 = vrot.slane %v7237_v18, 1  ;;  %v2968_v37 = vrot.slane %v7237_v18, 2  ;;  %v3618_v22 = vmax.f32 %v3442_v32, %v3495_v30  ;;  %v3144_v8 = vrot.slane %v7237_v18, 3  ;;  %v7252_v30 = vld [vmem:[#allocation2 + $0x1b8] sm:$0xf] }
 0x15e   : > { %v3446_v16 = vmax.f32 %v3270_v15, %v3323_v43  ;;  %v4001_v24 = vmax.f32 %v3953_v38, %v7166_v51  ;;  %v778_v19 = vmax.f32 %v714_v34, %v7085_v17  ;;  %v3320_v9 = vrot.slane %v7237_v18, 4 }
 0x15f   : > { %v2794_v0 = vsel %vm1255_vm2, %v2792_v11, %v2793_v7  ;;  %v3762_v26 = vmax.f32 %v3618_v22, %v3667_v45  ;;  %v2970_v60 = vsel %vm1400_vm3, %v2968_v37, %v2969_v52  ;;  %v3321_v25 = vrot.slane %v10706_v57, 4 }
 0x160   : > { %v2916_v2 = vmax.f32 %v7237_v18, %v2794_v0  ;;  %v3622_v53 = vmax.f32 %v3446_v16, %v3499_v62  ;;  %5051 = vst.msk [vmem:[%s5873_s17 + $0x10e] sm:$0xfc] %vm4047_vm11, %v4001_v24  ;;  %v842_v48 = vmax.f32 %v778_v19, %v7111_v59  ;;  %v3669_v11 = vrot.slane %v10702_v47, 6 }
 0x161   : > { %v3954_v45 = vmax.f32 %v3762_v26, %v3829_v56  ;;  %v3146_v38 = vsel %vm1545_vm4, %v3144_v8, %v3145_v29  ;;  %v3496_v37 = vrot.slane %v7237_v18, 5  ;;  %v3497_v22 = vrot.slane %v10706_v57, 5 }
 0x162   : > { %v3092_v15 = vmax.f32 %v2916_v2, %v2970_v60  ;;  %v906_v16 = vmax.f32 %v842_v48, %v7128_v1  ;;  %v3833_v0 = vrot.slane %v10702_v47, 7  ;;  %v7273_v56 = vmax.f32 %v966_v27, %v7252_v30 }
 0x163   : > { %v4002_v34 = vmax.f32 %v3954_v45, %v7098_v54  ;;  %v3766_v26 = vmax.f32 %v3622_v53, %v3669_v11  ;;  %v3322_v8 = vsel %vm1690_vm6, %v3320_v9, %v3321_v25  ;;  %v2796_v19 = vsel %vm1255_vm2, %v2793_v7, %v2795_v10 }
 0x164   : > { %v3268_v24 = vmax.f32 %v3092_v15, %v3146_v38  ;;  %10707 = vst [vmem:[#allocation10_spill] sm:$0xff] %v7273_v56  ;;  %v3835_v2 = vrot.slane %v906_v16, 7  ;;  %v3668_v45 = vrot.slane %v10706_v57, 6  ;;  %v2917_v48 = vmax.f32 %v10706_v57, %v2796_v19 }
 0x165   : > { %5052 = vst.msk [vmem:[%s5873_s17 + $0x116] sm:$0xff] %vm148_vm0, %v4002_v34  ;;  %v3498_v15 = vsel %vm1835_vm9, %v3496_v37, %v3497_v22  ;;  %v3832_v46 = vrot.slane %v10706_v57, 7  ;;  %v2972_v27 = vsel %vm1400_vm3, %v2969_v52, %v2971_v35  ;;  %v3148_v53 = vsel %vm1545_vm4, %v3145_v29, %v3147_v4  ;;  %v10708_v37 = vld [vmem:[#allocation16_spill] sm:$0xff]  ;;  %v7295_v52 = vld [vmem:[#allocation2 + $0x1d8] sm:$0xf] }
 0x166   : > { %v3444_v60 = vmax.f32 %v3268_v24, %v3322_v8  ;;  %v970_v9 = vmax.f32 %v906_v16, %v7252_v30  ;;  %v3836_v10 = vsel %vm2125_vm7, %v3833_v0, %v3835_v2  ;;  %v3093_v38 = vmax.f32 %v2917_v48, %v2972_v27  ;;  %10709 = vst [vmem:[#allocation13_spill] sm:$0xff] %v7295_v52 }
 0x167   : > { %v3958_v34 = vmax.f32 %v3766_v26, %v3836_v10  ;;  %v3324_v24 = vsel %vm1690_vm6, %v3321_v25, %v3323_v43  ;;  %v462_v8 = vmax.f32 %v6998_v28, %v7019_v21  ;;  %v10475_v19 = vrot.slane %v10708_v37, 1 }
 0x168   : > { %v3620_v7 = vmax.f32 %v3444_v60, %v3498_v15  ;;  %v3269_v18 = vmax.f32 %v3093_v38, %v3148_v53  ;;  %v3500_v35 = vsel %vm1835_vm9, %v3497_v22, %v3499_v62  ;;  %v3670_v4 = vsel %vm1980_vm10, %v3668_v45, %v3669_v11 }
 0x169   : > { %v4006_v29 = vmax.f32 %v3958_v34, %v906_v16  ;;  %v526_v2 = vmax.f32 %v462_v8, %v7044_v36  ;;  %v2921_v43 = vmax.f32 %v10708_v37, %v10475_v19  ;;  %v10471_v25 = vrot.slane %v10708_v37, 2 }
 0x16a   : > { %v3764_v32 = vmax.f32 %v3620_v7, %v3668_v45  ;;  %v7303_v28 = vmax.f32 %v970_v9, %v7295_v52  ;;  %v3445_v60 = vmax.f32 %v3269_v18, %v3324_v24  ;;  %v3834_v62 = vsel %vm2125_vm7, %v3832_v46, %v3833_v0  ;;  %v10711_v18 = vld [vmem:[#allocation17_spill] sm:$0xff] }
 0x16b   : > { %5056 = vst.msk [vmem:[%s5873_s17 + $0x12e] sm:$0x3] %vm4050_vm8, %v4006_v29  ;;  %v590_v11 = vmax.f32 %v526_v2, %v7052_v61  ;;  %v3097_v22 = vmax.f32 %v2921_v43, %v10471_v25  ;;  %v10465_v16 = vrot.slane %v10708_v37, 3  ;;  %v466_v45 = vmax.f32 %v7019_v21, %v7044_v36 }
 0x16c   : > { %10710 = vst [vmem:[#allocation16_spill] sm:$0xff] %v7303_v28  ;;  %v3956_v26 = vmax.f32 %v3764_v32, %v3832_v46  ;;  %v3621_v15 = vmax.f32 %v3445_v60, %v3500_v35  ;;  %v10464_v32 = vrot.slane %v10708_v37, 4  ;;  %v10441_v27 = vrot.slane %v10711_v18, 1 }
 0x16d   : > { %v654_v0 = vmax.f32 %v590_v11, %v7069_v31  ;;  %v3273_v46 = vmax.f32 %v3097_v22, %v10465_v16  ;;  %v10460_v53 = vrot.slane %v10708_v37, 5  ;;  %v530_v9 = vmax.f32 %v466_v45, %v7052_v61  ;;  %v10712_v22 = vld [vmem:[#allocation18_spill] sm:$0xff] }
 0x16e   : > { %v4004_v48 = vmax.f32 %v3956_v26, %v10706_v57  ;;  %v3765_v10 = vmax.f32 %v3621_v15, %v3670_v4  ;;  %v10454_v21 = vrot.slane %v10708_v37, 6  ;;  %v2924_v7 = vmax.f32 %v10711_v18, %v10441_v27 }
 0x16f   : > { %v10440_v38 = vrot.slane %v10711_v18, 2  ;;  %v718_v34 = vmax.f32 %v654_v0, %v7085_v17  ;;  %v3449_v24 = vmax.f32 %v3273_v46, %v10464_v32  ;;  %v10450_v8 = vrot.slane %v10708_v37, 7  ;;  %v10722_v32 = vld [vmem:[#allocation22_spill] sm:$0xff] }
 0x170   : > { %5054 = vst.msk [vmem:[%s5873_s17 + $0x11e] sm:$0xfc] %vm4047_vm11, %v4004_v48  ;;  %v594_v35 = vmax.f32 %v530_v9, %v7069_v31  ;;  %v3957_v29 = vmax.f32 %v3765_v10, %v3834_v62  ;;  %v10439_v2 = vrot.slane %v10711_v18, 3  ;;  %v470_v43 = vmax.f32 %v7044_v36, %v7052_v61 }
 0x171   : > { %v3100_v4 = vmax.f32 %v2924_v7, %v10440_v38  ;;  %v782_v26 = vmax.f32 %v718_v34, %v7111_v59  ;;  %v10436_v11 = vrot.slane %v10711_v18, 4  ;;  %v10434_v45 = vrot.slane %v10712_v22, 1 }
 0x172   : > { %v658_v60 = vmax.f32 %v594_v35, %v7085_v17  ;;  %v4005_v48 = vmax.f32 %v3957_v29, %v10702_v47  ;;  %v3625_v62 = vmax.f32 %v3449_v24, %v10460_v53  ;;  %v534_v0 = vmax.f32 %v470_v43, %v7069_v31 }
 0x173   : > { %v3276_v15 = vmax.f32 %v3100_v4, %v10439_v2  ;;  %v846_v36 = vmax.f32 %v782_v26, %v7128_v1  ;;  %v2927_v9 = vmax.f32 %v10712_v22, %v10434_v45  ;;  %v10435_v10 = vrot.slane %v10712_v22, 2 }
 0x174   : > { %v722_v46 = vmax.f32 %v658_v60, %v7111_v59  ;;  %5055 = vst.msk [vmem:[%s5873_s17 + $0x126] sm:$0xff] %vm148_vm0, %v4005_v48  ;;  %v10437_v34 = vrot.slane %v10711_v18, 5  ;;  %v10447_v24 = vrot.slane %v10711_v18, 6  ;;  %v598_v35 = vmax.f32 %v534_v0, %v7085_v17 }
 0x175   : > { %v3452_v7 = vmax.f32 %v3276_v15, %v10436_v11  ;;  %v910_v29 = vmax.f32 %v846_v36, %v7252_v30  ;;  %v3103_v43 = vmax.f32 %v2927_v9, %v10435_v10  ;;  %v10438_v26 = vrot.slane %v10712_v22, 3 }
 0x176   : > { %v786_v4 = vmax.f32 %v722_v46, %v7128_v1  ;;  %v3769_v60 = vmax.f32 %v3625_v62, %v10454_v21  ;;  %v10445_v15 = vrot.slane %v10711_v18, 7  ;;  %v662_v45 = vmax.f32 %v598_v35, %v7111_v59 }
 0x177   : > { %v3628_v48 = vmax.f32 %v3452_v7, %v10437_v34  ;;  %v3840_v0 = vrot.slane %v910_v29, 7  ;;  %v3279_v46 = vmax.f32 %v3103_v43, %v10438_v26  ;;  %v10443_v9 = vrot.slane %v10712_v22, 4  ;;  %v10713_v7 = vld [vmem:[#allocation19_spill] sm:$0xff] }
 0x178   : > { %v850_v36 = vmax.f32 %v786_v4, %v7252_v30  ;;  %v726_v10 = vmax.f32 %v662_v45, %v7128_v1  ;;  %v10444_v11 = vrot.slane %v10712_v22, 5  ;;  %v474_v62 = vmax.f32 %v7052_v61, %v7069_v31 }
 0x179   : > { %v10442_v34 = vrot.slane %v10713_v7, 1  ;;  %v3841_v35 = vsel %vm2125_vm7, %v10450_v8, %v3840_v0  ;;  %v3772_v43 = vmax.f32 %v3628_v48, %v10447_v24  ;;  %v3455_v26 = vmax.f32 %v3279_v46, %v10443_v9  ;;  %v7400_v46 = vld [vmem:[#allocation2 + $0x1f8] sm:$0xf]  ;;  %v10717_v24 = vld [vmem:[#allocation20_spill] sm:$0xff] }
 0x17a   : > { %v914_v4 = vmax.f32 %v850_v36, %v7295_v52  ;;  %v3961_v45 = vmax.f32 %v3769_v60, %v3841_v35  ;;  %v790_v2 = vmax.f32 %v726_v10, %v7252_v30  ;;  %v538_v61 = vmax.f32 %v474_v62, %v7085_v17  ;;  %10714 = vst [vmem:[#allocation17_spill] sm:$0xff] %v7400_v46 }
 0x17b   : > { %v2930_v38 = vmax.f32 %v10713_v7, %v10442_v34  ;;  %v974_v36 = vmax.f32 %v910_v29, %v7295_v52  ;;  %v3631_v48 = vmax.f32 %v3455_v26, %v10444_v11  ;;  %v10446_v35 = vrot.slane %v10713_v7, 2 }
 0x17c   : > { %v3845_v27 = vrot.slane %v914_v4, 7  ;;  %v4009_v60 = vmax.f32 %v3961_v45, %v910_v29  ;;  %v854_v10 = vmax.f32 %v790_v2, %v7295_v52  ;;  %v602_v62 = vmax.f32 %v538_v61, %v7111_v59 }
 0x17d   : > { %v10448_v9 = vrot.slane %v10712_v22, 6  ;;  %v10451_v26 = vrot.slane %v10712_v22, 7  ;;  %v3106_v61 = vmax.f32 %v2930_v38, %v10446_v35  ;;  %v7419_v34 = vmax.f32 %v974_v36, %v7400_v46 }
 0x17e   : > { %v3846_v0 = vsel %vm2125_vm7, %v10445_v15, %v3845_v27  ;;  %5059 = vst.msk [vmem:[%s5873_s17 + $0x13e] sm:$0x3] %vm4050_vm8, %v4009_v60  ;;  %v918_v2 = vmax.f32 %v854_v10, %v7400_v46  ;;  %v666_v45 = vmax.f32 %v602_v62, %v7128_v1  ;;  %v978_v27 = vmax.f32 %v914_v4, %v7400_v46  ;;  %v7427_v62 = vld [vmem:[#allocation2 + $0x218] sm:$0xf] }
 0x17f   : > { %v3964_v29 = vmax.f32 %v3772_v43, %v3846_v0  ;;  %10715 = vst [vmem:[#allocation57_spill] sm:$0xff] %v7419_v34  ;;  %v3775_v11 = vmax.f32 %v3631_v48, %v10448_v9  ;;  %v10449_v15 = vrot.slane %v10713_v7, 3  ;;  %v10453_v10 = vrot.slane %v10713_v7, 4  ;;  %10716 = vst [vmem:[#allocation58_spill] sm:$0xff] %v7427_v62 }
 0x180   : > { %v3850_v43 = vrot.slane %v918_v2, 7  ;;  %v730_v0 = vmax.f32 %v666_v45, %v7252_v30  ;;  %v10456_v36 = vrot.slane %v10713_v7, 5  ;;  %v478_v35 = vmax.f32 %v7069_v31, %v7085_v17 }
 0x181   : > { %v4012_v60 = vmax.f32 %v3964_v29, %v914_v4  ;;  %v3282_v38 = vmax.f32 %v3106_v61, %v10449_v15  ;;  %v10452_v48 = vrot.slane %v10717_v24, 1  ;;  %v982_v4 = vmax.f32 %v918_v2, %v7427_v62 }
 0x182   : > { %v3851_v29 = vsel %vm2125_vm7, %v10451_v26, %v3850_v43  ;;  %v794_v45 = vmax.f32 %v730_v0, %v7295_v52  ;;  %v10455_v9 = vrot.slane %v10717_v24, 2  ;;  %v542_v31 = vmax.f32 %v478_v35, %v7111_v59 }
 0x183   : > { %5062 = vst.msk [vmem:[%s5873_s17 + $0x14e] sm:$0x3] %vm4050_vm8, %v4012_v60  ;;  %v3967_v61 = vmax.f32 %v3775_v11, %v3851_v29  ;;  %v3458_v15 = vmax.f32 %v3282_v38, %v10453_v10  ;;  %v2933_v60 = vmax.f32 %v10717_v24, %v10452_v48  ;;  %v7450_v8 = vmax.f32 %v978_v27, %v7427_v62  ;;  %v7455_v11 = vld [vmem:[#allocation2 + $0x238] sm:$0xf] }
 0x184   : > { %v858_v43 = vmax.f32 %v794_v45, %v7400_v46  ;;  %v10458_v0 = vrot.slane %v10713_v7, 6  ;;  %v10457_v26 = vrot.slane %v10717_v24, 3  ;;  %v606_v35 = vmax.f32 %v542_v31, %v7128_v1 }
 0x185   : > { %10718 = vst [vmem:[#allocation59_spill] sm:$0xff] %v7450_v8  ;;  %v4015_v29 = vmax.f32 %v3967_v61, %v918_v2  ;;  %v3634_v38 = vmax.f32 %v3458_v15, %v10456_v36  ;;  %v3109_v48 = vmax.f32 %v2933_v60, %v10455_v9  ;;  %v7463_v27 = vmax.f32 %v982_v4, %v7455_v11  ;;  %v10720_v9 = vld [vmem:[#allocation21_spill] sm:$0xff]  ;;  %v7482_v36 = vld [vmem:[#allocation2 + $0x258] sm:$0xf] }
 0x186   : > { %v922_v45 = vmax.f32 %v858_v43, %v7427_v62  ;;  %v10462_v10 = vrot.slane %v10713_v7, 7  ;;  %v10459_v21 = vrot.slane %v10717_v24, 4  ;;  %v670_v15 = vmax.f32 %v606_v35, %v7252_v30  ;;  %10721 = vst [vmem:[#allocation61_spill] sm:$0xff] %v7482_v36 }
 0x187   : > { %10719 = vst [vmem:[#allocation60_spill] sm:$0xff] %v7463_v27  ;;  %5065 = vst.msk [vmem:[%s5873_s17 + $0x15e] sm:$0x3] %vm4050_vm8, %v4015_v29  ;;  %v3778_v2 = vmax.f32 %v3634_v38, %v10458_v0  ;;  %v3285_v61 = vmax.f32 %v3109_v48, %v10457_v26  ;;  %v482_v4 = vmax.f32 %v7085_v17, %v7111_v59  ;;  %v10461_v29 = vrot.slane %v10720_v9, 1 }
 0x188   : > { %v3855_v43 = vrot.slane %v922_v45, 7  ;;  %v734_v38 = vmax.f32 %v670_v15, %v7295_v52  ;;  %v10463_v48 = vrot.slane %v10717_v24, 5  ;;  %v10467_v15 = vrot.slane %v10720_v9, 2 }
 0x189   : > { %v3461_v35 = vmax.f32 %v3285_v61, %v10459_v21  ;;  %v546_v17 = vmax.f32 %v482_v4, %v7128_v1  ;;  %v2936_v26 = vmax.f32 %v10720_v9, %v10461_v29  ;;  %v10470_v31 = vrot.slane %v10717_v24, 6 }
 0x18a   : > { %v3856_v60 = vsel %vm2125_vm7, %v10462_v10, %v3855_v43  ;;  %v798_v61 = vmax.f32 %v734_v38, %v7400_v46  ;;  %v10474_v53 = vrot.slane %v10717_v24, 7  ;;  %v10466_v29 = vrot.slane %v10720_v9, 3 }
 0x18b   : > { %v3970_v0 = vmax.f32 %v3778_v2, %v3856_v60  ;;  %v3637_v4 = vmax.f32 %v3461_v35, %v10463_v48  ;;  %v610_v21 = vmax.f32 %v546_v17, %v7252_v30  ;;  %v3112_v43 = vmax.f32 %v2936_v26, %v10467_v15 }
 0x18c   : > { %v986_v10 = vmax.f32 %v922_v45, %v7455_v11  ;;  %v862_v60 = vmax.f32 %v798_v61, %v7427_v62  ;;  %v10469_v17 = vrot.slane %v10720_v9, 4  ;;  %v486_v48 = vmax.f32 %v7111_v59, %v7128_v1 }
 0x18d   : > { %v4018_v2 = vmax.f32 %v3970_v0, %v922_v45  ;;  %v674_v38 = vmax.f32 %v610_v21, %v7295_v52  ;;  %v3288_v35 = vmax.f32 %v3112_v43, %v10466_v29  ;;  %v10468_v16 = vrot.slane %v10722_v32, 1 }
 0x18e   : > { %v926_v26 = vmax.f32 %v862_v60, %v7455_v11  ;;  %v3781_v0 = vmax.f32 %v3637_v4, %v10470_v31  ;;  %v10473_v21 = vrot.slane %v10720_v9, 5  ;;  %v550_v43 = vmax.f32 %v486_v48, %v7252_v30 }
 0x18f   : > { %5068 = vst.msk [vmem:[%s5873_s17 + $0x16e] sm:$0x3] %vm4050_vm8, %v4018_v2  ;;  %v738_v45 = vmax.f32 %v674_v38, %v7400_v46  ;;  %v3464_v61 = vmax.f32 %v3288_v35, %v10469_v17  ;;  %v2939_v59 = vmax.f32 %v10722_v32, %v10468_v16  ;;  %v10472_v2 = vrot.slane %v10722_v32, 2 }
 0x190   : > { %v7531_v60 = vmax.f32 %v986_v10, %v7482_v36  ;;  %v3860_v29 = vrot.slane %v926_v26, 7  ;;  %v10479_v38 = vrot.slane %v10720_v9, 6  ;;  %v614_v35 = vmax.f32 %v550_v43, %v7295_v52 }
 0x191   : > { %v802_v4 = vmax.f32 %v738_v45, %v7427_v62  ;;  %v3640_v15 = vmax.f32 %v3464_v61, %v10473_v21  ;;  %v3115_v48 = vmax.f32 %v2939_v59, %v10472_v2  ;;  %v10476_v16 = vrot.slane %v10722_v32, 3 }
 0x192   : > { %10723 = vst [vmem:[#allocation62_spill] sm:$0xff] %v7531_v60  ;;  %v3861_v10 = vsel %vm2125_vm7, %v10474_v53, %v3860_v29  ;;  %v10478_v31 = vrot.slane %v10722_v32, 4  ;;  %v990_v25 = vmax.f32 %v926_v26, %v7482_v36  ;;  %v678_v43 = vmax.f32 %v614_v35, %v7400_v46  ;;  %v7626_v60 = vld [vmem:[#allocation2 + $0x2b8] sm:$0xf] }
 0x193   : > { %v866_v17 = vmax.f32 %v802_v4, %v7455_v11  ;;  %v3973_v61 = vmax.f32 %v3781_v0, %v3861_v10  ;;  %v3291_v59 = vmax.f32 %v3115_v48, %v10476_v16  ;;  %v10480_v21 = vrot.slane %v10722_v32, 5  ;;  %v10724_v4 = vld [vmem:[#allocation23_spill] sm:$0xff]  ;;  %v7561_v48 = vld [vmem:[#allocation2 + $0x278] sm:$0xf] }
 0x194   : > { %v490_v29 = vmax.f32 %v7128_v1, %v7252_v30  ;;  %v10477_v53 = vrot.slane %v10724_v4, 1  ;;  %v3784_v45 = vmax.f32 %v3640_v15, %v10479_v38  ;;  %v742_v0 = vmax.f32 %v678_v43, %v7427_v62  ;;  %10725 = vst [vmem:[#allocation63_spill] sm:$0xff] %v7561_v48 }
 0x195   : > { %v930_v2 = vmax.f32 %v866_v17, %v7482_v36  ;;  %v4021_v19 = vmax.f32 %v3973_v61, %v926_v26  ;;  %v3467_v35 = vmax.f32 %v3291_v59, %v10478_v31  ;;  %v10481_v16 = vrot.slane %v10724_v4, 2 }
 0x196   : > { %v554_v17 = vmax.f32 %v490_v29, %v7295_v52  ;;  %v2942_v1 = vmax.f32 %v10724_v4, %v10477_v53  ;;  %v7571_v15 = vmax.f32 %v990_v25, %v7561_v48  ;;  %v806_v61 = vmax.f32 %v742_v0, %v7455_v11 }
 0x197   : > { %v3865_v10 = vrot.slane %v930_v2, 7  ;;  %5071 = vst.msk [vmem:[%s5873_s17 + $0x17e] sm:$0x3] %vm4050_vm8, %v4021_v19  ;;  %v3643_v43 = vmax.f32 %v3467_v35, %v10480_v21  ;;  %v10727_v59 = vrot.slane %v10720_v9, 7  ;;  %v10482_v26 = vrot.slane %v10724_v4, 3 }
 0x198   : > { %10726 = vst [vmem:[#allocation64_spill] sm:$0xff] %v7571_v15  ;;  %v618_v53 = vmax.f32 %v554_v17, %v7400_v46  ;;  %v3118_v31 = vmax.f32 %v2942_v1, %v10481_v16  ;;  %v870_v38 = vmax.f32 %v806_v61, %v7482_v36  ;;  %v10485_v19 = vrot.slane %v10722_v32, 6  ;;  %v7588_v35 = vld [vmem:[#allocation2 + $0x298] sm:$0xf] }
 0x199   : > { %v3866_v29 = vsel %vm2125_vm7, %v10727_v59, %v3865_v10  ;;  %10728 = vst [vmem:[#allocation65_spill] sm:$0xff] %v7588_v35  ;;  %v994_v21 = vmax.f32 %v930_v2, %v7561_v48  ;;  %v10484_v1 = vrot.slane %v10724_v4, 4  ;;  %v10742_v56 = vrot.slane %v6382_v44, 3 }
 0x19a   : > { %v3976_v25 = vmax.f32 %v3784_v45, %v3866_v29  ;;  %v682_v10 = vmax.f32 %v618_v53, %v7427_v62  ;;  %v3294_v17 = vmax.f32 %v3118_v31, %v10482_v26  ;;  %v934_v59 = vmax.f32 %v870_v38, %v7561_v48  ;;  %v10729_v31 = vld [vmem:[#allocation24_spill] sm:$0xff] }
 0x19b   : > { %v494_v29 = vmax.f32 %v7252_v30, %v7295_v52  ;;  %v3787_v16 = vmax.f32 %v3643_v43, %v10485_v19  ;;  %v10488_v26 = vrot.slane %v10729_v31, 1  ;;  %v10490_v38 = vrot.slane %v10724_v4, 5 }
 0x19c   : > { %v4024_v61 = vmax.f32 %v3976_v25, %v930_v2  ;;  %v746_v0 = vmax.f32 %v682_v10, %v7455_v11  ;;  %v3470_v53 = vmax.f32 %v3294_v17, %v10484_v1  ;;  %v998_v45 = vmax.f32 %v934_v59, %v7588_v35 }
 0x19d   : > { %v3870_v2 = vrot.slane %v934_v59, 7  ;;  %v558_v25 = vmax.f32 %v494_v29, %v7400_v46  ;;  %v7612_v15 = vmax.f32 %v994_v21, %v7588_v35  ;;  %v2945_v10 = vmax.f32 %v10729_v31, %v10488_v26 }
 0x19e   : > { %5074 = vst.msk [vmem:[%s5873_s17 + $0x18e] sm:$0x3] %vm4050_vm8, %v4024_v61  ;;  %v810_v43 = vmax.f32 %v746_v0, %v7482_v36  ;;  %v10491_v17 = vrot.slane %v10729_v31, 2  ;;  %v10730_v61 = vrot.slane %v10722_v32, 7  ;;  %v3646_v19 = vmax.f32 %v3470_v53, %v10490_v38 }
 0x19f   : > { %v10493_v29 = vrot.slane %v10724_v4, 6  ;;  %v622_v21 = vmax.f32 %v558_v25, %v7427_v62  ;;  %v10492_v8 = vrot.slane %v10729_v31, 3  ;;  %v10498_v53 = vrot.slane %v10724_v4, 7 }
 0x1a0   : > { %v3871_v1 = vsel %vm2125_vm7, %v10730_v61, %v3870_v2  ;;  %v874_v27 = vmax.f32 %v810_v43, %v7561_v48  ;;  %v3121_v26 = vmax.f32 %v2945_v10, %v10491_v17  ;;  %v7633_v2 = vmax.f32 %v998_v45, %v7626_v60 }
 0x1a1   : > { %v3979_v0 = vmax.f32 %v3787_v16, %v3871_v1  ;;  %v686_v61 = vmax.f32 %v622_v21, %v7455_v11  ;;  %v10494_v25 = vrot.slane %v10729_v31, 4  ;;  %v498_v43 = vmax.f32 %v7295_v52, %v7400_v46 }
 0x1a2   : > { %v7639_v16 = vmax.f32 %v874_v27, %v7588_v35  ;;  %v3297_v1 = vmax.f32 %v3121_v26, %v10492_v8  ;;  %v3790_v45 = vmax.f32 %v3646_v19, %v10493_v29  ;;  %v10497_v17 = vrot.slane %v10729_v31, 5 }
 0x1a3   : > { %v4027_v38 = vmax.f32 %v3979_v0, %v934_v59  ;;  %v750_v10 = vmax.f32 %v686_v61, %v7482_v36  ;;  %v10495_v21 = vrot.slane %v6369_v6, 1  ;;  %v562_v0 = vmax.f32 %v498_v43, %v7427_v62 }
 0x1a4   : > { %v3875_v27 = vrot.slane %v7639_v16, 7  ;;  %v3473_v59 = vmax.f32 %v3297_v1, %v10494_v25  ;;  %v10499_v29 = vrot.slane %v6369_v6, 2  ;;  %v10500_v43 = vrot.slane %v6369_v6, 3 }
 0x1a5   : > { %5077 = vst.msk [vmem:[%s5873_s17 + $0x19e] sm:$0x3] %vm4050_vm8, %v4027_v38  ;;  %v814_v8 = vmax.f32 %v750_v10, %v7561_v48  ;;  %v2948_v61 = vmax.f32 %v6369_v6, %v10495_v21  ;;  %v626_v25 = vmax.f32 %v562_v0, %v7455_v11  ;;  %v10504_v0 = vrot.slane %v6375_v13, 1 }
 0x1a6   : > { %v3876_v38 = vsel %vm2125_vm7, %v10498_v53, %v3875_v27  ;;  %v3649_v1 = vmax.f32 %v3473_v59, %v10497_v17  ;;  %v10503_v27 = vrot.slane %v6369_v6, 4 }
 0x1a7   : > { %v3982_v19 = vmax.f32 %v3790_v45, %v3876_v38  ;;  %v878_v21 = vmax.f32 %v814_v8, %v7588_v35  ;;  %v3124_v26 = vmax.f32 %v2948_v61, %v10499_v29  ;;  %v690_v34 = vmax.f32 %v626_v25, %v7482_v36  ;;  %v7685_v38 = vld [vmem:[#allocation2 + $0x2d8] sm:$0xf] }
 0x1a8   : > { %v502_v8 = vmax.f32 %v7400_v46, %v7427_v62  ;;  %v10731_v25 = vrot.slane %v10729_v31, 6  ;;  %v10733_v46 = vrot.slane %v6369_v6, 5 }
 0x1a9   : > { %v4030_v17 = vmax.f32 %v3982_v19, %v7639_v16  ;;  %v942_v53 = vmax.f32 %v878_v21, %v7626_v60  ;;  %v3300_v45 = vmax.f32 %v3124_v26, %v10500_v43  ;;  %v754_v10 = vmax.f32 %v690_v34, %v7561_v48 }
 0x1aa   : > { %v3793_v61 = vmax.f32 %v3649_v1, %v10731_v25  ;;  %v566_v43 = vmax.f32 %v502_v8, %v7455_v11  ;;  %v2951_v34 = vmax.f32 %v6375_v13, %v10504_v0  ;;  %v10506_v1 = vrot.slane %v6375_v13, 2 }
 0x1ab   : > { %5080 = vst.msk [vmem:[%s5873_s17 + $0x1ae] sm:$0x3] %vm4050_vm8, %v4030_v17  ;;  %v1006_v21 = vmax.f32 %v942_v53, %v7685_v38  ;;  %v3880_v19 = vrot.slane %v942_v53, 7  ;;  %v3476_v26 = vmax.f32 %v3300_v45, %v10503_v27  ;;  %v818_v59 = vmax.f32 %v754_v10, %v7588_v35  ;;  %v7711_v10 = vld [vmem:[#allocation2 + $0x2f8] sm:$0xf] }
 0x1ac   : > { %v10732_v17 = vrot.slane %v10729_v31, 7  ;;  %v630_v45 = vmax.f32 %v566_v43, %v7482_v36  ;;  %v3127_v25 = vmax.f32 %v2951_v34, %v10506_v1  ;;  %v2673_v43 = vmax.f32 %v7427_v62, %v7455_v11 }
 0x1ad   : > { %v3652_v28 = vmax.f32 %v3476_v26, %v10733_v46  ;;  %v882_v0 = vmax.f32 %v818_v59, %v7626_v60  ;;  %v10507_v8 = vrot.slane %v6382_v44, 1  ;;  %v10735_v34 = vrot.slane %v6369_v6, 6 }
 0x1ae   : > { %v3881_v29 = vsel %vm2125_vm7, %v10732_v17, %v3880_v19  ;;  %v1070_v19 = vmax.f32 %v1006_v21, %v7711_v10  ;;  %v694_v17 = vmax.f32 %v630_v45, %v7561_v48  ;;  %v2681_v45 = vmax.f32 %v2673_v43, %v7482_v36 }
 0x1af   : > { %v3985_v27 = vmax.f32 %v3793_v61, %v3881_v29  ;;  %v946_v29 = vmax.f32 %v882_v0, %v7685_v38  ;;  %v10734_v61 = vrot.slane %v6375_v13, 3  ;;  %v3796_v1 = vmax.f32 %v3652_v28, %v10735_v34 }
 0x1b0   : > { %v758_v21 = vmax.f32 %v694_v17, %v7588_v35  ;;  %v10736_v0 = vrot.slane %v6375_v13, 4  ;;  %v2689_v43 = vmax.f32 %v2681_v45, %v7561_v48  ;;  %v10738_v46 = vrot.slane %v6369_v6, 7 }
 0x1b1   : > { %v4033_v26 = vmax.f32 %v3985_v27, %v942_v53  ;;  %v3303_v59 = vmax.f32 %v3127_v25, %v10734_v61  ;;  %v1010_v53 = vmax.f32 %v946_v29, %v7711_v10  ;;  %v3885_v27 = vrot.slane %v946_v29, 7  ;;  %v7739_v61 = vld [vmem:[#allocation2 + $0x318] sm:$0xf] }
 0x1b2   : > { %v2954_v25 = vmax.f32 %v6382_v44, %v10507_v8  ;;  %v822_v28 = vmax.f32 %v758_v21, %v7626_v60  ;;  %v10740_v62 = vrot.slane %v6382_v44, 2  ;;  %v2697_v45 = vmax.f32 %v2689_v43, %v7588_v35 }
 0x1b3   : > { %5083 = vst.msk [vmem:[%s5873_s17 + $0x1be] sm:$0x3] %vm4050_vm8, %v4033_v26  ;;  %v3479_v47 = vmax.f32 %v3303_v59, %v10736_v0  ;;  %v7746_v34 = vmax.f32 %v1010_v53, %v7739_v61  ;;  %v3886_v59 = vsel %vm2125_vm7, %v10738_v46, %v3885_v27  ;;  %v10739_v0 = vrot.slane %v6375_v13, 5 }
 0x1b4   : > { %v3130_v57 = vmax.f32 %v2954_v25, %v10740_v62  ;;  %v3988_v21 = vmax.f32 %v3796_v1, %v3886_v59  ;;  %v886_v17 = vmax.f32 %v822_v28, %v7685_v38  ;;  %v10512_v26 = vrot.slane %v6382_v44, 4 }
 0x1b5   : > { %10737 = vst [vmem:[#allocation66_spill] sm:$0xff] %v7746_v34  ;;  %v3655_v8 = vmax.f32 %v3479_v47, %v10739_v0  ;;  %v10741_v53 = vrot.slane %v6375_v13, 6  ;;  %v10514_v27 = vrot.slane %v6382_v44, 5  ;;  %v7763_v47 = vld [vmem:[#allocation2 + $0x338] sm:$0xf]  ;;  %v1134_v62 = vmax.f32 %v1070_v19, %v7739_v61 }
 0x1b6   : > { %v3306_v46 = vmax.f32 %v3130_v57, %v10742_v56  ;;  %10743 = vst [vmem:[#allocation67_spill] sm:$0xff] %v7763_v47  ;;  %v4036_v1 = vmax.f32 %v3988_v21, %v946_v29  ;;  %v950_v25 = vmax.f32 %v886_v17, %v7711_v10  ;;  %v2705_v28 = vmax.f32 %v2697_v45, %v7626_v60 }
 0x1b7   : > { %v3799_v52 = vmax.f32 %v3655_v8, %v10741_v53  ;;  %v7773_v59 = vmax.f32 %v1134_v62, %v7763_v47  ;;  %v2677_v57 = vmax.f32 %v7455_v11, %v7482_v36  ;;  %v10513_v56 = vrot.slane %v6386_v14, 1 }
 0x1b8   : > { %v3482_v8 = vmax.f32 %v3306_v46, %v10512_v26  ;;  %5086 = vst.msk [vmem:[%s5873_s17 + $0x1ce] sm:$0x3] %vm4050_vm8, %v4036_v1  ;;  %v1014_v19 = vmax.f32 %v950_v25, %v7739_v61  ;;  %v3890_v29 = vrot.slane %v950_v25, 7  ;;  %v2713_v17 = vmax.f32 %v2705_v28, %v7685_v38 }
 0x1b9   : > { %10744 = vst [vmem:[#allocation68_spill] sm:$0xff] %v7773_v59  ;;  %v2685_v45 = vmax.f32 %v2677_v57, %v7561_v48  ;;  %v2957_v53 = vmax.f32 %v6386_v14, %v10513_v56  ;;  %v10515_v46 = vrot.slane %v6386_v14, 2  ;;  %v10745_v62 = vrot.slane %v6375_v13, 7 }
 0x1ba   : > { %v3658_v21 = vmax.f32 %v3482_v8, %v10514_v27  ;;  %v2721_v43 = vmax.f32 %v2713_v17, %v7711_v10  ;;  %v7796_v26 = vmax.f32 %v1014_v19, %v7763_v47  ;;  %v10516_v27 = vrot.slane %v6386_v14, 3 }
 0x1bb   : > { %v3891_v1 = vsel %vm2125_vm7, %v10745_v62, %v3890_v29  ;;  %v2693_v57 = vmax.f32 %v2685_v45, %v7588_v35  ;;  %v3133_v56 = vmax.f32 %v2957_v53, %v10515_v46  ;;  %v10747_v29 = vrot.slane %v6382_v44, 6 }
 0x1bc   : > { %10746 = vst [vmem:[#allocation69_spill] sm:$0xff] %v7796_v26  ;;  %v3991_v8 = vmax.f32 %v3799_v52, %v3891_v1  ;;  %v2729_v0 = vmax.f32 %v2721_v43, %v7739_v61  ;;  %v10517_v17 = vrot.slane %v6386_v14, 4  ;;  %v10519_v28 = vrot.slane %v6386_v14, 5  ;;  %v5216_v26 = vld [vmem:[#allocation2 + $0x1a0] sm:$0xff] }
 0x1bd   : > { %v3802_v62 = vmax.f32 %v3658_v21, %v10747_v29  ;;  %v2701_v52 = vmax.f32 %v2693_v57, %v7626_v60  ;;  %v3309_v45 = vmax.f32 %v3133_v56, %v10516_v27  ;;  %v10748_v43 = vmax.f32 %v6348_v5, %v6378_v33 }
 0x1be   : > { %v4039_v19 = vmax.f32 %v3991_v8, %v950_v25  ;;  %v3895_v53 = vrot.slane %v2729_v0, 7  ;;  %v2798_v29 = vrot.slane %v6391_v40, 1  ;;  %v2974_v8 = vrot.slane %v6391_v40, 2 }
 0x1bf   : > { %v7815_v21 = vmax.f32 %v10748_v43, %v5216_v26  ;;  %v2709_v25 = vmax.f32 %v2701_v52, %v7685_v38  ;;  %v3485_v56 = vmax.f32 %v3309_v45, %v10517_v17  ;;  %v3150_v57 = vrot.slane %v6391_v40, 3 }
 0x1c0   : > { %5089 = vst.msk [vmem:[%s5873_s17 + $0x1de] sm:$0x3] %vm4050_vm8, %v4039_v19  ;;  %v10749_v27 = vrot.slane %v6382_v44, 7 }
 0x1c1   : > { %v2797_v5 = vrot.slane %v7815_v21, 1  ;;  %v2973_v33 = vrot.slane %v7815_v21, 2  ;;  %v3149_v26 = vrot.slane %v7815_v21, 3  ;;  %v2717_v38 = vmax.f32 %v2709_v25, %v7711_v10 }
 0x1c2   : > { %v3896_v46 = vsel %vm2125_vm7, %v10749_v27, %v3895_v53  ;;  %v3661_v52 = vmax.f32 %v3485_v56, %v10519_v28  ;;  %v3325_v45 = vrot.slane %v7815_v21, 4  ;;  %v3326_v53 = vrot.slane %v6391_v40, 4 }
 0x1c3   : > { %v3994_v19 = vmax.f32 %v3802_v62, %v3896_v46  ;;  %v2799_v43 = vsel %vm1255_vm2, %v2797_v5, %v2798_v29  ;;  %v2975_v17 = vsel %vm1400_vm3, %v2973_v33, %v2974_v8  ;;  %v3151_v27 = vsel %vm1545_vm4, %v3149_v26, %v3150_v57 }
 0x1c4   : > { %v2725_v34 = vmax.f32 %v2717_v38, %v7739_v61  ;;  %v10750_v46 = vrot.slane %v6386_v14, 6  ;;  %v2919_v10 = vmax.f32 %v7815_v21, %v2799_v43  ;;  %v3327_v25 = vsel %vm1690_vm6, %v3325_v45, %v3326_v53 }
 0x1c5   : > { %v4042_v1 = vmax.f32 %v3994_v19, %v2729_v0  ;;  %v3501_v56 = vrot.slane %v7815_v21, 5  ;;  %v3502_v5 = vrot.slane %v6391_v40, 5  ;;  %v3671_v33 = vrot.slane %v6391_v40, 6 }
 0x1c6   : > { %v3805_v62 = vmax.f32 %v3661_v52, %v10750_v46  ;;  %v2733_v26 = vmax.f32 %v2725_v34, %v7763_v47  ;;  %v3095_v0 = vmax.f32 %v2919_v10, %v2975_v17  ;;  %v3837_v61 = vrot.slane %v6391_v40, 7 }
 0x1c7   : > { %5092 = vst.msk [vmem:[%s5873_s17 + $0x1ee] sm:$0x3] %vm4050_vm8, %v4042_v1  ;;  %v10751_v19 = vrot.slane %v10708_v37, 1  ;;  %v3503_v52 = vsel %vm1835_vm9, %v3501_v56, %v3502_v5  ;;  %v10752_v43 = vrot.slane %v10708_v37, 2  ;;  %v10753_v28 = vrot.slane %v10708_v37, 3 }
 0x1c8   : > { %v3900_v34 = vrot.slane %v2733_v26, 7  ;;  %v3271_v17 = vmax.f32 %v3095_v0, %v3151_v27  ;;  %v10754_v10 = vrot.slane %v10708_v37, 4 }
 0x1c9   : > { %v2801_v38 = vsel %vm1255_vm2, %v2798_v29, %v10751_v19  ;;  %v2977_v46 = vsel %vm1400_vm3, %v2974_v8, %v10752_v43  ;;  %v3153_v1 = vsel %vm1545_vm4, %v3150_v57, %v10753_v28  ;;  %v10755_v29 = vrot.slane %v10708_v37, 5  ;;  %v5217_v28 = vld [vmem:[#allocation2 + $0x1c0] sm:$0xff] }
 0x1ca   : > { %v2920_v45 = vmax.f32 %v6391_v40, %v2801_v38  ;;  %v3329_v47 = vsel %vm1690_vm6, %v3326_v53, %v10754_v10  ;;  %v10756_v38 = vrot.slane %v10708_v37, 6  ;;  %v10757_v8 = vrot.slane %v10708_v37, 7 }
 0x1cb   : > { %v3505_v56 = vsel %vm1835_vm9, %v3502_v5, %v10755_v29  ;;  %v10758_v57 = vmax.f32 %v6423_v12, %v6447_v55  ;;  %v10759_v53 = vrot.slane %v6386_v14, 7  ;;  %v3447_v5 = vmax.f32 %v3271_v17, %v3327_v25 }
 0x1cc   : > { %v3096_v19 = vmax.f32 %v2920_v45, %v2977_v46  ;;  %v3673_v59 = vsel %vm1980_vm10, %v3671_v33, %v10756_v38  ;;  %v3839_v43 = vsel %vm2125_vm7, %v3837_v61, %v10757_v8  ;;  %v2803_v45 = vrot.slane %v6473_v42, 1 }
 0x1cd   : > { %v7877_v27 = vmax.f32 %v10758_v57, %v5217_v28  ;;  %v3901_v0 = vsel %vm2125_vm7, %v10759_v53, %v3900_v34  ;;  %v2979_v46 = vrot.slane %v6473_v42, 2  ;;  %v3623_v35 = vmax.f32 %v3447_v5, %v3503_v52 }
 0x1ce   : > { %v3997_v10 = vmax.f32 %v3805_v62, %v3901_v0  ;;  %v3272_v29 = vmax.f32 %v3096_v19, %v3153_v1  ;;  %v3155_v55 = vrot.slane %v6473_v42, 3  ;;  %v3331_v53 = vrot.slane %v6473_v42, 4 }
 0x1cf   : > { %v2802_v38 = vrot.slane %v7877_v27, 1  ;;  %v2978_v8 = vrot.slane %v7877_v27, 2  ;;  %v3154_v12 = vrot.slane %v7877_v27, 3  ;;  %v3330_v28 = vrot.slane %v7877_v27, 4 }
 0x1d0   : > { %v4045_v34 = vmax.f32 %v3997_v10, %v2733_v26  ;;  %v3448_v25 = vmax.f32 %v3272_v29, %v3329_v47  ;;  %v3767_v62 = vmax.f32 %v3623_v35, %v3671_v33  ;;  %v3506_v0 = vrot.slane %v7877_v27, 5 }
 0x1d1   : > { %v2804_v17 = vsel %vm1255_vm2, %v2802_v38, %v2803_v45  ;;  %v2980_v57 = vsel %vm1400_vm3, %v2978_v8, %v2979_v46  ;;  %v3156_v19 = vsel %vm1545_vm4, %v3154_v12, %v3155_v55  ;;  %v3507_v5 = vrot.slane %v6473_v42, 5 }
 0x1d2   : > { %v2922_v1 = vmax.f32 %v7877_v27, %v2804_v17  ;;  %5095 = vst.msk [vmem:[%s5873_s17 + $0x1fe] sm:$0x3] %vm4050_vm8, %v4045_v34  ;;  %v3624_v52 = vmax.f32 %v3448_v25, %v3505_v56  ;;  %v3674_v47 = vrot.slane %v6473_v42, 6  ;;  %v3959_v26 = vmax.f32 %v3767_v62, %v3837_v61 }
 0x1d3   : > { %v3332_v35 = vsel %vm1690_vm6, %v3330_v28, %v3331_v53  ;;  %v3842_v33 = vrot.slane %v6473_v42, 7  ;;  %v3508_v38 = vsel %vm1835_vm9, %v3506_v0, %v3507_v5  ;;  %v10760_v8 = vrot.slane %v10711_v18, 1 }
 0x1d4   : > { %v3098_v10 = vmax.f32 %v2922_v1, %v2980_v57  ;;  %v3768_v29 = vmax.f32 %v3624_v52, %v3673_v59  ;;  %v10761_v12 = vrot.slane %v10711_v18, 2  ;;  %v4007_v25 = vmax.f32 %v3959_v26, %v6391_v40 }
 0x1d5   : > { %v2806_v56 = vsel %vm1255_vm2, %v2803_v45, %v10760_v8  ;;  %v10762_v28 = vrot.slane %v10711_v18, 3  ;;  %v10763_v62 = vrot.slane %v10711_v18, 4  ;;  %v10764_v45 = vrot.slane %v10711_v18, 5 }
 0x1d6   : > { %v2982_v34 = vsel %vm1400_vm3, %v2979_v46, %v10761_v12  ;;  %v3274_v61 = vmax.f32 %v3098_v10, %v3156_v19  ;;  %v2923_v17 = vmax.f32 %v6473_v42, %v2806_v56  ;;  %v3960_v59 = vmax.f32 %v3768_v29, %v3839_v43  ;;  %5057 = vst.msk [vmem:[%s5873_s17 + $0x12e] sm:$0xfc] %vm4047_vm11, %v4007_v25  ;;  %v5218_v10 = vld [vmem:[#allocation2 + $0x1e0] sm:$0xff] }
 0x1d7   : > { %v3158_v57 = vsel %vm1545_vm4, %v3155_v55, %v10762_v28  ;;  %v3334_v1 = vsel %vm1690_vm6, %v3331_v53, %v10763_v62  ;;  %v3510_v52 = vsel %vm1835_vm9, %v3507_v5, %v10764_v45  ;;  %v10765_v46 = vrot.slane %v10711_v18, 6 }
 0x1d8   : > { %v3450_v0 = vmax.f32 %v3274_v61, %v3332_v35  ;;  %v3099_v26 = vmax.f32 %v2923_v17, %v2982_v34  ;;  %v10766_v55 = vrot.slane %v10711_v18, 7  ;;  %v10767_v53 = vmax.f32 %v6455_v3, %v6470_v39 }
 0x1d9   : > { %v3676_v19 = vsel %vm1980_vm10, %v3674_v47, %v10765_v46  ;;  %v4008_v5 = vmax.f32 %v3960_v59, %v10708_v37  ;;  %v2808_v8 = vrot.slane %v6501_v49, 1  ;;  %v2984_v56 = vrot.slane %v6501_v49, 2 }
 0x1da   : > { %v3844_v43 = vsel %vm2125_vm7, %v3842_v33, %v10766_v55  ;;  %v7930_v29 = vmax.f32 %v10767_v53, %v5218_v10  ;;  %v3160_v12 = vrot.slane %v6501_v49, 3  ;;  %v3626_v35 = vmax.f32 %v3450_v0, %v3508_v38 }
 0x1db   : > { %v3275_v34 = vmax.f32 %v3099_v26, %v3158_v57  ;;  %5058 = vst.msk [vmem:[%s5873_s17 + $0x136] sm:$0xff] %vm148_vm0, %v4008_v5  ;;  %v3336_v17 = vrot.slane %v6501_v49, 4  ;;  %v3512_v26 = vrot.slane %v6501_v49, 5  ;;  %v3677_v53 = vrot.slane %v6501_v49, 6 }
 0x1dc   : > { %v2807_v25 = vrot.slane %v7930_v29, 1  ;;  %v2983_v61 = vrot.slane %v7930_v29, 2  ;;  %v3159_v3 = vrot.slane %v7930_v29, 3  ;;  %v3335_v39 = vrot.slane %v7930_v29, 4 }
 0x1dd   : > { %v3511_v28 = vrot.slane %v7930_v29, 5  ;;  %v3770_v59 = vmax.f32 %v3626_v35, %v3674_v47  ;;  %v3451_v62 = vmax.f32 %v3275_v34, %v3334_v1  ;;  %v3847_v47 = vrot.slane %v6501_v49, 7 }
 0x1de   : > { %v2809_v45 = vsel %vm1255_vm2, %v2807_v25, %v2808_v8  ;;  %v2985_v38 = vsel %vm1400_vm3, %v2983_v61, %v2984_v56  ;;  %v3161_v46 = vsel %vm1545_vm4, %v3159_v3, %v3160_v12  ;;  %v3337_v0 = vsel %vm1690_vm6, %v3335_v39, %v3336_v17 }
 0x1df   : > { %v2925_v57 = vmax.f32 %v7930_v29, %v2809_v45  ;;  %v3962_v55 = vmax.f32 %v3770_v59, %v3842_v33  ;;  %v3627_v10 = vmax.f32 %v3451_v62, %v3510_v52  ;;  %v3513_v5 = vsel %vm1835_vm9, %v3511_v28, %v3512_v26 }
 0x1e0   : > { %v10768_v35 = vrot.slane %v10712_v22, 1  ;;  %v10769_v25 = vrot.slane %v10712_v22, 2  ;;  %v10770_v39 = vrot.slane %v10712_v22, 3  ;;  %v10771_v28 = vrot.slane %v10712_v22, 4 }
 0x1e1   : > { %v3101_v1 = vmax.f32 %v2925_v57, %v2985_v38  ;;  %v4010_v3 = vmax.f32 %v3962_v55, %v6473_v42  ;;  %v3771_v33 = vmax.f32 %v3627_v10, %v3676_v19  ;;  %v10774_v10 = vrot.slane %v10712_v22, 7 }
 0x1e2   : > { %v2811_v34 = vsel %vm1255_vm2, %v2808_v8, %v10768_v35  ;;  %v2987_v61 = vsel %vm1400_vm3, %v2984_v56, %v10769_v25  ;;  %v3163_v59 = vsel %vm1545_vm4, %v3160_v12, %v10770_v39  ;;  %v3339_v45 = vsel %vm1690_vm6, %v3336_v17, %v10771_v28  ;;  %v10775_v17 = vld [vmem:[#allocation27_spill] sm:$0xff] }
 0x1e3   : > { %v2926_v52 = vmax.f32 %v6501_v49, %v2811_v34  ;;  %v3277_v62 = vmax.f32 %v3101_v1, %v3161_v46  ;;  %v10772_v8 = vrot.slane %v10712_v22, 5  ;;  %v10773_v56 = vrot.slane %v10712_v22, 6  ;;  %5060 = vst.msk [vmem:[%s5873_s17 + $0x13e] sm:$0xfc] %vm4047_vm11, %v4010_v3  ;;  %v5219_v46 = vld [vmem:[#allocation2 + $0x200] sm:$0xff]  ;;  %v10778_v34 = vld [vmem:[#allocation28_spill] sm:$0xff] }
 0x1e4   : > { %v3963_v19 = vmax.f32 %v3771_v33, %v3844_v43  ;;  %v3849_v12 = vsel %vm2125_vm7, %v3847_v47, %v10774_v10  ;;  %v10776_v1 = vmax.f32 %v6517_v23, %v10775_v17  ;;  %v2813_v25 = vrot.slane %v10778_v34, 1 }
 0x1e5   : > { %v3515_v38 = vsel %vm1835_vm9, %v3512_v26, %v10772_v8  ;;  %v3679_v57 = vsel %vm1980_vm10, %v3677_v53, %v10773_v56  ;;  %v3102_v55 = vmax.f32 %v2926_v52, %v2987_v61  ;;  %v3453_v26 = vmax.f32 %v3277_v62, %v3337_v0 }
 0x1e6   : > { %v7981_v35 = vmax.f32 %v10776_v1, %v5219_v46  ;;  %v2989_v39 = vrot.slane %v10778_v34, 2  ;;  %v3165_v3 = vrot.slane %v10778_v34, 3  ;;  %v4011_v43 = vmax.f32 %v3963_v19, %v10711_v18 }
 0x1e7   : > { %v3278_v61 = vmax.f32 %v3102_v55, %v3163_v59  ;;  %v3629_v28 = vmax.f32 %v3453_v26, %v3513_v5  ;;  %v3341_v0 = vrot.slane %v10778_v34, 4  ;;  %v3517_v1 = vrot.slane %v10778_v34, 5 }
 0x1e8   : > { %10777 = vst [vmem:[#allocation27_spill] sm:$0xff] %v7981_v35  ;;  %v2812_v33 = vrot.slane %v7981_v35, 1  ;;  %v2988_v52 = vrot.slane %v7981_v35, 2  ;;  %v3164_v8 = vrot.slane %v7981_v35, 3  ;;  %v3340_v23 = vrot.slane %v7981_v35, 4  ;;  %5061 = vst.msk [vmem:[%s5873_s17 + $0x146] sm:$0xff] %vm148_vm0, %v4011_v43 }
 0x1e9   : > { %v3454_v62 = vmax.f32 %v3278_v61, %v3339_v45  ;;  %v3516_v59 = vrot.slane %v7981_v35, 5  ;;  %v3773_v19 = vmax.f32 %v3629_v28, %v3677_v53  ;;  %v3680_v26 = vrot.slane %v10778_v34, 6 }
 0x1ea   : > { %v2814_v56 = vsel %vm1255_vm2, %v2812_v33, %v2813_v25  ;;  %v2990_v10 = vsel %vm1400_vm3, %v2988_v52, %v2989_v39  ;;  %v3166_v5 = vsel %vm1545_vm4, %v3164_v8, %v3165_v3  ;;  %v3342_v46 = vsel %vm1690_vm6, %v3340_v23, %v3341_v0 }
 0x1eb   : > { %v2928_v55 = vmax.f32 %v7981_v35, %v2814_v56  ;;  %v3630_v17 = vmax.f32 %v3454_v62, %v3515_v38  ;;  %v3852_v45 = vrot.slane %v10778_v34, 7  ;;  %v3965_v43 = vmax.f32 %v3773_v19, %v3847_v47 }
 0x1ec   : > { %v10779_v33 = vrot.slane %v10713_v7, 1  ;;  %v10780_v52 = vrot.slane %v10713_v7, 2  ;;  %v3518_v38 = vsel %vm1835_vm9, %v3516_v59, %v3517_v1  ;;  %v10781_v62 = vrot.slane %v10713_v7, 3 }
 0x1ed   : > { %v3104_v61 = vmax.f32 %v2928_v55, %v2990_v10  ;;  %v3774_v8 = vmax.f32 %v3630_v17, %v3679_v57  ;;  %v4013_v47 = vmax.f32 %v3965_v43, %v6501_v49  ;;  %v10782_v19 = vrot.slane %v10713_v7, 4  ;;  %v5220_v43 = vld [vmem:[#allocation2 + $0x220] sm:$0xff] }
 0x1ee   : > { %v2816_v53 = vsel %vm1255_vm2, %v2813_v25, %v10779_v33  ;;  %v2992_v28 = vsel %vm1400_vm3, %v2989_v39, %v10780_v52  ;;  %v3168_v56 = vsel %vm1545_vm4, %v3165_v3, %v10781_v62  ;;  %v10783_v55 = vrot.slane %v10713_v7, 5 }
 0x1ef   : > { %v2929_v23 = vmax.f32 %v10778_v34, %v2816_v53  ;;  %v3280_v10 = vmax.f32 %v3104_v61, %v3166_v5  ;;  %v3344_v25 = vsel %vm1690_vm6, %v3341_v0, %v10782_v19  ;;  %v3966_v57 = vmax.f32 %v3774_v8, %v3849_v12  ;;  %5063 = vst.msk [vmem:[%s5873_s17 + $0x14e] sm:$0xfc] %vm4047_vm11, %v4013_v47  ;;  %v10786_v0 = vld [vmem:[#allocation29_spill] sm:$0xff]  ;;  %v10787_v61 = vld [vmem:[#allocation30_spill] sm:$0xff]  ;;  %v10790_v12 = vld [vmem:[#allocation31_spill] sm:$0xff] }
 0x1f0   : > { %v3520_v39 = vsel %vm1835_vm9, %v3517_v1, %v10783_v55  ;;  %v10784_v59 = vrot.slane %v10713_v7, 6  ;;  %v10785_v53 = vrot.slane %v10713_v7, 7  ;;  %v10788_v52 = vmax.f32 %v10786_v0, %v10787_v61 }
 0x1f1   : > { %v3105_v17 = vmax.f32 %v2929_v23, %v2992_v28  ;;  %v3456_v5 = vmax.f32 %v3280_v10, %v3342_v46  ;;  %v2818_v1 = vrot.slane %v10790_v12, 1  ;;  %v2994_v28 = vrot.slane %v10790_v12, 2 }
 0x1f2   : > { %v3682_v33 = vsel %vm1980_vm10, %v3680_v26, %v10784_v59  ;;  %v3854_v3 = vsel %vm2125_vm7, %v3852_v45, %v10785_v53  ;;  %v8032_v62 = vmax.f32 %v10788_v52, %v5220_v43  ;;  %v4014_v8 = vmax.f32 %v3966_v57, %v10712_v22 }
 0x1f3   : > { %v3281_v23 = vmax.f32 %v3105_v17, %v3168_v56  ;;  %v3170_v19 = vrot.slane %v10790_v12, 3  ;;  %v3346_v55 = vrot.slane %v10790_v12, 4  ;;  %v3632_v59 = vmax.f32 %v3456_v5, %v3518_v38 }
 0x1f4   : > { %10789 = vst [vmem:[#allocation29_spill] sm:$0xff] %v8032_v62  ;;  %v2817_v46 = vrot.slane %v8032_v62, 1  ;;  %v2993_v47 = vrot.slane %v8032_v62, 2  ;;  %v3169_v10 = vrot.slane %v8032_v62, 3  ;;  %5064 = vst.msk [vmem:[%s5873_s17 + $0x156] sm:$0xff] %vm148_vm0, %v4014_v8  ;;  %v3345_v43 = vrot.slane %v8032_v62, 4 }
 0x1f5   : > { %v3457_v53 = vmax.f32 %v3281_v23, %v3344_v25  ;;  %v3521_v0 = vrot.slane %v8032_v62, 5  ;;  %v3522_v56 = vrot.slane %v10790_v12, 5  ;;  %v3776_v57 = vmax.f32 %v3632_v59, %v3680_v26 }
 0x1f6   : > { %v2819_v17 = vsel %vm1255_vm2, %v2817_v46, %v2818_v1  ;;  %v2995_v38 = vsel %vm1400_vm3, %v2993_v47, %v2994_v28  ;;  %v3171_v5 = vsel %vm1545_vm4, %v3169_v10, %v3170_v19  ;;  %v3347_v48 = vsel %vm1690_vm6, %v3345_v43, %v3346_v55 }
 0x1f7   : > { %v3633_v61 = vmax.f32 %v3457_v53, %v3520_v39  ;;  %v2931_v52 = vmax.f32 %v8032_v62, %v2819_v17  ;;  %v3523_v25 = vsel %vm1835_vm9, %v3521_v0, %v3522_v56  ;;  %v3968_v8 = vmax.f32 %v3776_v57, %v3852_v45 }
 0x1f8   : > { %v3683_v23 = vrot.slane %v10790_v12, 6  ;;  %v3857_v35 = vrot.slane %v10790_v12, 7  ;;  %v10791_v26 = vrot.slane %v10717_v24, 1  ;;  %v10792_v10 = vrot.slane %v10717_v24, 2 }
 0x1f9   : > { %v3777_v46 = vmax.f32 %v3633_v61, %v3682_v33  ;;  %v3107_v47 = vmax.f32 %v2931_v52, %v2995_v38  ;;  %v4016_v43 = vmax.f32 %v3968_v8, %v10778_v34  ;;  %v10793_v45 = vrot.slane %v10717_v24, 3 }
 0x1fa   : > { %v2821_v59 = vsel %vm1255_vm2, %v2818_v1, %v10791_v26  ;;  %v2997_v53 = vsel %vm1400_vm3, %v2994_v28, %v10792_v10  ;;  %v10794_v57 = vrot.slane %v10717_v24, 4  ;;  %v10795_v1 = vrot.slane %v10717_v24, 5  ;;  %v10799_v10 = vld [vmem:[#allocation33_spill] sm:$0xff] }
 0x1fb   : > { %v2932_v39 = vmax.f32 %v10790_v12, %v2821_v59  ;;  %v3173_v0 = vsel %vm1545_vm4, %v3170_v19, %v10793_v45  ;;  %v3969_v38 = vmax.f32 %v3777_v46, %v3854_v3  ;;  %v3283_v61 = vmax.f32 %v3107_v47, %v3171_v5  ;;  %5066 = vst.msk [vmem:[%s5873_s17 + $0x15e] sm:$0xfc] %vm4047_vm11, %v4016_v43  ;;  %v5221_v59 = vld [vmem:[#allocation2 + $0x240] sm:$0xff]  ;;  %v10802_v3 = vld [vmem:[#allocation36_spill] sm:$0xff] }
 0x1fc   : > { %v3349_v17 = vsel %vm1690_vm6, %v3346_v55, %v10794_v57  ;;  %v3525_v33 = vsel %vm1835_vm9, %v3522_v56, %v10795_v1  ;;  %v10796_v26 = vrot.slane %v10717_v24, 6  ;;  %v10797_v19 = vrot.slane %v10717_v24, 7  ;;  %v10798_v55 = vld [vmem:[#allocation32_spill] sm:$0xff] }
 0x1fd   : > { %v3108_v52 = vmax.f32 %v2932_v39, %v2997_v53  ;;  %v10800_v45 = vmax.f32 %v10798_v55, %v10799_v10  ;;  %v2823_v56 = vrot.slane %v10802_v3, 1  ;;  %v2999_v5 = vrot.slane %v10802_v3, 2 }
 0x1fe   : > { %v3685_v28 = vsel %vm1980_vm10, %v3683_v23, %v10796_v26  ;;  %v3859_v8 = vsel %vm2125_vm7, %v3857_v35, %v10797_v19  ;;  %v4017_v46 = vmax.f32 %v3969_v38, %v10713_v7  ;;  %v3459_v47 = vmax.f32 %v3283_v61, %v3347_v48 }
 0x1ff   : > { %v8083_v57 = vmax.f32 %v10800_v45, %v5221_v59  ;;  %v3284_v39 = vmax.f32 %v3108_v52, %v3173_v0  ;;  %v3175_v53 = vrot.slane %v10802_v3, 3  ;;  %v3351_v10 = vrot.slane %v10802_v3, 4 }
 0x200   : > { %5067 = vst.msk [vmem:[%s5873_s17 + $0x166] sm:$0xff] %vm148_vm0, %v4017_v46  ;;  %v3635_v59 = vmax.f32 %v3459_v47, %v3523_v25  ;;  %v3527_v52 = vrot.slane %v10802_v3, 5  ;;  %v3862_v47 = vrot.slane %v10802_v3, 7 }
 0x201   : > { %10801 = vst [vmem:[#allocation30_spill] sm:$0xff] %v8083_v57  ;;  %v2822_v43 = vrot.slane %v8083_v57, 1  ;;  %v2998_v1 = vrot.slane %v8083_v57, 2  ;;  %v3174_v26 = vrot.slane %v8083_v57, 3  ;;  %v3350_v19 = vrot.slane %v8083_v57, 4 }
 0x202   : > { %v3460_v55 = vmax.f32 %v3284_v39, %v3349_v17  ;;  %v3526_v38 = vrot.slane %v8083_v57, 5  ;;  %v3779_v45 = vmax.f32 %v3635_v59, %v3683_v23  ;;  %v3686_v17 = vrot.slane %v10802_v3, 6 }
 0x203   : > { %v2824_v48 = vsel %vm1255_vm2, %v2822_v43, %v2823_v56  ;;  %v3000_v0 = vsel %vm1400_vm3, %v2998_v1, %v2999_v5  ;;  %v3176_v61 = vsel %vm1545_vm4, %v3174_v26, %v3175_v53  ;;  %v3352_v46 = vsel %vm1690_vm6, %v3350_v19, %v3351_v10 }
 0x204   : > { %v3636_v62 = vmax.f32 %v3460_v55, %v3525_v33  ;;  %v2934_v7 = vmax.f32 %v8083_v57, %v2824_v48  ;;  %v3528_v25 = vsel %vm1835_vm9, %v3526_v38, %v3527_v52  ;;  %v10803_v39 = vrot.slane %v10720_v9, 1 }
 0x205   : > { %v3971_v1 = vmax.f32 %v3779_v45, %v3857_v35  ;;  %v10804_v33 = vrot.slane %v10720_v9, 2  ;;  %v10805_v59 = vrot.slane %v10720_v9, 3  ;;  %v10806_v38 = vrot.slane %v10720_v9, 4 }
 0x206   : > { %v2826_v43 = vsel %vm1255_vm2, %v2823_v56, %v10803_v39  ;;  %v3780_v26 = vmax.f32 %v3636_v62, %v3685_v28  ;;  %v3110_v34 = vmax.f32 %v2934_v7, %v3000_v0  ;;  %v10807_v56 = vrot.slane %v10720_v9, 5 }
 0x207   : > { %v2935_v23 = vmax.f32 %v10802_v3, %v2826_v43  ;;  %v3002_v19 = vsel %vm1400_vm3, %v2999_v5, %v10804_v33  ;;  %v3178_v55 = vsel %vm1545_vm4, %v3175_v53, %v10805_v59  ;;  %v3354_v48 = vsel %vm1690_vm6, %v3351_v10, %v10806_v38  ;;  %v5222_v43 = vld [vmem:[#allocation2 + $0x260] sm:$0xff]  ;;  %v10810_v10 = vld [vmem:[#allocation34_spill] sm:$0xff] }
 0x208   : > { %v3530_v35 = vsel %vm1835_vm9, %v3527_v52, %v10807_v56  ;;  %v4019_v7 = vmax.f32 %v3971_v1, %v10790_v12  ;;  %v3972_v62 = vmax.f32 %v3780_v26, %v3859_v8  ;;  %v3286_v28 = vmax.f32 %v3110_v34, %v3176_v61  ;;  %v10811_v33 = vld [vmem:[#allocation35_spill] sm:$0xff]  ;;  %v10814_v52 = vld [vmem:[#allocation37_spill] sm:$0xff] }
 0x209   : > { %v3111_v0 = vmax.f32 %v2935_v23, %v3002_v19  ;;  %v10808_v5 = vrot.slane %v10720_v9, 6  ;;  %v10809_v53 = vrot.slane %v10720_v9, 7  ;;  %v10812_v59 = vmax.f32 %v10810_v10, %v10811_v33 }
 0x20a   : > { %v2828_v1 = vrot.slane %v10814_v52, 1  ;;  %5069 = vst.msk [vmem:[%s5873_s17 + $0x16e] sm:$0xfc] %vm4047_vm11, %v4019_v7  ;;  %v4020_v34 = vmax.f32 %v3972_v62, %v10717_v24  ;;  %v3462_v8 = vmax.f32 %v3286_v28, %v3352_v46  ;;  %v3004_v26 = vrot.slane %v10814_v52, 2 }
 0x20b   : > { %v3688_v45 = vsel %vm1980_vm10, %v3686_v17, %v10808_v5  ;;  %v3864_v39 = vsel %vm2125_vm7, %v3862_v47, %v10809_v53  ;;  %v8132_v38 = vmax.f32 %v10812_v59, %v5222_v43  ;;  %v3287_v61 = vmax.f32 %v3111_v0, %v3178_v55 }
 0x20c   : > { %v3180_v5 = vrot.slane %v10814_v52, 3  ;;  %5070 = vst.msk [vmem:[%s5873_s17 + $0x176] sm:$0xff] %vm148_vm0, %v4020_v34  ;;  %v3638_v53 = vmax.f32 %v3462_v8, %v3528_v25  ;;  %v3356_v62 = vrot.slane %v10814_v52, 4  ;;  %v3532_v25 = vrot.slane %v10814_v52, 5 }
 0x20d   : > { %10813 = vst [vmem:[#allocation32_spill] sm:$0xff] %v8132_v38  ;;  %v2827_v23 = vrot.slane %v8132_v38, 1  ;;  %v3003_v19 = vrot.slane %v8132_v38, 2  ;;  %v3179_v56 = vrot.slane %v8132_v38, 3  ;;  %v3463_v43 = vmax.f32 %v3287_v61, %v3354_v48 }
 0x20e   : > { %v3355_v7 = vrot.slane %v8132_v38, 4  ;;  %v3531_v0 = vrot.slane %v8132_v38, 5  ;;  %v3782_v10 = vmax.f32 %v3638_v53, %v3686_v17  ;;  %v3689_v48 = vrot.slane %v10814_v52, 6 }
 0x20f   : > { %v2829_v46 = vsel %vm1255_vm2, %v2827_v23, %v2828_v1  ;;  %v3005_v55 = vsel %vm1400_vm3, %v3003_v19, %v3004_v26  ;;  %v3181_v28 = vsel %vm1545_vm4, %v3179_v56, %v3180_v5  ;;  %v3639_v33 = vmax.f32 %v3463_v43, %v3530_v35 }
 0x210   : > { %v2937_v59 = vmax.f32 %v8132_v38, %v2829_v46  ;;  %v3357_v34 = vsel %vm1690_vm6, %v3355_v7, %v3356_v62  ;;  %v3867_v8 = vrot.slane %v10814_v52, 7  ;;  %v10815_v61 = vrot.slane %v10722_v32, 1 }
 0x211   : > { %v3974_v19 = vmax.f32 %v3782_v10, %v3862_v47  ;;  %v3783_v56 = vmax.f32 %v3639_v33, %v3688_v45  ;;  %v3533_v35 = vsel %vm1835_vm9, %v3531_v0, %v3532_v25  ;;  %v10816_v53 = vrot.slane %v10722_v32, 2 }
 0x212   : > { %v2831_v23 = vsel %vm1255_vm2, %v2828_v1, %v10815_v61  ;;  %v3113_v57 = vmax.f32 %v2937_v59, %v3005_v55  ;;  %v10817_v7 = vrot.slane %v10722_v32, 3  ;;  %v10818_v38 = vrot.slane %v10722_v32, 4 }
 0x213   : > { %v2938_v17 = vmax.f32 %v10814_v52, %v2831_v23  ;;  %v3007_v43 = vsel %vm1400_vm3, %v3004_v26, %v10816_v53  ;;  %v4022_v47 = vmax.f32 %v3974_v19, %v10802_v3  ;;  %v3975_v45 = vmax.f32 %v3783_v56, %v3864_v39  ;;  %v5223_v23 = vld [vmem:[#allocation2 + $0x280] sm:$0xff]  ;;  %v10826_v56 = vld [vmem:[#allocation41_spill] sm:$0xff] }
 0x214   : > { %v3183_v46 = vsel %vm1545_vm4, %v3180_v5, %v10817_v7  ;;  %v3359_v1 = vsel %vm1690_vm6, %v3356_v62, %v10818_v38  ;;  %v3289_v55 = vmax.f32 %v3113_v57, %v3181_v28  ;;  %v10819_v0 = vrot.slane %v10722_v32, 5  ;;  %v10822_v38 = vld [vmem:[#allocation38_spill] sm:$0xff]  ;;  %v10823_v62 = vld [vmem:[#allocation39_spill] sm:$0xff] }
 0x215   : > { %v3114_v10 = vmax.f32 %v2938_v17, %v3007_v43  ;;  %v10820_v26 = vrot.slane %v10722_v32, 6  ;;  %v10821_v5 = vrot.slane %v10722_v32, 7  ;;  %v10824_v19 = vmax.f32 %v10822_v38, %v10823_v62  ;;  %5072 = vst.msk [vmem:[%s5873_s17 + $0x17e] sm:$0xfc] %vm4047_vm11, %v4022_v47 }
 0x216   : > { %v3535_v33 = vsel %vm1835_vm9, %v3532_v25, %v10819_v0  ;;  %v4023_v57 = vmax.f32 %v3975_v45, %v10720_v9  ;;  %v3465_v28 = vmax.f32 %v3289_v55, %v3357_v34  ;;  %v2833_v17 = vrot.slane %v10826_v56, 1 }
 0x217   : > { %v3691_v59 = vsel %vm1980_vm10, %v3689_v48, %v10820_v26  ;;  %v3869_v61 = vsel %vm2125_vm7, %v3867_v8, %v10821_v5  ;;  %v8183_v39 = vmax.f32 %v10824_v19, %v5223_v23  ;;  %v3290_v25 = vmax.f32 %v3114_v10, %v3183_v46 }
 0x218   : > { %v3009_v7 = vrot.slane %v10826_v56, 2  ;;  %5073 = vst.msk [vmem:[%s5873_s17 + $0x186] sm:$0xff] %vm148_vm0, %v4023_v57  ;;  %v3641_v26 = vmax.f32 %v3465_v28, %v3533_v35  ;;  %v3185_v47 = vrot.slane %v10826_v56, 3  ;;  %v3361_v55 = vrot.slane %v10826_v56, 4 }
 0x219   : > { %10825 = vst [vmem:[#allocation33_spill] sm:$0xff] %v8183_v39  ;;  %v2832_v53 = vrot.slane %v8183_v39, 1  ;;  %v3008_v43 = vrot.slane %v8183_v39, 2  ;;  %v3184_v0 = vrot.slane %v8183_v39, 3  ;;  %v3466_v5 = vmax.f32 %v3290_v25, %v3359_v1 }
 0x21a   : > { %v3360_v45 = vrot.slane %v8183_v39, 4  ;;  %v3536_v10 = vrot.slane %v8183_v39, 5  ;;  %v3785_v23 = vmax.f32 %v3641_v26, %v3689_v48  ;;  %v3537_v1 = vrot.slane %v10826_v56, 5 }
 0x21b   : > { %v2834_v34 = vsel %vm1255_vm2, %v2832_v53, %v2833_v17  ;;  %v3010_v46 = vsel %vm1400_vm3, %v3008_v43, %v3009_v7  ;;  %v3642_v38 = vmax.f32 %v3466_v5, %v3535_v33  ;;  %v3186_v19 = vsel %vm1545_vm4, %v3184_v0, %v3185_v47 }
 0x21c   : > { %v2940_v62 = vmax.f32 %v8183_v39, %v2834_v34  ;;  %v3362_v35 = vsel %vm1690_vm6, %v3360_v45, %v3361_v55  ;;  %v3692_v57 = vrot.slane %v10826_v56, 6  ;;  %v3872_v28 = vrot.slane %v10826_v56, 7 }
 0x21d   : > { %v3977_v25 = vmax.f32 %v3785_v23, %v3867_v8  ;;  %v3786_v53 = vmax.f32 %v3642_v38, %v3691_v59  ;;  %v10827_v9 = vrot.slane %v10724_v4, 1  ;;  %v3538_v33 = vsel %vm1835_vm9, %v3536_v10, %v3537_v1 }
 0x21e   : > { %v3116_v43 = vmax.f32 %v2940_v62, %v3010_v46  ;;  %v10828_v26 = vrot.slane %v10724_v4, 2  ;;  %v10829_v45 = vrot.slane %v10724_v4, 3  ;;  %v10830_v23 = vrot.slane %v10724_v4, 4 }
 0x21f   : > { %v2836_v48 = vsel %vm1255_vm2, %v2833_v17, %v10827_v9  ;;  %v4025_v8 = vmax.f32 %v3977_v25, %v10814_v52  ;;  %v3978_v59 = vmax.f32 %v3786_v53, %v3869_v61  ;;  %v10831_v10 = vrot.slane %v10724_v4, 5  ;;  %v5224_v53 = vld [vmem:[#allocation2 + $0x2a0] sm:$0xff]  ;;  %v8598_v52 = vld [vmem:[#allocation2 + $0x118] sm:$0xf] }
 0x220   : > { %v2941_v0 = vmax.f32 %v10826_v56, %v2836_v48  ;;  %v3012_v5 = vsel %vm1400_vm3, %v3009_v7, %v10828_v26  ;;  %v3188_v34 = vsel %vm1545_vm4, %v3185_v47, %v10829_v45  ;;  %v3292_v46 = vmax.f32 %v3116_v43, %v3186_v19  ;;  %v10835_v43 = vld [vmem:[#allocation42_spill] sm:$0xff] }
 0x221   : > { %v3364_v9 = vsel %vm1690_vm6, %v3361_v55, %v10830_v23  ;;  %v3540_v38 = vsel %vm1835_vm9, %v3537_v1, %v10831_v10  ;;  %v10832_v7 = vrot.slane %v10724_v4, 6  ;;  %v10833_v47 = vrot.slane %v10724_v4, 7  ;;  %5075 = vst.msk [vmem:[%s5873_s17 + $0x18e] sm:$0xfc] %vm4047_vm11, %v4025_v8  ;;  %v10834_v55 = vld [vmem:[#allocation40_spill] sm:$0xff] }
 0x222   : > { %v3117_v17 = vmax.f32 %v2941_v0, %v3012_v5  ;;  %v4026_v61 = vmax.f32 %v3978_v59, %v10722_v32  ;;  %v3468_v19 = vmax.f32 %v3292_v46, %v3362_v35  ;;  %v10836_v48 = vmax.f32 %v10834_v55, %v10835_v43  ;;  %v10838_v1 = vld [vmem:[#allocation44_spill] sm:$0xff] }
 0x223   : > { %v3694_v62 = vsel %vm1980_vm10, %v3692_v57, %v10832_v7  ;;  %v3874_v25 = vsel %vm2125_vm7, %v3872_v28, %v10833_v47  ;;  %v2838_v26 = vrot.slane %v10838_v1, 1  ;;  %v3014_v45 = vrot.slane %v10838_v1, 2 }
 0x224   : > { %v8237_v0 = vmax.f32 %v10836_v48, %v5224_v53  ;;  %v3293_v5 = vmax.f32 %v3117_v17, %v3188_v34  ;;  %v3190_v23 = vrot.slane %v10838_v1, 3  ;;  %v3366_v10 = vrot.slane %v10838_v1, 4  ;;  %5076 = vst.msk [vmem:[%s5873_s17 + $0x196] sm:$0xff] %vm148_vm0, %v4026_v61 }
 0x225   : > { %v3644_v8 = vmax.f32 %v3468_v19, %v3538_v33  ;;  %v3542_v17 = vrot.slane %v10838_v1, 5  ;;  %v3695_v39 = vrot.slane %v10838_v1, 6  ;;  %v3877_v32 = vrot.slane %v10838_v1, 7 }
 0x226   : > { %10837 = vst [vmem:[#allocation34_spill] sm:$0xff] %v8237_v0  ;;  %v2837_v35 = vrot.slane %v8237_v0, 1  ;;  %v3013_v59 = vrot.slane %v8237_v0, 2  ;;  %v3189_v46 = vrot.slane %v8237_v0, 3  ;;  %v3469_v7 = vmax.f32 %v3293_v5, %v3364_v9 }
 0x227   : > { %v3365_v47 = vrot.slane %v8237_v0, 4  ;;  %v3541_v34 = vrot.slane %v8237_v0, 5  ;;  %v3788_v53 = vmax.f32 %v3644_v8, %v3692_v57  ;;  %v10839_v57 = vrot.slane %v10729_v31, 1 }
 0x228   : > { %v2839_v55 = vsel %vm1255_vm2, %v2837_v35, %v2838_v26  ;;  %v3015_v43 = vsel %vm1400_vm3, %v3013_v59, %v3014_v45  ;;  %v3191_v33 = vsel %vm1545_vm4, %v3189_v46, %v3190_v23  ;;  %v3645_v61 = vmax.f32 %v3469_v7, %v3540_v38 }
 0x229   : > { %v2943_v19 = vmax.f32 %v8237_v0, %v2839_v55  ;;  %v3367_v48 = vsel %vm1690_vm6, %v3365_v47, %v3366_v10  ;;  %v3543_v9 = vsel %vm1835_vm9, %v3541_v34, %v3542_v17  ;;  %v3980_v5 = vmax.f32 %v3788_v53, %v3872_v28 }
 0x22a   : > { %v2841_v8 = vsel %vm1255_vm2, %v2838_v26, %v10839_v57  ;;  %v3789_v35 = vmax.f32 %v3645_v61, %v3694_v62  ;;  %v10840_v46 = vrot.slane %v10729_v31, 2  ;;  %v10841_v28 = vrot.slane %v10729_v31, 3 }
 0x22b   : > { %v3119_v59 = vmax.f32 %v2943_v19, %v3015_v43  ;;  %v2944_v38 = vmax.f32 %v10838_v1, %v2841_v8  ;;  %v4028_v47 = vmax.f32 %v3980_v5, %v10826_v56  ;;  %v10842_v53 = vrot.slane %v10729_v31, 4  ;;  %v5225_v8 = vld [vmem:[#allocation2 + $0x2c0] sm:$0xff] }
 0x22c   : > { %v3017_v7 = vsel %vm1400_vm3, %v3014_v45, %v10840_v46  ;;  %v3193_v34 = vsel %vm1545_vm4, %v3190_v23, %v10841_v28  ;;  %v10843_v26 = vrot.slane %v10729_v31, 5  ;;  %v3981_v43 = vmax.f32 %v3789_v35, %v3874_v25  ;;  %v10849_v25 = vld [vmem:[#allocation45_spill] sm:$0xff] }
 0x22d   : > { %v3369_v55 = vsel %vm1690_vm6, %v3366_v10, %v10842_v53  ;;  %v3295_v61 = vmax.f32 %v3119_v59, %v3191_v33  ;;  %v3120_v19 = vmax.f32 %v2944_v38, %v3017_v7  ;;  %v10844_v57 = vrot.slane %v10729_v31, 6  ;;  %5078 = vst.msk [vmem:[%s5873_s17 + $0x19e] sm:$0xfc] %vm4047_vm11, %v4028_v47  ;;  %v10846_v10 = vld [vmem:[#allocation43_spill] sm:$0xff] }
 0x22e   : > { %v3545_v62 = vsel %vm1835_vm9, %v3542_v17, %v10843_v26  ;;  %v10845_v23 = vrot.slane %v10729_v31, 7  ;;  %v10847_v46 = vmax.f32 %v10846_v10, %v6850_v63  ;;  %v2843_v17 = vrot.slane %v10849_v25, 1 }
 0x22f   : > { %v3697_v45 = vsel %vm1980_vm10, %v3695_v39, %v10844_v57  ;;  %v3019_v33 = vrot.slane %v10849_v25, 2  ;;  %v4029_v35 = vmax.f32 %v3981_v43, %v10724_v4  ;;  %v3471_v59 = vmax.f32 %v3295_v61, %v3367_v48 }
 0x230   : > { %v3879_v5 = vsel %vm2125_vm7, %v3877_v32, %v10845_v23  ;;  %v8287_v28 = vmax.f32 %v10847_v46, %v5225_v8  ;;  %v3296_v38 = vmax.f32 %v3120_v19, %v3193_v34  ;;  %v3195_v7 = vrot.slane %v10849_v25, 3 }
 0x231   : > { %5079 = vst.msk [vmem:[%s5873_s17 + $0x1a6] sm:$0xff] %vm148_vm0, %v4029_v35  ;;  %v3647_v57 = vmax.f32 %v3471_v59, %v3543_v9  ;;  %v3371_v8 = vrot.slane %v10849_v25, 4  ;;  %v3547_v19 = vrot.slane %v10849_v25, 5  ;;  %v3882_v59 = vrot.slane %v10849_v25, 7 }
 0x232   : > { %10848 = vst [vmem:[#allocation35_spill] sm:$0xff] %v8287_v28  ;;  %v2842_v47 = vrot.slane %v8287_v28, 1  ;;  %v3018_v53 = vrot.slane %v8287_v28, 2  ;;  %v3194_v26 = vrot.slane %v8287_v28, 3  ;;  %v3370_v63 = vrot.slane %v8287_v28, 4 }
 0x233   : > { %v3472_v23 = vmax.f32 %v3296_v38, %v3369_v55  ;;  %v3546_v43 = vrot.slane %v8287_v28, 5  ;;  %v3791_v10 = vmax.f32 %v3647_v57, %v3695_v39  ;;  %v3698_v55 = vrot.slane %v10849_v25, 6 }
 0x234   : > { %v2844_v48 = vsel %vm1255_vm2, %v2842_v47, %v2843_v17  ;;  %v3020_v34 = vsel %vm1400_vm3, %v3018_v53, %v3019_v33  ;;  %v3196_v61 = vsel %vm1545_vm4, %v3194_v26, %v3195_v7  ;;  %v3372_v35 = vsel %vm1690_vm6, %v3370_v63, %v3371_v8 }
 0x235   : > { %v3648_v46 = vmax.f32 %v3472_v23, %v3545_v62  ;;  %v2946_v0 = vmax.f32 %v8287_v28, %v2844_v48  ;;  %v3548_v9 = vsel %vm1835_vm9, %v3546_v43, %v3547_v19  ;;  %v10850_v38 = vrot.slane %v6369_v6, 1 }
 0x236   : > { %v3983_v53 = vmax.f32 %v3791_v10, %v3877_v32  ;;  %v10851_v62 = vrot.slane %v6369_v6, 2  ;;  %v10852_v57 = vrot.slane %v6369_v6, 3  ;;  %v10853_v43 = vrot.slane %v6369_v6, 4 }
 0x237   : > { %v2846_v47 = vsel %vm1255_vm2, %v2843_v17, %v10850_v38  ;;  %v3792_v26 = vmax.f32 %v3648_v46, %v3697_v45  ;;  %v3122_v4 = vmax.f32 %v2946_v0, %v3020_v34  ;;  %v10854_v17 = vrot.slane %v6369_v6, 5 }
 0x238   : > { %v2947_v39 = vmax.f32 %v10849_v25, %v2846_v47  ;;  %v3022_v63 = vsel %vm1400_vm3, %v3019_v33, %v10851_v62  ;;  %v3198_v23 = vsel %vm1545_vm4, %v3195_v7, %v10852_v57  ;;  %v3374_v48 = vsel %vm1690_vm6, %v3371_v8, %v10853_v43  ;;  %v5226_v47 = vld [vmem:[#allocation2 + $0x2e0] sm:$0xff]  ;;  %v10857_v8 = vld [vmem:[#allocation46_spill] sm:$0xff]  ;;  %v10858_v62 = vld [vmem:[#allocation48_spill] sm:$0xff] }
 0x239   : > { %v3550_v32 = vsel %vm1835_vm9, %v3547_v19, %v10854_v17  ;;  %v4031_v0 = vmax.f32 %v3983_v53, %v10838_v1  ;;  %v3984_v45 = vmax.f32 %v3792_v26, %v3879_v5  ;;  %v3298_v34 = vmax.f32 %v3122_v4, %v3196_v61  ;;  %v10861_v19 = vld [vmem:[#allocation53_spill] sm:$0xff] }
 0x23a   : > { %v3123_v10 = vmax.f32 %v2947_v39, %v3022_v63  ;;  %v10855_v33 = vrot.slane %v6369_v6, 6  ;;  %v10856_v7 = vrot.slane %v6369_v6, 7  ;;  %v10859_v57 = vmax.f32 %v10857_v8, %v10858_v62 }
 0x23b   : > { %v2848_v53 = vrot.slane %v10861_v19, 1  ;;  %5081 = vst.msk [vmem:[%s5873_s17 + $0x1ae] sm:$0xfc] %vm4047_vm11, %v4031_v0  ;;  %v4032_v4 = vmax.f32 %v3984_v45, %v10729_v31  ;;  %v3474_v5 = vmax.f32 %v3298_v34, %v3372_v35  ;;  %v3024_v26 = vrot.slane %v10861_v19, 2 }
 0x23c   : > { %v3700_v46 = vsel %vm1980_vm10, %v3698_v55, %v10855_v33  ;;  %v3884_v38 = vsel %vm2125_vm7, %v3882_v59, %v10856_v7  ;;  %v8336_v43 = vmax.f32 %v10859_v57, %v5226_v47  ;;  %v3299_v61 = vmax.f32 %v3123_v10, %v3198_v23 }
 0x23d   : > { %v3200_v33 = vrot.slane %v10861_v19, 3  ;;  %5082 = vst.msk [vmem:[%s5873_s17 + $0x1b6] sm:$0xff] %vm148_vm0, %v4032_v4  ;;  %v3650_v7 = vmax.f32 %v3474_v5, %v3548_v9  ;;  %v3376_v45 = vrot.slane %v10861_v19, 4  ;;  %v3552_v9 = vrot.slane %v10861_v19, 5 }
 0x23e   : > { %10860 = vst [vmem:[#allocation38_spill] sm:$0xff] %v8336_v43  ;;  %v2847_v39 = vrot.slane %v8336_v43, 1  ;;  %v3023_v63 = vrot.slane %v8336_v43, 2  ;;  %v3199_v17 = vrot.slane %v8336_v43, 3  ;;  %v3475_v8 = vmax.f32 %v3299_v61, %v3374_v48 }
 0x23f   : > { %v3375_v0 = vrot.slane %v8336_v43, 4  ;;  %v3551_v10 = vrot.slane %v8336_v43, 5  ;;  %v3794_v62 = vmax.f32 %v3650_v7, %v3698_v55  ;;  %v3701_v48 = vrot.slane %v10861_v19, 6 }
 0x240   : > { %v2849_v35 = vsel %vm1255_vm2, %v2847_v39, %v2848_v53  ;;  %v3025_v23 = vsel %vm1400_vm3, %v3023_v63, %v3024_v26  ;;  %v3201_v34 = vsel %vm1545_vm4, %v3199_v17, %v3200_v33  ;;  %v3651_v57 = vmax.f32 %v3475_v8, %v3550_v32 }
 0x241   : > { %v2949_v28 = vmax.f32 %v8336_v43, %v2849_v35  ;;  %v3377_v4 = vsel %vm1690_vm6, %v3375_v0, %v3376_v45  ;;  %v3887_v5 = vrot.slane %v10861_v19, 7  ;;  %v10862_v61 = vrot.slane %v6375_v13, 1 }
 0x242   : > { %v3986_v63 = vmax.f32 %v3794_v62, %v3882_v59  ;;  %v3795_v17 = vmax.f32 %v3651_v57, %v3700_v46  ;;  %v3553_v32 = vsel %vm1835_vm9, %v3551_v10, %v3552_v9  ;;  %v10863_v7 = vrot.slane %v6375_v13, 2  ;;  %v8374_v59 = vld [vmem:[#allocation2 + $0x300] sm:$0xff] }
 0x243   : > { %v2851_v39 = vsel %vm1255_vm2, %v2848_v53, %v10862_v61  ;;  %v3125_v31 = vmax.f32 %v2949_v28, %v3025_v23  ;;  %v10864_v0 = vrot.slane %v6375_v13, 3  ;;  %v10865_v43 = vrot.slane %v6375_v13, 4  ;;  %v428_v28 = vld [vmem:[#allocation2 + $0x328] sm:$0xff] }
 0x244   : > { %v2950_v55 = vmax.f32 %v10861_v19, %v2851_v39  ;;  %v3027_v8 = vsel %vm1400_vm3, %v3024_v26, %v10863_v7  ;;  %v4034_v46 = vmax.f32 %v3986_v63, %v10849_v25  ;;  %v3987_v23 = vmax.f32 %v3795_v17, %v3884_v38  ;;  %v5227_v63 = vld [vmem:[#allocation2 + $0x308] sm:$0xff]  ;;  %v10870_v17 = vld [vmem:[#allocation47_spill] sm:$0xff] }
 0x245   : > { %v3203_v35 = vsel %vm1545_vm4, %v3200_v33, %v10864_v0  ;;  %v3379_v53 = vsel %vm1690_vm6, %v3376_v45, %v10865_v43  ;;  %v3301_v62 = vmax.f32 %v3125_v31, %v3201_v34  ;;  %v10866_v57 = vrot.slane %v6375_v13, 5  ;;  %v10869_v45 = vld [vmem:[#allocation54_spill] sm:$0xff]  ;;  %v10875_v25 = vld [vmem:[#allocation52_spill] sm:$0xff] }
 0x246   : > { %v3126_v10 = vmax.f32 %v2950_v55, %v3027_v8  ;;  %v10867_v61 = vrot.slane %v6375_v13, 6  ;;  %v10868_v39 = vrot.slane %v6375_v13, 7  ;;  %v2718_v7 = vmax.f32 %v10869_v45, %v5226_v47  ;;  %5084 = vst.msk [vmem:[%s5873_s17 + $0x1be] sm:$0xfc] %vm4047_vm11, %v4034_v46  ;;  %v10871_v55 = vld [vmem:[#allocation49_spill] sm:$0xff] }
 0x247   : > { %v3555_v26 = vsel %vm1835_vm9, %v3552_v9, %v10866_v57  ;;  %v4035_v31 = vmax.f32 %v3987_v23, %v6369_v6  ;;  %v3477_v38 = vmax.f32 %v3301_v62, %v3377_v4  ;;  %v10872_v9 = vmax.f32 %v10870_v17, %v10871_v55  ;;  %v10873_v57 = vld [vmem:[#allocation55_spill] sm:$0xff]  ;;  %v8403_v46 = vld [vmem:[#allocation2 + $0x110] sm:$0xff]  ;;  %v10877_v4 = vld [vmem:[#allocation4_spill] sm:$0xff] }
 0x248   : > { %v3703_v33 = vsel %vm1980_vm10, %v3701_v48, %v10867_v61  ;;  %v3889_v43 = vsel %vm2125_vm7, %v3887_v5, %v10868_v39  ;;  %v3302_v34 = vmax.f32 %v3126_v10, %v3203_v35  ;;  %v2726_v0 = vmax.f32 %v2718_v7, %v8374_v59  ;;  %v10874_v39 = vld [vmem:[#allocation50_spill] sm:$0xff]  ;;  %v10878_v35 = vld [vmem:[#allocation3_spill] sm:$0xff] }
 0x249   : > { %v8393_v8 = vmax.f32 %v10872_v9, %v5227_v63  ;;  %v2722_v61 = vmax.f32 %v10873_v57, %v8374_v59  ;;  %v10876_v47 = vmax.f32 %v10874_v39, %v10875_v25  ;;  %v10879_v23 = vmax.f32 %v10877_v4, %v10878_v35  ;;  %5085 = vst.msk [vmem:[%s5873_s17 + $0x1c6] sm:$0xff] %vm148_vm0, %v4035_v31 }
 0x24a   : > { %v3653_v10 = vmax.f32 %v3477_v38, %v3553_v32  ;;  %v3478_v7 = vmax.f32 %v3302_v34, %v3379_v53  ;;  %v2852_v17 = vrot.slane %v2726_v0, 1  ;;  %v3028_v25 = vrot.slane %v2726_v0, 2 }
 0x24b   : > { %v8401_v45 = vmax.f32 %v10876_v47, %v428_v28  ;;  %v8409_v62 = vmax.f32 %v10879_v23, %v8403_v46  ;;  %v2853_v63 = vrot.slane %v8393_v8, 1  ;;  %v3029_v59 = vrot.slane %v8393_v8, 2 }
 0x24c   : > { %v3204_v28 = vrot.slane %v2726_v0, 3  ;;  %v3205_v55 = vrot.slane %v8393_v8, 3  ;;  %v3797_v9 = vmax.f32 %v3653_v10, %v3701_v48  ;;  %v3654_v57 = vmax.f32 %v3478_v7, %v3555_v26 }
 0x24d   : > { %v3380_v39 = vrot.slane %v2726_v0, 4  ;;  %v3381_v47 = vrot.slane %v8393_v8, 4  ;;  %v2854_v4 = vsel %vm1255_vm2, %v2852_v17, %v2853_v63  ;;  %v3030_v31 = vsel %vm1400_vm3, %v3028_v25, %v3029_v59  ;;  %v427_v17 = vld [vmem:[#allocation2 + $0x320] sm:$0xff] }
 0x24e   : > { %v3206_v32 = vsel %vm1545_vm4, %v3204_v28, %v3205_v55  ;;  %v3556_v53 = vrot.slane %v2726_v0, 5  ;;  %v3989_v38 = vmax.f32 %v3797_v9, %v3887_v5  ;;  %v3798_v34 = vmax.f32 %v3654_v57, %v3703_v33 }
 0x24f   : > { %v2952_v35 = vmax.f32 %v2726_v0, %v2854_v4  ;;  %v3382_v23 = vsel %vm1690_vm6, %v3380_v39, %v3381_v47  ;;  %v3557_v6 = vrot.slane %v8393_v8, 5  ;;  %v3704_v48 = vrot.slane %v8393_v8, 6 }
 0x250   : > { %v3892_v26 = vrot.slane %v8393_v8, 7  ;;  %v10880_v10 = vrot.slane %v6382_v44, 1  ;;  %v4037_v25 = vmax.f32 %v3989_v38, %v10861_v19  ;;  %v3990_v28 = vmax.f32 %v3798_v34, %v3889_v43 }
 0x251   : > { %v3128_v5 = vmax.f32 %v2952_v35, %v3030_v31  ;;  %v3558_v0 = vsel %vm1835_vm9, %v3556_v53, %v3557_v6  ;;  %v10881_v9 = vrot.slane %v6382_v44, 2  ;;  %v10882_v39 = vrot.slane %v6382_v44, 3 }
 0x252   : > { %v2856_v7 = vsel %vm1255_vm2, %v2853_v63, %v10880_v10  ;;  %v10883_v63 = vrot.slane %v6382_v44, 4  ;;  %5087 = vst.msk [vmem:[%s5873_s17 + $0x1ce] sm:$0xfc] %vm4047_vm11, %v4037_v25  ;;  %v4038_v43 = vmax.f32 %v3990_v28, %v6375_v13  ;;  %v10884_v53 = vrot.slane %v6382_v44, 5 }
 0x253   : > { %v2953_v33 = vmax.f32 %v8393_v8, %v2856_v7  ;;  %v3032_v57 = vsel %vm1400_vm3, %v3029_v59, %v10881_v9  ;;  %v3208_v4 = vsel %vm1545_vm4, %v3205_v55, %v10882_v39  ;;  %v3304_v31 = vmax.f32 %v3128_v5, %v3206_v32 }
 0x254   : > { %v3384_v10 = vsel %vm1690_vm6, %v3381_v47, %v10883_v63  ;;  %v3560_v34 = vsel %vm1835_vm9, %v3557_v6, %v10884_v53  ;;  %v10885_v59 = vrot.slane %v6382_v44, 6  ;;  %v10886_v55 = vrot.slane %v6382_v44, 7  ;;  %5088 = vst.msk [vmem:[%s5873_s17 + $0x1d6] sm:$0xff] %vm148_vm0, %v4038_v43 }
 0x255   : > { %v3129_v38 = vmax.f32 %v2953_v33, %v3032_v57  ;;  %v2730_v9 = vmax.f32 %v2722_v61, %v427_v17  ;;  %v2858_v47 = vrot.slane %v8401_v45, 1  ;;  %v3480_v25 = vmax.f32 %v3304_v31, %v3382_v23 }
 0x256   : > { %v3706_v35 = vsel %vm1980_vm10, %v3704_v48, %v10885_v59  ;;  %v3894_v7 = vsel %vm2125_vm7, %v3892_v26, %v10886_v55  ;;  %v3034_v28 = vrot.slane %v8401_v45, 2  ;;  %v3210_v5 = vrot.slane %v8401_v45, 3 }
 0x257   : > { %v3305_v32 = vmax.f32 %v3129_v38, %v3208_v4  ;;  %v2857_v6 = vrot.slane %v2730_v9, 1  ;;  %v3033_v33 = vrot.slane %v2730_v9, 2  ;;  %v3209_v57 = vrot.slane %v2730_v9, 3 }
 0x258   : > { %v3385_v39 = vrot.slane %v2730_v9, 4  ;;  %v3656_v63 = vmax.f32 %v3480_v25, %v3558_v0  ;;  %v3386_v59 = vrot.slane %v8401_v45, 4  ;;  %v3561_v55 = vrot.slane %v2730_v9, 5 }
 0x259   : > { %v3481_v53 = vmax.f32 %v3305_v32, %v3384_v10  ;;  %v2859_v61 = vsel %vm1255_vm2, %v2857_v6, %v2858_v47  ;;  %v3035_v17 = vsel %vm1400_vm3, %v3033_v33, %v3034_v28  ;;  %v3211_v23 = vsel %vm1545_vm4, %v3209_v57, %v3210_v5 }
 0x25a   : > { %v3562_v4 = vrot.slane %v8401_v45, 5  ;;  %v3800_v43 = vmax.f32 %v3656_v63, %v3704_v48  ;;  %v2955_v38 = vmax.f32 %v2730_v9, %v2859_v61  ;;  %v3387_v13 = vsel %vm1690_vm6, %v3385_v39, %v3386_v59 }
 0x25b   : > { %v3657_v31 = vmax.f32 %v3481_v53, %v3560_v34  ;;  %v3707_v0 = vrot.slane %v8401_v45, 6  ;;  %v3897_v10 = vrot.slane %v8401_v45, 7  ;;  %v10887_v25 = vrot.slane %v6386_v14, 1 }
 0x25c   : > { %v3563_v19 = vsel %vm1835_vm9, %v3561_v55, %v3562_v4  ;;  %v3992_v6 = vmax.f32 %v3800_v43, %v3892_v26  ;;  %v3131_v57 = vmax.f32 %v2955_v38, %v3035_v17  ;;  %v10888_v34 = vrot.slane %v6386_v14, 2 }
 0x25d   : > { %v2861_v32 = vsel %vm1255_vm2, %v2858_v47, %v10887_v25  ;;  %v3801_v33 = vmax.f32 %v3657_v31, %v3706_v35  ;;  %v10889_v39 = vrot.slane %v6386_v14, 3  ;;  %v10890_v53 = vrot.slane %v6386_v14, 4  ;;  %v5229_v25 = vld [vmem:[#allocation2 + $0x120] sm:$0xff] }
 0x25e   : > { %v2956_v48 = vmax.f32 %v8401_v45, %v2861_v32  ;;  %v3037_v9 = vsel %vm1400_vm3, %v3034_v28, %v10888_v34  ;;  %v10891_v47 = vrot.slane %v6386_v14, 5  ;;  %v4040_v35 = vmax.f32 %v3992_v6, %v8393_v8  ;;  %v10894_v32 = vld [vmem:[#allocation7_spill] sm:$0xff]  ;;  %v5230_v34 = vld [vmem:[#allocation2 + $0x128] sm:$0xff]  ;;  %v5231_v6 = vld [vmem:[#allocation2 + $0x130] sm:$0xff] }
 0x25f   : > { %v3213_v63 = vsel %vm1545_vm4, %v3210_v5, %v10889_v39  ;;  %v3389_v55 = vsel %vm1690_vm6, %v3386_v59, %v10890_v53  ;;  %v3993_v61 = vmax.f32 %v3801_v33, %v3894_v7  ;;  %v3307_v17 = vmax.f32 %v3131_v57, %v3211_v23  ;;  %v10895_v39 = vld [vmem:[#allocation8_spill] sm:$0xff]  ;;  %v5232_v57 = vld [vmem:[#allocation2 + $0x140] sm:$0xff] }
 0x260   : > { %v3565_v26 = vsel %vm1835_vm9, %v3562_v4, %v10891_v47  ;;  %v3132_v43 = vmax.f32 %v2956_v48, %v3037_v9  ;;  %v10892_v31 = vrot.slane %v6386_v14, 6  ;;  %v10893_v38 = vrot.slane %v6386_v14, 7  ;;  %5090 = vst.msk [vmem:[%s5873_s17 + $0x1de] sm:$0xfc] %vm4047_vm11, %v4040_v35  ;;  %v8494_v9 = vld [vmem:[#allocation2 + $0x148] sm:$0xff]  ;;  %v10898_v35 = vld [vmem:[#allocation9_spill] sm:$0xff] }
 0x261   : > { %v951_v59 = vmax.f32 %v10894_v32, %v5229_v25  ;;  %v952_v4 = vmax.f32 %v10895_v39, %v5230_v34  ;;  %v4041_v8 = vmax.f32 %v3993_v61, %v6382_v44  ;;  %v3483_v7 = vmax.f32 %v3307_v17, %v3387_v13  ;;  %v5234_v47 = vld [vmem:[#allocation2 + $0xb8] sm:$0xf]  ;;  %v10897_v25 = vld [vmem:[#allocation5_spill] sm:$0xff]  ;;  %v8506_v17 = vld [vmem:[#allocation2 + $0x160] sm:$0xff] }
 0x262   : > { %v3709_v28 = vsel %vm1980_vm10, %v3707_v0, %v10892_v31  ;;  %v3899_v5 = vsel %vm2125_vm7, %v3897_v10, %v10893_v38  ;;  %v3308_v23 = vmax.f32 %v3132_v43, %v3213_v63  ;;  %v953_v33 = vmax.f32 %v8409_v62, %v5231_v6  ;;  %v10896_v31 = vld [vmem:[#allocation51_spill] sm:$0xff]  ;;  %v8502_v63 = vld [vmem:[#allocation2 + $0x150] sm:$0xff]  ;;  %v8512_v39 = vld [vmem:[#allocation2 + $0xd8] sm:$0xf] }
 0x263   : > { %v1015_v48 = vmax.f32 %v951_v59, %v5232_v57  ;;  %v1016_v53 = vmax.f32 %v952_v4, %v8494_v9  ;;  %v698_v38 = vmax.f32 %v10896_v31, %v5234_v47  ;;  %v829_v32 = vmax.f32 %v10897_v25, %v8403_v46  ;;  %5091 = vst.msk [vmem:[%s5873_s17 + $0x1e6] sm:$0xff] %vm148_vm0, %v4041_v8  ;;  %v8509_v59 = vld [vmem:[#allocation2 + $0x168] sm:$0xff]  ;;  %v8519_v8 = vld [vmem:[#allocation2 + $0x170] sm:$0xff] }
 0x264   : > { %v3659_v44 = vmax.f32 %v3483_v7, %v3563_v19  ;;  %v3484_v13 = vmax.f32 %v3308_v23, %v3389_v55  ;;  %v1017_v62 = vmax.f32 %v953_v33, %v8502_v63  ;;  %v955_v61 = vmax.f32 %v10898_v35, %v5232_v57  ;;  %v10899_v23 = vld [vmem:[#allocation11_spill] sm:$0xff]  ;;  %v8538_v25 = vld [vmem:[#allocation2 + $0x190] sm:$0xff] }
 0x265   : > { %v1079_v43 = vmax.f32 %v1015_v48, %v8506_v17  ;;  %v1080_v34 = vmax.f32 %v1016_v53, %v8509_v59  ;;  %v8515_v46 = vmax.f32 %v698_v38, %v8512_v39  ;;  %v8517_v19 = vmax.f32 %v829_v32, %v5231_v6  ;;  %v8524_v57 = vld [vmem:[#allocation2 + $0x180] sm:$0xff]  ;;  %v8527_v53 = vld [vmem:[#allocation2 + $0x188] sm:$0xff]  ;;  %v8532_v6 = vld [vmem:[#allocation2 + $0xf8] sm:$0xf] }
 0x266   : > { %v3803_v55 = vmax.f32 %v3659_v44, %v3707_v0  ;;  %v3660_v4 = vmax.f32 %v3484_v13, %v3565_v26  ;;  %v1081_v7 = vmax.f32 %v1017_v62, %v8519_v8  ;;  %v8544_v44 = vmax.f32 %v955_v61, %v8506_v17 }
 0x267   : > { %v1143_v48 = vmax.f32 %v1079_v43, %v8524_v57  ;;  %v8530_v47 = vmax.f32 %v1080_v34, %v8527_v53  ;;  %v826_v0 = vmax.f32 %v8515_v46, %v8532_v6  ;;  %v957_v26 = vmax.f32 %v8517_v19, %v8502_v63 }
 0x268   : > { %v3995_v31 = vmax.f32 %v3803_v55, %v3897_v10  ;;  %v3804_v38 = vmax.f32 %v3660_v4, %v3709_v28  ;;  %v8541_v32 = vmax.f32 %v1081_v7, %v8538_v25 }
 0x269   : > { %v1256_v13 = vrot.slane %v1143_v48, 1  ;;  %v1257_v62 = vrot.slane %v8530_v47, 1  ;;  %v1401_v35 = vrot.slane %v1143_v48, 2  ;;  %v1402_v43 = vrot.slane %v8530_v47, 2 }
 0x26a   : > { %v4043_v34 = vmax.f32 %v3995_v31, %v8401_v45  ;;  %v3996_v63 = vmax.f32 %v3804_v38, %v3899_v5  ;;  %v10549_v10 = vrot.slane %v8541_v32, 1  ;;  %v10548_v28 = vrot.slane %v8541_v32, 2 }
 0x26b   : > { %v1258_v46 = vsel %vm1255_vm2, %v1256_v13, %v1257_v62  ;;  %v1403_v19 = vsel %vm1400_vm3, %v1401_v35, %v1402_v43  ;;  %v1546_v61 = vrot.slane %v1143_v48, 3  ;;  %v1547_v55 = vrot.slane %v8530_v47, 3 }
 0x26c   : > { %5093 = vst.msk [vmem:[%s5873_s17 + $0x1ee] sm:$0xfc] %vm4047_vm11, %v4043_v34  ;;  %v4044_v4 = vmax.f32 %v3996_v63, %v6386_v14  ;;  %v8560_v45 = vsel %vm1255_vm2, %v1257_v62, %v10549_v10  ;;  %v1368_v5 = vmax.f32 %v1143_v48, %v1258_v46  ;;  %v8565_v7 = vsel %vm1400_vm3, %v1402_v43, %v10548_v28 }
 0x26d   : > { %v1369_v31 = vmax.f32 %v8530_v47, %v8560_v45  ;;  %v1548_v38 = vsel %vm1545_vm4, %v1546_v61, %v1547_v55  ;;  %v10550_v13 = vrot.slane %v8541_v32, 3  ;;  %v1691_v35 = vrot.slane %v1143_v48, 4 }
 0x26e   : > { %5094 = vst.msk [vmem:[%s5873_s17 + $0x1f6] sm:$0xff] %vm148_vm0, %v4044_v4  ;;  %v1513_v14 = vmax.f32 %v1368_v5, %v1403_v19  ;;  %v1692_v62 = vrot.slane %v8530_v47, 4  ;;  %v10553_v34 = vrot.slane %v8541_v32, 4  ;;  %v1836_v63 = vrot.slane %v1143_v48, 5 }
 0x26f   : > { %v1514_v46 = vmax.f32 %v1369_v31, %v8565_v7  ;;  %v8579_v43 = vsel %vm1545_vm4, %v1547_v55, %v10550_v13  ;;  %v1837_v61 = vrot.slane %v8530_v47, 5  ;;  %v1839_v28 = vrot.slane %v8541_v32, 5 }
 0x270   : > { %v1658_v10 = vmax.f32 %v1513_v14, %v1548_v38  ;;  %v1693_v4 = vsel %vm1690_vm6, %v1691_v35, %v1692_v62  ;;  %v8587_v19 = vsel %vm1690_vm6, %v1692_v62, %v10553_v34  ;;  %v1981_v5 = vrot.slane %v1143_v48, 6 }
 0x271   : > { %v1659_v31 = vmax.f32 %v1514_v46, %v8579_v43  ;;  %v1838_v33 = vsel %vm1835_vm9, %v1836_v63, %v1837_v61  ;;  %v1840_v55 = vsel %vm1835_vm9, %v1837_v61, %v1839_v28  ;;  %v1982_v13 = vrot.slane %v8530_v47, 6 }
 0x272   : > { %v1803_v1 = vmax.f32 %v1658_v10, %v1693_v4  ;;  %v1984_v56 = vrot.slane %v8541_v32, 6  ;;  %v2126_v38 = vrot.slane %v1143_v48, 7  ;;  %v2127_v35 = vrot.slane %v8530_v47, 7 }
 0x273   : > { %v1804_v14 = vmax.f32 %v1659_v31, %v8587_v19  ;;  %v1983_v62 = vsel %vm1980_vm10, %v1981_v5, %v1982_v13  ;;  %v2129_v34 = vrot.slane %v8541_v32, 7  ;;  %v890_v63 = vmax.f32 %v826_v0, %v8598_v52  ;;  %v8608_v5 = vld [vmem:[#allocation2 + $0x138] sm:$0xf] }
 0x274   : > { %v1948_v46 = vmax.f32 %v1803_v1, %v1838_v33  ;;  %v1985_v28 = vsel %vm1980_vm10, %v1982_v13, %v1984_v56  ;;  %v2128_v10 = vsel %vm2125_vm7, %v2126_v38, %v2127_v35  ;;  %v10900_v48 = vmax.f32 %v10899_v23, %v8494_v9  ;;  %v10901_v33 = vld [vmem:[#allocation56_spill] sm:$0xff]  ;;  %v8617_v23 = vld [vmem:[#allocation2 + $0x158] sm:$0xf] }
 0x275   : > { %v1949_v4 = vmax.f32 %v1804_v14, %v1840_v55  ;;  %v2130_v31 = vsel %vm2125_vm7, %v2127_v35, %v2129_v34  ;;  %v954_v3 = vmax.f32 %v890_v63, %v8608_v5  ;;  %v1021_v24 = vmax.f32 %v957_v26, %v8519_v8  ;;  %v10902_v38 = vld [vmem:[#allocation12_spill] sm:$0xff]  ;;  %v8623_v14 = vld [vmem:[#allocation2 + $0x1a0] sm:$0xff] }
 0x276   : > { %v1020_v61 = vmax.f32 %v10900_v48, %v8509_v59  ;;  %v2093_v0 = vmax.f32 %v1948_v46, %v1983_v62  ;;  %v1083_v56 = vmax.f32 %v8544_v44, %v8524_v57  ;;  %v702_v13 = vmax.f32 %v10901_v33, %v8512_v39  ;;  %v8628_v62 = vld [vmem:[#allocation2 + $0x1a8] sm:$0xff]  ;;  %v8636_v46 = vld [vmem:[#allocation2 + $0x178] sm:$0xf] }
 0x277   : > { %v2094_v9 = vmax.f32 %v1949_v4, %v1985_v28  ;;  %v1018_v34 = vmax.f32 %v954_v3, %v8617_v23  ;;  %v1085_v55 = vmax.f32 %v1021_v24, %v8538_v25  ;;  %v8639_v28 = vld [vmem:[#allocation2 + $0x1b0] sm:$0xff] }
 0x278   : > { %v1084_v1 = vmax.f32 %v1020_v61, %v8527_v53  ;;  %v2238_v26 = vmax.f32 %v2093_v0, %v2128_v10  ;;  %v8626_v44 = vmax.f32 %v1083_v56, %v8623_v14  ;;  %v8634_v63 = vmax.f32 %v702_v13, %v8532_v6  ;;  %v8650_v0 = vld [vmem:[#allocation2 + $0x198] sm:$0xf] }
 0x279   : > { %v2239_v3 = vmax.f32 %v2094_v9, %v2130_v31  ;;  %v1082_v24 = vmax.f32 %v1018_v34, %v8636_v46  ;;  %v8642_v10 = vmax.f32 %v1085_v55, %v8639_v28  ;;  %v10904_v34 = vrot.slane %v8541_v32, 2 }
 0x27a   : > { %v8631_v39 = vmax.f32 %v1084_v1, %v8628_v62  ;;  %v2270_v61 = vmax.f32 %v2238_v26, %v8530_v47  ;;  %v1261_v4 = vrot.slane %v8626_v44, 1  ;;  %v1406_v31 = vrot.slane %v8626_v44, 2 }
 0x27b   : > { %v1146_v56 = vmax.f32 %v1082_v24, %v8650_v0  ;;  %v2271_v1 = vmax.f32 %v2239_v3, %v8541_v32  ;;  %v10560_v33 = vrot.slane %v8642_v10, 1  ;;  %v1551_v55 = vrot.slane %v8626_v44, 3 }
 0x27c   : > { %v1262_v6 = vrot.slane %v8631_v39, 1  ;;  %v1407_v13 = vrot.slane %v8631_v39, 2  ;;  %v2366_v9 = vmax.f32 %v2270_v61, %v8560_v45  ;;  %v10903_v61 = vrot.slane %v8541_v32, 1 }
 0x27d   : > { %v2318_v26 = vrot.slane %v1146_v56, 1  ;;  %v2398_v48 = vrot.slane %v1146_v56, 2  ;;  %v2478_v35 = vrot.slane %v1146_v56, 3  ;;  %v2558_v12 = vrot.slane %v1146_v56, 4 }
 0x27e   : > { %v1263_v47 = vsel %vm1255_vm2, %v1261_v4, %v1262_v6  ;;  %v2446_v24 = vmax.f32 %v2366_v9, %v8565_v7  ;;  %v8664_v3 = vsel %vm1255_vm2, %v1262_v6, %v10560_v33  ;;  %v1408_v45 = vsel %vm1400_vm3, %v1406_v31, %v1407_v13 }
 0x27f   : > { %v1370_v36 = vmax.f32 %v8626_v44, %v1263_v47  ;;  %v2319_v4 = vsel %vm1255_vm2, %v10903_v61, %v2318_v26  ;;  %v2399_v22 = vsel %vm1400_vm3, %v10904_v34, %v2398_v48  ;;  %v10905_v56 = vrot.slane %v8541_v32, 3 }
 0x280   : > { %v10906_v9 = vrot.slane %v8541_v32, 4  ;;  %v2526_v47 = vmax.f32 %v2446_v24, %v8579_v43  ;;  %v2367_v31 = vmax.f32 %v2271_v1, %v2319_v4  ;;  %v1371_v33 = vmax.f32 %v8631_v39, %v8664_v3 }
 0x281   : > { %v2479_v7 = vsel %vm1545_vm4, %v10905_v56, %v2478_v35  ;;  %v10907_v26 = vrot.slane %v8642_v10, 2  ;;  %v1515_v48 = vmax.f32 %v1370_v36, %v1408_v45  ;;  %v1552_v34 = vrot.slane %v8631_v39, 3 }
 0x282   : > { %v2559_v6 = vsel %vm1690_vm6, %v10906_v9, %v2558_v12  ;;  %v1554_v35 = vrot.slane %v8642_v10, 3  ;;  %v1696_v32 = vrot.slane %v8626_v44, 4  ;;  %v2606_v12 = vmax.f32 %v2526_v47, %v8587_v19 }
 0x283   : > { %v8686_v61 = vsel %vm1400_vm3, %v1407_v13, %v10907_v26  ;;  %v2447_v43 = vmax.f32 %v2367_v31, %v2399_v22  ;;  %v1697_v24 = vrot.slane %v8631_v39, 4  ;;  %v1553_v4 = vsel %vm1545_vm4, %v1551_v55, %v1552_v34 }
 0x284   : > { %v1516_v1 = vmax.f32 %v1371_v33, %v8686_v61  ;;  %v8698_v13 = vsel %vm1545_vm4, %v1552_v34, %v1554_v35  ;;  %v10561_v36 = vrot.slane %v8642_v10, 4  ;;  %v1841_v45 = vrot.slane %v8626_v44, 5  ;;  %2638 = vst.msk [vmem:[%s5873_s17] sm:$0xff] %vm148_vm0, %v2606_v12 }
 0x285   : > { %v2527_v56 = vmax.f32 %v2447_v43, %v2479_v7  ;;  %v1660_v22 = vmax.f32 %v1515_v48, %v1553_v4  ;;  %v1698_v33 = vsel %vm1690_vm6, %v1696_v32, %v1697_v24  ;;  %v1842_v9 = vrot.slane %v8631_v39, 5 }
 0x286   : > { %v1661_v19 = vmax.f32 %v1516_v1, %v8698_v13  ;;  %v8709_v55 = vsel %vm1690_vm6, %v1697_v24, %v10561_v36  ;;  %v1844_v47 = vrot.slane %v8642_v10, 5  ;;  %v1986_v31 = vrot.slane %v8626_v44, 6 }
 0x287   : > { %v2607_v26 = vmax.f32 %v2527_v56, %v2559_v6  ;;  %v1805_v34 = vmax.f32 %v1660_v22, %v1698_v33  ;;  %v1987_v48 = vrot.slane %v8631_v39, 6  ;;  %v1843_v12 = vsel %vm1835_vm9, %v1841_v45, %v1842_v9 }
 0x288   : > { %v1806_v7 = vmax.f32 %v1661_v19, %v8709_v55  ;;  %v1845_v32 = vsel %vm1835_vm9, %v1842_v9, %v1844_v47  ;;  %v1989_v43 = vrot.slane %v8642_v10, 6  ;;  %v2131_v1 = vrot.slane %v8626_v44, 7 }
 0x289   : > { %2639 = vst.msk [vmem:[%s5873_s17 + $0x8] sm:$0xff] %vm148_vm0, %v2607_v26  ;;  %v1950_v24 = vmax.f32 %v1805_v34, %v1843_v12  ;;  %v1988_v36 = vsel %vm1980_vm10, %v1986_v31, %v1987_v48  ;;  %v2132_v6 = vrot.slane %v8631_v39, 7  ;;  %v2134_v22 = vrot.slane %v8642_v10, 7 }
 0x28a   : > { %v1951_v4 = vmax.f32 %v1806_v7, %v1845_v32  ;;  %v1990_v56 = vsel %vm1980_vm10, %v1987_v48, %v1989_v43  ;;  %v830_v45 = vmax.f32 %v8634_v63, %v8598_v52  ;;  %v961_v19 = vmax.f32 %v7011_v41, %v8519_v8  ;;  %v8742_v8 = vld [vmem:[#allocation2 + $0x2b8] sm:$0xf] }
 0x28b   : > { %v2095_v33 = vmax.f32 %v1950_v24, %v1988_v36  ;;  %v2133_v9 = vsel %vm2125_vm7, %v2131_v1, %v2132_v6  ;;  %v10908_v47 = vmax.f32 %v10902_v38, %v8506_v17  ;;  %v2135_v26 = vsel %vm2125_vm7, %v2132_v6, %v2134_v22  ;;  %v8747_v38 = vld [vmem:[#allocation2 + $0x2d8] sm:$0xf] }
 0x28c   : > { %v2096_v44 = vmax.f32 %v1951_v4, %v1990_v56  ;;  %v894_v34 = vmax.f32 %v830_v45, %v8608_v5  ;;  %v10909_v52 = vmax.f32 %v7078_v20, %v8509_v59  ;;  %v1025_v41 = vmax.f32 %v961_v19, %v8538_v25  ;;  %v8762_v4 = vld [vmem:[#allocation2 + $0x1c0] sm:$0xff]  ;;  %v8768_v56 = vld [vmem:[#allocation2 + $0x1c8] sm:$0xff]  ;;  %v8773_v45 = vld [vmem:[#allocation2 + $0x1d0] sm:$0xff] }
 0x28d   : > { %v1023_v31 = vmax.f32 %v10908_v47, %v8524_v57  ;;  %v1122_v36 = vmax.f32 %v7612_v15, %v8742_v8  ;;  %v2240_v7 = vmax.f32 %v2095_v33, %v2133_v9  ;;  %v1126_v5 = vmax.f32 %v7633_v2, %v8747_v38 }
 0x28e   : > { %v1024_v63 = vmax.f32 %v10909_v52, %v8527_v53  ;;  %v2241_v48 = vmax.f32 %v2096_v44, %v2135_v26  ;;  %v958_v12 = vmax.f32 %v894_v34, %v8617_v23  ;;  %v1089_v59 = vmax.f32 %v1025_v41, %v8639_v28 }
 0x28f   : > { %v1087_v17 = vmax.f32 %v1023_v31, %v8623_v14  ;;  %v10910_v32 = vmax.f32 %v7639_v16, %v7626_v60  ;;  %v2272_v1 = vmax.f32 %v2240_v7, %v8631_v39  ;;  %v5257_v16 = vld [vmem:[#allocation2 + $0x1d8] sm:$0xf]  ;;  %v10911_v39 = vmax.f32 %v7134_v58, %v7252_v30 }
 0x290   : > { %v1088_v20 = vmax.f32 %v1024_v63, %v8628_v62  ;;  %v2273_v24 = vmax.f32 %v2241_v48, %v8642_v10  ;;  %v1022_v23 = vmax.f32 %v958_v12, %v8636_v46  ;;  %v8776_v60 = vmax.f32 %v1089_v59, %v8773_v45  ;;  %v5258_v63 = vld [vmem:[#allocation2 + $0x1b8] sm:$0xf] }
 0x291   : > { %v8758_v43 = vmax.f32 %v10910_v32, %v8747_v38  ;;  %v8765_v6 = vmax.f32 %v1087_v17, %v8762_v4  ;;  %v8781_v19 = vmax.f32 %v10911_v39, %v5257_v16  ;;  %v2368_v33 = vmax.f32 %v2272_v1, %v8664_v3 }
 0x292   : > { %v8771_v22 = vmax.f32 %v1088_v20, %v8768_v56  ;;  %v1086_v47 = vmax.f32 %v1022_v23, %v8650_v0  ;;  %v1269_v26 = vrot.slane %v8776_v60, 1  ;;  %v1414_v30 = vrot.slane %v8776_v60, 2 }
 0x293   : > { %v1266_v46 = vrot.slane %v8765_v6, 1  ;;  %v1411_v44 = vrot.slane %v8765_v6, 2  ;;  %v1556_v9 = vrot.slane %v8765_v6, 3  ;;  %v2448_v58 = vmax.f32 %v2368_v33, %v8686_v61 }
 0x294   : > { %v1267_v31 = vrot.slane %v8771_v22, 1  ;;  %v1412_v34 = vrot.slane %v8771_v22, 2  ;;  %v1557_v3 = vrot.slane %v8771_v22, 3  ;;  %v1559_v52 = vrot.slane %v8776_v60, 3 }
 0x295   : > { %v1150_v41 = vmax.f32 %v1086_v47, %v5258_v63  ;;  %v2528_v17 = vmax.f32 %v2448_v58, %v8698_v13  ;;  %v10913_v47 = vrot.slane %v8642_v10, 2  ;;  %v10914_v58 = vrot.slane %v8642_v10, 4 }
 0x296   : > { %v1268_v7 = vsel %vm1255_vm2, %v1266_v46, %v1267_v31  ;;  %v8799_v0 = vsel %vm1255_vm2, %v1267_v31, %v1269_v26  ;;  %v1413_v48 = vsel %vm1400_vm3, %v1411_v44, %v1412_v34  ;;  %v8809_v20 = vsel %vm1400_vm3, %v1412_v34, %v1414_v30 }
 0x297   : > { %v1372_v61 = vmax.f32 %v8765_v6, %v1268_v7  ;;  %v1373_v12 = vmax.f32 %v8771_v22, %v8799_v0  ;;  %v2320_v59 = vrot.slane %v1150_v41, 1  ;;  %v2400_v32 = vrot.slane %v1150_v41, 2 }
 0x298   : > { %v2480_v1 = vrot.slane %v1150_v41, 3  ;;  %v2560_v23 = vrot.slane %v1150_v41, 4  ;;  %v2608_v16 = vmax.f32 %v2528_v17, %v8709_v55  ;;  %v1558_v33 = vsel %vm1545_vm4, %v1556_v9, %v1557_v3 }
 0x299   : > { %v1517_v39 = vmax.f32 %v1372_v61, %v1413_v48  ;;  %v1518_v13 = vmax.f32 %v1373_v12, %v8809_v20  ;;  %v10912_v46 = vrot.slane %v8642_v10, 1  ;;  %v2401_v31 = vsel %vm1400_vm3, %v10913_v47, %v2400_v32 }
 0x29a   : > { %v2481_v34 = vsel %vm1545_vm4, %v1554_v35, %v2480_v1  ;;  %v2561_v55 = vsel %vm1690_vm6, %v10914_v58, %v2560_v23  ;;  %2640 = vst.msk [vmem:[%s5873_s17 + $0x10] sm:$0xff] %vm148_vm0, %v2608_v16  ;;  %v8831_v9 = vsel %vm1545_vm4, %v1557_v3, %v1559_v52  ;;  %v1701_v7 = vrot.slane %v8765_v6, 4 }
 0x29b   : > { %v2321_v44 = vsel %vm1255_vm2, %v10912_v46, %v2320_v59  ;;  %v1662_v41 = vmax.f32 %v1517_v39, %v1558_v33  ;;  %v1663_v48 = vmax.f32 %v1518_v13, %v8831_v9  ;;  %v1702_v17 = vrot.slane %v8771_v22, 4 }
 0x29c   : > { %v2369_v63 = vmax.f32 %v2273_v24, %v2321_v44  ;;  %v1704_v35 = vrot.slane %v8776_v60, 4  ;;  %v1846_v10 = vrot.slane %v8765_v6, 5  ;;  %v1847_v12 = vrot.slane %v8771_v22, 5 }
 0x29d   : > { %v1849_v24 = vrot.slane %v8776_v60, 5  ;;  %v1991_v59 = vrot.slane %v8765_v6, 6  ;;  %v1703_v3 = vsel %vm1690_vm6, %v1701_v7, %v1702_v17  ;;  %v1992_v1 = vrot.slane %v8771_v22, 6 }
 0x29e   : > { %v2449_v61 = vmax.f32 %v2369_v63, %v2401_v31  ;;  %v8843_v32 = vsel %vm1690_vm6, %v1702_v17, %v1704_v35  ;;  %v1994_v23 = vrot.slane %v8776_v60, 6  ;;  %v1807_v39 = vmax.f32 %v1662_v41, %v1703_v3 }
 0x29f   : > { %v1808_v13 = vmax.f32 %v1663_v48, %v8843_v32  ;;  %v963_v33 = vmax.f32 %v7173_v50, %v8524_v57  ;;  %v1848_v46 = vsel %vm1835_vm9, %v1846_v10, %v1847_v12  ;;  %v1850_v44 = vsel %vm1835_vm9, %v1847_v12, %v1849_v24 }
 0x2a0   : > { %v2529_v16 = vmax.f32 %v2449_v61, %v2481_v34  ;;  %v2136_v47 = vrot.slane %v8765_v6, 7  ;;  %v2322_v31 = vrot.slane %v8781_v19, 1  ;;  %v1952_v63 = vmax.f32 %v1807_v39, %v1848_v46  ;;  %v10916_v46 = vld [vmem:[#allocation13_spill] sm:$0xff] }
 0x2a1   : > { %v1953_v7 = vmax.f32 %v1808_v13, %v1850_v44  ;;  %v2137_v34 = vrot.slane %v8771_v22, 7  ;;  %v1993_v41 = vsel %vm1980_vm10, %v1991_v59, %v1992_v1  ;;  %v1995_v48 = vsel %vm1980_vm10, %v1992_v1, %v1994_v23 }
 0x2a2   : > { %v2609_v58 = vmax.f32 %v2529_v16, %v2561_v55  ;;  %v2139_v17 = vrot.slane %v8776_v60, 7  ;;  %v2402_v50 = vrot.slane %v8781_v19, 2  ;;  %v2097_v57 = vmax.f32 %v1952_v63, %v1993_v41  ;;  %v10918_v63 = vld [vmem:[#allocation6_spill] sm:$0xff]  ;;  %v8895_v41 = vld [vmem:[#allocation2 + $0x1e0] sm:$0xff] }
 0x2a3   : > { %v2098_v10 = vmax.f32 %v1953_v7, %v1995_v48  ;;  %v2138_v6 = vsel %vm2125_vm7, %v2136_v47, %v2137_v34  ;;  %v2482_v55 = vrot.slane %v8781_v19, 3  ;;  %v2562_v12 = vrot.slane %v8781_v19, 4 }
 0x2a4   : > { %2641 = vst.msk [vmem:[%s5873_s17 + $0x18] sm:$0xff] %vm148_vm0, %v2609_v58  ;;  %v2140_v61 = vsel %vm2125_vm7, %v2137_v34, %v2139_v17  ;;  %v964_v24 = vmax.f32 %v7166_v51, %v8527_v53  ;;  %v965_v59 = vmax.f32 %v7098_v54, %v8538_v25  ;;  %v2242_v3 = vmax.f32 %v2097_v57, %v2138_v6  ;;  %v5259_v51 = vld [vmem:[#allocation2 + $0x1f8] sm:$0xf]  ;;  %v8902_v17 = vld [vmem:[#allocation2 + $0x1e8] sm:$0xff] }
 0x2a5   : > { %v2243_v1 = vmax.f32 %v2098_v10, %v2140_v61  ;;  %v2323_v23 = vsel %vm1255_vm2, %v1269_v26, %v2322_v31  ;;  %v1027_v16 = vmax.f32 %v963_v33, %v8623_v14  ;;  %v2403_v39 = vsel %vm1400_vm3, %v1414_v30, %v2402_v50  ;;  %v10915_v53 = vld [vmem:[#allocation10_spill] sm:$0xff]  ;;  %v8907_v50 = vld [vmem:[#allocation2 + $0x1f0] sm:$0xff] }
 0x2a6   : > { %v1028_v19 = vmax.f32 %v964_v24, %v8628_v62  ;;  %v1029_v13 = vmax.f32 %v965_v59, %v8639_v28  ;;  %v10917_v54 = vmax.f32 %v10915_v53, %v10916_v46  ;;  %v2274_v44 = vmax.f32 %v2242_v3, %v8771_v22 }
 0x2a7   : > { %v2275_v26 = vmax.f32 %v2243_v1, %v8776_v60  ;;  %v2483_v33 = vsel %vm1545_vm4, %v1559_v52, %v2482_v55  ;;  %v1091_v30 = vmax.f32 %v1027_v16, %v8762_v4  ;;  %v2563_v47 = vsel %vm1690_vm6, %v1704_v35, %v2562_v12  ;;  %v10919_v52 = vld [vmem:[#allocation15_spill] sm:$0xff] }
 0x2a8   : > { %v8881_v25 = vmax.f32 %v10917_v54, %v5259_v51  ;;  %v1092_v31 = vmax.f32 %v1028_v19, %v8768_v56  ;;  %v1093_v58 = vmax.f32 %v1029_v13, %v8773_v45  ;;  %v967_v7 = vmax.f32 %v10918_v63, %v8623_v14 }
 0x2a9   : > { %v2370_v34 = vmax.f32 %v2274_v44, %v8799_v0  ;;  %v2371_v22 = vmax.f32 %v2275_v26, %v2323_v23  ;;  %v8898_v60 = vmax.f32 %v1091_v30, %v8895_v41  ;;  %v968_v48 = vmax.f32 %v10919_v52, %v8628_v62  ;;  %v5264_v52 = vld [vmem:[#allocation2 + $0x218] sm:$0xf] }
 0x2aa   : > { %v8905_v35 = vmax.f32 %v1092_v31, %v8902_v17  ;;  %v8910_v57 = vmax.f32 %v1093_v58, %v8907_v50  ;;  %v2324_v0 = vrot.slane %v8881_v25, 1  ;;  %v2404_v10 = vrot.slane %v8881_v25, 2 }
 0x2ab   : > { %v2450_v6 = vmax.f32 %v2370_v34, %v8809_v20  ;;  %v2451_v55 = vmax.f32 %v2371_v22, %v2403_v39  ;;  %v1271_v61 = vrot.slane %v8898_v60, 1  ;;  %v1416_v12 = vrot.slane %v8898_v60, 2 }
 0x2ac   : > { %v1272_v24 = vrot.slane %v8905_v35, 1  ;;  %v1274_v59 = vrot.slane %v8910_v57, 1  ;;  %v1417_v3 = vrot.slane %v8905_v35, 2  ;;  %v1419_v1 = vrot.slane %v8910_v57, 2 }
 0x2ad   : > { %v2530_v23 = vmax.f32 %v2450_v6, %v8831_v9  ;;  %v2531_v16 = vmax.f32 %v2451_v55, %v2483_v33  ;;  %v1561_v20 = vrot.slane %v8898_v60, 3  ;;  %v1562_v39 = vrot.slane %v8905_v35, 3 }
 0x2ae   : > { %v1273_v19 = vsel %vm1255_vm2, %v1271_v61, %v1272_v24  ;;  %v8926_v13 = vsel %vm1255_vm2, %v1272_v24, %v1274_v59  ;;  %v1418_v51 = vsel %vm1400_vm3, %v1416_v12, %v1417_v3  ;;  %v2484_v53 = vrot.slane %v8881_v25, 3 }
 0x2af   : > { %v2610_v46 = vmax.f32 %v2530_v23, %v8843_v32  ;;  %v2611_v54 = vmax.f32 %v2531_v16, %v2563_v47  ;;  %v1374_v9 = vmax.f32 %v8898_v60, %v1273_v19  ;;  %v1375_v44 = vmax.f32 %v8905_v35, %v8926_v13  ;;  %v10920_v23 = vld [vmem:[#allocation14_spill] sm:$0xff] }
 0x2b0   : > { %v8935_v26 = vsel %vm1400_vm3, %v1417_v3, %v1419_v1  ;;  %v1564_v33 = vrot.slane %v8910_v57, 3  ;;  %v1706_v30 = vrot.slane %v8898_v60, 4  ;;  %v1707_v31 = vrot.slane %v8905_v35, 4 }
 0x2b1   : > { %2642 = vst.msk [vmem:[%s5873_s17 + $0x20] sm:$0xff] %vm148_vm0, %v2610_v46  ;;  %2643 = vst.msk [vmem:[%s5873_s17 + $0x28] sm:$0xff] %vm148_vm0, %v2611_v54  ;;  %v1519_v32 = vmax.f32 %v1374_v9, %v1418_v51  ;;  %v1520_v47 = vmax.f32 %v1375_v44, %v8935_v26  ;;  %v1563_v58 = vsel %vm1545_vm4, %v1561_v20, %v1562_v39  ;;  %v1709_v34 = vrot.slane %v8910_v57, 4 }
 0x2b2   : > { %v8948_v22 = vsel %vm1545_vm4, %v1562_v39, %v1564_v33  ;;  %v1851_v6 = vrot.slane %v8898_v60, 5  ;;  %v1852_v55 = vrot.slane %v8905_v35, 5  ;;  %v1854_v61 = vrot.slane %v8910_v57, 5 }
 0x2b3   : > { %v1664_v12 = vmax.f32 %v1519_v32, %v1563_v58  ;;  %v1665_v24 = vmax.f32 %v1520_v47, %v8948_v22  ;;  %v1996_v3 = vrot.slane %v8898_v60, 6  ;;  %v969_v16 = vmax.f32 %v10920_v23, %v8639_v28 }
 0x2b4   : > { %v1708_v20 = vsel %vm1690_vm6, %v1706_v30, %v1707_v31  ;;  %v8959_v19 = vsel %vm1690_vm6, %v1707_v31, %v1709_v34  ;;  %v1997_v39 = vrot.slane %v8905_v35, 6  ;;  %v1999_v51 = vrot.slane %v8910_v57, 6 }
 0x2b5   : > { %v1809_v46 = vmax.f32 %v1664_v12, %v1708_v20  ;;  %v1810_v54 = vmax.f32 %v1665_v24, %v8959_v19  ;;  %v2141_v9 = vrot.slane %v8898_v60, 7  ;;  %v2142_v44 = vrot.slane %v8905_v35, 7 }
 0x2b6   : > { %v1853_v32 = vsel %vm1835_vm9, %v1851_v6, %v1852_v55  ;;  %v1855_v28 = vsel %vm1835_vm9, %v1852_v55, %v1854_v61  ;;  %v2144_v30 = vrot.slane %v8910_v57, 7  ;;  %v2564_v31 = vrot.slane %v8881_v25, 4 }
 0x2b7   : > { %v1954_v47 = vmax.f32 %v1809_v46, %v1853_v32  ;;  %v1955_v58 = vmax.f32 %v1810_v54, %v1855_v28  ;;  %v1998_v23 = vsel %vm1980_vm10, %v1996_v3, %v1997_v39  ;;  %v2000_v12 = vsel %vm1980_vm10, %v1997_v39, %v1999_v51  ;;  %v8990_v51 = vld [vmem:[#allocation2 + $0x200] sm:$0xff]  ;;  %v9011_v28 = vld [vmem:[#allocation2 + $0x210] sm:$0xff] }
 0x2b8   : > { %v2143_v24 = vsel %vm2125_vm7, %v2141_v9, %v2142_v44  ;;  %v2325_v60 = vsel %vm1255_vm2, %v1274_v59, %v2324_v0  ;;  %v2405_v20 = vsel %vm1400_vm3, %v1419_v1, %v2404_v10  ;;  %v1031_v6 = vmax.f32 %v967_v7, %v8762_v4 }
 0x2b9   : > { %v2099_v55 = vmax.f32 %v1954_v47, %v1998_v23  ;;  %v2100_v61 = vmax.f32 %v1955_v58, %v2000_v12  ;;  %v1032_v25 = vmax.f32 %v968_v48, %v8768_v56  ;;  %v1033_v3 = vmax.f32 %v969_v16, %v8773_v45  ;;  %v10921_v48 = vld [vmem:[#allocation16_spill] sm:$0xff]  ;;  %v10922_v16 = vld [vmem:[#allocation17_spill] sm:$0xff] }
 0x2ba   : > { %v2145_v39 = vsel %vm2125_vm7, %v2142_v44, %v2144_v30  ;;  %v2485_v0 = vsel %vm1545_vm4, %v1564_v33, %v2484_v53  ;;  %v2565_v10 = vsel %vm1690_vm6, %v1709_v34, %v2564_v31  ;;  %v1095_v59 = vmax.f32 %v1031_v6, %v8895_v41  ;;  %v9006_v44 = vld [vmem:[#allocation2 + $0x208] sm:$0xff] }
 0x2bb   : > { %v2244_v1 = vmax.f32 %v2099_v55, %v2143_v24  ;;  %v2245_v14 = vmax.f32 %v2100_v61, %v2145_v39  ;;  %v1096_v63 = vmax.f32 %v1032_v25, %v8902_v17  ;;  %v1097_v7 = vmax.f32 %v1033_v3, %v8907_v50 }
 0x2bc   : > { %v8993_v62 = vmax.f32 %v1095_v59, %v8990_v51  ;;  %v10923_v46 = vmax.f32 %v10921_v48, %v10922_v16  ;;  %v971_v33 = vmax.f32 %v7815_v21, %v8762_v4  ;;  %v972_v34 = vmax.f32 %v6391_v40, %v8768_v56 }
 0x2bd   : > { %v2276_v54 = vmax.f32 %v2244_v1, %v8905_v35  ;;  %v2277_v9 = vmax.f32 %v2245_v14, %v8910_v57  ;;  %v9009_v32 = vmax.f32 %v1096_v63, %v9006_v44  ;;  %v9014_v30 = vmax.f32 %v1097_v7, %v9011_v28 }
 0x2be   : > { %v8998_v53 = vmax.f32 %v10923_v46, %v5264_v52  ;;  %v1276_v31 = vrot.slane %v8993_v62, 1  ;;  %v1421_v47 = vrot.slane %v8993_v62, 2  ;;  %v1566_v58 = vrot.slane %v8993_v62, 3 }
 0x2bf   : > { %v1711_v35 = vrot.slane %v8993_v62, 4  ;;  %v2372_v57 = vmax.f32 %v2276_v54, %v8926_v13  ;;  %v2373_v23 = vmax.f32 %v2277_v9, %v2325_v60  ;;  %v1277_v12 = vrot.slane %v9009_v32, 1 }
 0x2c0   : > { %v1279_v24 = vrot.slane %v9014_v30, 1  ;;  %v1422_v6 = vrot.slane %v9009_v32, 2  ;;  %v1424_v55 = vrot.slane %v9014_v30, 2  ;;  %v1567_v61 = vrot.slane %v9009_v32, 3 }
 0x2c1   : > { %v1569_v25 = vrot.slane %v9014_v30, 3  ;;  %v2452_v3 = vmax.f32 %v2372_v57, %v8935_v26  ;;  %v2453_v39 = vmax.f32 %v2373_v23, %v2405_v20  ;;  %v1278_v59 = vsel %vm1255_vm2, %v1276_v31, %v1277_v12 }
 0x2c2   : > { %v9030_v13 = vsel %vm1255_vm2, %v1277_v12, %v1279_v24  ;;  %v1376_v60 = vmax.f32 %v8993_v62, %v1278_v59  ;;  %v1423_v14 = vsel %vm1400_vm3, %v1421_v47, %v1422_v6  ;;  %v9037_v63 = vsel %vm1400_vm3, %v1422_v6, %v1424_v55 }
 0x2c3   : > { %v1377_v1 = vmax.f32 %v9009_v32, %v9030_v13  ;;  %v2532_v7 = vmax.f32 %v2452_v3, %v8948_v22  ;;  %v2533_v26 = vmax.f32 %v2453_v39, %v2485_v0  ;;  %v1568_v20 = vsel %vm1545_vm4, %v1566_v58, %v1567_v61 }
 0x2c4   : > { %v9042_v52 = vsel %vm1545_vm4, %v1567_v61, %v1569_v25  ;;  %v1521_v48 = vmax.f32 %v1376_v60, %v1423_v14  ;;  %v1712_v46 = vrot.slane %v9009_v32, 4  ;;  %v1714_v54 = vrot.slane %v9014_v30, 4 }
 0x2c5   : > { %v1522_v16 = vmax.f32 %v1377_v1, %v9037_v63  ;;  %v2612_v9 = vmax.f32 %v2532_v7, %v8959_v19  ;;  %v2613_v31 = vmax.f32 %v2533_v26, %v2565_v10  ;;  %v1856_v22 = vrot.slane %v8993_v62, 5  ;;  %v9070_v7 = vld [vmem:[#allocation2 + $0x2f8] sm:$0xf] }
 0x2c6   : > { %v1857_v0 = vrot.slane %v9009_v32, 5  ;;  %v1666_v47 = vmax.f32 %v1521_v48, %v1568_v20  ;;  %v1713_v57 = vsel %vm1690_vm6, %v1711_v35, %v1712_v46  ;;  %v2326_v23 = vrot.slane %v8998_v53, 1 }
 0x2c7   : > { %v1667_v58 = vmax.f32 %v1522_v16, %v9042_v52  ;;  %2644 = vst.msk [vmem:[%s5873_s17 + $0x30] sm:$0xff] %vm148_vm0, %v2612_v9  ;;  %2645 = vst.msk [vmem:[%s5873_s17 + $0x38] sm:$0xff] %vm148_vm0, %v2613_v31  ;;  %v9058_v12 = vsel %vm1690_vm6, %v1712_v46, %v1714_v54  ;;  %v1859_v19 = vrot.slane %v9014_v30, 5  ;;  %v2001_v10 = vrot.slane %v8993_v62, 6 }
 0x2c8   : > { %v2002_v6 = vrot.slane %v9009_v32, 6  ;;  %v1811_v61 = vmax.f32 %v1666_v47, %v1713_v57  ;;  %v2004_v35 = vrot.slane %v9014_v30, 6  ;;  %v2146_v39 = vrot.slane %v8993_v62, 7 }
 0x2c9   : > { %v1812_v3 = vmax.f32 %v1667_v58, %v9058_v12  ;;  %v1858_v59 = vsel %vm1835_vm9, %v1856_v22, %v1857_v0  ;;  %v1860_v60 = vsel %vm1835_vm9, %v1857_v0, %v1859_v19  ;;  %v2147_v1 = vrot.slane %v9009_v32, 7 }
 0x2ca   : > { %v2149_v14 = vrot.slane %v9014_v30, 7  ;;  %v1130_v26 = vmax.f32 %v8758_v43, %v9070_v7  ;;  %v1956_v20 = vmax.f32 %v1811_v61, %v1858_v59  ;;  %v2406_v16 = vrot.slane %v8998_v53, 2  ;;  %v9952_v7 = vld [vmem:[#allocation2 + $0x300] sm:$0xff] }
 0x2cb   : > { %v1957_v48 = vmax.f32 %v1812_v3, %v1860_v60  ;;  %v2003_v46 = vsel %vm1980_vm10, %v2001_v10, %v2002_v6  ;;  %v2005_v62 = vsel %vm1980_vm10, %v2002_v6, %v2004_v35  ;;  %v2327_v9 = vsel %vm1255_vm2, %v1279_v24, %v2326_v23  ;;  %v5268_v23 = vld [vmem:[#allocation2 + $0x238] sm:$0xf]  ;;  %v10924_v10 = vld [vmem:[#allocation57_spill] sm:$0xff] }
 0x2cc   : > { %v2486_v31 = vrot.slane %v8998_v53, 3  ;;  %v2101_v22 = vmax.f32 %v1956_v20, %v2003_v46  ;;  %v2148_v47 = vsel %vm2125_vm7, %v2146_v39, %v2147_v1  ;;  %v973_v58 = vmax.f32 %v10708_v37, %v8773_v45  ;;  %v10925_v6 = vld [vmem:[#allocation58_spill] sm:$0xff] }
 0x2cd   : > { %v2102_v0 = vmax.f32 %v1957_v48, %v2005_v62  ;;  %v2150_v57 = vsel %vm2125_vm7, %v2147_v1, %v2149_v14  ;;  %v1035_v19 = vmax.f32 %v971_v33, %v8895_v41  ;;  %v1036_v24 = vmax.f32 %v972_v34, %v8902_v17  ;;  %v9108_v1 = vld [vmem:[#allocation2 + $0x220] sm:$0xff]  ;;  %v9120_v48 = vld [vmem:[#allocation2 + $0x230] sm:$0xff] }
 0x2ce   : > { %v10926_v61 = vmax.f32 %v10924_v10, %v10925_v6  ;;  %v2246_v35 = vmax.f32 %v2101_v22, %v2148_v47  ;;  %v2407_v45 = vsel %vm1400_vm3, %v1424_v55, %v2406_v16  ;;  %v1037_v39 = vmax.f32 %v973_v58, %v8907_v50 }
 0x2cf   : > { %v2247_v37 = vmax.f32 %v2102_v0, %v2150_v57  ;;  %v2487_v21 = vsel %vm1545_vm4, %v1569_v25, %v2486_v31  ;;  %v2566_v4 = vrot.slane %v8998_v53, 4  ;;  %v1099_v33 = vmax.f32 %v1035_v19, %v8990_v51  ;;  %v9113_v53 = vld [vmem:[#allocation2 + $0x228] sm:$0xff] }
 0x2d0   : > { %v9094_v3 = vmax.f32 %v10926_v61, %v5268_v23  ;;  %v1100_v40 = vmax.f32 %v1036_v24, %v9006_v44  ;;  %v2278_v56 = vmax.f32 %v2246_v35, %v9009_v32  ;;  %v1101_v59 = vmax.f32 %v1037_v39, %v9011_v28 }
 0x2d1   : > { %v2279_v34 = vmax.f32 %v2247_v37, %v9014_v30  ;;  %v975_v60 = vmax.f32 %v7877_v27, %v8895_v41  ;;  %v2567_v55 = vsel %vm1690_vm6, %v1714_v54, %v2566_v4  ;;  %v9111_v25 = vmax.f32 %v1099_v33, %v9108_v1 }
 0x2d2   : > { %v9116_v14 = vmax.f32 %v1100_v40, %v9113_v53  ;;  %v2328_v32 = vrot.slane %v9094_v3, 1  ;;  %v2374_v30 = vmax.f32 %v2278_v56, %v9030_v13  ;;  %v9123_v16 = vmax.f32 %v1101_v59, %v9120_v48 }
 0x2d3   : > { %v2375_v20 = vmax.f32 %v2279_v34, %v2327_v9  ;;  %v976_v54 = vmax.f32 %v6473_v42, %v8902_v17  ;;  %v1281_v46 = vrot.slane %v9111_v25, 1  ;;  %v1426_v31 = vrot.slane %v9111_v25, 2 }
 0x2d4   : > { %v1282_v62 = vrot.slane %v9116_v14, 1  ;;  %v1427_v22 = vrot.slane %v9116_v14, 2  ;;  %v2454_v0 = vmax.f32 %v2374_v30, %v9037_v63  ;;  %v1284_v9 = vrot.slane %v9123_v16, 1 }
 0x2d5   : > { %v2455_v13 = vmax.f32 %v2375_v20, %v2407_v45  ;;  %v1429_v47 = vrot.slane %v9123_v16, 2  ;;  %v1571_v42 = vrot.slane %v9111_v25, 3  ;;  %v1572_v17 = vrot.slane %v9116_v14, 3 }
 0x2d6   : > { %v1283_v58 = vsel %vm1255_vm2, %v1281_v46, %v1282_v62  ;;  %v1428_v57 = vsel %vm1400_vm3, %v1426_v31, %v1427_v22  ;;  %v2534_v19 = vmax.f32 %v2454_v0, %v9042_v52  ;;  %v9140_v63 = vsel %vm1255_vm2, %v1282_v62, %v1284_v9 }
 0x2d7   : > { %v2535_v24 = vmax.f32 %v2455_v13, %v2487_v21  ;;  %v1378_v23 = vmax.f32 %v9111_v25, %v1283_v58  ;;  %v1379_v10 = vmax.f32 %v9116_v14, %v9140_v63  ;;  %v9146_v6 = vsel %vm1400_vm3, %v1427_v22, %v1429_v47 }
 0x2d8   : > { %v1573_v61 = vsel %vm1545_vm4, %v1571_v42, %v1572_v17  ;;  %v1574_v35 = vrot.slane %v9123_v16, 3  ;;  %v2614_v52 = vmax.f32 %v2534_v19, %v9058_v12  ;;  %v1716_v39 = vrot.slane %v9111_v25, 4 }
 0x2d9   : > { %v2615_v37 = vmax.f32 %v2535_v24, %v2567_v55  ;;  %v1523_v45 = vmax.f32 %v1378_v23, %v1428_v57  ;;  %v1524_v21 = vmax.f32 %v1379_v10, %v9146_v6  ;;  %v1717_v33 = vrot.slane %v9116_v14, 4 }
 0x2da   : > { %v9154_v4 = vsel %vm1545_vm4, %v1572_v17, %v1574_v35  ;;  %v1719_v40 = vrot.slane %v9123_v16, 4  ;;  %2646 = vst.msk [vmem:[%s5873_s17 + $0x40] sm:$0xff] %vm148_vm0, %v2614_v52  ;;  %v1861_v12 = vrot.slane %v9111_v25, 5  ;;  %v1862_v34 = vrot.slane %v9116_v14, 5 }
 0x2db   : > { %2647 = vst.msk [vmem:[%s5873_s17 + $0x48] sm:$0xff] %vm148_vm0, %v2615_v37  ;;  %v1668_v56 = vmax.f32 %v1523_v45, %v1573_v61  ;;  %v1864_v59 = vrot.slane %v9123_v16, 5  ;;  %v1669_v55 = vmax.f32 %v1524_v21, %v9154_v4  ;;  %v1718_v30 = vsel %vm1690_vm6, %v1716_v39, %v1717_v33 }
 0x2dc   : > { %v2006_v20 = vrot.slane %v9111_v25, 6  ;;  %v977_v46 = vmax.f32 %v10711_v18, %v8907_v50  ;;  %v9171_v62 = vsel %vm1690_vm6, %v1717_v33, %v1719_v40  ;;  %v1863_v22 = vsel %vm1835_vm9, %v1861_v12, %v1862_v34 }
 0x2dd   : > { %v1813_v31 = vmax.f32 %v1668_v56, %v1718_v30  ;;  %v2007_v0 = vrot.slane %v9116_v14, 6  ;;  %v1814_v13 = vmax.f32 %v1669_v55, %v9171_v62  ;;  %v2009_v58 = vrot.slane %v9123_v16, 6  ;;  %v5272_v55 = vld [vmem:[#allocation2 + $0x258] sm:$0xf]  ;;  %v10927_v30 = vld [vmem:[#allocation59_spill] sm:$0xff] }
 0x2de   : > { %v2151_v57 = vrot.slane %v9111_v25, 7  ;;  %v2152_v42 = vrot.slane %v9116_v14, 7  ;;  %v1865_v17 = vsel %vm1835_vm9, %v1862_v34, %v1864_v59  ;;  %v2154_v18 = vrot.slane %v9123_v16, 7 }
 0x2df   : > { %v1958_v19 = vmax.f32 %v1813_v31, %v1863_v22  ;;  %v2408_v50 = vrot.slane %v9094_v3, 2  ;;  %v1959_v24 = vmax.f32 %v1814_v13, %v1865_v17  ;;  %v2008_v23 = vsel %vm1980_vm10, %v2006_v20, %v2007_v0  ;;  %v9212_v31 = vld [vmem:[#allocation2 + $0x240] sm:$0xff] }
 0x2e0   : > { %v2488_v10 = vrot.slane %v9094_v3, 3  ;;  %v2568_v61 = vrot.slane %v9094_v3, 4  ;;  %v2010_v52 = vsel %vm1980_vm10, %v2007_v0, %v2009_v58  ;;  %v2153_v25 = vsel %vm2125_vm7, %v2151_v57, %v2152_v42  ;;  %v9217_v0 = vld [vmem:[#allocation2 + $0x248] sm:$0xff] }
 0x2e1   : > { %v2103_v37 = vmax.f32 %v1958_v19, %v2008_v23  ;;  %v2329_v45 = vsel %vm1255_vm2, %v1284_v9, %v2328_v32  ;;  %v2104_v39 = vmax.f32 %v1959_v24, %v2010_v52  ;;  %v1039_v21 = vmax.f32 %v975_v60, %v8990_v51 }
 0x2e2   : > { %v1040_v33 = vmax.f32 %v976_v54, %v9006_v44  ;;  %v1041_v56 = vmax.f32 %v977_v46, %v9011_v28  ;;  %v2155_v12 = vsel %vm2125_vm7, %v2152_v42, %v2154_v18  ;;  %v2409_v59 = vsel %vm1400_vm3, %v1429_v47, %v2408_v50 }
 0x2e3   : > { %v2248_v34 = vmax.f32 %v2103_v37, %v2153_v25  ;;  %v10928_v3 = vmax.f32 %v10927_v30, %v7455_v11  ;;  %v2249_v9 = vmax.f32 %v2104_v39, %v2155_v12  ;;  %v1103_v20 = vmax.f32 %v1039_v21, %v9108_v1 }
 0x2e4   : > { %v1104_v27 = vmax.f32 %v1040_v33, %v9113_v53  ;;  %v1105_v41 = vmax.f32 %v1041_v56, %v9120_v48  ;;  %v2489_v54 = vsel %vm1545_vm4, %v1574_v35, %v2488_v10  ;;  %v2569_v46 = vsel %vm1690_vm6, %v1719_v40, %v2568_v61 }
 0x2e5   : > { %v9201_v32 = vmax.f32 %v10928_v3, %v5272_v55  ;;  %v2280_v60 = vmax.f32 %v2248_v34, %v9116_v14  ;;  %v979_v47 = vmax.f32 %v7930_v29, %v8990_v51  ;;  %v2281_v11 = vmax.f32 %v2249_v9, %v9123_v16  ;;  %v9222_v14 = vld [vmem:[#allocation2 + $0x250] sm:$0xff] }
 0x2e6   : > { %v9215_v22 = vmax.f32 %v1103_v20, %v9212_v31  ;;  %v9220_v13 = vmax.f32 %v1104_v27, %v9217_v0  ;;  %v9225_v35 = vmax.f32 %v1105_v41, %v9222_v14  ;;  %v980_v16 = vmax.f32 %v6501_v49, %v9006_v44 }
 0x2e7   : > { %v2376_v40 = vmax.f32 %v2280_v60, %v9140_v63  ;;  %v2330_v29 = vrot.slane %v9201_v32, 1  ;;  %v2410_v51 = vrot.slane %v9201_v32, 2  ;;  %v2377_v58 = vmax.f32 %v2281_v11, %v2329_v45 }
 0x2e8   : > { %v1286_v57 = vrot.slane %v9215_v22, 1  ;;  %v1287_v42 = vrot.slane %v9220_v13, 1  ;;  %v1289_v17 = vrot.slane %v9225_v35, 1  ;;  %v1431_v18 = vrot.slane %v9215_v22, 2 }
 0x2e9   : > { %v2456_v19 = vmax.f32 %v2376_v40, %v9146_v6  ;;  %v1432_v63 = vrot.slane %v9220_v13, 2  ;;  %v1434_v50 = vrot.slane %v9225_v35, 2  ;;  %v2457_v24 = vmax.f32 %v2377_v58, %v2409_v59 }
 0x2ea   : > { %v1288_v23 = vsel %vm1255_vm2, %v1286_v57, %v1287_v42  ;;  %v9241_v49 = vsel %vm1255_vm2, %v1287_v42, %v1289_v17  ;;  %v1576_v44 = vrot.slane %v9215_v22, 3  ;;  %v1577_v45 = vrot.slane %v9220_v13, 3 }
 0x2eb   : > { %v2536_v10 = vmax.f32 %v2456_v19, %v9154_v4  ;;  %v1380_v61 = vmax.f32 %v9215_v22, %v1288_v23  ;;  %v1381_v6 = vmax.f32 %v9220_v13, %v9241_v49  ;;  %v1433_v52 = vsel %vm1400_vm3, %v1431_v18, %v1432_v63  ;;  %v10929_v19 = vld [vmem:[#allocation18_spill] sm:$0xff] }
 0x2ec   : > { %v2537_v37 = vmax.f32 %v2457_v24, %v2489_v54  ;;  %v9250_v25 = vsel %vm1400_vm3, %v1432_v63, %v1434_v50  ;;  %v1579_v39 = vrot.slane %v9225_v35, 3  ;;  %v1721_v56 = vrot.slane %v9215_v22, 4 }
 0x2ed   : > { %v2616_v21 = vmax.f32 %v2536_v10, %v9171_v62  ;;  %v1525_v4 = vmax.f32 %v1380_v61, %v1433_v52  ;;  %v1526_v33 = vmax.f32 %v1381_v6, %v9250_v25  ;;  %v1578_v34 = vsel %vm1545_vm4, %v1576_v44, %v1577_v45 }
 0x2ee   : > { %v2617_v12 = vmax.f32 %v2537_v37, %v2569_v46  ;;  %v9259_v59 = vsel %vm1545_vm4, %v1577_v45, %v1579_v39  ;;  %v1722_v55 = vrot.slane %v9220_v13, 4  ;;  %v1724_v62 = vrot.slane %v9225_v35, 4 }
 0x2ef   : > { %2648 = vst.msk [vmem:[%s5873_s17 + $0x50] sm:$0xff] %vm148_vm0, %v2616_v21  ;;  %v1670_v30 = vmax.f32 %v1525_v4, %v1578_v34  ;;  %v1671_v3 = vmax.f32 %v1526_v33, %v9259_v59  ;;  %v1866_v9 = vrot.slane %v9215_v22, 5  ;;  %v1867_v27 = vrot.slane %v9220_v13, 5 }
 0x2f0   : > { %2649 = vst.msk [vmem:[%s5873_s17 + $0x58] sm:$0xff] %vm148_vm0, %v2617_v12  ;;  %v1723_v20 = vsel %vm1690_vm6, %v1721_v56, %v1722_v55  ;;  %v1869_v41 = vrot.slane %v9225_v35, 5  ;;  %v2011_v60 = vrot.slane %v9215_v22, 6  ;;  %v9274_v54 = vsel %vm1690_vm6, %v1722_v55, %v1724_v62 }
 0x2f1   : > { %v1815_v46 = vmax.f32 %v1670_v30, %v1723_v20  ;;  %v2012_v11 = vrot.slane %v9220_v13, 6  ;;  %v2014_v40 = vrot.slane %v9225_v35, 6  ;;  %v1816_v58 = vmax.f32 %v1671_v3, %v9274_v54  ;;  %v9305_v20 = vld [vmem:[#allocation2 + $0x260] sm:$0xff] }
 0x2f2   : > { %v1868_v57 = vsel %vm1835_vm9, %v1866_v9, %v1867_v27  ;;  %v2156_v42 = vrot.slane %v9215_v22, 7  ;;  %v981_v18 = vmax.f32 %v10929_v19, %v9011_v28  ;;  %v1870_v63 = vsel %vm1835_vm9, %v1867_v27, %v1869_v41 }
 0x2f3   : > { %v1960_v24 = vmax.f32 %v1815_v46, %v1868_v57  ;;  %v2157_v23 = vrot.slane %v9220_v13, 7  ;;  %v1043_v44 = vmax.f32 %v979_v47, %v9108_v1  ;;  %v1961_v10 = vmax.f32 %v1816_v58, %v1870_v63  ;;  %v9316_v46 = vld [vmem:[#allocation2 + $0x268] sm:$0xff] }
 0x2f4   : > { %v2013_v61 = vsel %vm1980_vm10, %v2011_v60, %v2012_v11  ;;  %v2159_v6 = vrot.slane %v9225_v35, 7  ;;  %v2490_v52 = vrot.slane %v9201_v32, 3  ;;  %v2015_v37 = vsel %vm1980_vm10, %v2012_v11, %v2014_v40  ;;  %v10933_v40 = vld [vmem:[#allocation27_spill] sm:$0xff] }
 0x2f5   : > { %v2105_v22 = vmax.f32 %v1960_v24, %v2013_v61  ;;  %v2331_v45 = vsel %vm1255_vm2, %v1289_v17, %v2330_v29  ;;  %v2570_v28 = vrot.slane %v9201_v32, 4  ;;  %v2106_v21 = vmax.f32 %v1961_v10, %v2015_v37  ;;  %v5277_v32 = vld [vmem:[#allocation2 + $0x278] sm:$0xf] }
 0x2f6   : > { %v2158_v4 = vsel %vm2125_vm7, %v2156_v42, %v2157_v23  ;;  %v1044_v33 = vmax.f32 %v980_v16, %v9113_v53  ;;  %v1045_v47 = vmax.f32 %v981_v18, %v9120_v48  ;;  %v2160_v56 = vsel %vm2125_vm7, %v2157_v23, %v2159_v6 }
 0x2f7   : > { %v2250_v12 = vmax.f32 %v2105_v22, %v2158_v4  ;;  %v2411_v34 = vsel %vm1400_vm3, %v1434_v50, %v2410_v51  ;;  %v1107_v55 = vmax.f32 %v1043_v44, %v9212_v31  ;;  %v2251_v30 = vmax.f32 %v2106_v21, %v2160_v56  ;;  %v10930_v51 = vld [vmem:[#allocation60_spill] sm:$0xff]  ;;  %v10931_v50 = vld [vmem:[#allocation61_spill] sm:$0xff] }
 0x2f8   : > { %v2491_v29 = vsel %vm1545_vm4, %v1579_v39, %v2490_v52  ;;  %v1108_v17 = vmax.f32 %v1044_v33, %v9217_v0  ;;  %v1109_v3 = vmax.f32 %v1045_v47, %v9222_v14  ;;  %v2571_v9 = vsel %vm1690_vm6, %v1724_v62, %v2570_v28 }
 0x2f9   : > { %v2282_v16 = vmax.f32 %v2250_v12, %v9220_v13  ;;  %v9308_v27 = vmax.f32 %v1107_v55, %v9305_v20  ;;  %v10932_v41 = vmax.f32 %v10930_v51, %v10931_v50  ;;  %v2283_v39 = vmax.f32 %v2251_v30, %v9225_v35  ;;  %v9321_v13 = vld [vmem:[#allocation2 + $0x270] sm:$0xff] }
 0x2fa   : > { %v9319_v11 = vmax.f32 %v1108_v17, %v9316_v46  ;;  %v9324_v62 = vmax.f32 %v1109_v3, %v9321_v13  ;;  %v983_v58 = vmax.f32 %v10933_v40, %v9108_v1 }
 0x2fb   : > { %v9313_v60 = vmax.f32 %v10932_v41, %v5277_v32  ;;  %v2378_v57 = vmax.f32 %v2282_v16, %v9241_v49  ;;  %v1291_v42 = vrot.slane %v9308_v27, 1  ;;  %v1436_v19 = vrot.slane %v9308_v27, 2 }
 0x2fc   : > { %v1581_v35 = vrot.slane %v9308_v27, 3  ;;  %v2379_v18 = vmax.f32 %v2283_v39, %v2331_v45  ;;  %v1292_v63 = vrot.slane %v9319_v11, 1  ;;  %v1294_v24 = vrot.slane %v9324_v62, 1 }
 0x2fd   : > { %v1437_v23 = vrot.slane %v9319_v11, 2  ;;  %v2458_v44 = vmax.f32 %v2378_v57, %v9250_v25  ;;  %v1439_v10 = vrot.slane %v9324_v62, 2  ;;  %v1582_v61 = vrot.slane %v9319_v11, 3 }
 0x2fe   : > { %v1584_v49 = vrot.slane %v9324_v62, 3  ;;  %v2459_v6 = vmax.f32 %v2379_v18, %v2411_v34  ;;  %v1293_v52 = vsel %vm1255_vm2, %v1291_v42, %v1292_v63  ;;  %v9343_v37 = vsel %vm1255_vm2, %v1292_v63, %v1294_v24 }
 0x2ff   : > { %v1438_v22 = vsel %vm1400_vm3, %v1436_v19, %v1437_v23  ;;  %v2538_v45 = vmax.f32 %v2458_v44, %v9259_v59  ;;  %v1382_v25 = vmax.f32 %v9308_v27, %v1293_v52  ;;  %v1383_v28 = vmax.f32 %v9319_v11, %v9343_v37 }
 0x300   : > { %v9353_v21 = vsel %vm1400_vm3, %v1437_v23, %v1439_v10  ;;  %v2539_v4 = vmax.f32 %v2459_v6, %v2491_v29  ;;  %v1583_v33 = vsel %vm1545_vm4, %v1581_v35, %v1582_v61  ;;  %v9357_v47 = vsel %vm1545_vm4, %v1582_v61, %v1584_v49 }
 0x301   : > { %v1726_v59 = vrot.slane %v9308_v27, 4  ;;  %v2618_v56 = vmax.f32 %v2538_v45, %v9274_v54  ;;  %v1527_v12 = vmax.f32 %v1382_v25, %v1438_v22  ;;  %v1528_v34 = vmax.f32 %v1383_v28, %v9353_v21  ;;  %v10934_v54 = vld [vmem:[#allocation28_spill] sm:$0xff] }
 0x302   : > { %v1727_v55 = vrot.slane %v9319_v11, 4  ;;  %v2619_v30 = vmax.f32 %v2539_v4, %v2571_v9  ;;  %v1729_v17 = vrot.slane %v9324_v62, 4  ;;  %v1871_v29 = vrot.slane %v9308_v27, 5 }
 0x303   : > { %v1872_v3 = vrot.slane %v9319_v11, 5  ;;  %2650 = vst.msk [vmem:[%s5873_s17 + $0x60] sm:$0xff] %vm148_vm0, %v2618_v56  ;;  %v1672_v16 = vmax.f32 %v1527_v12, %v1583_v33  ;;  %v1673_v32 = vmax.f32 %v1528_v34, %v9357_v47  ;;  %v1874_v51 = vrot.slane %v9324_v62, 5  ;;  %v10935_v56 = vld [vmem:[#allocation19_spill] sm:$0xff] }
 0x304   : > { %v984_v50 = vmax.f32 %v10934_v54, %v9113_v53  ;;  %2651 = vst.msk [vmem:[%s5873_s17 + $0x68] sm:$0xff] %vm148_vm0, %v2619_v30  ;;  %v1728_v9 = vsel %vm1690_vm6, %v1726_v59, %v1727_v55  ;;  %v9376_v41 = vsel %vm1690_vm6, %v1727_v55, %v1729_v17  ;;  %v2016_v39 = vrot.slane %v9308_v27, 6 }
 0x305   : > { %v2017_v57 = vrot.slane %v9319_v11, 6  ;;  %v1817_v42 = vmax.f32 %v1672_v16, %v1728_v9  ;;  %v1818_v19 = vmax.f32 %v1673_v32, %v9376_v41  ;;  %v1873_v35 = vsel %vm1835_vm9, %v1871_v29, %v1872_v3  ;;  %v5280_v29 = vld [vmem:[#allocation2 + $0x298] sm:$0xf]  ;;  %v10937_v16 = vld [vmem:[#allocation63_spill] sm:$0xff] }
 0x306   : > { %v2019_v18 = vrot.slane %v9324_v62, 6  ;;  %v1875_v53 = vsel %vm1835_vm9, %v1872_v3, %v1874_v51  ;;  %v2161_v63 = vrot.slane %v9308_v27, 7  ;;  %v2162_v23 = vrot.slane %v9319_v11, 7  ;;  %v10936_v3 = vld [vmem:[#allocation62_spill] sm:$0xff] }
 0x307   : > { %v2164_v44 = vrot.slane %v9324_v62, 7  ;;  %v1962_v61 = vmax.f32 %v1817_v42, %v1873_v35  ;;  %v1963_v6 = vmax.f32 %v1818_v19, %v1875_v53  ;;  %v2332_v52 = vrot.slane %v9313_v60, 1 }
 0x308   : > { %v2412_v22 = vrot.slane %v9313_v60, 2  ;;  %v2018_v45 = vsel %vm1980_vm10, %v2016_v39, %v2017_v57  ;;  %v2020_v25 = vsel %vm1980_vm10, %v2017_v57, %v2019_v18  ;;  %v2163_v28 = vsel %vm2125_vm7, %v2161_v63, %v2162_v23  ;;  %v9423_v18 = vld [vmem:[#allocation2 + $0x280] sm:$0xff] }
 0x309   : > { %v2492_v4 = vrot.slane %v9313_v60, 3  ;;  %v2107_v33 = vmax.f32 %v1962_v61, %v2018_v45  ;;  %v2108_v27 = vmax.f32 %v1963_v6, %v2020_v25  ;;  %v2165_v59 = vsel %vm2125_vm7, %v2162_v23, %v2164_v44  ;;  %v9435_v23 = vld [vmem:[#allocation2 + $0x290] sm:$0xff] }
 0x30a   : > { %v985_v12 = vmax.f32 %v10935_v56, %v9120_v48  ;;  %v2572_v34 = vrot.slane %v9313_v60, 4  ;;  %v1047_v55 = vmax.f32 %v983_v58, %v9212_v31  ;;  %v1048_v30 = vmax.f32 %v984_v50, %v9217_v0 }
 0x30b   : > { %v10938_v32 = vmax.f32 %v10936_v3, %v10937_v16  ;;  %v2252_v54 = vmax.f32 %v2107_v33, %v2163_v28  ;;  %v2253_v9 = vmax.f32 %v2108_v27, %v2165_v59  ;;  %v2333_v48 = vsel %vm1255_vm2, %v1294_v24, %v2332_v52  ;;  %v10939_v24 = vld [vmem:[#allocation29_spill] sm:$0xff] }
 0x30c   : > { %v1049_v60 = vmax.f32 %v985_v12, %v9222_v14  ;;  %v2413_v1 = vsel %vm1400_vm3, %v1439_v10, %v2412_v22  ;;  %v2493_v40 = vsel %vm1545_vm4, %v1584_v49, %v2492_v4  ;;  %v1111_v58 = vmax.f32 %v1047_v55, %v9305_v20  ;;  %v9428_v49 = vld [vmem:[#allocation2 + $0x288] sm:$0xff] }
 0x30d   : > { %v9405_v51 = vmax.f32 %v10938_v32, %v5280_v29  ;;  %v1112_v50 = vmax.f32 %v1048_v30, %v9316_v46  ;;  %v2284_v39 = vmax.f32 %v2252_v54, %v9319_v11  ;;  %v2285_v57 = vmax.f32 %v2253_v9, %v9324_v62 }
 0x30e   : > { %v1113_v42 = vmax.f32 %v1049_v60, %v9321_v13  ;;  %v987_v19 = vmax.f32 %v10939_v24, %v9212_v31  ;;  %v2573_v35 = vsel %vm1690_vm6, %v1729_v17, %v2572_v34  ;;  %v9426_v10 = vmax.f32 %v1111_v58, %v9423_v18  ;;  %v10940_v17 = vld [vmem:[#allocation31_spill] sm:$0xff] }
 0x30f   : > { %v9431_v53 = vmax.f32 %v1112_v50, %v9428_v49  ;;  %v2334_v11 = vrot.slane %v9405_v51, 1  ;;  %v2380_v62 = vmax.f32 %v2284_v39, %v9343_v37  ;;  %v2381_v63 = vmax.f32 %v2285_v57, %v2333_v48 }
 0x310   : > { %v9438_v44 = vmax.f32 %v1113_v42, %v9435_v23  ;;  %v988_v61 = vmax.f32 %v10940_v17, %v9217_v0  ;;  %v1296_v6 = vrot.slane %v9426_v10, 1  ;;  %v1441_v22 = vrot.slane %v9426_v10, 2 }
 0x311   : > { %v1297_v52 = vrot.slane %v9431_v53, 1  ;;  %v1442_v45 = vrot.slane %v9431_v53, 2  ;;  %v2460_v25 = vmax.f32 %v2380_v62, %v9353_v21  ;;  %v2461_v37 = vmax.f32 %v2381_v63, %v2413_v1 }
 0x312   : > { %v1299_v28 = vrot.slane %v9438_v44, 1  ;;  %v1444_v4 = vrot.slane %v9438_v44, 2  ;;  %v1586_v0 = vrot.slane %v9426_v10, 3  ;;  %v1587_v59 = vrot.slane %v9431_v53, 3 }
 0x313   : > { %v1298_v33 = vsel %vm1255_vm2, %v1296_v6, %v1297_v52  ;;  %v1443_v27 = vsel %vm1400_vm3, %v1441_v22, %v1442_v45  ;;  %v2540_v56 = vmax.f32 %v2460_v25, %v9357_v47  ;;  %v2541_v12 = vmax.f32 %v2461_v37, %v2493_v40 }
 0x314   : > { %v9455_v21 = vsel %vm1255_vm2, %v1297_v52, %v1299_v28  ;;  %v1384_v34 = vmax.f32 %v9426_v10, %v1298_v33  ;;  %v9461_v30 = vsel %vm1400_vm3, %v1442_v45, %v1444_v4  ;;  %v1588_v29 = vsel %vm1545_vm4, %v1586_v0, %v1587_v59 }
 0x315   : > { %v1385_v55 = vmax.f32 %v9431_v53, %v9455_v21  ;;  %v1589_v3 = vrot.slane %v9438_v44, 3  ;;  %v2620_v47 = vmax.f32 %v2540_v56, %v9376_v41  ;;  %v2621_v16 = vmax.f32 %v2541_v12, %v2573_v35  ;;  %v10941_v35 = vld [vmem:[#allocation20_spill] sm:$0xff] }
 0x316   : > { %v1529_v32 = vmax.f32 %v1384_v34, %v1443_v27  ;;  %v1731_v54 = vrot.slane %v9426_v10, 4  ;;  %v1732_v60 = vrot.slane %v9431_v53, 4  ;;  %v1734_v1 = vrot.slane %v9438_v44, 4 }
 0x317   : > { %v1530_v9 = vmax.f32 %v1385_v55, %v9461_v30  ;;  %v9469_v48 = vsel %vm1545_vm4, %v1587_v59, %v1589_v3  ;;  %2652 = vst.msk [vmem:[%s5873_s17 + $0x70] sm:$0xff] %vm148_vm0, %v2620_v47  ;;  %2653 = vst.msk [vmem:[%s5873_s17 + $0x78] sm:$0xff] %vm148_vm0, %v2621_v16  ;;  %v1876_v41 = vrot.slane %v9426_v10, 5  ;;  %v1877_v58 = vrot.slane %v9431_v53, 5 }
 0x318   : > { %v1674_v40 = vmax.f32 %v1529_v32, %v1588_v29  ;;  %v1879_v50 = vrot.slane %v9438_v44, 5  ;;  %v1733_v57 = vsel %vm1690_vm6, %v1731_v54, %v1732_v60  ;;  %v2021_v42 = vrot.slane %v9426_v10, 6 }
 0x319   : > { %v1675_v39 = vmax.f32 %v1530_v9, %v9469_v48  ;;  %v989_v62 = vmax.f32 %v10941_v35, %v9222_v14  ;;  %v9486_v63 = vsel %vm1690_vm6, %v1732_v60, %v1734_v1  ;;  %v1878_v6 = vsel %vm1835_vm9, %v1876_v41, %v1877_v58 }
 0x31a   : > { %v1819_v17 = vmax.f32 %v1674_v40, %v1733_v57  ;;  %v2022_v52 = vrot.slane %v9431_v53, 6  ;;  %v2024_v45 = vrot.slane %v9438_v44, 6  ;;  %v2166_v25 = vrot.slane %v9426_v10, 7 }
 0x31b   : > { %v1820_v22 = vmax.f32 %v1675_v39, %v9486_v63  ;;  %v2167_v37 = vrot.slane %v9431_v53, 7  ;;  %v1880_v33 = vsel %vm1835_vm9, %v1877_v58, %v1879_v50  ;;  %v2169_v14 = vrot.slane %v9438_v44, 7  ;;  %v5284_v58 = vld [vmem:[#allocation2 + $0x2b8] sm:$0xf]  ;;  %v10942_v50 = vld [vmem:[#allocation64_spill] sm:$0xff] }
 0x31c   : > { %v1964_v27 = vmax.f32 %v1819_v17, %v1878_v6  ;;  %v2414_v0 = vrot.slane %v9405_v51, 2  ;;  %v2023_v56 = vsel %vm1980_vm10, %v2021_v42, %v2022_v52  ;;  %v2494_v12 = vrot.slane %v9405_v51, 3  ;;  %v9527_v17 = vld [vmem:[#allocation2 + $0x2a0] sm:$0xff] }
 0x31d   : > { %v1965_v59 = vmax.f32 %v1820_v22, %v1880_v33  ;;  %v2574_v34 = vrot.slane %v9405_v51, 4  ;;  %v2025_v55 = vsel %vm1980_vm10, %v2022_v52, %v2024_v45  ;;  %v2168_v10 = vsel %vm2125_vm7, %v2166_v25, %v2167_v37  ;;  %v10943_v51 = vld [vmem:[#allocation65_spill] sm:$0xff]  ;;  %v9532_v52 = vld [vmem:[#allocation2 + $0x2a8] sm:$0xff] }
 0x31e   : > { %v2109_v29 = vmax.f32 %v1964_v27, %v2023_v56  ;;  %v2335_v47 = vsel %vm1255_vm2, %v1299_v28, %v2334_v11  ;;  %v1051_v32 = vmax.f32 %v987_v19, %v9305_v20  ;;  %v1052_v54 = vmax.f32 %v988_v61, %v9316_v46  ;;  %v10946_v45 = vld [vmem:[#allocation36_spill] sm:$0xff] }
 0x31f   : > { %v2110_v16 = vmax.f32 %v1965_v59, %v2025_v55  ;;  %v1053_v9 = vmax.f32 %v989_v62, %v9321_v13  ;;  %v2170_v60 = vsel %vm2125_vm7, %v2167_v37, %v2169_v14  ;;  %v2415_v41 = vsel %vm1400_vm3, %v1444_v4, %v2414_v0  ;;  %v10945_v4 = vld [vmem:[#allocation30_spill] sm:$0xff] }
 0x320   : > { %v2254_v40 = vmax.f32 %v2109_v29, %v2168_v10  ;;  %v10944_v39 = vmax.f32 %v10942_v50, %v10943_v51  ;;  %v1115_v57 = vmax.f32 %v1051_v32, %v9423_v18  ;;  %v1116_v31 = vmax.f32 %v1052_v54, %v9428_v49 }
 0x321   : > { %v2255_v28 = vmax.f32 %v2110_v16, %v2170_v60  ;;  %v1117_v24 = vmax.f32 %v1053_v9, %v9435_v23  ;;  %v2495_v61 = vsel %vm1545_vm4, %v1589_v3, %v2494_v12  ;;  %v2575_v42 = vsel %vm1690_vm6, %v1734_v1, %v2574_v34 }
 0x322   : > { %v9516_v11 = vmax.f32 %v10944_v39, %v5284_v58  ;;  %v2286_v19 = vmax.f32 %v2254_v40, %v9431_v53  ;;  %v991_v35 = vmax.f32 %v10945_v4, %v9305_v20  ;;  %v9530_v6 = vmax.f32 %v1115_v57, %v9527_v17  ;;  %v9537_v53 = vld [vmem:[#allocation2 + $0x2b0] sm:$0xff] }
 0x323   : > { %v2287_v62 = vmax.f32 %v2255_v28, %v9438_v44  ;;  %v9535_v22 = vmax.f32 %v1116_v31, %v9532_v52  ;;  %v9540_v3 = vmax.f32 %v1117_v24, %v9537_v53  ;;  %v992_v25 = vmax.f32 %v10946_v45, %v9316_v46 }
 0x324   : > { %v2382_v1 = vmax.f32 %v2286_v19, %v9455_v21  ;;  %v2336_v20 = vrot.slane %v9516_v11, 1  ;;  %v2416_v44 = vrot.slane %v9516_v11, 2  ;;  %v1301_v33 = vrot.slane %v9530_v6, 1 }
 0x325   : > { %v2383_v37 = vmax.f32 %v2287_v62, %v2335_v47  ;;  %v1302_v27 = vrot.slane %v9535_v22, 1  ;;  %v1304_v14 = vrot.slane %v9540_v3, 1  ;;  %v1446_v59 = vrot.slane %v9530_v6, 2 }
 0x326   : > { %v2462_v0 = vmax.f32 %v2382_v1, %v9461_v30  ;;  %v1447_v21 = vrot.slane %v9535_v22, 2  ;;  %v1449_v56 = vrot.slane %v9540_v3, 2  ;;  %v1591_v55 = vrot.slane %v9530_v6, 3 }
 0x327   : > { %v2463_v12 = vmax.f32 %v2383_v37, %v2415_v41  ;;  %v1303_v34 = vsel %vm1255_vm2, %v1301_v33, %v1302_v27  ;;  %v9556_v46 = vsel %vm1255_vm2, %v1302_v27, %v1304_v14  ;;  %v1592_v54 = vrot.slane %v9535_v22, 3 }
 0x328   : > { %v2542_v29 = vmax.f32 %v2462_v0, %v9469_v48  ;;  %v1386_v10 = vmax.f32 %v9530_v6, %v1303_v34  ;;  %v1387_v30 = vmax.f32 %v9535_v22, %v9556_v46  ;;  %v1448_v47 = vsel %vm1400_vm3, %v1446_v59, %v1447_v21  ;;  %v10947_v0 = vld [vmem:[#allocation21_spill] sm:$0xff] }
 0x329   : > { %v2543_v16 = vmax.f32 %v2463_v12, %v2495_v61  ;;  %v9565_v32 = vsel %vm1400_vm3, %v1447_v21, %v1449_v56  ;;  %v1594_v9 = vrot.slane %v9540_v3, 3  ;;  %v1736_v41 = vrot.slane %v9530_v6, 4 }
 0x32a   : > { %v2622_v60 = vmax.f32 %v2542_v29, %v9486_v63  ;;  %v1531_v48 = vmax.f32 %v1386_v10, %v1448_v47  ;;  %v1532_v40 = vmax.f32 %v1387_v30, %v9565_v32  ;;  %v1593_v50 = vsel %vm1545_vm4, %v1591_v55, %v1592_v54 }
 0x32b   : > { %v2623_v58 = vmax.f32 %v2543_v16, %v2575_v42  ;;  %v9574_v51 = vsel %vm1545_vm4, %v1592_v54, %v1594_v9  ;;  %v1737_v39 = vrot.slane %v9535_v22, 4  ;;  %v1739_v63 = vrot.slane %v9540_v3, 4 }
 0x32c   : > { %2654 = vst.msk [vmem:[%s5873_s17 + $0x80] sm:$0xff] %vm148_vm0, %v2622_v60  ;;  %v1676_v28 = vmax.f32 %v1531_v48, %v1593_v50  ;;  %v1677_v57 = vmax.f32 %v1532_v40, %v9574_v51  ;;  %v1881_v31 = vrot.slane %v9530_v6, 5  ;;  %v1882_v19 = vrot.slane %v9535_v22, 5 }
 0x32d   : > { %2655 = vst.msk [vmem:[%s5873_s17 + $0x88] sm:$0xff] %vm148_vm0, %v2623_v58  ;;  %v1738_v24 = vsel %vm1690_vm6, %v1736_v41, %v1737_v39  ;;  %v1884_v61 = vrot.slane %v9540_v3, 5  ;;  %v2026_v42 = vrot.slane %v9530_v6, 6  ;;  %v9589_v4 = vsel %vm1690_vm6, %v1737_v39, %v1739_v63 }
 0x32e   : > { %v1821_v62 = vmax.f32 %v1676_v28, %v1738_v24  ;;  %v2027_v1 = vrot.slane %v9535_v22, 6  ;;  %v2029_v45 = vrot.slane %v9540_v3, 6  ;;  %v1822_v37 = vmax.f32 %v1677_v57, %v9589_v4 }
 0x32f   : > { %v1883_v33 = vsel %vm1835_vm9, %v1881_v31, %v1882_v19  ;;  %v2171_v27 = vrot.slane %v9530_v6, 7  ;;  %v993_v59 = vmax.f32 %v10947_v0, %v9321_v13  ;;  %v1885_v21 = vsel %vm1835_vm9, %v1882_v19, %v1884_v61  ;;  %v9640_v19 = vld [vmem:[#allocation2 + $0x2d0] sm:$0xff] }
 0x330   : > { %v1966_v12 = vmax.f32 %v1821_v62, %v1883_v33  ;;  %v2172_v34 = vrot.slane %v9535_v22, 7  ;;  %v1055_v55 = vmax.f32 %v991_v35, %v9423_v18  ;;  %v1967_v29 = vmax.f32 %v1822_v37, %v1885_v21  ;;  %v4893_v37 = vld [vmem:[%s5592_s13 + $0x10] sm:$0xff]  ;;  %v4895_v21 = vld [vmem:[%s5592_s13 + $0x20] sm:$0xff] }
 0x331   : > { %v2028_v10 = vsel %vm1980_vm10, %v2026_v42, %v2027_v1  ;;  %v2174_v30 = vrot.slane %v9540_v3, 7  ;;  %v2496_v47 = vrot.slane %v9516_v11, 3  ;;  %v2030_v16 = vsel %vm1980_vm10, %v2027_v1, %v2029_v45  ;;  %v10948_v42 = vld [vmem:[#allocation32_spill] sm:$0xff]  ;;  %v4891_v1 = vld [vmem:[%s5592_s13] sm:$0xff]  ;;  %5146 = vst.msk [vmem:[%s5873_s17 + $0x310] sm:$0xff] %vm148_vm0, %v4893_v37  ;;  %5148 = vst.msk [vmem:[%s5873_s17 + $0x320] sm:$0xff] %vm148_vm0, %v4895_v21 }
 0x332   : > { %v2111_v6 = vmax.f32 %v1966_v12, %v2028_v10  ;;  %v2337_v54 = vsel %vm1255_vm2, %v1304_v14, %v2336_v20  ;;  %v2576_v13 = vrot.slane %v9516_v11, 4  ;;  %v2112_v60 = vmax.f32 %v1967_v29, %v2030_v16  ;;  %v9624_v11 = vld [vmem:[#allocation2 + $0x2c0] sm:$0xff]  ;;  %v4892_v45 = vld [vmem:[%s5592_s13 + $0x8] sm:$0xff]  ;;  %5144 = vst.msk [vmem:[%s5873_s17 + $0x300] sm:$0xff] %vm148_vm0, %v4891_v1  ;;  %v4910_v37 = vld [vmem:[%s5592_s13 + $0x98] sm:$0xff] }
 0x333   : > { %v2173_v48 = vsel %vm2125_vm7, %v2171_v27, %v2172_v34  ;;  %v1056_v40 = vmax.f32 %v992_v25, %v9428_v49  ;;  %v1057_v35 = vmax.f32 %v993_v59, %v9435_v23  ;;  %v2175_v41 = vsel %vm2125_vm7, %v2172_v34, %v2174_v30  ;;  %5145 = vst.msk [vmem:[%s5873_s17 + $0x308] sm:$0xff] %vm148_vm0, %v4892_v45  ;;  %v4894_v59 = vld [vmem:[%s5592_s13 + $0x18] sm:$0xff]  ;;  %v4896_v12 = vld [vmem:[%s5592_s13 + $0x28] sm:$0xff]  ;;  %v4897_v30 = vld [vmem:[%s5592_s13 + $0x30] sm:$0xff] }
 0x334   : > { %v2256_v58 = vmax.f32 %v2111_v6, %v2173_v48  ;;  %v2417_v50 = vsel %vm1400_vm3, %v1449_v56, %v2416_v44  ;;  %v1119_v39 = vmax.f32 %v1055_v55, %v9527_v17  ;;  %v2257_v28 = vmax.f32 %v2112_v60, %v2175_v41  ;;  %v5289_v56 = vld [vmem:[#allocation2 + $0x2d8] sm:$0xf]  ;;  %5147 = vst.msk [vmem:[%s5873_s17 + $0x318] sm:$0xff] %vm148_vm0, %v4894_v59  ;;  %v4900_v60 = vld [vmem:[%s5592_s13 + $0x48] sm:$0xff]  ;;  %v4901_v48 = vld [vmem:[%s5592_s13 + $0x50] sm:$0xff] }
 0x335   : > { %v9616_v20 = vsel %vm1545_vm4, %v1594_v9, %v2496_v47  ;;  %v1120_v14 = vmax.f32 %v1056_v40, %v9532_v52  ;;  %v1121_v57 = vmax.f32 %v1057_v35, %v9537_v53  ;;  %v9622_v31 = vsel %vm1690_vm6, %v1739_v63, %v2576_v13  ;;  %5149 = vst.msk [vmem:[%s5873_s17 + $0x328] sm:$0xff] %vm148_vm0, %v4896_v12  ;;  %v4898_v47 = vld [vmem:[%s5592_s13 + $0x38] sm:$0xff]  ;;  %v4909_v45 = vld [vmem:[%s5592_s13 + $0x90] sm:$0xff]  ;;  %v4912_v21 = vld [vmem:[%s5592_s13 + $0xa8] sm:$0xff] }
 0x336   : > { %v2288_v25 = vmax.f32 %v2256_v58, %v9535_v22  ;;  %v9627_v44 = vmax.f32 %v1119_v39, %v9624_v11  ;;  %v9632_v9 = vmax.f32 %v1122_v36, %v5289_v56  ;;  %v2289_v24 = vmax.f32 %v2257_v28, %v9540_v3  ;;  %v9635_v22 = vld [vmem:[#allocation2 + $0x2c8] sm:$0xff]  ;;  %5150 = vst.msk [vmem:[%s5873_s17 + $0x330] sm:$0xff] %vm148_vm0, %v4897_v30  ;;  %v4902_v40 = vld [vmem:[%s5592_s13 + $0x58] sm:$0xff]  ;;  %v4905_v28 = vld [vmem:[%s5592_s13 + $0x70] sm:$0xff] }
 0x337   : > { %v9638_v63 = vmax.f32 %v1120_v14, %v9635_v22  ;;  %v9643_v61 = vmax.f32 %v1121_v57, %v9640_v19  ;;  %v995_v15 = vmax.f32 %v10948_v42, %v9423_v18  ;;  %5151 = vst.msk [vmem:[%s5873_s17 + $0x338] sm:$0xff] %vm148_vm0, %v4898_v47  ;;  %5153 = vst.msk [vmem:[%s5873_s17 + $0x348] sm:$0xff] %vm148_vm0, %v4900_v60  ;;  %v4904_v39 = vld [vmem:[%s5592_s13 + $0x68] sm:$0xff]  ;;  %v4914_v12 = vld [vmem:[%s5592_s13 + $0xb8] sm:$0xff] }
 0x338   : > { %v2384_v8 = vmax.f32 %v2288_v25, %v9556_v46  ;;  %v1306_v36 = vrot.slane %v9627_v44, 1  ;;  %v1451_v3 = vrot.slane %v9627_v44, 2  ;;  %v1596_v62 = vrot.slane %v9627_v44, 3  ;;  %5154 = vst.msk [vmem:[%s5873_s17 + $0x350] sm:$0xff] %vm148_vm0, %v4901_v48  ;;  %5155 = vst.msk [vmem:[%s5873_s17 + $0x358] sm:$0xff] %vm148_vm0, %v4902_v40  ;;  %v10949_v47 = vld [vmem:[#allocation37_spill] sm:$0xff] }
 0x339   : > { %v2385_v33 = vmax.f32 %v2289_v24, %v2337_v54  ;;  %v1307_v27 = vrot.slane %v9638_v63, 1  ;;  %v1309_v0 = vrot.slane %v9643_v61, 1  ;;  %v1452_v46 = vrot.slane %v9638_v63, 2  ;;  %5157 = vst.msk [vmem:[%s5873_s17 + $0x368] sm:$0xff] %vm148_vm0, %v4904_v39  ;;  %5158 = vst.msk [vmem:[%s5873_s17 + $0x370] sm:$0xff] %vm148_vm0, %v4905_v28  ;;  %v4907_v24 = vld [vmem:[%s5592_s13 + $0x80] sm:$0xff] }
 0x33a   : > { %v2464_v34 = vmax.f32 %v2384_v8, %v9565_v32  ;;  %v1454_v55 = vrot.slane %v9643_v61, 2  ;;  %v1597_v29 = vrot.slane %v9638_v63, 3  ;;  %v1599_v10 = vrot.slane %v9643_v61, 3  ;;  %v4899_v32 = vld [vmem:[%s5592_s13 + $0x40] sm:$0xff]  ;;  %v4908_v8 = vld [vmem:[%s5592_s13 + $0x88] sm:$0xff]  ;;  %5160 = vst.msk [vmem:[%s5873_s17 + $0x380] sm:$0xff] %vm148_vm0, %v4907_v24 }
 0x33b   : > { %v2465_v16 = vmax.f32 %v2385_v33, %v2417_v50  ;;  %v1308_v6 = vsel %vm1255_vm2, %v1306_v36, %v1307_v27  ;;  %v9683_v54 = vsel %vm1255_vm2, %v1307_v27, %v1309_v0  ;;  %v1453_v13 = vsel %vm1400_vm3, %v1451_v3, %v1452_v46  ;;  %5152 = vst.msk [vmem:[%s5873_s17 + $0x340] sm:$0xff] %vm148_vm0, %v4899_v32  ;;  %v4911_v33 = vld [vmem:[%s5592_s13 + $0xa0] sm:$0xff] }
 0x33c   : > { %v2544_v35 = vmax.f32 %v2464_v34, %v9574_v51  ;;  %v1388_v41 = vmax.f32 %v9627_v44, %v1308_v6  ;;  %v1389_v58 = vmax.f32 %v9638_v63, %v9683_v54  ;;  %v9702_v50 = vsel %vm1400_vm3, %v1452_v46, %v1454_v55  ;;  %v4903_v51 = vld [vmem:[%s5592_s13 + $0x60] sm:$0xff]  ;;  %5161 = vst.msk [vmem:[%s5873_s17 + $0x388] sm:$0xff] %vm148_vm0, %v4908_v8  ;;  %v4916_v6 = vld [vmem:[%s5592_s13 + $0xc8] sm:$0xff] }
 0x33d   : > { %v2545_v14 = vmax.f32 %v2465_v16, %v9616_v20  ;;  %v1598_v57 = vsel %vm1545_vm4, %v1596_v62, %v1597_v29  ;;  %v9718_v25 = vsel %vm1545_vm4, %v1597_v29, %v1599_v10  ;;  %v1741_v56 = vrot.slane %v9627_v44, 4  ;;  %5156 = vst.msk [vmem:[%s5873_s17 + $0x360] sm:$0xff] %vm148_vm0, %v4903_v51  ;;  %v4906_v20 = vld [vmem:[%s5592_s13 + $0x78] sm:$0xff]  ;;  %5162 = vst.msk [vmem:[%s5873_s17 + $0x390] sm:$0xff] %vm148_vm0, %v4909_v45  ;;  %v4915_v16 = vld [vmem:[%s5592_s13 + $0xc0] sm:$0xff] }
 0x33e   : > { %v2624_v36 = vmax.f32 %v2544_v35, %v9589_v4  ;;  %v1533_v3 = vmax.f32 %v1388_v41, %v1453_v13  ;;  %v1534_v62 = vmax.f32 %v1389_v58, %v9702_v50  ;;  %v1742_v1 = vrot.slane %v9638_v63, 4  ;;  %5159 = vst.msk [vmem:[%s5873_s17 + $0x378] sm:$0xff] %vm148_vm0, %v4906_v20  ;;  %5163 = vst.msk [vmem:[%s5873_s17 + $0x398] sm:$0xff] %vm148_vm0, %v4910_v37  ;;  %v4917_v13 = vld [vmem:[%s5592_s13 + $0xd0] sm:$0xff]  ;;  %v4918_v35 = vld [vmem:[%s5592_s13 + $0xd8] sm:$0xff] }
 0x33f   : > { %v2625_v4 = vmax.f32 %v2545_v14, %v9622_v31  ;;  %v1744_v27 = vrot.slane %v9643_v61, 4  ;;  %v1886_v46 = vrot.slane %v9627_v44, 5  ;;  %v1887_v59 = vrot.slane %v9638_v63, 5  ;;  %5164 = vst.msk [vmem:[%s5873_s17 + $0x3a0] sm:$0xff] %vm148_vm0, %v4911_v33  ;;  %v4913_v31 = vld [vmem:[%s5592_s13 + $0xb0] sm:$0xff]  ;;  %5165 = vst.msk [vmem:[%s5873_s17 + $0x3a8] sm:$0xff] %vm148_vm0, %v4912_v21 }
 0x340   : > { %2656 = vst.msk [vmem:[%s5873_s17 + $0x90] sm:$0xff] %vm148_vm0, %v2624_v36  ;;  %v1678_v34 = vmax.f32 %v1533_v3, %v1598_v57  ;;  %v1679_v29 = vmax.f32 %v1534_v62, %v9718_v25  ;;  %v1889_v30 = vrot.slane %v9643_v61, 5  ;;  %v996_v32 = vmax.f32 %v10949_v47, %v9428_v49  ;;  %5166 = vst.msk [vmem:[%s5873_s17 + $0x3b0] sm:$0xff] %vm148_vm0, %v4913_v31  ;;  %v4919_v41 = vld [vmem:[%s5592_s13 + $0xe0] sm:$0xff]  ;;  %v4920_v58 = vld [vmem:[%s5592_s13 + $0xe8] sm:$0xff] }
 0x341   : > { %5167 = vst.msk [vmem:[%s5873_s17 + $0x3b8] sm:$0xff] %vm148_vm0, %v4914_v12  ;;  %2657 = vst.msk [vmem:[%s5873_s17 + $0x98] sm:$0xff] %vm148_vm0, %v2625_v4  ;;  %v1743_v60 = vsel %vm1690_vm6, %v1741_v56, %v1742_v1  ;;  %v9776_v49 = vsel %vm1690_vm6, %v1742_v1, %v1744_v27  ;;  %v2031_v48 = vrot.slane %v9627_v44, 6  ;;  %v2032_v40 = vrot.slane %v9638_v63, 6  ;;  %v4921_v57 = vld [vmem:[%s5592_s13 + $0xf0] sm:$0xff]  ;;  %v4922_v56 = vld [vmem:[%s5592_s13 + $0xf8] sm:$0xff] }
 0x342   : > { %5168 = vst.msk [vmem:[%s5873_s17 + $0x3c0] sm:$0xff] %vm148_vm0, %v4915_v16  ;;  %5169 = vst.msk [vmem:[%s5873_s17 + $0x3c8] sm:$0xff] %vm148_vm0, %v4916_v6  ;;  %v1823_v51 = vmax.f32 %v1678_v34, %v1743_v60  ;;  %v1824_v39 = vmax.f32 %v1679_v29, %v9776_v49  ;;  %v1888_v28 = vsel %vm1835_vm9, %v1886_v46, %v1887_v59  ;;  %v2034_v14 = vrot.slane %v9643_v61, 6  ;;  %v10950_v31 = vld [vmem:[#allocation22_spill] sm:$0xff] }
 0x343   : > { %5170 = vst.msk [vmem:[%s5873_s17 + $0x3d0] sm:$0xff] %vm148_vm0, %v4917_v13  ;;  %5171 = vst.msk [vmem:[%s5873_s17 + $0x3d8] sm:$0xff] %vm148_vm0, %v4918_v35  ;;  %v1890_v20 = vsel %vm1835_vm9, %v1887_v59, %v1889_v30  ;;  %v2176_v24 = vrot.slane %v9627_v44, 7  ;;  %v2177_v8 = vrot.slane %v9638_v63, 7  ;;  %v2179_v36 = vrot.slane %v9643_v61, 7 }
 0x344   : > { %5172 = vst.msk [vmem:[%s5873_s17 + $0x3e0] sm:$0xff] %vm148_vm0, %v4919_v41  ;;  %5173 = vst.msk [vmem:[%s5873_s17 + $0x3e8] sm:$0xff] %vm148_vm0, %v4920_v58  ;;  %v1968_v3 = vmax.f32 %v1823_v51, %v1888_v28  ;;  %v1969_v62 = vmax.f32 %v1824_v39, %v1890_v20  ;;  %v2338_v1 = vrot.slane %v9632_v9, 1  ;;  %v2418_v45 = vrot.slane %v9632_v9, 2  ;;  %v5292_v47 = vld [vmem:[#allocation2 + $0x2f8] sm:$0xf] }
 0x345   : > { %5174 = vst.msk [vmem:[%s5873_s17 + $0x3f0] sm:$0xff] %vm148_vm0, %v4921_v57  ;;  %5175 = vst.msk [vmem:[%s5873_s17 + $0x3f8] sm:$0xff] %vm148_vm0, %v4922_v56  ;;  %v2033_v37 = vsel %vm1980_vm10, %v2031_v48, %v2032_v40  ;;  %v2035_v33 = vsel %vm1980_vm10, %v2032_v40, %v2034_v14  ;;  %v2178_v44 = vsel %vm2125_vm7, %v2176_v24, %v2177_v8  ;;  %v2498_v4 = vrot.slane %v9632_v9, 3  ;;  %v9848_v48 = vld [vmem:[#allocation2 + $0x2e0] sm:$0xff]  ;;  %v9853_v40 = vld [vmem:[#allocation2 + $0x2e8] sm:$0xff] }
 0x346   : > { %v2113_v46 = vmax.f32 %v1968_v3, %v2033_v37  ;;  %v2114_v59 = vmax.f32 %v1969_v62, %v2035_v33  ;;  %v2180_v21 = vsel %vm2125_vm7, %v2177_v8, %v2179_v36  ;;  %v997_v12 = vmax.f32 %v10950_v31, %v9435_v23  ;;  %v9860_v51 = vld [vmem:[#allocation2 + $0x2f0] sm:$0xff] }
 0x347   : > { %v2578_v34 = vrot.slane %v9632_v9, 4  ;;  %v1059_v29 = vmax.f32 %v995_v15, %v9527_v17  ;;  %v1060_v30 = vmax.f32 %v996_v32, %v9532_v52  ;;  %v9826_v16 = vmax.f32 %v1126_v5, %v5292_v47  ;;  %v10951_v32 = vld [vmem:[#allocation33_spill] sm:$0xff] }
 0x348   : > { %v2258_v6 = vmax.f32 %v2113_v46, %v2178_v44  ;;  %v2259_v13 = vmax.f32 %v2114_v59, %v2180_v21  ;;  %v2339_v23 = vsel %vm1255_vm2, %v1309_v0, %v2338_v1  ;;  %v1061_v9 = vmax.f32 %v997_v12, %v9537_v53 }
 0x349   : > { %v2419_v18 = vsel %vm1400_vm3, %v1454_v55, %v2418_v45  ;;  %v2499_v42 = vsel %vm1545_vm4, %v1599_v10, %v2498_v4  ;;  %v1123_v2 = vmax.f32 %v1059_v29, %v9624_v11  ;;  %v1124_v38 = vmax.f32 %v1060_v30, %v9635_v22 }
 0x34a   : > { %v2290_v5 = vmax.f32 %v2258_v6, %v9638_v63  ;;  %v2291_v15 = vmax.f32 %v2259_v13, %v9643_v61  ;;  %v1125_v0 = vmax.f32 %v1061_v9, %v9640_v19  ;;  %v999_v60 = vmax.f32 %v10951_v32, %v9527_v17 }
 0x34b   : > { %v2579_v55 = vsel %vm1690_vm6, %v1744_v27, %v2578_v34  ;;  %v9851_v10 = vmax.f32 %v1123_v2, %v9848_v48  ;;  %v9856_v63 = vmax.f32 %v1124_v38, %v9853_v40  ;;  %v2340_v35 = vrot.slane %v9826_v16, 1  ;;  %v10952_v27 = vld [vmem:[#allocation41_spill] sm:$0xff] }
 0x34c   : > { %v2386_v41 = vmax.f32 %v2290_v5, %v9683_v54  ;;  %v2387_v58 = vmax.f32 %v2291_v15, %v2339_v23  ;;  %v9863_v61 = vmax.f32 %v1125_v0, %v9860_v51  ;;  %v1000_v39 = vmax.f32 %v10952_v27, %v9532_v52 }
 0x34d   : > { %v1311_v28 = vrot.slane %v9851_v10, 1  ;;  %v1312_v14 = vrot.slane %v9856_v63, 1  ;;  %v1456_v57 = vrot.slane %v9851_v10, 2  ;;  %v1457_v56 = vrot.slane %v9856_v63, 2 }
 0x34e   : > { %v2466_v20 = vmax.f32 %v2386_v41, %v9702_v50  ;;  %v2467_v54 = vmax.f32 %v2387_v58, %v2419_v18  ;;  %v1314_v24 = vrot.slane %v9863_v61, 1  ;;  %v1459_v8 = vrot.slane %v9863_v61, 2 }
 0x34f   : > { %v1313_v36 = vsel %vm1255_vm2, %v1311_v28, %v1312_v14  ;;  %v1458_v3 = vsel %vm1400_vm3, %v1456_v57, %v1457_v56  ;;  %v1601_v52 = vrot.slane %v9851_v10, 3  ;;  %v1602_v62 = vrot.slane %v9856_v63, 3 }
 0x350   : > { %v2546_v1 = vmax.f32 %v2466_v20, %v9718_v25  ;;  %v2547_v45 = vmax.f32 %v2467_v54, %v2499_v42  ;;  %v9880_v50 = vsel %vm1255_vm2, %v1312_v14, %v1314_v24  ;;  %v1390_v37 = vmax.f32 %v9851_v10, %v1313_v36  ;;  %v10953_v42 = vld [vmem:[#allocation23_spill] sm:$0xff] }
 0x351   : > { %v1391_v33 = vmax.f32 %v9856_v63, %v9880_v50  ;;  %v9886_v44 = vsel %vm1400_vm3, %v1457_v56, %v1459_v8  ;;  %v1603_v4 = vsel %vm1545_vm4, %v1601_v52, %v1602_v62  ;;  %v1604_v46 = vrot.slane %v9863_v61, 3 }
 0x352   : > { %v2626_v25 = vmax.f32 %v2546_v1, %v9776_v49  ;;  %v2627_v59 = vmax.f32 %v2547_v45, %v2579_v55  ;;  %v1535_v21 = vmax.f32 %v1390_v37, %v1458_v3  ;;  %v1746_v31 = vrot.slane %v9851_v10, 4 }
 0x353   : > { %v1536_v12 = vmax.f32 %v1391_v33, %v9886_v44  ;;  %v9894_v34 = vsel %vm1545_vm4, %v1602_v62, %v1604_v46  ;;  %v1747_v29 = vrot.slane %v9856_v63, 4  ;;  %v1749_v30 = vrot.slane %v9863_v61, 4 }
 0x354   : > { %2658 = vst.msk [vmem:[%s5873_s17 + $0xa0] sm:$0xff] %vm148_vm0, %v2626_v25  ;;  %2659 = vst.msk [vmem:[%s5873_s17 + $0xa8] sm:$0xff] %vm148_vm0, %v2627_v59  ;;  %v1680_v47 = vmax.f32 %v1535_v21, %v1603_v4  ;;  %v1891_v49 = vrot.slane %v9851_v10, 5  ;;  %v1892_v6 = vrot.slane %v9856_v63, 5  ;;  %v1894_v13 = vrot.slane %v9863_v61, 5 }
 0x355   : > { %v1681_v23 = vmax.f32 %v1536_v12, %v9894_v34  ;;  %v1748_v9 = vsel %vm1690_vm6, %v1746_v31, %v1747_v29  ;;  %v2036_v18 = vrot.slane %v9851_v10, 6  ;;  %v1001_v2 = vmax.f32 %v10953_v42, %v9537_v53  ;;  %v5296_v21 = vld [vmem:[#allocation2 + $0x318] sm:$0xf] }
 0x356   : > { %v9911_v38 = vsel %vm1690_vm6, %v1747_v29, %v1749_v30  ;;  %v1825_v5 = vmax.f32 %v1680_v47, %v1748_v9  ;;  %v1893_v15 = vsel %vm1835_vm9, %v1891_v49, %v1892_v6  ;;  %v2037_v0 = vrot.slane %v9856_v63, 6  ;;  %v9957_v29 = vld [vmem:[#allocation2 + $0x308] sm:$0xff] }
 0x357   : > { %v1826_v55 = vmax.f32 %v1681_v23, %v9911_v38  ;;  %v2039_v41 = vrot.slane %v9863_v61, 6  ;;  %v2181_v58 = vrot.slane %v9851_v10, 7  ;;  %v2182_v27 = vrot.slane %v9856_v63, 7  ;;  %v10955_v49 = vld [vmem:[#allocation44_spill] sm:$0xff] }
 0x358   : > { %v1895_v28 = vsel %vm1835_vm9, %v1892_v6, %v1894_v13  ;;  %v1970_v14 = vmax.f32 %v1825_v5, %v1893_v15  ;;  %v2184_v53 = vrot.slane %v9863_v61, 7  ;;  %v2420_v57 = vrot.slane %v9826_v16, 2 }
 0x359   : > { %v1971_v56 = vmax.f32 %v1826_v55, %v1895_v28  ;;  %v2038_v20 = vsel %vm1980_vm10, %v2036_v18, %v2037_v0  ;;  %v2500_v54 = vrot.slane %v9826_v16, 3  ;;  %v2580_v36 = vrot.slane %v9826_v16, 4 }
 0x35a   : > { %v2040_v3 = vsel %vm1980_vm10, %v2037_v0, %v2039_v41  ;;  %v2115_v52 = vmax.f32 %v1970_v14, %v2038_v20  ;;  %v2183_v10 = vsel %vm2125_vm7, %v2181_v58, %v2182_v27  ;;  %v2341_v62 = vsel %vm1255_vm2, %v1314_v24, %v2340_v35 }
 0x35b   : > { %v2116_v1 = vmax.f32 %v1971_v56, %v2040_v3  ;;  %v1063_v45 = vmax.f32 %v999_v60, %v9624_v11  ;;  %v1064_v37 = vmax.f32 %v1000_v39, %v9635_v22  ;;  %v1065_v33 = vmax.f32 %v1001_v2, %v9640_v19 }
 0x35c   : > { %v2185_v4 = vsel %vm2125_vm7, %v2182_v27, %v2184_v53  ;;  %v2260_v25 = vmax.f32 %v2115_v52, %v2183_v10  ;;  %v2421_v59 = vsel %vm1400_vm3, %v1459_v8, %v2420_v57  ;;  %v9941_v16 = vmax.f32 %v1130_v26, %v5296_v21  ;;  %v10954_v8 = vld [vmem:[#allocation34_spill] sm:$0xff] }
 0x35d   : > { %v2261_v35 = vmax.f32 %v2116_v1, %v2185_v4  ;;  %v1127_v24 = vmax.f32 %v1063_v45, %v9848_v48  ;;  %v1128_v17 = vmax.f32 %v1064_v37, %v9853_v40  ;;  %v1129_v32 = vmax.f32 %v1065_v33, %v9860_v51 }
 0x35e   : > { %v2292_v60 = vmax.f32 %v2260_v25, %v9856_v63  ;;  %v2501_v39 = vsel %vm1545_vm4, %v1604_v46, %v2500_v54  ;;  %v2581_v31 = vsel %vm1690_vm6, %v1749_v30, %v2580_v36  ;;  %v1003_v12 = vmax.f32 %v10954_v8, %v9624_v11  ;;  %v9962_v63 = vld [vmem:[#allocation2 + $0x310] sm:$0xff] }
 0x35f   : > { %v2293_v43 = vmax.f32 %v2261_v35, %v9863_v61  ;;  %v9955_v26 = vmax.f32 %v1127_v24, %v9952_v7  ;;  %v9960_v47 = vmax.f32 %v1128_v17, %v9957_v29  ;;  %v9965_v46 = vmax.f32 %v1129_v32, %v9962_v63 }
 0x360   : > { %v2388_v30 = vmax.f32 %v2292_v60, %v9880_v50  ;;  %v2342_v11 = vrot.slane %v9941_v16, 1  ;;  %v2422_v61 = vrot.slane %v9941_v16, 2  ;;  %v1004_v6 = vmax.f32 %v10955_v49, %v9635_v22 }
 0x361   : > { %v2389_v13 = vmax.f32 %v2293_v43, %v2341_v62  ;;  %v1316_v23 = vrot.slane %v9955_v26, 1  ;;  %v1317_v9 = vrot.slane %v9960_v47, 1  ;;  %v1319_v18 = vrot.slane %v9965_v46, 1 }
 0x362   : > { %v2468_v42 = vmax.f32 %v2388_v30, %v9886_v44  ;;  %v1461_v2 = vrot.slane %v9955_v26, 2  ;;  %v1462_v50 = vrot.slane %v9960_v47, 2  ;;  %v1464_v5 = vrot.slane %v9965_v46, 2 }
 0x363   : > { %v2469_v15 = vmax.f32 %v2389_v13, %v2421_v59  ;;  %v1318_v0 = vsel %vm1255_vm2, %v1316_v23, %v1317_v9  ;;  %v9981_v22 = vsel %vm1255_vm2, %v1317_v9, %v1319_v18  ;;  %v1606_v55 = vrot.slane %v9955_v26, 3 }
 0x364   : > { %v2548_v41 = vmax.f32 %v2468_v42, %v9894_v34  ;;  %v1392_v58 = vmax.f32 %v9955_v26, %v1318_v0  ;;  %v1393_v44 = vmax.f32 %v9960_v47, %v9981_v22  ;;  %v1463_v27 = vsel %vm1400_vm3, %v1461_v2, %v1462_v50 }
 0x365   : > { %v2549_v28 = vmax.f32 %v2469_v15, %v2501_v39  ;;  %v9990_v14 = vsel %vm1400_vm3, %v1462_v50, %v1464_v5  ;;  %v1607_v53 = vrot.slane %v9960_v47, 3  ;;  %v1609_v57 = vrot.slane %v9965_v46, 3  ;;  %v10956_v39 = vld [vmem:[#allocation24_spill] sm:$0xff] }
 0x366   : > { %v2628_v56 = vmax.f32 %v2548_v41, %v9911_v38  ;;  %v1537_v34 = vmax.f32 %v1392_v58, %v1463_v27  ;;  %v1538_v20 = vmax.f32 %v1393_v44, %v9990_v14  ;;  %v1751_v54 = vrot.slane %v9955_v26, 4 }
 0x367   : > { %v2629_v36 = vmax.f32 %v2549_v28, %v2581_v31  ;;  %v1608_v3 = vsel %vm1545_vm4, %v1606_v55, %v1607_v53  ;;  %v9999_v52 = vsel %vm1545_vm4, %v1607_v53, %v1609_v57  ;;  %v1752_v10 = vrot.slane %v9960_v47, 4 }
 0x368   : > { %2660 = vst.msk [vmem:[%s5873_s17 + $0xb0] sm:$0xff] %vm148_vm0, %v2628_v56  ;;  %v1682_v62 = vmax.f32 %v1537_v34, %v1608_v3  ;;  %v1683_v1 = vmax.f32 %v1538_v20, %v9999_v52  ;;  %v1754_v38 = vrot.slane %v9965_v46, 4  ;;  %v1896_v45 = vrot.slane %v9955_v26, 5  ;;  %v10045_v34 = vld [vmem:[#allocation2 + $0x320] sm:$0xff] }
 0x369   : > { %2661 = vst.msk [vmem:[%s5873_s17 + $0xb8] sm:$0xff] %vm148_vm0, %v2629_v36  ;;  %v1753_v37 = vsel %vm1690_vm6, %v1751_v54, %v1752_v10  ;;  %v1897_v33 = vrot.slane %v9960_v47, 5  ;;  %v1899_v4 = vrot.slane %v9965_v46, 5  ;;  %v2041_v25 = vrot.slane %v9955_v26, 6  ;;  %v10052_v54 = vld [vmem:[#allocation2 + $0x328] sm:$0xff]  ;;  %v10057_v36 = vld [vmem:[#allocation2 + $0x330] sm:$0xff] }
 0x36a   : > { %v10014_v59 = vsel %vm1690_vm6, %v1752_v10, %v1754_v38  ;;  %v1827_v21 = vmax.f32 %v1682_v62, %v1753_v37  ;;  %v2042_v35 = vrot.slane %v9960_v47, 6  ;;  %v2044_v24 = vrot.slane %v9965_v46, 6  ;;  %v10958_v3 = vld [vmem:[#allocation35_spill] sm:$0xff] }
 0x36b   : > { %v1828_v17 = vmax.f32 %v1683_v1, %v10014_v59  ;;  %v1898_v32 = vsel %vm1835_vm9, %v1896_v45, %v1897_v33  ;;  %v2186_v60 = vrot.slane %v9955_v26, 7  ;;  %v1005_v31 = vmax.f32 %v10956_v39, %v9640_v19 }
 0x36c   : > { %v1900_v8 = vsel %vm1835_vm9, %v1897_v33, %v1899_v4  ;;  %v1972_v43 = vmax.f32 %v1827_v21, %v1898_v32  ;;  %v2187_v30 = vrot.slane %v9960_v47, 7  ;;  %v1067_v49 = vmax.f32 %v1003_v12, %v9848_v48 }
 0x36d   : > { %v1973_v13 = vmax.f32 %v1828_v17, %v1900_v8  ;;  %v2043_v23 = vsel %vm1980_vm10, %v2041_v25, %v2042_v35  ;;  %v2189_v9 = vrot.slane %v9965_v46, 7  ;;  %v2502_v42 = vrot.slane %v9941_v16, 3 }
 0x36e   : > { %v2045_v2 = vsel %vm1980_vm10, %v2042_v35, %v2044_v24  ;;  %v2117_v26 = vmax.f32 %v1972_v43, %v2043_v23  ;;  %v2343_v50 = vsel %vm1255_vm2, %v1319_v18, %v2342_v11  ;;  %v2582_v19 = vrot.slane %v9941_v16, 4  ;;  %v10957_v16 = vld [vmem:[#allocation68_spill] sm:$0xff] }
 0x36f   : > { %v2118_v15 = vmax.f32 %v1973_v13, %v2045_v2  ;;  %v2188_v0 = vsel %vm2125_vm7, %v2186_v60, %v2187_v30  ;;  %v1068_v55 = vmax.f32 %v1004_v6, %v9853_v40  ;;  %v1069_v12 = vmax.f32 %v1005_v31, %v9860_v51 }
 0x370   : > { %v2190_v41 = vsel %vm2125_vm7, %v2187_v30, %v2189_v9  ;;  %v2262_v58 = vmax.f32 %v2117_v26, %v2188_v0  ;;  %v2423_v44 = vsel %vm1400_vm3, %v1464_v5, %v2422_v61  ;;  %v1131_v27 = vmax.f32 %v1067_v49, %v9952_v7 }
 0x371   : > { %v2263_v28 = vmax.f32 %v2118_v15, %v2190_v41  ;;  %v2503_v11 = vsel %vm1545_vm4, %v1609_v57, %v2502_v42  ;;  %v1132_v18 = vmax.f32 %v1068_v55, %v9957_v29  ;;  %v1133_v53 = vmax.f32 %v1069_v12, %v9962_v63 }
 0x372   : > { %v2294_v6 = vmax.f32 %v2262_v58, %v9960_v47  ;;  %v2583_v56 = vsel %vm1690_vm6, %v1754_v38, %v2582_v19  ;;  %v10048_v20 = vmax.f32 %v1131_v27, %v10045_v34  ;;  %v2344_v61 = vrot.slane %v10957_v16, 1 }
 0x373   : > { %v2295_v5 = vmax.f32 %v2263_v28, %v9965_v46  ;;  %v10055_v57 = vmax.f32 %v1132_v18, %v10052_v54  ;;  %v10060_v47 = vmax.f32 %v1133_v53, %v10057_v36  ;;  %v1007_v10 = vmax.f32 %v10958_v3, %v9848_v48  ;;  %v10153_v48 = vld [vmem:[#allocation2 + $0x348] sm:$0xff] }
 0x374   : > { %v2390_v62 = vmax.f32 %v2294_v6, %v9981_v22  ;;  %v1321_v1 = vrot.slane %v10048_v20, 1  ;;  %v1466_v38 = vrot.slane %v10048_v20, 2  ;;  %v1611_v46 = vrot.slane %v10048_v20, 3  ;;  %v10115_v6 = vld [vmem:[#allocation2 + $0x358] sm:$0xf] }
 0x375   : > { %v2391_v45 = vmax.f32 %v2295_v5, %v2343_v50  ;;  %v1322_v37 = vrot.slane %v10055_v57, 1  ;;  %v1324_v33 = vrot.slane %v10060_v47, 1  ;;  %v1467_v4 = vrot.slane %v10055_v57, 2 }
 0x376   : > { %v2470_v25 = vmax.f32 %v2390_v62, %v9990_v14  ;;  %v1469_v21 = vrot.slane %v10060_v47, 2  ;;  %v1612_v35 = vrot.slane %v10055_v57, 3  ;;  %v1614_v22 = vrot.slane %v10060_v47, 3 }
 0x377   : > { %v2471_v24 = vmax.f32 %v2391_v45, %v2423_v44  ;;  %v1323_v17 = vsel %vm1255_vm2, %v1321_v1, %v1322_v37  ;;  %v10077_v32 = vsel %vm1255_vm2, %v1322_v37, %v1324_v33  ;;  %v1468_v60 = vsel %vm1400_vm3, %v1466_v38, %v1467_v4  ;;  %v10960_v1 = vld [vmem:[#allocation66_spill] sm:$0xff]  ;;  %v10961_v38 = vld [vmem:[#allocation67_spill] sm:$0xff] }
 0x378   : > { %v2550_v39 = vmax.f32 %v2470_v25, %v9999_v52  ;;  %v1394_v31 = vmax.f32 %v10048_v20, %v1323_v17  ;;  %v1395_v14 = vmax.f32 %v10055_v57, %v10077_v32  ;;  %v10085_v8 = vsel %vm1400_vm3, %v1467_v4, %v1469_v21 }
 0x379   : > { %v2551_v43 = vmax.f32 %v2471_v24, %v2503_v11  ;;  %v1613_v30 = vsel %vm1545_vm4, %v1611_v46, %v1612_v35  ;;  %v10089_v49 = vsel %vm1545_vm4, %v1612_v35, %v1614_v22  ;;  %v1756_v13 = vrot.slane %v10048_v20, 4 }
 0x37a   : > { %v2630_v52 = vmax.f32 %v2550_v39, %v10014_v59  ;;  %v1539_v23 = vmax.f32 %v1394_v31, %v1468_v60  ;;  %v1540_v9 = vmax.f32 %v1395_v14, %v10085_v8  ;;  %v1757_v42 = vrot.slane %v10055_v57, 4  ;;  %v10959_v59 = vld [vmem:[#allocation45_spill] sm:$0xff] }
 0x37b   : > { %v2631_v2 = vmax.f32 %v2551_v43, %v2583_v56  ;;  %v1759_v26 = vrot.slane %v10060_v47, 4  ;;  %v1901_v50 = vrot.slane %v10048_v20, 5  ;;  %v1902_v19 = vrot.slane %v10055_v57, 5  ;;  %v10963_v14 = vld [vmem:[#allocation25_spill] sm:$0xff] }
 0x37c   : > { %2662 = vst.msk [vmem:[%s5873_s17 + $0xc0] sm:$0xff] %vm148_vm0, %v2630_v52  ;;  %v1684_v15 = vmax.f32 %v1539_v23, %v1613_v30  ;;  %v1685_v0 = vmax.f32 %v1540_v9, %v10089_v49  ;;  %v1904_v55 = vrot.slane %v10060_v47, 5  ;;  %v1008_v12 = vmax.f32 %v10959_v59, %v9853_v40 }
 0x37d   : > { %2663 = vst.msk [vmem:[%s5873_s17 + $0xc8] sm:$0xff] %vm148_vm0, %v2631_v2  ;;  %v1758_v41 = vsel %vm1690_vm6, %v1756_v13, %v1757_v42  ;;  %v10108_v58 = vsel %vm1690_vm6, %v1757_v42, %v1759_v26  ;;  %v2046_v44 = vrot.slane %v10048_v20, 6  ;;  %v2047_v27 = vrot.slane %v10055_v57, 6 }
 0x37e   : > { %v1829_v28 = vmax.f32 %v1684_v15, %v1758_v41  ;;  %v1830_v11 = vmax.f32 %v1685_v0, %v10108_v58  ;;  %v1903_v18 = vsel %vm1835_vm9, %v1901_v50, %v1902_v19  ;;  %v2049_v53 = vrot.slane %v10060_v47, 6  ;;  %v10964_v50 = vld [vmem:[#allocation38_spill] sm:$0xff]  ;;  %v10151_v15 = vld [vmem:[#allocation2 + $0x340] sm:$0xff] }
 0x37f   : > { %v1905_v40 = vsel %vm1835_vm9, %v1902_v19, %v1904_v55  ;;  %v2191_v56 = vrot.slane %v10048_v20, 7  ;;  %v2192_v5 = vrot.slane %v10055_v57, 7  ;;  %v2194_v62 = vrot.slane %v10060_v47, 7  ;;  %v10966_v41 = vld [vmem:[#allocation26_spill] sm:$0xff] }
 0x380   : > { %v10962_v46 = vmax.f32 %v10960_v1, %v10961_v38  ;;  %v1974_v37 = vmax.f32 %v1829_v28, %v1903_v18  ;;  %v1975_v4 = vmax.f32 %v1830_v11, %v1905_v40  ;;  %v2424_v25 = vrot.slane %v10957_v16, 2 }
 0x381   : > { %v2048_v35 = vsel %vm1980_vm10, %v2046_v44, %v2047_v27  ;;  %v2050_v24 = vsel %vm1980_vm10, %v2047_v27, %v2049_v53  ;;  %v2504_v20 = vrot.slane %v10957_v16, 3  ;;  %v2584_v17 = vrot.slane %v10957_v16, 4 }
 0x382   : > { %v10125_v45 = vmax.f32 %v10962_v46, %v10115_v6  ;;  %v2119_v60 = vmax.f32 %v1974_v37, %v2048_v35  ;;  %v2120_v39 = vmax.f32 %v1975_v4, %v2050_v24  ;;  %v2345_v31 = vsel %vm1255_vm2, %v1324_v33, %v2344_v61 }
 0x383   : > { %v1009_v43 = vmax.f32 %v10963_v14, %v9860_v51  ;;  %v2193_v30 = vsel %vm2125_vm7, %v2191_v56, %v2192_v5  ;;  %v2195_v13 = vsel %vm2125_vm7, %v2192_v5, %v2194_v62  ;;  %v1071_v52 = vmax.f32 %v1007_v10, %v9952_v7 }
 0x384   : > { %v1072_v23 = vmax.f32 %v1008_v12, %v9957_v29  ;;  %v2264_v9 = vmax.f32 %v2119_v60, %v2193_v30  ;;  %v2265_v42 = vmax.f32 %v2120_v39, %v2195_v13  ;;  %v2425_v16 = vsel %vm1400_vm3, %v1469_v21, %v2424_v25 }
 0x385   : > { %v1073_v61 = vmax.f32 %v1009_v43, %v9962_v63  ;;  %v2505_v33 = vsel %vm1545_vm4, %v1614_v22, %v2504_v20  ;;  %v1135_v51 = vmax.f32 %v1071_v52, %v10045_v34  ;;  %v1011_v19 = vmax.f32 %v10964_v50, %v9952_v7  ;;  %v10159_v22 = vld [vmem:[#allocation2 + $0x350] sm:$0xff] }
 0x386   : > { %v1136_v2 = vmax.f32 %v1072_v23, %v10052_v54  ;;  %v2296_v3 = vmax.f32 %v2264_v9, %v10055_v57  ;;  %v2297_v10 = vmax.f32 %v2265_v42, %v10060_v47  ;;  %v2585_v21 = vsel %vm1690_vm6, %v1759_v26, %v2584_v17  ;;  %v10965_v7 = vld [vmem:[#allocation53_spill] sm:$0xff] }
 0x387   : > { %v1137_v0 = vmax.f32 %v1073_v61, %v10057_v36  ;;  %v10162_v55 = vmax.f32 %v1135_v51, %v10151_v15  ;;  %v1012_v12 = vmax.f32 %v10965_v7, %v9957_v29  ;;  %v1013_v57 = vmax.f32 %v10966_v41, %v9962_v63 }
 0x388   : > { %v10165_v59 = vmax.f32 %v1136_v2, %v10153_v48  ;;  %v2392_v47 = vmax.f32 %v2296_v3, %v10077_v32  ;;  %v2393_v44 = vmax.f32 %v2297_v10, %v2345_v31  ;;  %v10176_v27 = vmax.f32 %v1011_v19, %v10045_v34 }
 0x389   : > { %v10173_v26 = vmax.f32 %v1137_v0, %v10159_v22  ;;  %v1326_v28 = vrot.slane %v10162_v55, 1  ;;  %v1471_v18 = vrot.slane %v10162_v55, 2  ;;  %v1616_v62 = vrot.slane %v10162_v55, 3 }
 0x38a   : > { %v1327_v11 = vrot.slane %v10165_v59, 1  ;;  %v1472_v29 = vrot.slane %v10165_v59, 2  ;;  %v2472_v53 = vmax.f32 %v2392_v47, %v10085_v8  ;;  %v2473_v40 = vmax.f32 %v2393_v44, %v2425_v16 }
 0x38b   : > { %v1329_v32 = vrot.slane %v10173_v26, 1  ;;  %v1474_v56 = vrot.slane %v10173_v26, 2  ;;  %v1617_v1 = vrot.slane %v10165_v59, 3  ;;  %v1619_v35 = vrot.slane %v10173_v26, 3 }
 0x38c   : > { %v1328_v5 = vsel %vm1255_vm2, %v1326_v28, %v1327_v11  ;;  %v1473_v34 = vsel %vm1400_vm3, %v1471_v18, %v1472_v29  ;;  %v2552_v38 = vmax.f32 %v2472_v53, %v10089_v49  ;;  %v2553_v46 = vmax.f32 %v2473_v40, %v2505_v33  ;;  %v436_v18 = vld [vmem:[#allocation2 + $0x368] sm:$0xff] }
 0x38d   : > { %v10193_v8 = vsel %vm1255_vm2, %v1327_v11, %v1329_v32  ;;  %v1396_v37 = vmax.f32 %v10162_v55, %v1328_v5  ;;  %v10201_v25 = vsel %vm1400_vm3, %v1472_v29, %v1474_v56  ;;  %v1618_v49 = vsel %vm1545_vm4, %v1616_v62, %v1617_v1  ;;  %v435_v11 = vld [vmem:[#allocation2 + $0x360] sm:$0xff] }
 0x38e   : > { %v1397_v4 = vmax.f32 %v10165_v59, %v10193_v8  ;;  %v2632_v24 = vmax.f32 %v2552_v38, %v10108_v58  ;;  %v2633_v20 = vmax.f32 %v2553_v46, %v2585_v21  ;;  %v1761_v60 = vrot.slane %v10162_v55, 4  ;;  %v437_v38 = vld [vmem:[#allocation2 + $0x370] sm:$0xff] }
 0x38f   : > { %v1541_v17 = vmax.f32 %v1396_v37, %v1473_v34  ;;  %v10209_v31 = vsel %vm1545_vm4, %v1617_v1, %v1619_v35  ;;  %v1762_v14 = vrot.slane %v10165_v59, 4  ;;  %v1764_v43 = vrot.slane %v10173_v26, 4  ;;  %v10967_v46 = vld [vmem:[#allocation69_spill] sm:$0xff] }
 0x390   : > { %v1542_v39 = vmax.f32 %v1397_v4, %v10201_v25  ;;  %2664 = vst.msk [vmem:[%s5873_s17 + $0xd0] sm:$0xff] %vm148_vm0, %v2632_v24  ;;  %2665 = vst.msk [vmem:[%s5873_s17 + $0xd8] sm:$0xff] %vm148_vm0, %v2633_v20  ;;  %v1906_v58 = vrot.slane %v10162_v55, 5  ;;  %v1907_v13 = vrot.slane %v10165_v59, 5  ;;  %v1909_v52 = vrot.slane %v10173_v26, 5 }
 0x391   : > { %v1686_v30 = vmax.f32 %v1541_v17, %v1618_v49  ;;  %v1763_v9 = vsel %vm1690_vm6, %v1761_v60, %v1762_v14  ;;  %v2051_v42 = vrot.slane %v10162_v55, 6  ;;  %v1076_v16 = vmax.f32 %v1012_v12, %v10052_v54 }
 0x392   : > { %v1687_v23 = vmax.f32 %v1542_v39, %v10209_v31  ;;  %v10225_v61 = vsel %vm1690_vm6, %v1762_v14, %v1764_v43  ;;  %v1908_v51 = vsel %vm1835_vm9, %v1906_v58, %v1907_v13  ;;  %v2052_v2 = vrot.slane %v10165_v59, 6 }
 0x393   : > { %v1831_v33 = vmax.f32 %v1686_v30, %v1763_v9  ;;  %v2054_v19 = vrot.slane %v10173_v26, 6  ;;  %v2196_v3 = vrot.slane %v10162_v55, 7  ;;  %v2197_v10 = vrot.slane %v10165_v59, 7 }
 0x394   : > { %v1832_v50 = vmax.f32 %v1687_v23, %v10225_v61  ;;  %v1910_v21 = vsel %vm1835_vm9, %v1907_v13, %v1909_v52  ;;  %v2199_v54 = vrot.slane %v10173_v26, 7  ;;  %v2346_v7 = vrot.slane %v10125_v45, 1 }
 0x395   : > { %v1976_v0 = vmax.f32 %v1831_v33, %v1908_v51  ;;  %v2053_v47 = vsel %vm1980_vm10, %v2051_v42, %v2052_v2  ;;  %v2426_v44 = vrot.slane %v10125_v45, 2  ;;  %v2506_v28 = vrot.slane %v10125_v45, 3 }
 0x396   : > { %v1977_v12 = vmax.f32 %v1832_v50, %v1910_v21  ;;  %v2055_v55 = vsel %vm1980_vm10, %v2052_v2, %v2054_v19  ;;  %v2198_v53 = vsel %vm2125_vm7, %v2196_v3, %v2197_v10  ;;  %v2586_v40 = vrot.slane %v10125_v45, 4 }
 0x397   : > { %v2121_v29 = vmax.f32 %v1976_v0, %v2053_v47  ;;  %v1077_v34 = vmax.f32 %v1013_v57, %v10057_v36  ;;  %v1139_v62 = vmax.f32 %v10176_v27, %v10151_v15  ;;  %v1140_v1 = vmax.f32 %v1076_v16, %v10153_v48  ;;  %v438_v47 = vld [vmem:[#allocation2 + $0x378] sm:$0xf] }
 0x398   : > { %v2122_v5 = vmax.f32 %v1977_v12, %v2055_v55  ;;  %v1142_v37 = vmax.f32 %v10967_v46, %v10115_v6  ;;  %v2200_v4 = vsel %vm2125_vm7, %v2197_v10, %v2199_v54  ;;  %v2347_v45 = vsel %vm1255_vm2, %v1329_v32, %v2346_v7 }
 0x399   : > { %v2266_v49 = vmax.f32 %v2121_v29, %v2198_v53  ;;  %v1141_v63 = vmax.f32 %v1077_v34, %v10159_v22  ;;  %v10256_v36 = vmax.f32 %v1139_v62, %v435_v11  ;;  %v10258_v41 = vmax.f32 %v1140_v1, %v436_v18 }
 0x39a   : > { %v2267_v24 = vmax.f32 %v2122_v5, %v2200_v4  ;;  %v2427_v6 = vsel %vm1400_vm3, %v1474_v56, %v2426_v44  ;;  %v2507_v48 = vsel %vm1545_vm4, %v1619_v35, %v2506_v28  ;;  %v2587_v57 = vsel %vm1690_vm6, %v1764_v43, %v2586_v40 }
 0x39b   : > { %v2298_v15 = vmax.f32 %v2266_v49, %v10165_v59  ;;  %v10267_v32 = vmax.f32 %v1141_v63, %v437_v38  ;;  %v1331_v22 = vrot.slane %v10256_v36, 1  ;;  %v1332_v20 = vrot.slane %v10258_v41, 1 }
 0x39c   : > { %v2299_v27 = vmax.f32 %v2267_v24, %v10173_v26  ;;  %v1476_v59 = vrot.slane %v10256_v36, 2  ;;  %v1477_v60 = vrot.slane %v10258_v41, 2  ;;  %v1621_v56 = vrot.slane %v10256_v36, 3 }
 0x39d   : > { %v2394_v17 = vmax.f32 %v2298_v15, %v10193_v8  ;;  %v1333_v35 = vsel %vm1255_vm2, %v1331_v22, %v1332_v20  ;;  %v1334_v14 = vrot.slane %v10267_v32, 1  ;;  %v1479_v26 = vrot.slane %v10267_v32, 2 }
 0x39e   : > { %v2395_v39 = vmax.f32 %v2299_v27, %v2347_v45  ;;  %v1398_v30 = vmax.f32 %v10256_v36, %v1333_v35  ;;  %v1478_v58 = vsel %vm1400_vm3, %v1476_v59, %v1477_v60  ;;  %v1622_v8 = vrot.slane %v10258_v41, 3 }
 0x39f   : > { %v2474_v43 = vmax.f32 %v2394_v17, %v10201_v25  ;;  %v1335_v52 = vsel %vm1255_vm2, %v1332_v20, %v1334_v14  ;;  %v1480_v23 = vsel %vm1400_vm3, %v1477_v60, %v1479_v26  ;;  %v1624_v9 = vrot.slane %v10267_v32, 3 }
 0x3a0   : > { %v2475_v13 = vmax.f32 %v2395_v39, %v2427_v6  ;;  %v1399_v16 = vmax.f32 %v10258_v41, %v1335_v52  ;;  %v1543_v33 = vmax.f32 %v1398_v30, %v1478_v58  ;;  %v1623_v25 = vsel %vm1545_vm4, %v1621_v56, %v1622_v8 }
 0x3a1   : > { %v2554_v42 = vmax.f32 %v2474_v43, %v10209_v31  ;;  %v1625_v2 = vsel %vm1545_vm4, %v1622_v8, %v1624_v9  ;;  %v1766_v50 = vrot.slane %v10256_v36, 4  ;;  %v1767_v19 = vrot.slane %v10258_v41, 4 }
 0x3a2   : > { %v2555_v51 = vmax.f32 %v2475_v13, %v2507_v48  ;;  %v1544_v10 = vmax.f32 %v1399_v16, %v1480_v23  ;;  %v1688_v21 = vmax.f32 %v1543_v33, %v1623_v25  ;;  %v1769_v31 = vrot.slane %v10267_v32, 4 }
 0x3a3   : > { %v2634_v3 = vmax.f32 %v2554_v42, %v10225_v61  ;;  %v1768_v54 = vsel %vm1690_vm6, %v1766_v50, %v1767_v19  ;;  %v1911_v7 = vrot.slane %v10256_v36, 5  ;;  %v1912_v12 = vrot.slane %v10258_v41, 5 }
 0x3a4   : > { %v2635_v0 = vmax.f32 %v2555_v51, %v2587_v57  ;;  %v1689_v44 = vmax.f32 %v1544_v10, %v1625_v2  ;;  %v1770_v28 = vsel %vm1690_vm6, %v1767_v19, %v1769_v31  ;;  %v1833_v11 = vmax.f32 %v1688_v21, %v1768_v54 }
 0x3a5   : > { %2666 = vst.msk [vmem:[%s5873_s17 + $0xe0] sm:$0xff] %vm148_vm0, %v2634_v3  ;;  %v1914_v61 = vrot.slane %v10267_v32, 5  ;;  %v1913_v18 = vsel %vm1835_vm9, %v1911_v7, %v1912_v12  ;;  %v2056_v55 = vrot.slane %v10256_v36, 6  ;;  %v2057_v29 = vrot.slane %v10258_v41, 6 }
 0x3a6   : > { %2667 = vst.msk [vmem:[%s5873_s17 + $0xe8] sm:$0xff] %vm148_vm0, %v2635_v0  ;;  %v2059_v53 = vrot.slane %v10267_v32, 6  ;;  %v1834_v40 = vmax.f32 %v1689_v44, %v1770_v28  ;;  %v1978_v5 = vmax.f32 %v1833_v11, %v1913_v18  ;;  %v2201_v34 = vrot.slane %v10256_v36, 7 }
 0x3a7   : > { %v1206_v62 = vmax.f32 %v1142_v37, %v438_v47  ;;  %v1915_v1 = vsel %vm1835_vm9, %v1912_v12, %v1914_v61  ;;  %v2058_v38 = vsel %vm1980_vm10, %v2056_v55, %v2057_v29  ;;  %v2202_v46 = vrot.slane %v10258_v41, 7 }
 0x3a8   : > { %v2204_v4 = vrot.slane %v10267_v32, 7  ;;  %v1979_v49 = vmax.f32 %v1834_v40, %v1915_v1  ;;  %v2123_v45 = vmax.f32 %v1978_v5, %v2058_v38  ;;  %v2060_v24 = vsel %vm1980_vm10, %v2057_v29, %v2059_v53 }
 0x3a9   : > { %v2203_v63 = vsel %vm2125_vm7, %v2201_v34, %v2202_v46  ;;  %v2348_v36 = vrot.slane %v1206_v62, 1  ;;  %v2428_v27 = vrot.slane %v1206_v62, 2  ;;  %v2508_v59 = vrot.slane %v1206_v62, 3 }
 0x3aa   : > { %v2124_v15 = vmax.f32 %v1979_v49, %v2060_v24  ;;  %v2268_v6 = vmax.f32 %v2123_v45, %v2203_v63  ;;  %v2205_v48 = vsel %vm2125_vm7, %v2202_v46, %v2204_v4  ;;  %v2588_v35 = vrot.slane %v1206_v62, 4 }
 0x3ab   : > { %v2349_v17 = vsel %vm1255_vm2, %v1334_v14, %v2348_v36  ;;  %v2429_v39 = vsel %vm1400_vm3, %v1479_v26, %v2428_v27  ;;  %v2509_v58 = vsel %vm1545_vm4, %v1624_v9, %v2508_v59 }
 0x3ac   : > { %v2269_v37 = vmax.f32 %v2124_v15, %v2205_v48  ;;  %v2300_v57 = vmax.f32 %v2268_v6, %v10258_v41  ;;  %v2589_v13 = vsel %vm1690_vm6, %v1769_v31, %v2588_v35 }
 0x3ae   : > { %v2396_v22 = vmax.f32 %v2300_v57, %v1335_v52  ;;  %v2301_v20 = vmax.f32 %v2269_v37, %v10267_v32 }
 0x3b0   : > { %v2476_v60 = vmax.f32 %v2396_v22, %v1480_v23  ;;  %v2397_v56 = vmax.f32 %v2301_v20, %v2349_v17 }
 0x3b2   : > { %v2556_v43 = vmax.f32 %v2476_v60, %v1625_v2  ;;  %v2477_v30 = vmax.f32 %v2397_v56, %v2429_v39 }
 0x3b4   : > { %v2636_v8 = vmax.f32 %v2556_v43, %v1770_v28  ;;  %v2557_v41 = vmax.f32 %v2477_v30, %v2509_v58 }
 0x3b6   : > { %2668 = vst.msk [vmem:[%s5873_s17 + $0xf0] sm:$0xff] %vm148_vm0, %v2636_v8  ;;  %v2637_v52 = vmax.f32 %v2557_v41, %v2589_v13 }
 0x3b8   : > { %2669 = vst.msk [vmem:[%s5873_s17 + $0xf8] sm:$0xff] %vm148_vm0, %v2637_v52 }
 0x3b9 PF: > { %s11_s8 = sadd.s32 1, %s5325_s8   ;;  %s10968_s6 = smov %s5321_s7 }
 0x3ba   : > { %p8_p5 = scmp.ge.s32.totalorder %s11_s8, 4   ;;  %s10969_s7 = smov %s10971_s9 }
 0x3bc   :  { %10 = sbr.rel (!%p8_p5) target bundleno = 2 (0x2), region = 58 }

</bundles_post_ra>
